<compile_context>
chip_gen: v7x
topology: tpu7x:2x2x1
jax: 0.10.0
libtpu: 0.0.40
codegen_flags: <defaults>
</compile_context>

<pallas_src>
import math

import jax
import jax.numpy as jnp
from jax import lax
from jax.experimental import pallas as pl
from jax.experimental.pallas import tpu as pltpu

EPS = 1e-5


def resnet_block_pallas(x_nchw, params):
    """x_nchw: (N, C, H, W) float32. Returns (N, C, H, W) float32."""
    w1, b1, g1, be1, w2, b2, g2, be2 = params
    N, C, H, W = x_nchw.shape
    Wp = W + 2                                   # padded width (conv pad = 1)
    # Slack rows keep every tap's flat shift in-bounds; TOP is chosen so that
    # the first data row starts at an 8-aligned sublane offset.
    TOP = max(1, 8 // math.gcd(Wp, 8) - 1)
    BOT = 1
    R = H + TOP + BOT + 2                        # slack + pad + H + pad + slack
    P = R * Wp                                   # flat padded length
    Np = H * Wp                                  # flat conv-output length
    D = (TOP + 1) * Wp                           # first data row offset (8-aligned)

    # ---- host-side layout prep (cheap XLA ops) ------------------------------
    x = jnp.transpose(x_nchw, (0, 2, 3, 1)).astype(jnp.float32)        # NHWC
    xpad = jnp.pad(x, ((0, 0), (TOP + 1, BOT + 1), (1, 1), (0, 0)))
    xflat = xpad.reshape(N, P, C)                                      # f32

    # torch conv weight (Cout, Cin, 3, 3) -> per-tap (9, Cin, Cout), bf16
    w1t = jnp.transpose(w1, (2, 3, 1, 0)).reshape(9, C, C).astype(jnp.bfloat16)
    w2t = jnp.transpose(w2, (2, 3, 1, 0)).reshape(9, C, C).astype(jnp.bfloat16)
    zc = jnp.zeros((C,), jnp.float32)
    prm = jnp.stack([b1, g1, be1, b2, g2, be2, zc, zc], axis=0)        # (8, C)

    # interior-column mask (cols 1..W are real pixels; 0 / W+1 are padding),
    # computed once on the host instead of per grid step in the kernel.
    col = jnp.arange(Np, dtype=jnp.int32) % Wp
    colmask = ((col >= 1) & (col <= W)).astype(jnp.float32).reshape(Np, 1)

    # tap (dy, dx) reads buffer position (row + dy - 1, col + dx - 1):
    # a constant flat shift of the slab.
    shifts = tuple((TOP + dy) * Wp + dx - 1
                   for dy in range(3) for dx in range(3))
    inv_hw = 1.0 / float(H * W)

    # ---- kernel -------------------------------------------------------------
    def kernel(x_ref, w1_ref, w2_ref, prm_ref, mask_ref, out_ref, pad_ref):
        x32 = x_ref[0]                            # (P, C) f32
        x_bf = x32.astype(jnp.bfloat16)           # one bf16 copy for the MXU
        mask = mask_ref[...]                      # (Np, 1) f32

        def conv3x3(src_bf, w_ref, bias):
            # 9 taps, each a constant flat shift -> bf16 MXU matmul, f32 acc.
            acc = jnp.zeros((Np, C), jnp.float32)
            for t, s in enumerate(shifts):
                acc = acc + jnp.dot(src_bf[s:s + Np], w_ref[t],
                                    preferred_element_type=jnp.float32)
            return acc + bias

        def inst_norm(y, gamma, beta):
            # fused single-pass stats over the interior (biased variance)
            ym = y * mask
            s1 = jnp.sum(ym, axis=0, keepdims=True)
            s2 = jnp.sum(ym * y, axis=0, keepdims=True)
            mean = s1 * inv_hw
            var = jnp.maximum(s2 * inv_hw - mean * mean, 0.0)
            return (y - mean) * lax.rsqrt(var + EPS) * gamma + beta

        b1v, g1v, be1v = prm_ref[0:1, :], prm_ref[1:2, :], prm_ref[2:3, :]
        b2v, g2v, be2v = prm_ref[3:4, :], prm_ref[4:5, :], prm_ref[5:6, :]

        # conv1 -> IN -> ReLU.  Masking the junk border columns to zero also
        # provides conv2's left/right zero padding in the flat layout.
        y1 = conv3x3(x_bf, w1_ref, b1v)
        y1 = jnp.maximum(inst_norm(y1, g1v, be1v), 0.0) * mask

        # Stage y1 (bf16) in the flat padded scratch: zero only the border
        # rows (cheap, and safe under a parallel batch axis); the interior
        # store starts at the 8-aligned offset D.
        pad_ref[0:D, :] = jnp.zeros((D, C), jnp.bfloat16)
        pad_ref[D + Np:P, :] = jnp.zeros((P - D - Np, C), jnp.bfloat16)
        pad_ref[D:D + Np, :] = y1.astype(jnp.bfloat16)

        # conv2 -> IN
        y2 = conv3x3(pad_ref[...], w2_ref, b2v)
        y2 = inst_norm(y2, g2v, be2v)

        # residual add in f32 (junk columns just get x's zero padding)
        out_ref[0] = x32[D:D + Np] + y2

    # ---- pallas_call --------------------------------------------------------
    # per-step VMEM footprint estimate (double-buffered I/O + f32 temps)
    est = (2 * P * C * 4 + 2 * Np * C * 4            # x / out blocks
           + 2 * (2 * 9 * C * C * 2 + 8 * C * 4)     # weights + params
           + 2 * P * C * 2                           # scratch + bf16 x copy
           + 8 * Np * C * 4)                         # f32 temporaries
    vmem_limit = int(min(max(2 * est, 32 * 1024 * 1024), 64 * 1024 * 1024))

    def run(single_buffer_consts):
        def const_spec(shape):
            idx = lambda n, _r=len(shape): (0,) * _r
            if single_buffer_consts:
                return pl.BlockSpec(shape, idx, pipeline_mode=pl.Buffered(1))
            return pl.BlockSpec(shape, idx)

        grid_spec = pltpu.PrefetchScalarGridSpec(
            num_scalar_prefetch=0,
            grid=(N,),
            in_specs=[
                pl.BlockSpec((1, P, C), lambda n: (n, 0, 0)),
                const_spec((9, C, C)),
                const_spec((9, C, C)),
                const_spec((8, C)),
                const_spec((Np, 1)),
            ],
            out_specs=pl.BlockSpec((1, Np, C), lambda n: (n, 0, 0)),
            scratch_shapes=[pltpu.VMEM((P, C), jnp.bfloat16)],
        )
        return pl.pallas_call(
            kernel,
            out_shape=jax.ShapeDtypeStruct((N, Np, C), jnp.float32),
            grid_spec=grid_spec,
            compiler_params=pltpu.CompilerParams(
                dimension_semantics=("parallel",),
                vmem_limit_bytes=vmem_limit),
        )(xflat, w1t, w2t, prm, colmask)

    try:
        out_flat = run(single_buffer_consts=True)
    except Exception:
        # pipeline_mode=pl.Buffered(1) not supported by this jax/libtpu:
        # fall back to default double-buffered constant operands.
        out_flat = run(single_buffer_consts=False)

    out = out_flat.reshape(N, H, Wp, C)[:, :, 1:W + 1, :]
    return jnp.transpose(out, (0, 3, 1, 2))                           # NCHW


def resnet_block_ref(x, params, matmul_dtype=jnp.float32):
    """Pure-JAX reference (NCHW), mirrors the PyTorch forward.

    matmul_dtype=jnp.bfloat16 mirrors the kernel's bf16 MXU inputs (f32
    accumulation, f32 norm/residual) for a tight numerical comparison.
    """
    w1, b1, g1, be1, w2, b2, g2, be2 = params

    def conv(v, w, b):
        y = lax.conv_general_dilated(
            v.astype(matmul_dtype), w.astype(matmul_dtype),
            window_strides=(1, 1), padding=((1, 1), (1, 1)),
            dimension_numbers=('NCHW', 'OIHW', 'NCHW'),
            preferred_element_type=jnp.float32)
        return y + b[None, :, None, None]

    def inorm(y, g, be):
        mean = jnp.mean(y, axis=(2, 3), keepdims=True)
        var = jnp.mean((y - mean) ** 2, axis=(2, 3), keepdims=True)
        return ((y - mean) * lax.rsqrt(var + EPS)
                * g[None, :, None, None] + be[None, :, None, None])

    y = jnp.maximum(inorm(conv(x, w1, b1), g1, be1), 0.0)
    y = inorm(conv(y, w2, b2), g2, be2)
    return x + y


def init_params(key, dim):
    ks = jax.random.split(key, 4)
    scale = 1.0 / (dim * 9) ** 0.5
    w1 = jax.random.normal(ks[0], (dim, dim, 3, 3), jnp.float32) * scale
    b1 = jax.random.normal(ks[1], (dim,), jnp.float32) * 0.1
    w2 = jax.random.normal(ks[2], (dim, dim, 3, 3), jnp.float32) * scale
    b2 = jax.random.normal(ks[3], (dim,), jnp.float32) * 0.1
    g1 = jnp.ones((dim,), jnp.float32) * 1.1
    be1 = jnp.ones((dim,), jnp.float32) * 0.05
    g2 = jnp.ones((dim,), jnp.float32) * 0.9
    be2 = jnp.ones((dim,), jnp.float32) * -0.05
    return (w1, b1, g1, be1, w2, b2, g2, be2)


if __name__ == "__main__":
    N, C, H, W = 2, 4, 16, 16
    key = jax.random.PRNGKey(0)
    kx, kp = jax.random.split(key)
    x = jax.random.normal(kx, (N, C, H, W), jnp.float32)
    params = init_params(kp, C)

    out = jax.block_until_ready(resnet_block_pallas(x, params))
    # Tight check against a reference that mirrors the kernel's bf16 matmul
    # inputs (f32 accumulation / norms / residual).
    ref_bf = jax.block_until_ready(resnet_block_ref(x, params, jnp.bfloat16))
    # Loose semantic check against the pure-f32 reference (bf16 MXU rounding).
    ref_f32 = jax.block_until_ready(resnet_block_ref(x, params))

    assert out.shape == (N, C, H, W)
    assert jnp.allclose(out, ref_bf, rtol=5e-3, atol=5e-3), (
        float(jnp.max(jnp.abs(out - ref_bf))))
    assert jnp.allclose(out, ref_f32, rtol=5e-2, atol=1e-1), (
        float(jnp.max(jnp.abs(out - ref_f32))))
    print("KERNEL_OK")
</pallas_src>

<mosaic_0001>
module attributes {stable_mosaic.version = 11 : i64} {
  func.func @kernel(%arg0: i32, %arg1: memref<1x396x4xf32, #tpu.memory_space<vmem>>, %arg2: memref<9x4x4xbf16, #tpu.memory_space<vmem>>, %arg3: memref<9x4x4xbf16, #tpu.memory_space<vmem>>, %arg4: memref<8x4xf32, #tpu.memory_space<vmem>>, %arg5: memref<288x1xf32, #tpu.memory_space<vmem>>, %arg6: memref<1x288x4xf32, #tpu.memory_space<vmem>>, %arg7: memref<396x4xbf16, #tpu.memory_space<vmem>>) attributes {dimension_semantics = [#tpu.dimension_semantics<parallel>], iteration_bounds = array<i64: 2>, scalar_prefetch = 0 : i64, scratch_operands = 1 : i64, tpu.core_type = #tpu.core_type<tc>, window_params = [{transform_indices = @transform_0, window_bounds = array<i64: 1, 396, 4>}, {pipeline_mode = #tpu.pipeline_mode<synchronous>, transform_indices = @transform_1, window_bounds = array<i64: 9, 4, 4>}, {pipeline_mode = #tpu.pipeline_mode<synchronous>, transform_indices = @transform_2, window_bounds = array<i64: 9, 4, 4>}, {pipeline_mode = #tpu.pipeline_mode<synchronous>, transform_indices = @transform_3, window_bounds = array<i64: 8, 4>}, {pipeline_mode = #tpu.pipeline_mode<synchronous>, transform_indices = @transform_4, window_bounds = array<i64: 288, 1>}, {transform_indices = @transform_5, window_bounds = array<i64: 1, 288, 4>}]} {
    %c0 = arith.constant 0 : index
    %c0_0 = arith.constant 0 : index
    %c0_1 = arith.constant 0 : index
    %0 = vector.load %arg1[%c0, %c0_0, %c0_1] : memref<1x396x4xf32, #tpu.memory_space<vmem>>, vector<1x396x4xf32>
    %1 = vector.shape_cast %0 : vector<1x396x4xf32> to vector<396x4xf32>
    %2 = arith.truncf %1 : vector<396x4xf32> to vector<396x4xbf16>
    %c0_2 = arith.constant 0 : index
    %c0_3 = arith.constant 0 : index
    %3 = vector.load %arg5[%c0_2, %c0_3] : memref<288x1xf32, #tpu.memory_space<vmem>>, vector<288x1xf32>
    %c0_4 = arith.constant 0 : index
    %c0_5 = arith.constant 0 : index
    %4 = vector.load %arg4[%c0_4, %c0_5] : memref<8x4xf32, #tpu.memory_space<vmem>>, vector<1x4xf32>
    %c1 = arith.constant 1 : index
    %c0_6 = arith.constant 0 : index
    %5 = vector.load %arg4[%c1, %c0_6] : memref<8x4xf32, #tpu.memory_space<vmem>>, vector<1x4xf32>
    %c2 = arith.constant 2 : index
    %c0_7 = arith.constant 0 : index
    %6 = vector.load %arg4[%c2, %c0_7] : memref<8x4xf32, #tpu.memory_space<vmem>>, vector<1x4xf32>
    %c3 = arith.constant 3 : index
    %c0_8 = arith.constant 0 : index
    %7 = vector.load %arg4[%c3, %c0_8] : memref<8x4xf32, #tpu.memory_space<vmem>>, vector<1x4xf32>
    %c4 = arith.constant 4 : index
    %c0_9 = arith.constant 0 : index
    %8 = vector.load %arg4[%c4, %c0_9] : memref<8x4xf32, #tpu.memory_space<vmem>>, vector<1x4xf32>
    %c5 = arith.constant 5 : index
    %c0_10 = arith.constant 0 : index
    %9 = vector.load %arg4[%c5, %c0_10] : memref<8x4xf32, #tpu.memory_space<vmem>>, vector<1x4xf32>
    %cst = arith.constant 0.000000e+00 : f32
    %10 = vector.broadcast %cst : f32 to vector<288x4xf32>
    %11 = vector.extract_strided_slice %2 {offsets = [53, 0], sizes = [288, 4], strides = [1, 1]} : vector<396x4xbf16> to vector<288x4xbf16>
    %c0_11 = arith.constant 0 : index
    %c0_12 = arith.constant 0 : index
    %c0_13 = arith.constant 0 : index
    %12 = vector.load %arg2[%c0_11, %c0_12, %c0_13] : memref<9x4x4xbf16, #tpu.memory_space<vmem>>, vector<1x4x4xbf16>
    %13 = vector.shape_cast %12 : vector<1x4x4xbf16> to vector<4x4xbf16>
    %cst_14 = arith.constant dense<0.000000e+00> : vector<288x4xf32>
    %14 = tpu.matmul %11, %13, %cst_14 {dimension_numbers = #tpu.dot_dimension_numbers<[1], [0], [0], [1], [0, 0, 1, 1], [], []>} : vector<288x4xbf16>, vector<4x4xbf16>, vector<288x4xf32> -> vector<288x4xf32>
    %15 = arith.addf %10, %14 : vector<288x4xf32>
    %16 = vector.extract_strided_slice %2 {offsets = [54, 0], sizes = [288, 4], strides = [1, 1]} : vector<396x4xbf16> to vector<288x4xbf16>
    %c1_15 = arith.constant 1 : index
    %c0_16 = arith.constant 0 : index
    %c0_17 = arith.constant 0 : index
    %17 = vector.load %arg2[%c1_15, %c0_16, %c0_17] : memref<9x4x4xbf16, #tpu.memory_space<vmem>>, vector<1x4x4xbf16>
    %18 = vector.shape_cast %17 : vector<1x4x4xbf16> to vector<4x4xbf16>
    %cst_18 = arith.constant dense<0.000000e+00> : vector<288x4xf32>
    %19 = tpu.matmul %16, %18, %cst_18 {dimension_numbers = #tpu.dot_dimension_numbers<[1], [0], [0], [1], [0, 0, 1, 1], [], []>} : vector<288x4xbf16>, vector<4x4xbf16>, vector<288x4xf32> -> vector<288x4xf32>
    %20 = arith.addf %15, %19 : vector<288x4xf32>
    %21 = vector.extract_strided_slice %2 {offsets = [55, 0], sizes = [288, 4], strides = [1, 1]} : vector<396x4xbf16> to vector<288x4xbf16>
    %c2_19 = arith.constant 2 : index
    %c0_20 = arith.constant 0 : index
    %c0_21 = arith.constant 0 : index
    %22 = vector.load %arg2[%c2_19, %c0_20, %c0_21] : memref<9x4x4xbf16, #tpu.memory_space<vmem>>, vector<1x4x4xbf16>
    %23 = vector.shape_cast %22 : vector<1x4x4xbf16> to vector<4x4xbf16>
    %cst_22 = arith.constant dense<0.000000e+00> : vector<288x4xf32>
    %24 = tpu.matmul %21, %23, %cst_22 {dimension_numbers = #tpu.dot_dimension_numbers<[1], [0], [0], [1], [0, 0, 1, 1], [], []>} : vector<288x4xbf16>, vector<4x4xbf16>, vector<288x4xf32> -> vector<288x4xf32>
    %25 = arith.addf %20, %24 : vector<288x4xf32>
    %26 = vector.extract_strided_slice %2 {offsets = [71, 0], sizes = [288, 4], strides = [1, 1]} : vector<396x4xbf16> to vector<288x4xbf16>
    %c3_23 = arith.constant 3 : index
    %c0_24 = arith.constant 0 : index
    %c0_25 = arith.constant 0 : index
    %27 = vector.load %arg2[%c3_23, %c0_24, %c0_25] : memref<9x4x4xbf16, #tpu.memory_space<vmem>>, vector<1x4x4xbf16>
    %28 = vector.shape_cast %27 : vector<1x4x4xbf16> to vector<4x4xbf16>
    %cst_26 = arith.constant dense<0.000000e+00> : vector<288x4xf32>
    %29 = tpu.matmul %26, %28, %cst_26 {dimension_numbers = #tpu.dot_dimension_numbers<[1], [0], [0], [1], [0, 0, 1, 1], [], []>} : vector<288x4xbf16>, vector<4x4xbf16>, vector<288x4xf32> -> vector<288x4xf32>
    %30 = arith.addf %25, %29 : vector<288x4xf32>
    %31 = vector.extract_strided_slice %2 {offsets = [72, 0], sizes = [288, 4], strides = [1, 1]} : vector<396x4xbf16> to vector<288x4xbf16>
    %c4_27 = arith.constant 4 : index
    %c0_28 = arith.constant 0 : index
    %c0_29 = arith.constant 0 : index
    %32 = vector.load %arg2[%c4_27, %c0_28, %c0_29] : memref<9x4x4xbf16, #tpu.memory_space<vmem>>, vector<1x4x4xbf16>
    %33 = vector.shape_cast %32 : vector<1x4x4xbf16> to vector<4x4xbf16>
    %cst_30 = arith.constant dense<0.000000e+00> : vector<288x4xf32>
    %34 = tpu.matmul %31, %33, %cst_30 {dimension_numbers = #tpu.dot_dimension_numbers<[1], [0], [0], [1], [0, 0, 1, 1], [], []>} : vector<288x4xbf16>, vector<4x4xbf16>, vector<288x4xf32> -> vector<288x4xf32>
    %35 = arith.addf %30, %34 : vector<288x4xf32>
    %36 = vector.extract_strided_slice %2 {offsets = [73, 0], sizes = [288, 4], strides = [1, 1]} : vector<396x4xbf16> to vector<288x4xbf16>
    %c5_31 = arith.constant 5 : index
    %c0_32 = arith.constant 0 : index
    %c0_33 = arith.constant 0 : index
    %37 = vector.load %arg2[%c5_31, %c0_32, %c0_33] : memref<9x4x4xbf16, #tpu.memory_space<vmem>>, vector<1x4x4xbf16>
    %38 = vector.shape_cast %37 : vector<1x4x4xbf16> to vector<4x4xbf16>
    %cst_34 = arith.constant dense<0.000000e+00> : vector<288x4xf32>
    %39 = tpu.matmul %36, %38, %cst_34 {dimension_numbers = #tpu.dot_dimension_numbers<[1], [0], [0], [1], [0, 0, 1, 1], [], []>} : vector<288x4xbf16>, vector<4x4xbf16>, vector<288x4xf32> -> vector<288x4xf32>
    %40 = arith.addf %35, %39 : vector<288x4xf32>
    %41 = vector.extract_strided_slice %2 {offsets = [89, 0], sizes = [288, 4], strides = [1, 1]} : vector<396x4xbf16> to vector<288x4xbf16>
    %c6 = arith.constant 6 : index
    %c0_35 = arith.constant 0 : index
    %c0_36 = arith.constant 0 : index
    %42 = vector.load %arg2[%c6, %c0_35, %c0_36] : memref<9x4x4xbf16, #tpu.memory_space<vmem>>, vector<1x4x4xbf16>
    %43 = vector.shape_cast %42 : vector<1x4x4xbf16> to vector<4x4xbf16>
    %cst_37 = arith.constant dense<0.000000e+00> : vector<288x4xf32>
    %44 = tpu.matmul %41, %43, %cst_37 {dimension_numbers = #tpu.dot_dimension_numbers<[1], [0], [0], [1], [0, 0, 1, 1], [], []>} : vector<288x4xbf16>, vector<4x4xbf16>, vector<288x4xf32> -> vector<288x4xf32>
    %45 = arith.addf %40, %44 : vector<288x4xf32>
    %46 = vector.extract_strided_slice %2 {offsets = [90, 0], sizes = [288, 4], strides = [1, 1]} : vector<396x4xbf16> to vector<288x4xbf16>
    %c7 = arith.constant 7 : index
    %c0_38 = arith.constant 0 : index
    %c0_39 = arith.constant 0 : index
    %47 = vector.load %arg2[%c7, %c0_38, %c0_39] : memref<9x4x4xbf16, #tpu.memory_space<vmem>>, vector<1x4x4xbf16>
    %48 = vector.shape_cast %47 : vector<1x4x4xbf16> to vector<4x4xbf16>
    %cst_40 = arith.constant dense<0.000000e+00> : vector<288x4xf32>
    %49 = tpu.matmul %46, %48, %cst_40 {dimension_numbers = #tpu.dot_dimension_numbers<[1], [0], [0], [1], [0, 0, 1, 1], [], []>} : vector<288x4xbf16>, vector<4x4xbf16>, vector<288x4xf32> -> vector<288x4xf32>
    %50 = arith.addf %45, %49 : vector<288x4xf32>
    %51 = vector.extract_strided_slice %2 {offsets = [91, 0], sizes = [288, 4], strides = [1, 1]} : vector<396x4xbf16> to vector<288x4xbf16>
    %c8 = arith.constant 8 : index
    %c0_41 = arith.constant 0 : index
    %c0_42 = arith.constant 0 : index
    %52 = vector.load %arg2[%c8, %c0_41, %c0_42] : memref<9x4x4xbf16, #tpu.memory_space<vmem>>, vector<1x4x4xbf16>
    %53 = vector.shape_cast %52 : vector<1x4x4xbf16> to vector<4x4xbf16>
    %cst_43 = arith.constant dense<0.000000e+00> : vector<288x4xf32>
    %54 = tpu.matmul %51, %53, %cst_43 {dimension_numbers = #tpu.dot_dimension_numbers<[1], [0], [0], [1], [0, 0, 1, 1], [], []>} : vector<288x4xbf16>, vector<4x4xbf16>, vector<288x4xf32> -> vector<288x4xf32>
    %55 = arith.addf %50, %54 : vector<288x4xf32>
    %56 = vector.broadcast %4 : vector<1x4xf32> to vector<288x4xf32>
    %57 = arith.addf %55, %56 : vector<288x4xf32>
    %58 = vector.broadcast %3 : vector<288x1xf32> to vector<288x4xf32>
    %59 = arith.mulf %57, %58 : vector<288x4xf32>
    %cst_44 = arith.constant dense<0.000000e+00> : vector<4xf32>
    %60 = vector.multi_reduction <add>, %59, %cst_44 [0] : vector<288x4xf32> to vector<4xf32>
    %61 = vector.shape_cast %60 : vector<4xf32> to vector<1x4xf32>
    %62 = arith.mulf %59, %57 : vector<288x4xf32>
    %cst_45 = arith.constant dense<0.000000e+00> : vector<4xf32>
    %63 = vector.multi_reduction <add>, %62, %cst_45 [0] : vector<288x4xf32> to vector<4xf32>
    %64 = vector.shape_cast %63 : vector<4xf32> to vector<1x4xf32>
    %cst_46 = arith.constant 3.906250e-03 : f32
    %65 = vector.broadcast %cst_46 : f32 to vector<1x4xf32>
    %66 = arith.mulf %61, %65 : vector<1x4xf32>
    %cst_47 = arith.constant 3.906250e-03 : f32
    %67 = vector.broadcast %cst_47 : f32 to vector<1x4xf32>
    %68 = arith.mulf %64, %67 : vector<1x4xf32>
    %69 = arith.mulf %66, %66 : vector<1x4xf32>
    %70 = arith.subf %68, %69 : vector<1x4xf32>
    %cst_48 = arith.constant 0.000000e+00 : f32
    %71 = vector.broadcast %cst_48 : f32 to vector<1x4xf32>
    %72 = arith.maximumf %70, %71 : vector<1x4xf32>
    %73 = vector.broadcast %66 : vector<1x4xf32> to vector<288x4xf32>
    %74 = arith.subf %57, %73 : vector<288x4xf32>
    %cst_49 = arith.constant 9.99999974E-6 : f32
    %75 = vector.broadcast %cst_49 : f32 to vector<1x4xf32>
    %76 = arith.addf %72, %75 : vector<1x4xf32>
    %77 = math.rsqrt %76 : vector<1x4xf32>
    %78 = vector.broadcast %77 : vector<1x4xf32> to vector<288x4xf32>
    %79 = arith.mulf %74, %78 : vector<288x4xf32>
    %80 = vector.broadcast %5 : vector<1x4xf32> to vector<288x4xf32>
    %81 = arith.mulf %79, %80 : vector<288x4xf32>
    %82 = vector.broadcast %6 : vector<1x4xf32> to vector<288x4xf32>
    %83 = arith.addf %81, %82 : vector<288x4xf32>
    %cst_50 = arith.constant 0.000000e+00 : f32
    %84 = vector.broadcast %cst_50 : f32 to vector<288x4xf32>
    %85 = arith.maximumf %83, %84 : vector<288x4xf32>
    %86 = vector.broadcast %3 : vector<288x1xf32> to vector<288x4xf32>
    %87 = arith.mulf %85, %86 : vector<288x4xf32>
    %cst_51 = arith.constant 0.000000e+00 : bf16
    %88 = vector.broadcast %cst_51 : bf16 to vector<72x4xbf16>
    %c0_52 = arith.constant 0 : index
    %c0_53 = arith.constant 0 : index
    %89 = vector.load %arg7[%c0_52, %c0_53] : memref<396x4xbf16, #tpu.memory_space<vmem>>, vector<72x4xbf16>
    tpu.vector_store %arg7[%c0_52, %c0_53], %88 {strides = array<i32>} : memref<396x4xbf16, #tpu.memory_space<vmem>>, vector<72x4xbf16>,
    %cst_54 = arith.constant 0.000000e+00 : bf16
    %90 = vector.broadcast %cst_54 : bf16 to vector<36x4xbf16>
    %c360 = arith.constant 360 : index
    %c0_55 = arith.constant 0 : index
    %91 = vector.load %arg7[%c360, %c0_55] : memref<396x4xbf16, #tpu.memory_space<vmem>>, vector<36x4xbf16>
    tpu.vector_store %arg7[%c360, %c0_55], %90 {strides = array<i32>} : memref<396x4xbf16, #tpu.memory_space<vmem>>, vector<36x4xbf16>,
    %92 = arith.truncf %87 : vector<288x4xf32> to vector<288x4xbf16>
    %c72 = arith.constant 72 : index
    %c0_56 = arith.constant 0 : index
    %93 = vector.load %arg7[%c72, %c0_56] : memref<396x4xbf16, #tpu.memory_space<vmem>>, vector<288x4xbf16>
    tpu.vector_store %arg7[%c72, %c0_56], %92 {strides = array<i32>} : memref<396x4xbf16, #tpu.memory_space<vmem>>, vector<288x4xbf16>,
    %c0_57 = arith.constant 0 : index
    %c0_58 = arith.constant 0 : index
    %94 = vector.load %arg7[%c0_57, %c0_58] : memref<396x4xbf16, #tpu.memory_space<vmem>>, vector<396x4xbf16>
    %cst_59 = arith.constant 0.000000e+00 : f32
    %95 = vector.broadcast %cst_59 : f32 to vector<288x4xf32>
    %96 = vector.extract_strided_slice %94 {offsets = [53, 0], sizes = [288, 4], strides = [1, 1]} : vector<396x4xbf16> to vector<288x4xbf16>
    %c0_60 = arith.constant 0 : index
    %c0_61 = arith.constant 0 : index
    %c0_62 = arith.constant 0 : index
    %97 = vector.load %arg3[%c0_60, %c0_61, %c0_62] : memref<9x4x4xbf16, #tpu.memory_space<vmem>>, vector<1x4x4xbf16>
    %98 = vector.shape_cast %97 : vector<1x4x4xbf16> to vector<4x4xbf16>
    %cst_63 = arith.constant dense<0.000000e+00> : vector<288x4xf32>
    %99 = tpu.matmul %96, %98, %cst_63 {dimension_numbers = #tpu.dot_dimension_numbers<[1], [0], [0], [1], [0, 0, 1, 1], [], []>} : vector<288x4xbf16>, vector<4x4xbf16>, vector<288x4xf32> -> vector<288x4xf32>
    %100 = arith.addf %95, %99 : vector<288x4xf32>
    %101 = vector.extract_strided_slice %94 {offsets = [54, 0], sizes = [288, 4], strides = [1, 1]} : vector<396x4xbf16> to vector<288x4xbf16>
    %c1_64 = arith.constant 1 : index
    %c0_65 = arith.constant 0 : index
    %c0_66 = arith.constant 0 : index
    %102 = vector.load %arg3[%c1_64, %c0_65, %c0_66] : memref<9x4x4xbf16, #tpu.memory_space<vmem>>, vector<1x4x4xbf16>
    %103 = vector.shape_cast %102 : vector<1x4x4xbf16> to vector<4x4xbf16>
    %cst_67 = arith.constant dense<0.000000e+00> : vector<288x4xf32>
    %104 = tpu.matmul %101, %103, %cst_67 {dimension_numbers = #tpu.dot_dimension_numbers<[1], [0], [0], [1], [0, 0, 1, 1], [], []>} : vector<288x4xbf16>, vector<4x4xbf16>, vector<288x4xf32> -> vector<288x4xf32>
    %105 = arith.addf %100, %104 : vector<288x4xf32>
    %106 = vector.extract_strided_slice %94 {offsets = [55, 0], sizes = [288, 4], strides = [1, 1]} : vector<396x4xbf16> to vector<288x4xbf16>
    %c2_68 = arith.constant 2 : index
    %c0_69 = arith.constant 0 : index
    %c0_70 = arith.constant 0 : index
    %107 = vector.load %arg3[%c2_68, %c0_69, %c0_70] : memref<9x4x4xbf16, #tpu.memory_space<vmem>>, vector<1x4x4xbf16>
    %108 = vector.shape_cast %107 : vector<1x4x4xbf16> to vector<4x4xbf16>
    %cst_71 = arith.constant dense<0.000000e+00> : vector<288x4xf32>
    %109 = tpu.matmul %106, %108, %cst_71 {dimension_numbers = #tpu.dot_dimension_numbers<[1], [0], [0], [1], [0, 0, 1, 1], [], []>} : vector<288x4xbf16>, vector<4x4xbf16>, vector<288x4xf32> -> vector<288x4xf32>
    %110 = arith.addf %105, %109 : vector<288x4xf32>
    %111 = vector.extract_strided_slice %94 {offsets = [71, 0], sizes = [288, 4], strides = [1, 1]} : vector<396x4xbf16> to vector<288x4xbf16>
    %c3_72 = arith.constant 3 : index
    %c0_73 = arith.constant 0 : index
    %c0_74 = arith.constant 0 : index
    %112 = vector.load %arg3[%c3_72, %c0_73, %c0_74] : memref<9x4x4xbf16, #tpu.memory_space<vmem>>, vector<1x4x4xbf16>
    %113 = vector.shape_cast %112 : vector<1x4x4xbf16> to vector<4x4xbf16>
    %cst_75 = arith.constant dense<0.000000e+00> : vector<288x4xf32>
    %114 = tpu.matmul %111, %113, %cst_75 {dimension_numbers = #tpu.dot_dimension_numbers<[1], [0], [0], [1], [0, 0, 1, 1], [], []>} : vector<288x4xbf16>, vector<4x4xbf16>, vector<288x4xf32> -> vector<288x4xf32>
    %115 = arith.addf %110, %114 : vector<288x4xf32>
    %116 = vector.extract_strided_slice %94 {offsets = [72, 0], sizes = [288, 4], strides = [1, 1]} : vector<396x4xbf16> to vector<288x4xbf16>
    %c4_76 = arith.constant 4 : index
    %c0_77 = arith.constant 0 : index
    %c0_78 = arith.constant 0 : index
    %117 = vector.load %arg3[%c4_76, %c0_77, %c0_78] : memref<9x4x4xbf16, #tpu.memory_space<vmem>>, vector<1x4x4xbf16>
    %118 = vector.shape_cast %117 : vector<1x4x4xbf16> to vector<4x4xbf16>
    %cst_79 = arith.constant dense<0.000000e+00> : vector<288x4xf32>
    %119 = tpu.matmul %116, %118, %cst_79 {dimension_numbers = #tpu.dot_dimension_numbers<[1], [0], [0], [1], [0, 0, 1, 1], [], []>} : vector<288x4xbf16>, vector<4x4xbf16>, vector<288x4xf32> -> vector<288x4xf32>
    %120 = arith.addf %115, %119 : vector<288x4xf32>
    %121 = vector.extract_strided_slice %94 {offsets = [73, 0], sizes = [288, 4], strides = [1, 1]} : vector<396x4xbf16> to vector<288x4xbf16>
    %c5_80 = arith.constant 5 : index
    %c0_81 = arith.constant 0 : index
    %c0_82 = arith.constant 0 : index
    %122 = vector.load %arg3[%c5_80, %c0_81, %c0_82] : memref<9x4x4xbf16, #tpu.memory_space<vmem>>, vector<1x4x4xbf16>
    %123 = vector.shape_cast %122 : vector<1x4x4xbf16> to vector<4x4xbf16>
    %cst_83 = arith.constant dense<0.000000e+00> : vector<288x4xf32>
    %124 = tpu.matmul %121, %123, %cst_83 {dimension_numbers = #tpu.dot_dimension_numbers<[1], [0], [0], [1], [0, 0, 1, 1], [], []>} : vector<288x4xbf16>, vector<4x4xbf16>, vector<288x4xf32> -> vector<288x4xf32>
    %125 = arith.addf %120, %124 : vector<288x4xf32>
    %126 = vector.extract_strided_slice %94 {offsets = [89, 0], sizes = [288, 4], strides = [1, 1]} : vector<396x4xbf16> to vector<288x4xbf16>
    %c6_84 = arith.constant 6 : index
    %c0_85 = arith.constant 0 : index
    %c0_86 = arith.constant 0 : index
    %127 = vector.load %arg3[%c6_84, %c0_85, %c0_86] : memref<9x4x4xbf16, #tpu.memory_space<vmem>>, vector<1x4x4xbf16>
    %128 = vector.shape_cast %127 : vector<1x4x4xbf16> to vector<4x4xbf16>
    %cst_87 = arith.constant dense<0.000000e+00> : vector<288x4xf32>
    %129 = tpu.matmul %126, %128, %cst_87 {dimension_numbers = #tpu.dot_dimension_numbers<[1], [0], [0], [1], [0, 0, 1, 1], [], []>} : vector<288x4xbf16>, vector<4x4xbf16>, vector<288x4xf32> -> vector<288x4xf32>
    %130 = arith.addf %125, %129 : vector<288x4xf32>
    %131 = vector.extract_strided_slice %94 {offsets = [90, 0], sizes = [288, 4], strides = [1, 1]} : vector<396x4xbf16> to vector<288x4xbf16>
    %c7_88 = arith.constant 7 : index
    %c0_89 = arith.constant 0 : index
    %c0_90 = arith.constant 0 : index
    %132 = vector.load %arg3[%c7_88, %c0_89, %c0_90] : memref<9x4x4xbf16, #tpu.memory_space<vmem>>, vector<1x4x4xbf16>
    %133 = vector.shape_cast %132 : vector<1x4x4xbf16> to vector<4x4xbf16>
    %cst_91 = arith.constant dense<0.000000e+00> : vector<288x4xf32>
    %134 = tpu.matmul %131, %133, %cst_91 {dimension_numbers = #tpu.dot_dimension_numbers<[1], [0], [0], [1], [0, 0, 1, 1], [], []>} : vector<288x4xbf16>, vector<4x4xbf16>, vector<288x4xf32> -> vector<288x4xf32>
    %135 = arith.addf %130, %134 : vector<288x4xf32>
    %136 = vector.extract_strided_slice %94 {offsets = [91, 0], sizes = [288, 4], strides = [1, 1]} : vector<396x4xbf16> to vector<288x4xbf16>
    %c8_92 = arith.constant 8 : index
    %c0_93 = arith.constant 0 : index
    %c0_94 = arith.constant 0 : index
    %137 = vector.load %arg3[%c8_92, %c0_93, %c0_94] : memref<9x4x4xbf16, #tpu.memory_space<vmem>>, vector<1x4x4xbf16>
    %138 = vector.shape_cast %137 : vector<1x4x4xbf16> to vector<4x4xbf16>
    %cst_95 = arith.constant dense<0.000000e+00> : vector<288x4xf32>
    %139 = tpu.matmul %136, %138, %cst_95 {dimension_numbers = #tpu.dot_dimension_numbers<[1], [0], [0], [1], [0, 0, 1, 1], [], []>} : vector<288x4xbf16>, vector<4x4xbf16>, vector<288x4xf32> -> vector<288x4xf32>
    %140 = arith.addf %135, %139 : vector<288x4xf32>
    %141 = vector.broadcast %7 : vector<1x4xf32> to vector<288x4xf32>
    %142 = arith.addf %140, %141 : vector<288x4xf32>
    %143 = vector.broadcast %3 : vector<288x1xf32> to vector<288x4xf32>
    %144 = arith.mulf %142, %143 : vector<288x4xf32>
    %cst_96 = arith.constant dense<0.000000e+00> : vector<4xf32>
    %145 = vector.multi_reduction <add>, %144, %cst_96 [0] : vector<288x4xf32> to vector<4xf32>
    %146 = vector.shape_cast %145 : vector<4xf32> to vector<1x4xf32>
    %147 = arith.mulf %144, %142 : vector<288x4xf32>
    %cst_97 = arith.constant dense<0.000000e+00> : vector<4xf32>
    %148 = vector.multi_reduction <add>, %147, %cst_97 [0] : vector<288x4xf32> to vector<4xf32>
    %149 = vector.shape_cast %148 : vector<4xf32> to vector<1x4xf32>
    %cst_98 = arith.constant 3.906250e-03 : f32
    %150 = vector.broadcast %cst_98 : f32 to vector<1x4xf32>
    %151 = arith.mulf %146, %150 : vector<1x4xf32>
    %cst_99 = arith.constant 3.906250e-03 : f32
    %152 = vector.broadcast %cst_99 : f32 to vector<1x4xf32>
    %153 = arith.mulf %149, %152 : vector<1x4xf32>
    %154 = arith.mulf %151, %151 : vector<1x4xf32>
    %155 = arith.subf %153, %154 : vector<1x4xf32>
    %cst_100 = arith.constant 0.000000e+00 : f32
    %156 = vector.broadcast %cst_100 : f32 to vector<1x4xf32>
    %157 = arith.maximumf %155, %156 : vector<1x4xf32>
    %158 = vector.broadcast %151 : vector<1x4xf32> to vector<288x4xf32>
    %159 = arith.subf %142, %158 : vector<288x4xf32>
    %cst_101 = arith.constant 9.99999974E-6 : f32
    %160 = vector.broadcast %cst_101 : f32 to vector<1x4xf32>
    %161 = arith.addf %157, %160 : vector<1x4xf32>
    %162 = math.rsqrt %161 : vector<1x4xf32>
    %163 = vector.broadcast %162 : vector<1x4xf32> to vector<288x4xf32>
    %164 = arith.mulf %159, %163 : vector<288x4xf32>
    %165 = vector.broadcast %8 : vector<1x4xf32> to vector<288x4xf32>
    %166 = arith.mulf %164, %165 : vector<288x4xf32>
    %167 = vector.broadcast %9 : vector<1x4xf32> to vector<288x4xf32>
    %168 = arith.addf %166, %167 : vector<288x4xf32>
    %169 = vector.extract_strided_slice %1 {offsets = [72, 0], sizes = [288, 4], strides = [1, 1]} : vector<396x4xf32> to vector<288x4xf32>
    %170 = arith.addf %169, %168 : vector<288x4xf32>
    %c0_102 = arith.constant 0 : index
    %c0_103 = arith.constant 0 : index
    %c0_104 = arith.constant 0 : index
    %171 = vector.load %arg6[%c0_102, %c0_103, %c0_104] : memref<1x288x4xf32, #tpu.memory_space<vmem>>, vector<1x288x4xf32>
    %172 = vector.shape_cast %171 : vector<1x288x4xf32> to vector<288x4xf32>
    %173 = vector.shape_cast %170 : vector<288x4xf32> to vector<1x288x4xf32>
    tpu.vector_store %arg6[%c0_102, %c0_103, %c0_104], %173 {strides = array<i32>} : memref<1x288x4xf32, #tpu.memory_space<vmem>>, vector<1x288x4xf32>,
    return
  }
  func.func @transform_0(%arg0: i32) -> (i32, i32, i32) {
    %c0_i32 = arith.constant 0 : i32
    %c0_i32_0 = arith.constant 0 : i32
    %c0_i32_1 = arith.constant 0 : i32
    return %arg0, %c0_i32, %c0_i32_0 : i32, i32, i32
  }
  func.func @transform_1(%arg0: i32) -> (i32, i32, i32) {
    %c0_i32 = arith.constant 0 : i32
    %c0_i32_0 = arith.constant 0 : i32
    %c0_i32_1 = arith.constant 0 : i32
    %c0_i32_2 = arith.constant 0 : i32
    return %c0_i32, %c0_i32_0, %c0_i32_1 : i32, i32, i32
  }
  func.func @transform_2(%arg0: i32) -> (i32, i32, i32) {
    %c0_i32 = arith.constant 0 : i32
    %c0_i32_0 = arith.constant 0 : i32
    %c0_i32_1 = arith.constant 0 : i32
    %c0_i32_2 = arith.constant 0 : i32
    return %c0_i32, %c0_i32_0, %c0_i32_1 : i32, i32, i32
  }
  func.func @transform_3(%arg0: i32) -> (i32, i32) {
    %c0_i32 = arith.constant 0 : i32
    %c0_i32_0 = arith.constant 0 : i32
    %c0_i32_1 = arith.constant 0 : i32
    return %c0_i32, %c0_i32_0 : i32, i32
  }
  func.func @transform_4(%arg0: i32) -> (i32, i32) {
    %c0_i32 = arith.constant 0 : i32
    %c0_i32_0 = arith.constant 0 : i32
    %c0_i32_1 = arith.constant 0 : i32
    return %c0_i32, %c0_i32_0 : i32, i32
  }
  func.func @transform_5(%arg0: i32) -> (i32, i32, i32) {
    %c0_i32 = arith.constant 0 : i32
    %c0_i32_0 = arith.constant 0 : i32
    %c0_i32_1 = arith.constant 0 : i32
    return %arg0, %c0_i32, %c0_i32_0 : i32, i32, i32
  }
}

module attributes {stable_mosaic.version = 11 : i64} {
  func.func @kernel(%arg0: i32, %arg1: memref<1x396x4xf32, #tpu.memory_space<vmem>>, %arg2: memref<9x4x4xbf16, #tpu.memory_space<vmem>>, %arg3: memref<9x4x4xbf16, #tpu.memory_space<vmem>>, %arg4: memref<8x4xf32, #tpu.memory_space<vmem>>, %arg5: memref<288x1xf32, #tpu.memory_space<vmem>>, %arg6: memref<1x288x4xf32, #tpu.memory_space<vmem>>, %arg7: memref<396x4xbf16, #tpu.memory_space<vmem>>) attributes {dimension_semantics = [#tpu.dimension_semantics<parallel>], iteration_bounds = array<i64: 2>, scalar_prefetch = 0 : i64, scratch_operands = 1 : i64, tpu.core_type = #tpu.core_type<tc>, window_params = [{transform_indices = @transform_0, window_bounds = array<i64: 1, 396, 4>}, {pipeline_mode = #tpu.pipeline_mode<synchronous>, transform_indices = @transform_1, window_bounds = array<i64: 9, 4, 4>}, {pipeline_mode = #tpu.pipeline_mode<synchronous>, transform_indices = @transform_2, window_bounds = array<i64: 9, 4, 4>}, {pipeline_mode = #tpu.pipeline_mode<synchronous>, transform_indices = @transform_3, window_bounds = array<i64: 8, 4>}, {pipeline_mode = #tpu.pipeline_mode<synchronous>, transform_indices = @transform_4, window_bounds = array<i64: 288, 1>}, {transform_indices = @transform_5, window_bounds = array<i64: 1, 288, 4>}]} {
    %c0 = arith.constant 0 : index
    %c0_0 = arith.constant 0 : index
    %c0_1 = arith.constant 0 : index
    %0 = vector.load %arg1[%c0, %c0_0, %c0_1] : memref<1x396x4xf32, #tpu.memory_space<vmem>>, vector<1x396x4xf32>
    %1 = vector.shape_cast %0 : vector<1x396x4xf32> to vector<396x4xf32>
    %2 = arith.truncf %1 : vector<396x4xf32> to vector<396x4xbf16>
    %c0_2 = arith.constant 0 : index
    %c0_3 = arith.constant 0 : index
    %3 = vector.load %arg5[%c0_2, %c0_3] : memref<288x1xf32, #tpu.memory_space<vmem>>, vector<288x1xf32>
    %c0_4 = arith.constant 0 : index
    %c0_5 = arith.constant 0 : index
    %4 = vector.load %arg4[%c0_4, %c0_5] : memref<8x4xf32, #tpu.memory_space<vmem>>, vector<1x4xf32>
    %c1 = arith.constant 1 : index
    %c0_6 = arith.constant 0 : index
    %5 = vector.load %arg4[%c1, %c0_6] : memref<8x4xf32, #tpu.memory_space<vmem>>, vector<1x4xf32>
    %c2 = arith.constant 2 : index
    %c0_7 = arith.constant 0 : index
    %6 = vector.load %arg4[%c2, %c0_7] : memref<8x4xf32, #tpu.memory_space<vmem>>, vector<1x4xf32>
    %c3 = arith.constant 3 : index
    %c0_8 = arith.constant 0 : index
    %7 = vector.load %arg4[%c3, %c0_8] : memref<8x4xf32, #tpu.memory_space<vmem>>, vector<1x4xf32>
    %c4 = arith.constant 4 : index
    %c0_9 = arith.constant 0 : index
    %8 = vector.load %arg4[%c4, %c0_9] : memref<8x4xf32, #tpu.memory_space<vmem>>, vector<1x4xf32>
    %c5 = arith.constant 5 : index
    %c0_10 = arith.constant 0 : index
    %9 = vector.load %arg4[%c5, %c0_10] : memref<8x4xf32, #tpu.memory_space<vmem>>, vector<1x4xf32>
    %cst = arith.constant 0.000000e+00 : f32
    %10 = vector.broadcast %cst : f32 to vector<288x4xf32>
    %11 = vector.extract_strided_slice %2 {offsets = [53, 0], sizes = [288, 4], strides = [1, 1]} : vector<396x4xbf16> to vector<288x4xbf16>
    %c0_11 = arith.constant 0 : index
    %c0_12 = arith.constant 0 : index
    %c0_13 = arith.constant 0 : index
    %12 = vector.load %arg2[%c0_11, %c0_12, %c0_13] : memref<9x4x4xbf16, #tpu.memory_space<vmem>>, vector<1x4x4xbf16>
    %13 = vector.shape_cast %12 : vector<1x4x4xbf16> to vector<4x4xbf16>
    %cst_14 = arith.constant dense<0.000000e+00> : vector<288x4xf32>
    %14 = tpu.matmul %11, %13, %cst_14 {dimension_numbers = #tpu.dot_dimension_numbers<[1], [0], [0], [1], [0, 0, 1, 1], [], []>} : vector<288x4xbf16>, vector<4x4xbf16>, vector<288x4xf32> -> vector<288x4xf32>
    %15 = arith.addf %10, %14 : vector<288x4xf32>
    %16 = vector.extract_strided_slice %2 {offsets = [54, 0], sizes = [288, 4], strides = [1, 1]} : vector<396x4xbf16> to vector<288x4xbf16>
    %c1_15 = arith.constant 1 : index
    %c0_16 = arith.constant 0 : index
    %c0_17 = arith.constant 0 : index
    %17 = vector.load %arg2[%c1_15, %c0_16, %c0_17] : memref<9x4x4xbf16, #tpu.memory_space<vmem>>, vector<1x4x4xbf16>
    %18 = vector.shape_cast %17 : vector<1x4x4xbf16> to vector<4x4xbf16>
    %cst_18 = arith.constant dense<0.000000e+00> : vector<288x4xf32>
    %19 = tpu.matmul %16, %18, %cst_18 {dimension_numbers = #tpu.dot_dimension_numbers<[1], [0], [0], [1], [0, 0, 1, 1], [], []>} : vector<288x4xbf16>, vector<4x4xbf16>, vector<288x4xf32> -> vector<288x4xf32>
    %20 = arith.addf %15, %19 : vector<288x4xf32>
    %21 = vector.extract_strided_slice %2 {offsets = [55, 0], sizes = [288, 4], strides = [1, 1]} : vector<396x4xbf16> to vector<288x4xbf16>
    %c2_19 = arith.constant 2 : index
    %c0_20 = arith.constant 0 : index
    %c0_21 = arith.constant 0 : index
    %22 = vector.load %arg2[%c2_19, %c0_20, %c0_21] : memref<9x4x4xbf16, #tpu.memory_space<vmem>>, vector<1x4x4xbf16>
    %23 = vector.shape_cast %22 : vector<1x4x4xbf16> to vector<4x4xbf16>
    %cst_22 = arith.constant dense<0.000000e+00> : vector<288x4xf32>
    %24 = tpu.matmul %21, %23, %cst_22 {dimension_numbers = #tpu.dot_dimension_numbers<[1], [0], [0], [1], [0, 0, 1, 1], [], []>} : vector<288x4xbf16>, vector<4x4xbf16>, vector<288x4xf32> -> vector<288x4xf32>
    %25 = arith.addf %20, %24 : vector<288x4xf32>
    %26 = vector.extract_strided_slice %2 {offsets = [71, 0], sizes = [288, 4], strides = [1, 1]} : vector<396x4xbf16> to vector<288x4xbf16>
    %c3_23 = arith.constant 3 : index
    %c0_24 = arith.constant 0 : index
    %c0_25 = arith.constant 0 : index
    %27 = vector.load %arg2[%c3_23, %c0_24, %c0_25] : memref<9x4x4xbf16, #tpu.memory_space<vmem>>, vector<1x4x4xbf16>
    %28 = vector.shape_cast %27 : vector<1x4x4xbf16> to vector<4x4xbf16>
    %cst_26 = arith.constant dense<0.000000e+00> : vector<288x4xf32>
    %29 = tpu.matmul %26, %28, %cst_26 {dimension_numbers = #tpu.dot_dimension_numbers<[1], [0], [0], [1], [0, 0, 1, 1], [], []>} : vector<288x4xbf16>, vector<4x4xbf16>, vector<288x4xf32> -> vector<288x4xf32>
    %30 = arith.addf %25, %29 : vector<288x4xf32>
    %31 = vector.extract_strided_slice %2 {offsets = [72, 0], sizes = [288, 4], strides = [1, 1]} : vector<396x4xbf16> to vector<288x4xbf16>
    %c4_27 = arith.constant 4 : index
    %c0_28 = arith.constant 0 : index
    %c0_29 = arith.constant 0 : index
    %32 = vector.load %arg2[%c4_27, %c0_28, %c0_29] : memref<9x4x4xbf16, #tpu.memory_space<vmem>>, vector<1x4x4xbf16>
    %33 = vector.shape_cast %32 : vector<1x4x4xbf16> to vector<4x4xbf16>
    %cst_30 = arith.constant dense<0.000000e+00> : vector<288x4xf32>
    %34 = tpu.matmul %31, %33, %cst_30 {dimension_numbers = #tpu.dot_dimension_numbers<[1], [0], [0], [1], [0, 0, 1, 1], [], []>} : vector<288x4xbf16>, vector<4x4xbf16>, vector<288x4xf32> -> vector<288x4xf32>
    %35 = arith.addf %30, %34 : vector<288x4xf32>
    %36 = vector.extract_strided_slice %2 {offsets = [73, 0], sizes = [288, 4], strides = [1, 1]} : vector<396x4xbf16> to vector<288x4xbf16>
    %c5_31 = arith.constant 5 : index
    %c0_32 = arith.constant 0 : index
    %c0_33 = arith.constant 0 : index
    %37 = vector.load %arg2[%c5_31, %c0_32, %c0_33] : memref<9x4x4xbf16, #tpu.memory_space<vmem>>, vector<1x4x4xbf16>
    %38 = vector.shape_cast %37 : vector<1x4x4xbf16> to vector<4x4xbf16>
    %cst_34 = arith.constant dense<0.000000e+00> : vector<288x4xf32>
    %39 = tpu.matmul %36, %38, %cst_34 {dimension_numbers = #tpu.dot_dimension_numbers<[1], [0], [0], [1], [0, 0, 1, 1], [], []>} : vector<288x4xbf16>, vector<4x4xbf16>, vector<288x4xf32> -> vector<288x4xf32>
    %40 = arith.addf %35, %39 : vector<288x4xf32>
    %41 = vector.extract_strided_slice %2 {offsets = [89, 0], sizes = [288, 4], strides = [1, 1]} : vector<396x4xbf16> to vector<288x4xbf16>
    %c6 = arith.constant 6 : index
    %c0_35 = arith.constant 0 : index
    %c0_36 = arith.constant 0 : index
    %42 = vector.load %arg2[%c6, %c0_35, %c0_36] : memref<9x4x4xbf16, #tpu.memory_space<vmem>>, vector<1x4x4xbf16>
    %43 = vector.shape_cast %42 : vector<1x4x4xbf16> to vector<4x4xbf16>
    %cst_37 = arith.constant dense<0.000000e+00> : vector<288x4xf32>
    %44 = tpu.matmul %41, %43, %cst_37 {dimension_numbers = #tpu.dot_dimension_numbers<[1], [0], [0], [1], [0, 0, 1, 1], [], []>} : vector<288x4xbf16>, vector<4x4xbf16>, vector<288x4xf32> -> vector<288x4xf32>
    %45 = arith.addf %40, %44 : vector<288x4xf32>
    %46 = vector.extract_strided_slice %2 {offsets = [90, 0], sizes = [288, 4], strides = [1, 1]} : vector<396x4xbf16> to vector<288x4xbf16>
    %c7 = arith.constant 7 : index
    %c0_38 = arith.constant 0 : index
    %c0_39 = arith.constant 0 : index
    %47 = vector.load %arg2[%c7, %c0_38, %c0_39] : memref<9x4x4xbf16, #tpu.memory_space<vmem>>, vector<1x4x4xbf16>
    %48 = vector.shape_cast %47 : vector<1x4x4xbf16> to vector<4x4xbf16>
    %cst_40 = arith.constant dense<0.000000e+00> : vector<288x4xf32>
    %49 = tpu.matmul %46, %48, %cst_40 {dimension_numbers = #tpu.dot_dimension_numbers<[1], [0], [0], [1], [0, 0, 1, 1], [], []>} : vector<288x4xbf16>, vector<4x4xbf16>, vector<288x4xf32> -> vector<288x4xf32>
    %50 = arith.addf %45, %49 : vector<288x4xf32>
    %51 = vector.extract_strided_slice %2 {offsets = [91, 0], sizes = [288, 4], strides = [1, 1]} : vector<396x4xbf16> to vector<288x4xbf16>
    %c8 = arith.constant 8 : index
    %c0_41 = arith.constant 0 : index
    %c0_42 = arith.constant 0 : index
    %52 = vector.load %arg2[%c8, %c0_41, %c0_42] : memref<9x4x4xbf16, #tpu.memory_space<vmem>>, vector<1x4x4xbf16>
    %53 = vector.shape_cast %52 : vector<1x4x4xbf16> to vector<4x4xbf16>
    %cst_43 = arith.constant dense<0.000000e+00> : vector<288x4xf32>
    %54 = tpu.matmul %51, %53, %cst_43 {dimension_numbers = #tpu.dot_dimension_numbers<[1], [0], [0], [1], [0, 0, 1, 1], [], []>} : vector<288x4xbf16>, vector<4x4xbf16>, vector<288x4xf32> -> vector<288x4xf32>
    %55 = arith.addf %50, %54 : vector<288x4xf32>
    %56 = vector.broadcast %4 : vector<1x4xf32> to vector<288x4xf32>
    %57 = arith.addf %55, %56 : vector<288x4xf32>
    %58 = vector.broadcast %3 : vector<288x1xf32> to vector<288x4xf32>
    %59 = arith.mulf %57, %58 : vector<288x4xf32>
    %cst_44 = arith.constant dense<0.000000e+00> : vector<4xf32>
    %60 = vector.multi_reduction <add>, %59, %cst_44 [0] : vector<288x4xf32> to vector<4xf32>
    %61 = vector.shape_cast %60 : vector<4xf32> to vector<1x4xf32>
    %62 = arith.mulf %59, %57 : vector<288x4xf32>
    %cst_45 = arith.constant dense<0.000000e+00> : vector<4xf32>
    %63 = vector.multi_reduction <add>, %62, %cst_45 [0] : vector<288x4xf32> to vector<4xf32>
    %64 = vector.shape_cast %63 : vector<4xf32> to vector<1x4xf32>
    %cst_46 = arith.constant 3.906250e-03 : f32
    %65 = vector.broadcast %cst_46 : f32 to vector<1x4xf32>
    %66 = arith.mulf %61, %65 : vector<1x4xf32>
    %cst_47 = arith.constant 3.906250e-03 : f32
    %67 = vector.broadcast %cst_47 : f32 to vector<1x4xf32>
    %68 = arith.mulf %64, %67 : vector<1x4xf32>
    %69 = arith.mulf %66, %66 : vector<1x4xf32>
    %70 = arith.subf %68, %69 : vector<1x4xf32>
    %cst_48 = arith.constant 0.000000e+00 : f32
    %71 = vector.broadcast %cst_48 : f32 to vector<1x4xf32>
    %72 = arith.maximumf %70, %71 : vector<1x4xf32>
    %73 = vector.broadcast %66 : vector<1x4xf32> to vector<288x4xf32>
    %74 = arith.subf %57, %73 : vector<288x4xf32>
    %cst_49 = arith.constant 9.99999974E-6 : f32
    %75 = vector.broadcast %cst_49 : f32 to vector<1x4xf32>
    %76 = arith.addf %72, %75 : vector<1x4xf32>
    %77 = math.rsqrt %76 : vector<1x4xf32>
    %78 = vector.broadcast %77 : vector<1x4xf32> to vector<288x4xf32>
    %79 = arith.mulf %74, %78 : vector<288x4xf32>
    %80 = vector.broadcast %5 : vector<1x4xf32> to vector<288x4xf32>
    %81 = arith.mulf %79, %80 : vector<288x4xf32>
    %82 = vector.broadcast %6 : vector<1x4xf32> to vector<288x4xf32>
    %83 = arith.addf %81, %82 : vector<288x4xf32>
    %cst_50 = arith.constant 0.000000e+00 : f32
    %84 = vector.broadcast %cst_50 : f32 to vector<288x4xf32>
    %85 = arith.maximumf %83, %84 : vector<288x4xf32>
    %86 = vector.broadcast %3 : vector<288x1xf32> to vector<288x4xf32>
    %87 = arith.mulf %85, %86 : vector<288x4xf32>
    %cst_51 = arith.constant 0.000000e+00 : bf16
    %88 = vector.broadcast %cst_51 : bf16 to vector<72x4xbf16>
    %c0_52 = arith.constant 0 : index
    %c0_53 = arith.constant 0 : index
    %89 = vector.load %arg7[%c0_52, %c0_53] : memref<396x4xbf16, #tpu.memory_space<vmem>>, vector<72x4xbf16>
    tpu.vector_store %arg7[%c0_52, %c0_53], %88 {strides = array<i32>} : memref<396x4xbf16, #tpu.memory_space<vmem>>, vector<72x4xbf16>,
    %cst_54 = arith.constant 0.000000e+00 : bf16
    %90 = vector.broadcast %cst_54 : bf16 to vector<36x4xbf16>
    %c360 = arith.constant 360 : index
    %c0_55 = arith.constant 0 : index
    %91 = vector.load %arg7[%c360, %c0_55] : memref<396x4xbf16, #tpu.memory_space<vmem>>, vector<36x4xbf16>
    tpu.vector_store %arg7[%c360, %c0_55], %90 {strides = array<i32>} : memref<396x4xbf16, #tpu.memory_space<vmem>>, vector<36x4xbf16>,
    %92 = arith.truncf %87 : vector<288x4xf32> to vector<288x4xbf16>
    %c72 = arith.constant 72 : index
    %c0_56 = arith.constant 0 : index
    %93 = vector.load %arg7[%c72, %c0_56] : memref<396x4xbf16, #tpu.memory_space<vmem>>, vector<288x4xbf16>
    tpu.vector_store %arg7[%c72, %c0_56], %92 {strides = array<i32>} : memref<396x4xbf16, #tpu.memory_space<vmem>>, vector<288x4xbf16>,
    %c0_57 = arith.constant 0 : index
    %c0_58 = arith.constant 0 : index
    %94 = vector.load %arg7[%c0_57, %c0_58] : memref<396x4xbf16, #tpu.memory_space<vmem>>, vector<396x4xbf16>
    %cst_59 = arith.constant 0.000000e+00 : f32
    %95 = vector.broadcast %cst_59 : f32 to vector<288x4xf32>
    %96 = vector.extract_strided_slice %94 {offsets = [53, 0], sizes = [288, 4], strides = [1, 1]} : vector<396x4xbf16> to vector<288x4xbf16>
    %c0_60 = arith.constant 0 : index
    %c0_61 = arith.constant 0 : index
    %c0_62 = arith.constant 0 : index
    %97 = vector.load %arg3[%c0_60, %c0_61, %c0_62] : memref<9x4x4xbf16, #tpu.memory_space<vmem>>, vector<1x4x4xbf16>
    %98 = vector.shape_cast %97 : vector<1x4x4xbf16> to vector<4x4xbf16>
    %cst_63 = arith.constant dense<0.000000e+00> : vector<288x4xf32>
    %99 = tpu.matmul %96, %98, %cst_63 {dimension_numbers = #tpu.dot_dimension_numbers<[1], [0], [0], [1], [0, 0, 1, 1], [], []>} : vector<288x4xbf16>, vector<4x4xbf16>, vector<288x4xf32> -> vector<288x4xf32>
    %100 = arith.addf %95, %99 : vector<288x4xf32>
    %101 = vector.extract_strided_slice %94 {offsets = [54, 0], sizes = [288, 4], strides = [1, 1]} : vector<396x4xbf16> to vector<288x4xbf16>
    %c1_64 = arith.constant 1 : index
    %c0_65 = arith.constant 0 : index
    %c0_66 = arith.constant 0 : index
    %102 = vector.load %arg3[%c1_64, %c0_65, %c0_66] : memref<9x4x4xbf16, #tpu.memory_space<vmem>>, vector<1x4x4xbf16>
    %103 = vector.shape_cast %102 : vector<1x4x4xbf16> to vector<4x4xbf16>
    %cst_67 = arith.constant dense<0.000000e+00> : vector<288x4xf32>
    %104 = tpu.matmul %101, %103, %cst_67 {dimension_numbers = #tpu.dot_dimension_numbers<[1], [0], [0], [1], [0, 0, 1, 1], [], []>} : vector<288x4xbf16>, vector<4x4xbf16>, vector<288x4xf32> -> vector<288x4xf32>
    %105 = arith.addf %100, %104 : vector<288x4xf32>
    %106 = vector.extract_strided_slice %94 {offsets = [55, 0], sizes = [288, 4], strides = [1, 1]} : vector<396x4xbf16> to vector<288x4xbf16>
    %c2_68 = arith.constant 2 : index
    %c0_69 = arith.constant 0 : index
    %c0_70 = arith.constant 0 : index
    %107 = vector.load %arg3[%c2_68, %c0_69, %c0_70] : memref<9x4x4xbf16, #tpu.memory_space<vmem>>, vector<1x4x4xbf16>
    %108 = vector.shape_cast %107 : vector<1x4x4xbf16> to vector<4x4xbf16>
    %cst_71 = arith.constant dense<0.000000e+00> : vector<288x4xf32>
    %109 = tpu.matmul %106, %108, %cst_71 {dimension_numbers = #tpu.dot_dimension_numbers<[1], [0], [0], [1], [0, 0, 1, 1], [], []>} : vector<288x4xbf16>, vector<4x4xbf16>, vector<288x4xf32> -> vector<288x4xf32>
    %110 = arith.addf %105, %109 : vector<288x4xf32>
    %111 = vector.extract_strided_slice %94 {offsets = [71, 0], sizes = [288, 4], strides = [1, 1]} : vector<396x4xbf16> to vector<288x4xbf16>
    %c3_72 = arith.constant 3 : index
    %c0_73 = arith.constant 0 : index
    %c0_74 = arith.constant 0 : index
    %112 = vector.load %arg3[%c3_72, %c0_73, %c0_74] : memref<9x4x4xbf16, #tpu.memory_space<vmem>>, vector<1x4x4xbf16>
    %113 = vector.shape_cast %112 : vector<1x4x4xbf16> to vector<4x4xbf16>
    %cst_75 = arith.constant dense<0.000000e+00> : vector<288x4xf32>
    %114 = tpu.matmul %111, %113, %cst_75 {dimension_numbers = #tpu.dot_dimension_numbers<[1], [0], [0], [1], [0, 0, 1, 1], [], []>} : vector<288x4xbf16>, vector<4x4xbf16>, vector<288x4xf32> -> vector<288x4xf32>
    %115 = arith.addf %110, %114 : vector<288x4xf32>
    %116 = vector.extract_strided_slice %94 {offsets = [72, 0], sizes = [288, 4], strides = [1, 1]} : vector<396x4xbf16> to vector<288x4xbf16>
    %c4_76 = arith.constant 4 : index
    %c0_77 = arith.constant 0 : index
    %c0_78 = arith.constant 0 : index
    %117 = vector.load %arg3[%c4_76, %c0_77, %c0_78] : memref<9x4x4xbf16, #tpu.memory_space<vmem>>, vector<1x4x4xbf16>
    %118 = vector.shape_cast %117 : vector<1x4x4xbf16> to vector<4x4xbf16>
    %cst_79 = arith.constant dense<0.000000e+00> : vector<288x4xf32>
    %119 = tpu.matmul %116, %118, %cst_79 {dimension_numbers = #tpu.dot_dimension_numbers<[1], [0], [0], [1], [0, 0, 1, 1], [], []>} : vector<288x4xbf16>, vector<4x4xbf16>, vector<288x4xf32> -> vector<288x4xf32>
    %120 = arith.addf %115, %119 : vector<288x4xf32>
    %121 = vector.extract_strided_slice %94 {offsets = [73, 0], sizes = [288, 4], strides = [1, 1]} : vector<396x4xbf16> to vector<288x4xbf16>
    %c5_80 = arith.constant 5 : index
    %c0_81 = arith.constant 0 : index
    %c0_82 = arith.constant 0 : index
    %122 = vector.load %arg3[%c5_80, %c0_81, %c0_82] : memref<9x4x4xbf16, #tpu.memory_space<vmem>>, vector<1x4x4xbf16>
    %123 = vector.shape_cast %122 : vector<1x4x4xbf16> to vector<4x4xbf16>
    %cst_83 = arith.constant dense<0.000000e+00> : vector<288x4xf32>
    %124 = tpu.matmul %121, %123, %cst_83 {dimension_numbers = #tpu.dot_dimension_numbers<[1], [0], [0], [1], [0, 0, 1, 1], [], []>} : vector<288x4xbf16>, vector<4x4xbf16>, vector<288x4xf32> -> vector<288x4xf32>
    %125 = arith.addf %120, %124 : vector<288x4xf32>
    %126 = vector.extract_strided_slice %94 {offsets = [89, 0], sizes = [288, 4], strides = [1, 1]} : vector<396x4xbf16> to vector<288x4xbf16>
    %c6_84 = arith.constant 6 : index
    %c0_85 = arith.constant 0 : index
    %c0_86 = arith.constant 0 : index
    %127 = vector.load %arg3[%c6_84, %c0_85, %c0_86] : memref<9x4x4xbf16, #tpu.memory_space<vmem>>, vector<1x4x4xbf16>
    %128 = vector.shape_cast %127 : vector<1x4x4xbf16> to vector<4x4xbf16>
    %cst_87 = arith.constant dense<0.000000e+00> : vector<288x4xf32>
    %129 = tpu.matmul %126, %128, %cst_87 {dimension_numbers = #tpu.dot_dimension_numbers<[1], [0], [0], [1], [0, 0, 1, 1], [], []>} : vector<288x4xbf16>, vector<4x4xbf16>, vector<288x4xf32> -> vector<288x4xf32>
    %130 = arith.addf %125, %129 : vector<288x4xf32>
    %131 = vector.extract_strided_slice %94 {offsets = [90, 0], sizes = [288, 4], strides = [1, 1]} : vector<396x4xbf16> to vector<288x4xbf16>
    %c7_88 = arith.constant 7 : index
    %c0_89 = arith.constant 0 : index
    %c0_90 = arith.constant 0 : index
    %132 = vector.load %arg3[%c7_88, %c0_89, %c0_90] : memref<9x4x4xbf16, #tpu.memory_space<vmem>>, vector<1x4x4xbf16>
    %133 = vector.shape_cast %132 : vector<1x4x4xbf16> to vector<4x4xbf16>
    %cst_91 = arith.constant dense<0.000000e+00> : vector<288x4xf32>
    %134 = tpu.matmul %131, %133, %cst_91 {dimension_numbers = #tpu.dot_dimension_numbers<[1], [0], [0], [1], [0, 0, 1, 1], [], []>} : vector<288x4xbf16>, vector<4x4xbf16>, vector<288x4xf32> -> vector<288x4xf32>
    %135 = arith.addf %130, %134 : vector<288x4xf32>
    %136 = vector.extract_strided_slice %94 {offsets = [91, 0], sizes = [288, 4], strides = [1, 1]} : vector<396x4xbf16> to vector<288x4xbf16>
    %c8_92 = arith.constant 8 : index
    %c0_93 = arith.constant 0 : index
    %c0_94 = arith.constant 0 : index
    %137 = vector.load %arg3[%c8_92, %c0_93, %c0_94] : memref<9x4x4xbf16, #tpu.memory_space<vmem>>, vector<1x4x4xbf16>
    %138 = vector.shape_cast %137 : vector<1x4x4xbf16> to vector<4x4xbf16>
    %cst_95 = arith.constant dense<0.000000e+00> : vector<288x4xf32>
    %139 = tpu.matmul %136, %138, %cst_95 {dimension_numbers = #tpu.dot_dimension_numbers<[1], [0], [0], [1], [0, 0, 1, 1], [], []>} : vector<288x4xbf16>, vector<4x4xbf16>, vector<288x4xf32> -> vector<288x4xf32>
    %140 = arith.addf %135, %139 : vector<288x4xf32>
    %141 = vector.broadcast %7 : vector<1x4xf32> to vector<288x4xf32>
    %142 = arith.addf %140, %141 : vector<288x4xf32>
    %143 = vector.broadcast %3 : vector<288x1xf32> to vector<288x4xf32>
    %144 = arith.mulf %142, %143 : vector<288x4xf32>
    %cst_96 = arith.constant dense<0.000000e+00> : vector<4xf32>
    %145 = vector.multi_reduction <add>, %144, %cst_96 [0] : vector<288x4xf32> to vector<4xf32>
    %146 = vector.shape_cast %145 : vector<4xf32> to vector<1x4xf32>
    %147 = arith.mulf %144, %142 : vector<288x4xf32>
    %cst_97 = arith.constant dense<0.000000e+00> : vector<4xf32>
    %148 = vector.multi_reduction <add>, %147, %cst_97 [0] : vector<288x4xf32> to vector<4xf32>
    %149 = vector.shape_cast %148 : vector<4xf32> to vector<1x4xf32>
    %cst_98 = arith.constant 3.906250e-03 : f32
    %150 = vector.broadcast %cst_98 : f32 to vector<1x4xf32>
    %151 = arith.mulf %146, %150 : vector<1x4xf32>
    %cst_99 = arith.constant 3.906250e-03 : f32
    %152 = vector.broadcast %cst_99 : f32 to vector<1x4xf32>
    %153 = arith.mulf %149, %152 : vector<1x4xf32>
    %154 = arith.mulf %151, %151 : vector<1x4xf32>
    %155 = arith.subf %153, %154 : vector<1x4xf32>
    %cst_100 = arith.constant 0.000000e+00 : f32
    %156 = vector.broadcast %cst_100 : f32 to vector<1x4xf32>
    %157 = arith.maximumf %155, %156 : vector<1x4xf32>
    %158 = vector.broadcast %151 : vector<1x4xf32> to vector<288x4xf32>
    %159 = arith.subf %142, %158 : vector<288x4xf32>
    %cst_101 = arith.constant 9.99999974E-6 : f32
    %160 = vector.broadcast %cst_101 : f32 to vector<1x4xf32>
    %161 = arith.addf %157, %160 : vector<1x4xf32>
    %162 = math.rsqrt %161 : vector<1x4xf32>
    %163 = vector.broadcast %162 : vector<1x4xf32> to vector<288x4xf32>
    %164 = arith.mulf %159, %163 : vector<288x4xf32>
    %165 = vector.broadcast %8 : vector<1x4xf32> to vector<288x4xf32>
    %166 = arith.mulf %164, %165 : vector<288x4xf32>
    %167 = vector.broadcast %9 : vector<1x4xf32> to vector<288x4xf32>
    %168 = arith.addf %166, %167 : vector<288x4xf32>
    %169 = vector.extract_strided_slice %1 {offsets = [72, 0], sizes = [288, 4], strides = [1, 1]} : vector<396x4xf32> to vector<288x4xf32>
    %170 = arith.addf %169, %168 : vector<288x4xf32>
    %c0_102 = arith.constant 0 : index
    %c0_103 = arith.constant 0 : index
    %c0_104 = arith.constant 0 : index
    %171 = vector.load %arg6[%c0_102, %c0_103, %c0_104] : memref<1x288x4xf32, #tpu.memory_space<vmem>>, vector<1x288x4xf32>
    %172 = vector.shape_cast %171 : vector<1x288x4xf32> to vector<288x4xf32>
    %173 = vector.shape_cast %170 : vector<288x4xf32> to vector<1x288x4xf32>
    tpu.vector_store %arg6[%c0_102, %c0_103, %c0_104], %173 {strides = array<i32>} : memref<1x288x4xf32, #tpu.memory_space<vmem>>, vector<1x288x4xf32>,
    return
  }
  func.func @transform_0(%arg0: i32) -> (i32, i32, i32) {
    %c0_i32 = arith.constant 0 : i32
    %c0_i32_0 = arith.constant 0 : i32
    %c0_i32_1 = arith.constant 0 : i32
    return %arg0, %c0_i32, %c0_i32_0 : i32, i32, i32
  }
  func.func @transform_1(%arg0: i32) -> (i32, i32, i32) {
    %c0_i32 = arith.constant 0 : i32
    %c0_i32_0 = arith.constant 0 : i32
    %c0_i32_1 = arith.constant 0 : i32
    %c0_i32_2 = arith.constant 0 : i32
    return %c0_i32, %c0_i32_0, %c0_i32_1 : i32, i32, i32
  }
  func.func @transform_2(%arg0: i32) -> (i32, i32, i32) {
    %c0_i32 = arith.constant 0 : i32
    %c0_i32_0 = arith.constant 0 : i32
    %c0_i32_1 = arith.constant 0 : i32
    %c0_i32_2 = arith.constant 0 : i32
    return %c0_i32, %c0_i32_0, %c0_i32_1 : i32, i32, i32
  }
  func.func @transform_3(%arg0: i32) -> (i32, i32) {
    %c0_i32 = arith.constant 0 : i32
    %c0_i32_0 = arith.constant 0 : i32
    %c0_i32_1 = arith.constant 0 : i32
    return %c0_i32, %c0_i32_0 : i32, i32
  }
  func.func @transform_4(%arg0: i32) -> (i32, i32) {
    %c0_i32 = arith.constant 0 : i32
    %c0_i32_0 = arith.constant 0 : i32
    %c0_i32_1 = arith.constant 0 : i32
    return %c0_i32, %c0_i32_0 : i32, i32
  }
  func.func @transform_5(%arg0: i32) -> (i32, i32, i32) {
    %c0_i32 = arith.constant 0 : i32
    %c0_i32_0 = arith.constant 0 : i32
    %c0_i32_1 = arith.constant 0 : i32
    return %arg0, %c0_i32, %c0_i32_0 : i32, i32, i32
  }
}

</mosaic_0001>

<bundles_post_ra>
// kernel: tpu_custom_call.1
= control target key start
LH: loop header
LB: loop body
LE: loop exit
PB: predicated region body
PF: predicated region fallthrough
CT: control target
= control target key end

     0   :  { %s9813_s18 = smov 0   ;;  %s13321_s0 = inlined_call_operand.vmem [shape: f32[2,396,4], index: 0, kind: input, shape index: {}]   ;;  %s13322_s1 = inlined_call_operand.vmem [shape: bf16[9,4,4], index: 1, kind: input, shape index: {}]   ;;  %s13323_s2 = inlined_call_operand.vmem [shape: bf16[9,4,4], index: 2, kind: input, shape index: {}]   ;;  %s13324_s3 = inlined_call_operand.vmem [shape: f32[8,4], index: 3, kind: input, shape index: {}]   ;;  %s13325_s4 = inlined_call_operand.vmem [shape: f32[288,1], index: 4, kind: input, shape index: {}]   ;;  %s13326_s5 = inlined_call_operand.vmem [shape: f32[2,288,4], index: 5, kind: output, shape index: {}]  }
   0x1 LB: > { %s7590_s19 = sadd.s32 4294967295, %s9780_s18   ;;  %p7594_p0 = scmp.ge.s32.totalorder %s9780_s18, 1  ;;  %s9780_s18 = sphi %s9813_s18, %s15_s18  }
   0x2   : > { %p187_p1 = scmp.lt.s32.totalorder %s9780_s18, 3 }
   0x4   : > { %p188_p2 = pnand %p7594_p0, %p187_p1 }
   0x6   : > { %191 = sbr.rel (%p188_p2) target bundleno = 1952 (0x7a0), region = 40 }
   0xd   : > { %v7597_v0 = vld [vmem:[%s13322_s1 + $0x2] sm:$0x3]  ;;  %vm446_vm0 = vcmask 1041408   ;;  %p215_p3 = scmp.lt.s32.totalorder %s7590_s19, 1  ;;  %v331_v2 = vld [vmem:[%s13322_s1] sm:$0x3] }
   0xe   : > { %9661 = vmatprep.subr.msk.bf16.mxu0 %vm446_vm0, %v7597_v0  ;;  %v448_v1 = vsel %vm446_vm0, %v7597_v0, 0  ;;  %vm353_vm1 = vcmask 1044480   ;;  %vm391_vm2 = vcmask 31744   ;;  %v853_v26 = vsel %vm446_vm0, %v331_v2, 0  ;;  %v9874_v29 = vld [vmem:[%s13322_s1 + $0x4] sm:$0x3] }
   0xf   : > { %8402 = vmatpush3.bf16.msra.mxu0 %v448_v1  ;;  %s13865_s19 = smov (!%p215_p3, %s7590_s19), 1  ;;  %vm627_vm3 = vsmask.f32 5376  ;;  %vm1034_vm4 = vsmask.f32 4352  ;;  %vm1613_vm5 = vcmask 1043456  }
  0x10   : > { %9662 = vmatprep.subr.msk.bf16.mxu0 %vm446_vm0, %v331_v2  ;;  %s9679_s24 = smul.u32 400, %s13865_s19  ;;  %vm1923_vm6 = vsmask.f32 3328  ;;  %vm3835_vm7 = vcmask 27648   ;;  %vm2502_vm8 = vcmask 1042432   ;;  %vm6380_vm12 = vcmask 1046528  }
  0x11   : > { %vm2812_vm9 = vsmask.f32 2304  ;;  %vm5734_vm10 = vsmask.f32 7424  ;;  %vm6690_vm11 = vsmask.f32 6400 }
  0x12   : > { %s9836_s27 = scalar_lea.vmem %s13321_s0, %s9679_s24  ;;  %s9680_s9 = smul.u32 288, %s13865_s19 }
  0x13   : > { %v226_v3 = vld [vmem:[%s9836_s27 + $0x30] sm:$0xff]  ;;  %v227_v4 = vld [vmem:[%s9836_s27 + $0x38] sm:$0xff]  ;;  %v228_v5 = vld [vmem:[%s9836_s27 + $0x40] sm:$0xff] }
  0x14   : > { %v229_v6 = vld [vmem:[%s9836_s27 + $0x48] sm:$0xff]  ;;  %v9842_v7 = vpack.c.bf16 %v227_v4, %v226_v3  ;;  %v230_v8 = vld [vmem:[%s9836_s27 + $0x50] sm:$0xff]  ;;  %v231_v9 = vld [vmem:[%s9836_s27 + $0x58] sm:$0xff]  ;;  %s13181_s11 = scalar_lea.vmem %s13326_s5, %s9680_s9 }
  0x15   : > { %v9846_v10 = vpack.c.bf16 %v229_v6, %v228_v5  ;;  %v9848_v11 = vpack.c.bf16 %v231_v9, %v230_v8  ;;  %v232_v12 = vld [vmem:[%s9836_s27 + $0x60] sm:$0xff]  ;;  %v233_v13 = vld [vmem:[%s9836_s27 + $0x68] sm:$0xff]  ;;  %v234_v14 = vld [vmem:[%s9836_s27 + $0x70] sm:$0xff] }
  0x16   : > { %v354_v15 = vrot.slane %v9842_v7, 3  ;;  %v9854_v16 = vpack.c.bf16 %v233_v13, %v232_v12  ;;  %v235_v17 = vld [vmem:[%s9836_s27 + $0x78] sm:$0xff]  ;;  %v236_v18 = vld [vmem:[%s9836_s27 + $0x80] sm:$0xff]  ;;  %v237_v19 = vld [vmem:[%s9836_s27 + $0x88] sm:$0xff]  ;;  %v629_v8 = vshrl.u32 %v9842_v7, 16  ;;  %v632_v9 = vshll.u32 %v9842_v7, 16 }
  0x17   : > { %v355_v20 = vrot.slane %v9846_v10, 3  ;;  %v357_v21 = vrot.slane %v9848_v11, 3  ;;  %v9862_v23 = vpack.c.bf16 %v235_v17, %v234_v14  ;;  %v9867_v27 = vpack.c.bf16 %v237_v19, %v236_v18  ;;  %v238_v32 = vld [vmem:[%s9836_s27 + $0x90] sm:$0xff]  ;;  %v239_v33 = vld [vmem:[%s9836_s27 + $0x98] sm:$0xff]  ;;  %v240_v34 = vld [vmem:[%s9836_s27 + $0xa0] sm:$0xff] }
  0x18   : > { %v359_v22 = vrot.slane %v9854_v16, 3  ;;  %v241_v35 = vld [vmem:[%s9836_s27 + $0xa8] sm:$0xff]  ;;  %v9887_v37 = vpack.c.bf16 %v239_v33, %v238_v32  ;;  %v242_v42 = vld [vmem:[%s9836_s27 + $0xb0] sm:$0xff]  ;;  %v243_v43 = vld [vmem:[%s9836_s27 + $0xb8] sm:$0xff]  ;;  %v9944_v18 = vrot.slane %v629_v8, 3  ;;  %v9946_v19 = vrot.slane %v632_v9, 4 }
  0x19   : > { %v356_v24 = vsel %vm353_vm1, %v354_v15, %v355_v20  ;;  %v358_v25 = vsel %vm353_vm1, %v355_v20, %v357_v21  ;;  %v361_v30 = vrot.slane %v9862_v23, 3  ;;  %v363_v31 = vrot.slane %v9867_v27, 3  ;;  %v244_v44 = vld [vmem:[%s9836_s27 + $0xc0] sm:$0xff]  ;;  %v245_v45 = vld [vmem:[%s9836_s27 + $0xc8] sm:$0xff]  ;;  %v246_v52 = vld [vmem:[%s9836_s27 + $0xd0] sm:$0xff] }
  0x1a   : > { %8403 = vmatprep.mubr.msk.bf16.mxu0 %vm391_vm2, %v356_v24  ;;  %v360_v28 = vsel %vm353_vm1, %v357_v21, %v359_v22  ;;  %v9890_v39 = vpack.c.bf16 %v241_v35, %v240_v34  ;;  %v365_v40 = vrot.slane %v9887_v37, 3  ;;  %v9901_v47 = vpack.c.bf16 %v243_v43, %v242_v42  ;;  %v247_v53 = vld [vmem:[%s9836_s27 + $0xd8] sm:$0xff]  ;;  %v248_v54 = vld [vmem:[%s9836_s27 + $0xe0] sm:$0xff]  ;;  %v249_v55 = vld [vmem:[%s9836_s27 + $0xe8] sm:$0xff] }
  0x1b   : > { %8404 = vmatmul.mubr.msk.bf16.vlgmr.msra.gmra.mrb[0].mxu0 %vm391_vm2, %v358_v25  ;;  %v362_v36 = vsel %vm353_vm1, %v359_v22, %v361_v30  ;;  %v364_v38 = vsel %vm353_vm1, %v361_v30, %v363_v31  ;;  %v9904_v49 = vpack.c.bf16 %v245_v45, %v244_v44  ;;  %v9915_v57 = vpack.c.bf16 %v247_v53, %v246_v52  ;;  %v250_v62 = vld [vmem:[%s9836_s27 + $0xf0] sm:$0xff]  ;;  %v251_v63 = vld [vmem:[%s9836_s27 + $0xf8] sm:$0xff]  ;;  %v252_v0 = vld [vmem:[%s9836_s27 + $0x100] sm:$0xff] }
  0x1c   : > { %8440 = vmatpush3.bf16.msra.mxu0 %v853_v26  ;;  %8407 = vmatprep.mubr.msk.bf16.mxu0 %vm391_vm2, %v360_v28  ;;  %v367_v41 = vrot.slane %v9890_v39, 3  ;;  %v366_v46 = vsel %vm353_vm1, %v363_v31, %v365_v40  ;;  %v369_v50 = vrot.slane %v9901_v47, 3  ;;  %v9918_v59 = vpack.c.bf16 %v249_v55, %v248_v54  ;;  %v253_v1 = vld [vmem:[%s9836_s27 + $0x108] sm:$0xff]  ;;  %v254_v13 = vld [vmem:[%s9836_s27 + $0x110] sm:$0xff]  ;;  %v255_v14 = vld [vmem:[%s9836_s27 + $0x118] sm:$0xff] }
  0x1d   : > { %9663 = vmatprep.subr.msk.bf16.mxu0 %vm446_vm0, %v9874_v29  ;;  %v371_v51 = vrot.slane %v9904_v49, 3  ;;  %v373_v60 = vrot.slane %v9915_v57, 3  ;;  %v9929_v3 = vpack.c.bf16 %v251_v63, %v250_v62  ;;  %v9932_v5 = vpack.c.bf16 %v253_v1, %v252_v0  ;;  %v256_v15 = vld [vmem:[%s9836_s27 + $0x120] sm:$0xff]  ;;  %v257_v17 = vld [vmem:[%s9836_s27 + $0x128] sm:$0xff]  ;;  %v258_v28 = vld [vmem:[%s9836_s27 + $0x130] sm:$0xff] }
  0x1e   : > { %v368_v48 = vsel %vm353_vm1, %v365_v40, %v367_v41  ;;  %v370_v56 = vsel %vm353_vm1, %v367_v41, %v369_v50  ;;  %v375_v61 = vrot.slane %v9918_v59, 3  ;;  %v9949_v21 = vpack.c.bf16 %v255_v14, %v254_v13  ;;  %v259_v30 = vld [vmem:[%s9836_s27 + $0x138] sm:$0xff]  ;;  %v260_v31 = vld [vmem:[%s9836_s27 + $0x140] sm:$0xff]  ;;  %v261_v32 = vld [vmem:[%s9836_s27 + $0x148] sm:$0xff] }
  0x1f   : > { %v372_v58 = vsel %vm353_vm1, %v369_v50, %v371_v51  ;;  %v374_v2 = vsel %vm353_vm1, %v371_v51, %v373_v60  ;;  %13501 = vst [vmem:[#allocation3_spill] sm:$0xff] %v9929_v3  ;;  %13502 = vst [vmem:[#allocation4_spill] sm:$0xff] %v9932_v5  ;;  %v377_v6 = vrot.slane %v9929_v3, 3  ;;  %v379_v12 = vrot.slane %v9932_v5, 3  ;;  %v262_v41 = vld [vmem:[%s9836_s27 + $0x150] sm:$0xff]  ;;  %v263_v42 = vld [vmem:[%s9836_s27 + $0x158] sm:$0xff] }
  0x20   : > { %v376_v4 = vsel %vm353_vm1, %v373_v60, %v375_v61  ;;  %13503 = vst [vmem:[#allocation5_spill] sm:$0xff] %v9949_v21  ;;  %v9954_v24 = vpack.c.bf16 %v257_v17, %v256_v15  ;;  %v381_v25 = vrot.slane %v9949_v21, 3  ;;  %v9965_v34 = vpack.c.bf16 %v259_v30, %v258_v28 }
  0x21   : > { %v378_v20 = vsel %vm353_vm1, %v375_v61, %v377_v6  ;;  %v380_v22 = vsel %vm353_vm1, %v377_v6, %v379_v12  ;;  %v9977_v43 = vshrl.u32 %v9846_v10, 16  ;;  %v9980_v44 = vshll.u32 %v9846_v10, 16 }
  0x22   : > { %13504 = vst [vmem:[#allocation6_spill] sm:$0xff] %v9954_v24  ;;  %v383_v26 = vrot.slane %v9954_v24, 3  ;;  %v382_v33 = vsel %vm353_vm1, %v379_v12, %v381_v25  ;;  %13505 = vst [vmem:[#allocation7_spill] sm:$0xff] %v9965_v34  ;;  %v634_v51 = vrot.slane %v632_v9, 3  ;;  %v9992_v55 = vshrl.u32 %v9848_v11, 16 }
  0x23   : > { %8408 = vmatmul.mubr.msk.bf16.gmra.mrb[4].mxu0 %vm391_vm2, %v362_v36  ;;  %v9968_v36 = vpack.c.bf16 %v261_v32, %v260_v31  ;;  %13507 = vst [vmem:[#allocation9_spill] sm:$0xff] %v9977_v43  ;;  %13508 = vst [vmem:[#allocation10_spill] sm:$0xff] %v9980_v44  ;;  %v639_v52 = vrot.slane %v9977_v43, 2  ;;  %v642_v53 = vrot.slane %v9980_v44, 3  ;;  %v9998_v61 = vshrl.u32 %v9854_v16, 16 }
  0x24   : > { %8411 = vmatprep.mubr.msk.bf16.mxu0 %vm391_vm2, %v364_v38  ;;  %v384_v35 = vsel %vm353_vm1, %v381_v25, %v383_v26  ;;  %v385_v38 = vrot.slane %v9965_v34, 3  ;;  %v10001_v62 = vshll.u32 %v9854_v16, 16  ;;  %v648_v0 = vrot.slane %v9992_v55, 2  ;;  %v10034_v31 = vld [vmem:[%s13322_s1 + $0x6] sm:$0x3] }
  0x25   : > { %13506 = vst [vmem:[#allocation8_spill] sm:$0xff] %v9968_v36  ;;  %v387_v40 = vrot.slane %v9968_v36, 3  ;;  %v643_v60 = vor.u32 %v642_v53, %v639_v52  ;;  %v10012_v9 = vshrl.u32 %v9862_v23, 16  ;;  %v10015_v12 = vshll.u32 %v9862_v23, 16 }
  0x26   : > { %v386_v45 = vsel %vm353_vm1, %v383_v26, %v385_v38  ;;  %v660_v6 = vrot.slane %v10001_v62, 3  ;;  %v10018_v14 = vshrl.u32 %v9867_v27, 16  ;;  %v10021_v15 = vshll.u32 %v9867_v27, 16 }
  0x27   : > { %v388_v50 = vsel %vm353_vm1, %v385_v38, %v387_v40  ;;  %v1165_v25 = vsel %vm446_vm0, %v9874_v29, 0  ;;  %v10042_v29 = vshll.u32 %v9887_v37, 16  ;;  %v10045_v38 = vshrl.u32 %v9890_v39, 16 }
  0x28   : > { %v675_v28 = vrot.slane %v10018_v14, 2  ;;  %v678_v30 = vrot.slane %v10021_v15, 3  ;;  %v10061_v53 = vshrl.u32 %v9901_v47, 16  ;;  %v10147_v7 = vshrl.u32 %v9968_v36, 16 }
  0x29   : > { %13509 = vst [vmem:[#allocation11_spill] sm:$0xff] %v10045_v38 }
  0x2a   : > { %13511 = vst [vmem:[#allocation13_spill] sm:$0xff] %v10061_v53 }
  0x2b   : > { %8412 = vmatmul.mubr.msk.bf16.gmra.mrb[8].mxu0 %vm391_vm2, %v366_v46  ;;  %v9983_v46 = vpack.c.bf16 %v263_v42, %v262_v41 }
  0x2c   : > { %8415 = vmatprep.mubr.msk.bf16.mxu0 %vm391_vm2, %v368_v48  ;;  %v631_v48 = vrot.slane %v629_v8, 2 }
  0x2d   : > { %v389_v54 = vrot.slane %v9983_v46, 3 }
  0x2f   : > { %v390_v63 = vsel %vm353_vm1, %v387_v40, %v389_v54  ;;  %v10048_v40 = vshll.u32 %v9890_v39, 16  ;;  %v10064_v54 = vshll.u32 %v9901_v47, 16 }
  0x31   : > { %13510 = vst [vmem:[#allocation12_spill] sm:$0xff] %v10048_v40  ;;  %13512 = vst [vmem:[#allocation14_spill] sm:$0xff] %v10064_v54 }
  0x33   : > { %8416 = vmatmul.mubr.msk.bf16.gmra.mrb[12].mxu0 %vm391_vm2, %v370_v56  ;;  %v9995_v56 = vshll.u32 %v9848_v11, 16 }
  0x34   : > { %8419 = vmatprep.mubr.msk.bf16.mxu0 %vm391_vm2, %v372_v58  ;;  %v635_v58 = vor.u32 %v634_v51, %v631_v48  ;;  %v696_v51 = vrot.slane %v10048_v40, 3 }
  0x35   : > { %v651_v1 = vrot.slane %v9995_v56, 3 }
  0x37   : > { %v652_v8 = vor.u32 %v651_v1, %v648_v0  ;;  %v702_v1 = vrot.slane %v10061_v53, 2 }
  0x39   : > { %v653_v17 = vsel %vm627_vm3, %v643_v60, %v652_v8 }
  0x3b   : > { %8420 = vmatmul.mubr.msk.bf16.gmra.mrb[16].mxu0 %vm391_vm2, %v374_v2  ;;  %v644_v2 = vsel %vm627_vm3, %v635_v58, %v643_v60  ;;  %v10067_v60 = vshrl.u32 %v9904_v49, 16 }
  0x3c   : > { %8423 = vmatprep.mubr.msk.bf16.mxu0 %vm391_vm2, %v376_v4  ;;  %v657_v4 = vrot.slane %v9998_v61, 2 }
  0x3d   : > { %13513 = vst [vmem:[#allocation15_spill] sm:$0xff] %v10067_v60 }
  0x3e   : > { %v661_v13 = vor.u32 %v660_v6, %v657_v4  ;;  %v711_v6 = vrot.slane %v10067_v60, 2 }
  0x40   : > { %v662_v26 = vsel %vm627_vm3, %v652_v8, %v661_v13 }
  0x43   : > { %8424 = vmatmul.mubr.msk.bf16.gmra.mrb[20].mxu0 %vm391_vm2, %v378_v20  ;;  %v666_v20 = vrot.slane %v10012_v9, 2 }
  0x44   : > { %8427 = vmatprep.mubr.msk.bf16.mxu0 %vm391_vm2, %v380_v22  ;;  %v669_v22 = vrot.slane %v10015_v12, 3 }
  0x46   : > { %v670_v32 = vor.u32 %v669_v22, %v666_v20  ;;  %v10084_v20 = vshll.u32 %v9915_v57, 16 }
  0x48   : > { %v671_v41 = vsel %vm627_vm3, %v661_v13, %v670_v32  ;;  %13516 = vst [vmem:[#allocation18_spill] sm:$0xff] %v10084_v20 }
  0x4b   : > { %8428 = vmatmul.mubr.msk.bf16.gmra.mrb[24].mxu0 %vm391_vm2, %v382_v33  ;;  %v10039_v33 = vshrl.u32 %v9887_v37, 16 }
  0x4c   : > { %8431 = vmatprep.mubr.msk.bf16.mxu0 %vm391_vm2, %v384_v35  ;;  %v679_v35 = vor.u32 %v678_v30, %v675_v28 }
  0x4d   : > { %v684_v42 = vrot.slane %v10039_v33, 2 }
  0x4e   : > { %v680_v48 = vsel %vm627_vm3, %v670_v32, %v679_v35  ;;  %v723_v32 = vrot.slane %v10084_v20, 3 }
  0x53   : > { %8432 = vmatmul.mubr.msk.bf16.gmra.mrb[28].mxu0 %vm391_vm2, %v386_v45  ;;  %v687_v45 = vrot.slane %v10042_v29, 3 }
  0x54   : > { %8435 = vmatprep.mubr.msk.bf16.mxu0 %vm391_vm2, %v388_v50  ;;  %v693_v50 = vrot.slane %v10045_v38, 2 }
  0x55   : > { %v688_v52 = vor.u32 %v687_v45, %v684_v42 }
  0x56   : > { %v697_v58 = vor.u32 %v696_v51, %v693_v50  ;;  %v10104_v50 = vshll.u32 %v9929_v3, 16 }
  0x57   : > { %v689_v0 = vsel %vm627_vm3, %v679_v35, %v688_v52 }
  0x58   : > { %v698_v4 = vsel %vm627_vm3, %v688_v52, %v697_v58  ;;  %13520 = vst [vmem:[#allocation22_spill] sm:$0xff] %v10104_v50  ;;  %v10107_v52 = vshrl.u32 %v9932_v5, 16 }
  0x5a   : > { %13521 = vst [vmem:[#allocation23_spill] sm:$0xff] %v10107_v52 }
  0x5b   : > { %8436 = vmatmul.mubr.msk.bf16.gmra.mrb[32].mxu0 %vm391_vm2, %v390_v63  ;;  %v10070_v63 = vshll.u32 %v9904_v49, 16 }
  0x5c   : > { %8441 = vmatprep.mubr.msk.bf16.mxu0 %vm391_vm2, %v644_v2  ;;  %v705_v2 = vrot.slane %v10064_v54, 3 }
  0x5d   : > { %13514 = vst [vmem:[#allocation16_spill] sm:$0xff] %v10070_v63  ;;  %v714_v8 = vrot.slane %v10070_v63, 3 }
  0x5e   : > { %v706_v13 = vor.u32 %v705_v2, %v702_v1  ;;  %v741_v2 = vrot.slane %v10104_v50, 3 }
  0x5f   : > { %v715_v22 = vor.u32 %v714_v8, %v711_v6  ;;  %v747_v6 = vrot.slane %v10107_v52, 2 }
  0x60   : > { %v707_v28 = vsel %vm627_vm3, %v697_v58, %v706_v13  ;;  %v10110_v58 = vshll.u32 %v9932_v5, 16 }
  0x61   : > { %v716_v35 = vsel %vm627_vm3, %v706_v13, %v715_v22 }
  0x62   : > { %13522 = vst [vmem:[#allocation24_spill] sm:$0xff] %v10110_v58  ;;  %v750_v8 = vrot.slane %v10110_v58, 3 }
  0x63   : > { %8442 = vmatmul.mubr.msk.bf16.vlgmr.msra.gmra.mrb[0].mxu0 %vm391_vm2, %v653_v17  ;;  %v10081_v17 = vshrl.u32 %v9915_v57, 16 }
  0x64   : > { %8478 = vmatpush3.bf16.msra.mxu0 %v1165_v25  ;;  %8445 = vmatprep.mubr.msk.bf16.mxu0 %vm391_vm2, %v662_v26  ;;  %v10087_v25 = vshrl.u32 %v9918_v59, 16  ;;  %v10090_v26 = vshll.u32 %v9918_v59, 16 }
  0x65   : > { %9664 = vmatprep.subr.msk.bf16.mxu0 %vm446_vm0, %v10034_v31  ;;  %13515 = vst [vmem:[#allocation17_spill] sm:$0xff] %v10081_v17  ;;  %v720_v30 = vrot.slane %v10081_v17, 2 }
  0x66   : > { %13517 = vst [vmem:[#allocation19_spill] sm:$0xff] %v10087_v25  ;;  %13518 = vst [vmem:[#allocation20_spill] sm:$0xff] %v10090_v26  ;;  %v732_v42 = vrot.slane %v10090_v26, 3 }
  0x67   : > { %v724_v45 = vor.u32 %v723_v32, %v720_v30  ;;  %v751_v30 = vor.u32 %v750_v8, %v747_v6  ;;  %v10127_v32 = vshrl.u32 %v9954_v24, 16  ;;  %v10141_v6 = vshrl.u32 %v9965_v34, 16 }
  0x69   : > { %13525 = vst [vmem:[#allocation27_spill] sm:$0xff] %v10127_v32  ;;  %13527 = vst [vmem:[#allocation29_spill] sm:$0xff] %v10141_v6 }
  0x6b   : > { %8446 = vmatmul.mubr.msk.bf16.gmra.mrb[4].mxu0 %vm391_vm2, %v671_v41  ;;  %v729_v41 = vrot.slane %v10087_v25, 2 }
  0x6c   : > { %8449 = vmatprep.mubr.msk.bf16.mxu0 %vm391_vm2, %v680_v48  ;;  %v10101_v48 = vshrl.u32 %v9929_v3, 16 }
  0x6d   : > { %v733_v51 = vor.u32 %v732_v42, %v729_v41 }
  0x6e   : > { %13519 = vst [vmem:[#allocation21_spill] sm:$0xff] %v10101_v48  ;;  %v738_v1 = vrot.slane %v10101_v48, 2 }
  0x70   : > { %v742_v13 = vor.u32 %v741_v2, %v738_v1  ;;  %v765_v1 = vrot.slane %v10127_v32, 2 }
  0x72   : > { %v743_v41 = vsel %vm627_vm3, %v733_v51, %v742_v13 }
  0x73   : > { %8450 = vmatmul.mubr.msk.bf16.gmra.mrb[8].mxu0 %vm391_vm2, %v689_v0  ;;  %v725_v0 = vsel %vm627_vm3, %v715_v22, %v724_v45  ;;  %v10124_v22 = vshll.u32 %v9949_v21, 16 }
  0x74   : > { %8453 = vmatprep.mubr.msk.bf16.mxu0 %vm391_vm2, %v698_v4  ;;  %v734_v4 = vsel %vm627_vm3, %v724_v45, %v733_v51  ;;  %v10144_v51 = vshll.u32 %v9965_v34, 16 }
  0x75   : > { %13524 = vst [vmem:[#allocation26_spill] sm:$0xff] %v10124_v22  ;;  %v759_v45 = vrot.slane %v10124_v22, 3 }
  0x76   : > { %13528 = vst [vmem:[#allocation30_spill] sm:$0xff] %v10144_v51 }
  0x7b   : > { %8454 = vmatmul.mubr.msk.bf16.gmra.mrb[12].mxu0 %vm391_vm2, %v707_v28  ;;  %v10121_v28 = vshrl.u32 %v9949_v21, 16 }
  0x7c   : > { %8457 = vmatprep.mubr.msk.bf16.mxu0 %vm391_vm2, %v716_v35  ;;  %v10130_v35 = vshll.u32 %v9954_v24, 16 }
  0x7d   : > { %13523 = vst [vmem:[#allocation25_spill] sm:$0xff] %v10121_v28  ;;  %v756_v42 = vrot.slane %v10121_v28, 2 }
  0x7e   : > { %13526 = vst [vmem:[#allocation28_spill] sm:$0xff] %v10130_v35  ;;  %v768_v2 = vrot.slane %v10130_v35, 3 }
  0x80   : > { %v769_v8 = vor.u32 %v768_v2, %v765_v1  ;;  %v10161_v2 = vshrl.u32 %v9983_v46, 16 }
  0x83   : > { %8458 = vmatmul.mubr.msk.bf16.gmra.mrb[16].mxu0 %vm391_vm2, %v725_v0  ;;  %v752_v0 = vsel %vm627_vm3, %v742_v13, %v751_v30  ;;  %v10150_v13 = vshll.u32 %v9968_v36, 16 }
  0x84   : > { %8461 = vmatprep.mubr.msk.bf16.mxu0 %vm391_vm2, %v734_v4  ;;  %v760_v4 = vor.u32 %v759_v45, %v756_v42  ;;  %v783_v45 = vrot.slane %v10147_v7, 2 }
  0x85   : > { %v786_v34 = vrot.slane %v10150_v13, 3 }
  0x86   : > { %v761_v24 = vsel %vm627_vm3, %v751_v30, %v760_v4  ;;  %v770_v42 = vsel %vm627_vm3, %v760_v4, %v769_v8  ;;  %v10164_v30 = vshll.u32 %v9983_v46, 16  ;;  %v792_v4 = vrot.slane %v10161_v2, 2 }
  0x87   : > { %v787_v36 = vor.u32 %v786_v34, %v783_v45  ;;  %v1043_v45 = vrot.slane %v9995_v56, 4 }
  0x88   : > { %v795_v5 = vrot.slane %v10164_v30, 3 }
  0x8b   : > { %8462 = vmatmul.mubr.msk.bf16.gmra.mrb[20].mxu0 %vm391_vm2, %v743_v41  ;;  %v774_v41 = vrot.slane %v10141_v6, 2 }
  0x8c   : > { %8465 = vmatprep.mubr.msk.bf16.mxu0 %vm391_vm2, %v752_v0  ;;  %v777_v0 = vrot.slane %v10144_v51, 3 }
  0x8e   : > { %v778_v1 = vor.u32 %v777_v0, %v774_v41  ;;  %v796_v41 = vor.u32 %v795_v5, %v792_v4  ;;  %v1050_v4 = vrot.slane %v10012_v9, 3 }
  0x90   : > { %v779_v21 = vsel %vm627_vm3, %v769_v8, %v778_v1  ;;  %v788_v3 = vsel %vm627_vm3, %v778_v1, %v787_v36  ;;  %v797_v34 = vsel %vm627_vm3, %v787_v36, %v796_v41  ;;  %v1042_v8 = vrot.slane %v9992_v55, 3 }
  0x91   : > { %v13529_v1 = vor.u32 %v9946_v19, %v9944_v18  ;;  %v1395_v18 = vsel %vm446_vm0, %v10034_v31, 0  ;;  %v1055_v41 = vrot.slane %v10021_v15, 4 }
  0x93   : > { %8466 = vmatmul.mubr.msk.bf16.gmra.mrb[24].mxu0 %vm391_vm2, %v761_v24  ;;  %v1038_v24 = vrot.slane %v9977_v43, 3 }
  0x94   : > { %8469 = vmatprep.mubr.msk.bf16.mxu0 %vm391_vm2, %v770_v42  ;;  %v1039_v42 = vrot.slane %v9980_v44, 4  ;;  %v1046_v44 = vrot.slane %v9998_v61, 3 }
  0x96   : > { %v1040_v0 = vor.u32 %v1039_v42, %v1038_v24  ;;  %v1051_v24 = vrot.slane %v10015_v12, 4  ;;  %v1054_v42 = vrot.slane %v10018_v14, 3 }
  0x98   : > { %v1041_v43 = vsel %vm1034_vm4, %v13529_v1, %v1040_v0  ;;  %v1056_v31 = vor.u32 %v1055_v41, %v1054_v42  ;;  %v1062_v1 = vrot.slane %v10045_v38, 3  ;;  %v1070_v41 = vrot.slane %v10067_v60, 3 }
  0x99   : > { %v1078_v60 = vrot.slane %v10087_v25, 3 }
  0x9b   : > { %8470 = vmatmul.mubr.msk.bf16.gmra.mrb[28].mxu0 %vm391_vm2, %v779_v21  ;;  %v1047_v21 = vrot.slane %v10001_v62, 4 }
  0x9c   : > { %8473 = vmatprep.mubr.msk.bf16.mxu0 %vm391_vm2, %v788_v3  ;;  %v1044_v3 = vor.u32 %v1043_v45, %v1042_v8  ;;  %v1059_v8 = vrot.slane %v10042_v29, 4 }
  0x9d   : > { %v1048_v5 = vor.u32 %v1047_v21, %v1046_v44  ;;  %v1052_v44 = vor.u32 %v1051_v24, %v1050_v4  ;;  %v1063_v21 = vrot.slane %v10048_v40, 4  ;;  %v1066_v24 = vrot.slane %v10061_v53, 3 }
  0x9e   : > { %v10186_v36 = vsel %vm1034_vm4, %v1040_v0, %v1044_v3 }
  0x9f   : > { %v10193_v19 = vsel %vm1034_vm4, %v1044_v3, %v1048_v5  ;;  %v10209_v0 = vsel %vm1034_vm4, %v1048_v5, %v1052_v44  ;;  %v10214_v45 = vsel %vm1034_vm4, %v1052_v44, %v1056_v31  ;;  %v1064_v5 = vor.u32 %v1063_v21, %v1062_v1 }
  0xa0   : > { %v1071_v44 = vrot.slane %v10070_v63, 4  ;;  %v1074_v1 = vrot.slane %v10081_v17, 3  ;;  %v1075_v21 = vrot.slane %v10084_v20, 4  ;;  %v1079_v63 = vrot.slane %v10090_v26, 4 }
  0xa2   : > { %v1080_v53 = vor.u32 %v1079_v63, %v1078_v60  ;;  %v1090_v63 = vrot.slane %v10121_v28, 3 }
  0xa3   : > { %8474 = vmatmul.mubr.msk.bf16.gmra.mrb[32].mxu0 %vm391_vm2, %v797_v34  ;;  %v1058_v34 = vrot.slane %v10039_v33, 3 }
  0xa4   : > { %8479 = vmatprep.mubr.msk.bf16.mxu0 %vm391_vm2, %v1041_v43  ;;  %v10200_v43 = vld [vmem:[%s13322_s1 + $0x8] sm:$0x3] }
  0xa5   : > { %v1060_v3 = vor.u32 %v1059_v8, %v1058_v34 }
  0xa7   : > { %v10223_v4 = vsel %vm1034_vm4, %v1056_v31, %v1060_v3  ;;  %v10228_v42 = vsel %vm1034_vm4, %v1060_v3, %v1064_v5  ;;  %v1072_v31 = vor.u32 %v1071_v44, %v1070_v41  ;;  %v1086_v44 = vrot.slane %v10107_v52, 3 }
  0xab   : > { %8480 = vmatmul.mubr.msk.bf16.vlgmr.msra.gmra.mrb[0].mxu0 %vm391_vm2, %v10186_v36 }
  0xac   : > { %8516 = vmatpush3.bf16.msra.mxu0 %v1395_v18  ;;  %8483 = vmatprep.mubr.msk.bf16.mxu0 %vm391_vm2, %v10193_v19  ;;  %v1067_v18 = vrot.slane %v10064_v54, 4  ;;  %v1076_v54 = vor.u32 %v1075_v21, %v1074_v1  ;;  %v1095_v21 = vrot.slane %v10130_v35, 4 }
  0xad   : > { %9665 = vmatprep.subr.msk.bf16.mxu0 %vm446_vm0, %v10200_v43 }
  0xae   : > { %v1068_v34 = vor.u32 %v1067_v18, %v1066_v24  ;;  %v1077_v24 = vsel %vm1034_vm4, %v1072_v31, %v1076_v54  ;;  %v1083_v18 = vrot.slane %v10104_v50, 4  ;;  %v1081_v41 = vsel %vm1034_vm4, %v1076_v54, %v1080_v53 }
  0xaf   : > { %v1094_v54 = vrot.slane %v10127_v32, 3 }
  0xb0   : > { %v1069_v8 = vsel %vm1034_vm4, %v1064_v5, %v1068_v34  ;;  %v1073_v3 = vsel %vm1034_vm4, %v1068_v34, %v1072_v31  ;;  %v1082_v5 = vrot.slane %v10101_v48, 3  ;;  %v1087_v34 = vrot.slane %v10110_v58, 4 }
  0xb1   : > { %v1091_v31 = vrot.slane %v10124_v22, 4  ;;  %v1096_v52 = vor.u32 %v1095_v21, %v1094_v54 }
  0xb2   : > { %v1084_v26 = vor.u32 %v1083_v18, %v1082_v5  ;;  %v1088_v25 = vor.u32 %v1087_v34, %v1086_v44  ;;  %v1099_v18 = vrot.slane %v10144_v51, 4  ;;  %v1103_v34 = vrot.slane %v10150_v13, 4 }
  0xb3   : > { %8484 = vmatmul.mubr.msk.bf16.gmra.mrb[4].mxu0 %vm391_vm2, %v10209_v0  ;;  %v1092_v58 = vor.u32 %v1091_v31, %v1090_v63  ;;  %v1107_v31 = vrot.slane %v10164_v30, 4 }
  0xb4   : > { %8487 = vmatprep.mubr.msk.bf16.mxu0 %vm391_vm2, %v10214_v45  ;;  %v1085_v60 = vsel %vm1034_vm4, %v1080_v53, %v1084_v26  ;;  %v1089_v1 = vsel %vm1034_vm4, %v1084_v26, %v1088_v25  ;;  %v1098_v53 = vrot.slane %v10141_v6, 3  ;;  %v1102_v26 = vrot.slane %v10147_v7, 3 }
  0xb5   : > { %v1093_v5 = vsel %vm1034_vm4, %v1088_v25, %v1092_v58  ;;  %v1097_v44 = vsel %vm1034_vm4, %v1092_v58, %v1096_v52  ;;  %v1106_v25 = vrot.slane %v10161_v2, 3 }
  0xb6   : > { %v1100_v35 = vor.u32 %v1099_v18, %v1098_v53  ;;  %v1104_v32 = vor.u32 %v1103_v34, %v1102_v26  ;;  %v10331_v18 = vld [vmem:[%s13322_s1 + $0xc] sm:$0x3]  ;;  %v1623_v26 = vrot.slane %v9887_v37, 4 }
  0xb7   : > { %v1108_v58 = vor.u32 %v1107_v31, %v1106_v25  ;;  %v1625_v25 = vrot.slane %v9890_v39, 4  ;;  %v1627_v31 = vrot.slane %v9901_v47, 4 }
  0xb8   : > { %v1101_v63 = vsel %vm1034_vm4, %v1096_v52, %v1100_v35  ;;  %v1105_v54 = vsel %vm1034_vm4, %v1100_v35, %v1104_v32  ;;  %v1706_v52 = vsel %vm446_vm0, %v10200_v43, 0  ;;  %v7691_v35 = vld [vmem:[%s13322_s1 + $0xa] sm:$0x3] }
  0xb9   : > { %v1109_v21 = vsel %vm1034_vm4, %v1104_v32, %v1108_v58  ;;  %v264_v32 = vld [vmem:[%s9836_s27 + $0x160] sm:$0xff]  ;;  %v2054_v53 = vsel %vm446_vm0, %v7691_v35, 0 }
  0xbb   : > { %8488 = vmatmul.mubr.msk.bf16.gmra.mrb[8].mxu0 %vm391_vm2, %v10223_v4 }
  0xbc   : > { %8491 = vmatprep.mubr.msk.bf16.mxu0 %vm391_vm2, %v10228_v42 }
  0xc3   : > { %8492 = vmatmul.mubr.msk.bf16.gmra.mrb[12].mxu0 %vm391_vm2, %v1069_v8 }
  0xc4   : > { %8495 = vmatprep.mubr.msk.bf16.mxu0 %vm391_vm2, %v1073_v3 }
  0xcb   : > { %8496 = vmatmul.mubr.msk.bf16.gmra.mrb[16].mxu0 %vm391_vm2, %v1077_v24 }
  0xcc   : > { %8499 = vmatprep.mubr.msk.bf16.mxu0 %vm391_vm2, %v1081_v41 }
  0xd3   : > { %8500 = vmatmul.mubr.msk.bf16.gmra.mrb[20].mxu0 %vm391_vm2, %v1085_v60 }
  0xd4   : > { %8503 = vmatprep.mubr.msk.bf16.mxu0 %vm391_vm2, %v1089_v1 }
  0xdb   : > { %8504 = vmatmul.mubr.msk.bf16.gmra.mrb[24].mxu0 %vm391_vm2, %v1093_v5 }
  0xdc   : > { %8507 = vmatprep.mubr.msk.bf16.mxu0 %vm391_vm2, %v1097_v44 }
  0xe3   : > { %8508 = vmatmul.mubr.msk.bf16.gmra.mrb[28].mxu0 %vm391_vm2, %v1101_v63 }
  0xe4   : > { %8511 = vmatprep.mubr.msk.bf16.mxu0 %vm391_vm2, %v1105_v54 }
  0xeb   : > { %8512 = vmatmul.mubr.msk.bf16.gmra.mrb[32].mxu0 %vm391_vm2, %v1109_v21 }
  0xec   : > { %8517 = vmatprep.mubr.msk.bf16.mxu0 %vm391_vm2, %v10186_v36  ;;  %v265_v36 = vld [vmem:[%s9836_s27 + $0x168] sm:$0xff] }
  0xf3   : > { %8518 = vmatmul.mubr.msk.bf16.vlgmr.msra.gmra.mrb[0].mxu0 %vm391_vm2, %v10193_v19  ;;  %v10303_v19 = vpack.c.bf16 %v265_v36, %v264_v32  ;;  %v1633_v36 = vrot.slane %v9918_v59, 4 }
  0xf4   : > { %8554 = vmatpush3.bf16.msra.mxu0 %v1706_v52  ;;  %8521 = vmatprep.mubr.msk.bf16.mxu0 %vm391_vm2, %v10209_v0  ;;  %v1631_v52 = vrot.slane %v9915_v57, 4 }
  0xf5   : > { %9666 = vmatprep.subr.msk.bf16.mxu0 %vm446_vm0, %v7691_v35  ;;  %v10308_v43 = vshrl.u32 %v10303_v19, 16  ;;  %v10311_v0 = vshll.u32 %v10303_v19, 16 }
  0xfb   : > { %8522 = vmatmul.mubr.msk.bf16.gmra.mrb[4].mxu0 %vm391_vm2, %v10214_v45  ;;  %v1385_v45 = vrot.slane %v10308_v43, 3 }
  0xfc   : > { %8525 = vmatprep.mubr.msk.bf16.mxu0 %vm391_vm2, %v10223_v4  ;;  %v1388_v4 = vrot.slane %v10311_v0, 4 }
 0x103   : > { %8526 = vmatmul.mubr.msk.bf16.gmra.mrb[8].mxu0 %vm391_vm2, %v10228_v42  ;;  %v1389_v42 = vor.u32 %v1388_v4, %v1385_v45  ;;  %v13530_v45 = vld [vmem:[#allocation3_spill] sm:$0xff] }
 0x104   : > { %8529 = vmatprep.mubr.msk.bf16.mxu0 %vm391_vm2, %v1069_v8  ;;  %v1614_v8 = vrot.slane %v9846_v10, 4  ;;  %v1635_v4 = vrot.slane %v13530_v45, 4 }
 0x10b   : > { %8530 = vmatmul.mubr.msk.bf16.gmra.mrb[12].mxu0 %vm391_vm2, %v1073_v3  ;;  %v1615_v3 = vrot.slane %v9848_v11, 4 }
 0x10c   : > { %8533 = vmatprep.mubr.msk.bf16.mxu0 %vm391_vm2, %v1077_v24  ;;  %v1390_v24 = vsel %vm1034_vm4, %v1108_v58, %v1389_v42  ;;  %v1628_v58 = vsel %vm1613_vm5, %v1625_v25, %v1627_v31  ;;  %v1634_v42 = vsel %vm1613_vm5, %v1631_v52, %v1633_v36 }
 0x113   : > { %8534 = vmatmul.mubr.msk.bf16.gmra.mrb[16].mxu0 %vm391_vm2, %v1081_v41  ;;  %v1616_v41 = vsel %vm1613_vm5, %v1614_v8, %v1615_v3  ;;  %v1636_v8 = vsel %vm1613_vm5, %v1633_v36, %v1635_v4 }
 0x114   : > { %8537 = vmatprep.mubr.msk.bf16.mxu0 %vm391_vm2, %v1085_v60  ;;  %v1617_v60 = vrot.slane %v9854_v16, 4 }
 0x11b   : > { %8538 = vmatmul.mubr.msk.bf16.gmra.mrb[20].mxu0 %vm391_vm2, %v1089_v1  ;;  %v1619_v1 = vrot.slane %v9862_v23, 4 }
 0x11c   : > { %8541 = vmatprep.mubr.msk.bf16.mxu0 %vm391_vm2, %v1093_v5  ;;  %v1618_v5 = vsel %vm1613_vm5, %v1615_v3, %v1617_v60  ;;  %v13531_v3 = vld [vmem:[#allocation4_spill] sm:$0xff] }
 0x11d   : > { %v1620_v10 = vsel %vm1613_vm5, %v1617_v60, %v1619_v1 }
 0x123   : > { %8542 = vmatmul.mubr.msk.bf16.gmra.mrb[24].mxu0 %vm391_vm2, %v1097_v44  ;;  %v1621_v44 = vrot.slane %v9867_v27, 4 }
 0x124   : > { %8545 = vmatprep.mubr.msk.bf16.mxu0 %vm391_vm2, %v1101_v63 }
 0x125   : > { %v1622_v34 = vsel %vm1613_vm5, %v1619_v1, %v1621_v44  ;;  %v1624_v63 = vsel %vm1613_vm5, %v1621_v44, %v1623_v26  ;;  %v13534_v44 = vld [vmem:[#allocation7_spill] sm:$0xff] }
 0x12b   : > { %8546 = vmatmul.mubr.msk.bf16.gmra.mrb[28].mxu0 %vm391_vm2, %v1105_v54  ;;  %v1626_v54 = vsel %vm1613_vm5, %v1623_v26, %v1625_v25  ;;  %v1643_v26 = vrot.slane %v13534_v44, 4  ;;  %v13535_v25 = vld [vmem:[#allocation8_spill] sm:$0xff] }
 0x12c   : > { %8549 = vmatprep.mubr.msk.bf16.mxu0 %vm391_vm2, %v1109_v21  ;;  %v1629_v21 = vrot.slane %v9904_v49, 4 }
 0x12e   : > { %v1630_v35 = vsel %vm1613_vm5, %v1627_v31, %v1629_v21  ;;  %v1632_v32 = vsel %vm1613_vm5, %v1629_v21, %v1631_v52  ;;  %v1645_v31 = vrot.slane %v13535_v25, 4  ;;  %v13536_v52 = vld [vmem:[#allocation9_spill] sm:$0xff] }
 0x133   : > { %8550 = vmatmul.mubr.msk.bf16.gmra.mrb[32].mxu0 %vm391_vm2, %v1390_v24  ;;  %v1637_v24 = vrot.slane %v13531_v3, 4 }
 0x134   : > { %8555 = vmatprep.mubr.msk.bf16.mxu0 %vm391_vm2, %v1616_v41  ;;  %v13532_v41 = vld [vmem:[#allocation5_spill] sm:$0xff] }
 0x135   : > { %v1639_v60 = vrot.slane %v13532_v41, 4  ;;  %v1638_v1 = vsel %vm1613_vm5, %v1635_v4, %v1637_v24  ;;  %v1927_v4 = vrot.slane %v9992_v55, 4 }
 0x13b   : > { %8556 = vmatmul.mubr.msk.bf16.vlgmr.msra.gmra.mrb[0].mxu0 %vm391_vm2, %v1618_v5  ;;  %v1640_v5 = vsel %vm1613_vm5, %v1637_v24, %v1639_v60 }
 0x13c   : > { %8592 = vmatpush3.bf16.msra.mxu0 %v2054_v53  ;;  %8559 = vmatprep.mubr.msk.bf16.mxu0 %vm391_vm2, %v1620_v10  ;;  %v13533_v53 = vld [vmem:[#allocation6_spill] sm:$0xff] }
 0x13d   : > { %9667 = vmatprep.subr.msk.bf16.mxu0 %vm446_vm0, %v10331_v18  ;;  %v1641_v10 = vrot.slane %v13533_v53, 4 }
 0x143   : > { %8560 = vmatmul.mubr.msk.bf16.gmra.mrb[4].mxu0 %vm391_vm2, %v1622_v34  ;;  %v1642_v34 = vsel %vm1613_vm5, %v1639_v60, %v1641_v10 }
 0x144   : > { %8563 = vmatprep.mubr.msk.bf16.mxu0 %vm391_vm2, %v1624_v63  ;;  %v1644_v63 = vsel %vm1613_vm5, %v1641_v10, %v1643_v26  ;;  %v1932_v10 = vrot.slane %v10001_v62, 5 }
 0x14b   : > { %8564 = vmatmul.mubr.msk.bf16.gmra.mrb[8].mxu0 %vm391_vm2, %v1626_v54  ;;  %v1647_v54 = vrot.slane %v9983_v46, 4 }
 0x14c   : > { %8567 = vmatprep.mubr.msk.bf16.mxu0 %vm391_vm2, %v1628_v58  ;;  %v1646_v58 = vsel %vm1613_vm5, %v1643_v26, %v1645_v31 }
 0x14d   : > { %v1648_v21 = vsel %vm1613_vm5, %v1645_v31, %v1647_v54 }
 0x153   : > { %8568 = vmatmul.mubr.msk.bf16.gmra.mrb[12].mxu0 %vm391_vm2, %v1630_v35  ;;  %v1924_v35 = vrot.slane %v13536_v52, 4  ;;  %v1940_v52 = vrot.slane %v10021_v15, 5 }
 0x154   : > { %8571 = vmatprep.mubr.msk.bf16.mxu0 %vm391_vm2, %v1632_v32  ;;  %v13537_v32 = vld [vmem:[#allocation10_spill] sm:$0xff] }
 0x155   : > { %v1925_v36 = vrot.slane %v13537_v32, 5 }
 0x157   : > { %v1926_v24 = vor.u32 %v1925_v36, %v1924_v35  ;;  %v2284_v35 = vsel %vm446_vm0, %v10331_v18, 0  ;;  %v1943_v36 = vrot.slane %v10039_v33, 4 }
 0x15b   : > { %8572 = vmatmul.mubr.msk.bf16.gmra.mrb[16].mxu0 %vm391_vm2, %v1634_v42  ;;  %v1928_v42 = vrot.slane %v9995_v56, 5 }
 0x15c   : > { %8575 = vmatprep.mubr.msk.bf16.mxu0 %vm391_vm2, %v1636_v8  ;;  %v1649_v8 = vrot.slane %v10303_v19, 4 }
 0x15d   : > { %v1929_v60 = vor.u32 %v1928_v42, %v1927_v4  ;;  %v1944_v4 = vrot.slane %v10042_v29, 5  ;;  %v10407_v42 = vld [vmem:[%s13322_s1 + $0xe] sm:$0x3] }
 0x15f   : > { %v1930_v26 = vsel %vm1923_vm6, %v1926_v24, %v1929_v60 }
 0x163   : > { %8576 = vmatmul.mubr.msk.bf16.gmra.mrb[20].mxu0 %vm391_vm2, %v1638_v1  ;;  %v1650_v1 = vsel %vm1613_vm5, %v1647_v54, %v1649_v8  ;;  %v1939_v54 = vrot.slane %v10018_v14, 4  ;;  %v1945_v8 = vor.u32 %v1944_v4, %v1943_v36  ;;  %v13541_v36 = vld [vmem:[#allocation16_spill] sm:$0xff] }
 0x164   : > { %8579 = vmatprep.mubr.msk.bf16.mxu0 %vm391_vm2, %v1640_v5  ;;  %v1931_v5 = vrot.slane %v9998_v61, 4  ;;  %v1956_v4 = vrot.slane %v13541_v36, 5  ;;  %v13543_v36 = vld [vmem:[#allocation20_spill] sm:$0xff] }
 0x165   : > { %v1941_v18 = vor.u32 %v1940_v52, %v1939_v54  ;;  %v13540_v52 = vld [vmem:[#allocation15_spill] sm:$0xff] }
 0x166   : > { %v1933_v31 = vor.u32 %v1932_v10, %v1931_v5  ;;  %v13538_v10 = vld [vmem:[#allocation13_spill] sm:$0xff] }
 0x167   : > { %v10421_v5 = vsel %vm1923_vm6, %v1941_v18, %v1945_v8 }
 0x16b   : > { %8580 = vmatmul.mubr.msk.bf16.gmra.mrb[24].mxu0 %vm391_vm2, %v1642_v34  ;;  %v1935_v34 = vrot.slane %v10012_v9, 4 }
 0x16c   : > { %8583 = vmatprep.mubr.msk.bf16.mxu0 %vm391_vm2, %v1644_v63  ;;  %v1936_v63 = vrot.slane %v10015_v12, 5 }
 0x173   : > { %8584 = vmatmul.mubr.msk.bf16.gmra.mrb[28].mxu0 %vm391_vm2, %v1646_v58  ;;  %v1937_v58 = vor.u32 %v1936_v63, %v1935_v34  ;;  %v13539_v34 = vld [vmem:[#allocation14_spill] sm:$0xff] }
 0x174   : > { %8587 = vmatprep.mubr.msk.bf16.mxu0 %vm391_vm2, %v1648_v21  ;;  %v10393_v21 = vsel %vm1923_vm6, %v1929_v60, %v1933_v31  ;;  %v1947_v60 = vrot.slane %v10045_v38, 4  ;;  %v1952_v63 = vrot.slane %v13539_v34, 5  ;;  %v1959_v34 = vrot.slane %v10081_v17, 4 }
 0x175   : > { %v10400_v32 = vsel %vm1923_vm6, %v1933_v31, %v1937_v58  ;;  %v10416_v24 = vsel %vm1923_vm6, %v1937_v58, %v1941_v18  ;;  %v1967_v17 = vrot.slane %v10101_v48, 4  ;;  %v1976_v48 = vrot.slane %v10124_v22, 5 }
 0x17b   : > { %8588 = vmatmul.mubr.msk.bf16.gmra.mrb[32].mxu0 %vm391_vm2, %v1650_v1  ;;  %v1948_v1 = vrot.slane %v10048_v40, 5 }
 0x17c   : > { %8593 = vmatprep.mubr.msk.bf16.mxu0 %vm391_vm2, %v1930_v26  ;;  %v1951_v26 = vrot.slane %v13538_v10, 4  ;;  %v1960_v10 = vrot.slane %v10084_v20, 5  ;;  %v1968_v20 = vrot.slane %v10104_v50, 5 }
 0x17d   : > { %v1949_v31 = vor.u32 %v1948_v1, %v1947_v60 }
 0x17e   : > { %v1953_v58 = vor.u32 %v1952_v63, %v1951_v26  ;;  %v13542_v26 = vld [vmem:[#allocation19_spill] sm:$0xff]  ;;  %v1969_v38 = vor.u32 %v1968_v20, %v1967_v17 }
 0x17f   : > { %v10430_v54 = vsel %vm1923_vm6, %v1945_v8, %v1949_v31  ;;  %v1961_v8 = vor.u32 %v1960_v10, %v1959_v34  ;;  %v1963_v63 = vrot.slane %v13542_v26, 4  ;;  %v13544_v34 = vld [vmem:[#allocation23_spill] sm:$0xff] }
 0x180   : > { %v10435_v18 = vsel %vm1923_vm6, %v1949_v31, %v1953_v58  ;;  %v13546_v20 = vld [vmem:[#allocation27_spill] sm:$0xff] }
 0x183   : > { %8594 = vmatmul.mubr.msk.bf16.vlgmr.msra.gmra.mrb[0].mxu0 %vm391_vm2, %v10393_v21 }
 0x184   : > { %8630 = vmatpush3.bf16.msra.mxu0 %v2284_v35  ;;  %8597 = vmatprep.mubr.msk.bf16.mxu0 %vm391_vm2, %v10400_v32  ;;  %v1955_v35 = vrot.slane %v13540_v52, 4  ;;  %v1964_v52 = vrot.slane %v13543_v36, 5 }
 0x185   : > { %9668 = vmatprep.subr.msk.bf16.mxu0 %vm446_vm0, %v10407_v42 }
 0x186   : > { %v1957_v60 = vor.u32 %v1956_v4, %v1955_v35  ;;  %v1965_v40 = vor.u32 %v1964_v52, %v1963_v63  ;;  %v13545_v35 = vld [vmem:[#allocation24_spill] sm:$0xff]  ;;  %v1979_v52 = vrot.slane %v13546_v20, 4 }
 0x187   : > { %v1972_v4 = vrot.slane %v13545_v35, 5 }
 0x188   : > { %v1958_v1 = vsel %vm1923_vm6, %v1953_v58, %v1957_v60  ;;  %v1962_v31 = vsel %vm1923_vm6, %v1957_v60, %v1961_v8  ;;  %v1966_v10 = vsel %vm1923_vm6, %v1961_v8, %v1965_v40  ;;  %v1971_v58 = vrot.slane %v13544_v34, 4  ;;  %v13547_v8 = vld [vmem:[#allocation28_spill] sm:$0xff] }
 0x189   : > { %v1970_v36 = vsel %vm1923_vm6, %v1965_v40, %v1969_v38  ;;  %v1975_v60 = vrot.slane %v10121_v28, 4  ;;  %v1980_v63 = vrot.slane %v13547_v8, 5  ;;  %v1983_v40 = vrot.slane %v10141_v6, 4 }
 0x18a   : > { %v1973_v50 = vor.u32 %v1972_v4, %v1971_v58  ;;  %v1984_v28 = vrot.slane %v10144_v51, 5  ;;  %v1988_v58 = vrot.slane %v10150_v13, 5 }
 0x18b   : > { %8598 = vmatmul.mubr.msk.bf16.gmra.mrb[4].mxu0 %vm391_vm2, %v10416_v24  ;;  %v1977_v26 = vor.u32 %v1976_v48, %v1975_v60  ;;  %v1981_v22 = vor.u32 %v1980_v63, %v1979_v52  ;;  %v1992_v60 = vrot.slane %v10164_v30, 5  ;;  %v1996_v52 = vrot.slane %v10311_v0, 5 }
 0x18c   : > { %8601 = vmatprep.mubr.msk.bf16.mxu0 %vm391_vm2, %v10421_v5  ;;  %v1974_v17 = vsel %vm1923_vm6, %v1969_v38, %v1973_v50  ;;  %v1985_v34 = vor.u32 %v1984_v28, %v1983_v40  ;;  %v1987_v38 = vrot.slane %v10147_v7, 4 }
 0x18d   : > { %v1978_v35 = vsel %vm1923_vm6, %v1973_v50, %v1977_v26  ;;  %v1982_v48 = vsel %vm1923_vm6, %v1977_v26, %v1981_v22  ;;  %v1991_v50 = vrot.slane %v10161_v2, 4  ;;  %v1995_v26 = vrot.slane %v10308_v43, 4 }
 0x18e   : > { %v1986_v4 = vsel %vm1923_vm6, %v1981_v22, %v1985_v34  ;;  %v1989_v51 = vor.u32 %v1988_v58, %v1987_v38  ;;  %v298_v38 = vld [vmem:[%s13325_s4 + $0x48] sm:$0xff]  ;;  %v299_v58 = vld [vmem:[%s13325_s4 + $0x50] sm:$0xff] }
 0x18f   : > { %v1993_v6 = vor.u32 %v1992_v60, %v1991_v50  ;;  %v10484_v22 = vor.u32 %v1996_v52, %v1995_v26  ;;  %v300_v60 = vld [vmem:[%s13325_s4 + $0x58] sm:$0xff]  ;;  %v2503_v52 = vrot.slane %v9848_v11, 5 }
 0x190   : > { %v1990_v28 = vsel %vm1923_vm6, %v1985_v34, %v1989_v51  ;;  %v10499_v34 = vld [vmem:[%s13322_s1 + $0x10] sm:$0x3]  ;;  %v304_v11 = vld [vmem:[%s13325_s4 + $0x78] sm:$0xff] }
 0x191   : > { %v10479_v63 = vsel %vm1923_vm6, %v1989_v51, %v1993_v6  ;;  %v10488_v40 = vsel %vm1923_vm6, %v1993_v6, %v10484_v22  ;;  %v2595_v51 = vsel %vm446_vm0, %v10407_v42, 0  ;;  %v9782_v6 = vmov 0   ;;  %v290_v42 = vld [vmem:[%s13325_s4 + $0x8] sm:$0xff] }
 0x192   : > { %9690 = vset.pattern.permute.xlu0 %v9782_v6  ;;  %3842 = vst.msk [vmem:[#allocation2 + $0x18] sm:$0xf] %vm3835_vm7, %v9782_v6  ;;  %3843 = vst.msk [vmem:[#allocation2 + $0x1c] sm:$0xf] %vm3835_vm7, %v9782_v6  ;;  %9691 = vset.pattern.permute.xlu1 %v9782_v6 }
 0x193   : > { %8602 = vmatmul.mubr.msk.bf16.gmra.mrb[8].mxu0 %vm391_vm2, %v10430_v54  ;;  %3844 = vst.msk [vmem:[#allocation2 + $0x20] sm:$0xf] %vm3835_vm7, %v9782_v6  ;;  %3845 = vst.msk [vmem:[#allocation2 + $0xb4] sm:$0xf] %vm3835_vm7, %v9782_v6 }
 0x194   : > { %8605 = vmatprep.mubr.msk.bf16.mxu0 %vm391_vm2, %v10435_v18  ;;  %3846 = vst.msk [vmem:[#allocation2 + $0xb8] sm:$0xf] %vm3835_vm7, %v9782_v6  ;;  %3847 = vst.msk [vmem:[#allocation2 + $0xbc] sm:$0xf] %vm3835_vm7, %v9782_v6  ;;  %v303_v6 = vld [vmem:[%s13325_s4 + $0x70] sm:$0xff] }
 0x19b   : > { %8606 = vmatmul.mubr.msk.bf16.gmra.mrb[12].mxu0 %vm391_vm2, %v1958_v1 }
 0x19c   : > { %8609 = vmatprep.mubr.msk.bf16.mxu0 %vm391_vm2, %v1962_v31 }
 0x1a3   : > { %8610 = vmatmul.mubr.msk.bf16.gmra.mrb[16].mxu0 %vm391_vm2, %v1966_v10 }
 0x1a4   : > { %8613 = vmatprep.mubr.msk.bf16.mxu0 %vm391_vm2, %v1970_v36 }
 0x1ab   : > { %8614 = vmatmul.mubr.msk.bf16.gmra.mrb[20].mxu0 %vm391_vm2, %v1974_v17 }
 0x1ac   : > { %8617 = vmatprep.mubr.msk.bf16.mxu0 %vm391_vm2, %v1978_v35 }
 0x1b3   : > { %8618 = vmatmul.mubr.msk.bf16.gmra.mrb[24].mxu0 %vm391_vm2, %v1982_v48 }
 0x1b4   : > { %8621 = vmatprep.mubr.msk.bf16.mxu0 %vm391_vm2, %v1986_v4 }
 0x1bb   : > { %8622 = vmatmul.mubr.msk.bf16.gmra.mrb[28].mxu0 %vm391_vm2, %v1990_v28 }
 0x1bc   : > { %8625 = vmatprep.mubr.msk.bf16.mxu0 %vm391_vm2, %v10479_v63 }
 0x1c3   : > { %8626 = vmatmul.mubr.msk.bf16.gmra.mrb[32].mxu0 %vm391_vm2, %v10488_v40 }
 0x1c4   : > { %8631 = vmatprep.mubr.msk.bf16.mxu0 %vm391_vm2, %v10393_v21  ;;  %v289_v21 = vld [vmem:[%s13325_s4] sm:$0xff] }
 0x1c5   : > { %3200 = vperm.xlu0 %9690, %v289_v21  }
 0x1c9   : > { %3205 = vperm.xlu0 %9690, %v290_v42   ;;  %v306_v42 = vld [vmem:[%s13325_s4 + $0x88] sm:$0xff] }
 0x1cb   : > { %8632 = vmatmul.mubr.msk.bf16.vlgmr.msra.gmra.mrb[0].mxu0 %vm391_vm2, %v10400_v32  ;;  %v291_v32 = vld [vmem:[%s13325_s4 + $0x10] sm:$0xff] }
 0x1cc   : > { %8668 = vmatpush3.bf16.msra.mxu0 %v2595_v51  ;;  %8635 = vmatprep.mubr.msk.bf16.mxu0 %vm391_vm2, %v10416_v24  ;;  %v292_v24 = vld [vmem:[%s13325_s4 + $0x18] sm:$0xff]  ;;  %v2504_v51 = vrot.slane %v9854_v16, 5  ;;  %v305_v16 = vld [vmem:[%s13325_s4 + $0x80] sm:$0xff] }
 0x1cd   : > { %9669 = vmatprep.subr.msk.bf16.mxu0 %vm446_vm0, %v10499_v34  ;;  %3210 = vperm.xlu1 %9691, %v291_v32   ;;  %v2506_v32 = vrot.slane %v9862_v23, 5 }
 0x1d1   : > { %3215 = vperm.xlu1 %9691, %v292_v24   ;;  %v307_v24 = vld [vmem:[%s13325_s4 + $0x90] sm:$0xff] }
 0x1d3   : > { %8636 = vmatmul.mubr.msk.bf16.gmra.mrb[4].mxu0 %vm391_vm2, %v10421_v5  ;;  %v293_v5 = vld [vmem:[%s13325_s4 + $0x20] sm:$0xff] }
 0x1d4   : > { %8639 = vmatprep.mubr.msk.bf16.mxu0 %vm391_vm2, %v10430_v54  ;;  %v266_v54 = vld [vmem:[%s9836_s27 + $0x170] sm:$0xff]  ;;  %3220 = vperm.xlu0 %9690, %v293_v5   ;;  %v2507_v5 = vsel %vm2502_vm8, %v2504_v51, %v2506_v32 }
 0x1db   : > { %8640 = vmatmul.mubr.msk.bf16.gmra.mrb[8].mxu0 %vm391_vm2, %v10435_v18  ;;  %v294_v18 = vld [vmem:[%s13325_s4 + $0x28] sm:$0xff] }
 0x1dc   : > { %8643 = vmatprep.mubr.msk.bf16.mxu0 %vm391_vm2, %v1958_v1  ;;  %v295_v1 = vld [vmem:[%s13325_s4 + $0x30] sm:$0xff]  ;;  %3225 = vperm.xlu1 %9691, %v294_v18   ;;  %v2510_v18 = vrot.slane %v9887_v37, 5  ;;  %v312_v37 = vld [vmem:[%s13325_s4 + $0xb8] sm:$0xff] }
 0x1dd   : > { %3230 = vperm.xlu0 %9690, %v295_v1   ;;  %v310_v1 = vld [vmem:[%s13325_s4 + $0xa8] sm:$0xff] }
 0x1e3   : > { %8644 = vmatmul.mubr.msk.bf16.gmra.mrb[12].mxu0 %vm391_vm2, %v1962_v31 }
 0x1e4   : > { %8647 = vmatprep.mubr.msk.bf16.mxu0 %vm391_vm2, %v1966_v10  ;;  %v296_v10 = vld [vmem:[%s13325_s4 + $0x38] sm:$0xff] }
 0x1e5   : > { %3235 = vperm.xlu1 %9691, %v296_v10   ;;  %v311_v10 = vld [vmem:[%s13325_s4 + $0xb0] sm:$0xff] }
 0x1e9   : > { %3245 = vperm.xlu1 %9691, %v298_v38  }
 0x1eb   : > { %8648 = vmatmul.mubr.msk.bf16.gmra.mrb[16].mxu0 %vm391_vm2, %v1970_v36  ;;  %v267_v36 = vld [vmem:[%s9836_s27 + $0x178] sm:$0xff] }
 0x1ec   : > { %8651 = vmatprep.mubr.msk.bf16.mxu0 %vm391_vm2, %v1974_v17  ;;  %v10549_v31 = vpack.c.bf16 %v267_v36, %v266_v54  ;;  %v2943_v54 = vsel %vm446_vm0, %v10499_v34, 0  ;;  %v309_v36 = vld [vmem:[%s13325_s4 + $0xa0] sm:$0xff]  ;;  %v2512_v34 = vrot.slane %v9890_v39, 5 }
 0x1ed   : > { %3255 = vperm.xlu1 %9691, %v300_v60   ;;  %v313_v39 = vld [vmem:[%s13325_s4 + $0xc0] sm:$0xff]  ;;  %v315_v60 = vld [vmem:[%s13325_s4 + $0xd0] sm:$0xff] }
 0x1ee   : > { %v2272_v17 = vshrl.u32 %v10549_v31, 16  ;;  %v2513_v38 = vsel %vm2502_vm8, %v2510_v18, %v2512_v34 }
 0x1f3   : > { %8652 = vmatmul.mubr.msk.bf16.gmra.mrb[20].mxu0 %vm391_vm2, %v1978_v35  ;;  %v297_v35 = vld [vmem:[%s13325_s4 + $0x40] sm:$0xff] }
 0x1f4   : > { %8655 = vmatprep.mubr.msk.bf16.mxu0 %vm391_vm2, %v1982_v48  ;;  %v2275_v48 = vshll.u32 %v10549_v31, 16  ;;  %3240 = vperm.xlu0 %9690, %v297_v35  }
 0x1f6   : > { %v2277_v50 = vrot.slane %v2275_v48, 5 }
 0x1f8   : > { %3250 = vperm.xlu0 %9690, %v299_v58   ;;  %v2514_v58 = vrot.slane %v9901_v47, 5  ;;  %v316_v47 = vld [vmem:[%s13325_s4 + $0xd8] sm:$0xff] }
 0x1fb   : > { %8656 = vmatmul.mubr.msk.bf16.gmra.mrb[24].mxu0 %vm391_vm2, %v1986_v4  ;;  %v2274_v4 = vrot.slane %v2272_v17, 4 }
 0x1fc   : > { %8659 = vmatprep.mubr.msk.bf16.mxu0 %vm391_vm2, %v1990_v28  ;;  %v301_v28 = vld [vmem:[%s13325_s4 + $0x60] sm:$0xff] }
 0x1fd   : > { %v2278_v26 = vor.u32 %v2277_v50, %v2274_v4  ;;  %3260 = vperm.xlu0 %9690, %v301_v28   ;;  %v2516_v4 = vrot.slane %v9904_v49, 5  ;;  %v314_v50 = vld [vmem:[%s13325_s4 + $0xc8] sm:$0xff]  ;;  %v2515_v28 = vsel %vm2502_vm8, %v2512_v34, %v2514_v58  ;;  %v317_v49 = vld [vmem:[%s13325_s4 + $0xe0] sm:$0xff] }
 0x1ff   : > { %v2279_v21 = vsel %vm1923_vm6, %v10484_v22, %v2278_v26  ;;  %v2508_v22 = vrot.slane %v9867_v27, 5  ;;  %v308_v27 = vld [vmem:[%s13325_s4 + $0x98] sm:$0xff]  ;;  %v2517_v26 = vsel %vm2502_vm8, %v2514_v58, %v2516_v4  ;;  %v2820_v58 = vrot.slane %v10012_v9, 5 }
 0x200   : > { %v2829_v9 = vrot.slane %v10042_v29, 6 }
 0x201   : > { %3270 = vperm.xlu0 %9690, %v303_v6   ;;  %v2509_v23 = vsel %vm2502_vm8, %v2506_v32, %v2508_v22  ;;  %v2511_v35 = vsel %vm2502_vm8, %v2508_v22, %v2510_v18  ;;  %v319_v6 = vld [vmem:[%s13325_s4 + $0xf0] sm:$0xff]  ;;  %v322_v32 = vld [vmem:[%s13325_s4 + $0x108] sm:$0xff] }
 0x202   : > { %v323_v22 = vld [vmem:[%s13325_s4 + $0x110] sm:$0xff] }
 0x203   : > { %8660 = vmatmul.mubr.msk.bf16.gmra.mrb[28].mxu0 %vm391_vm2, %v10479_v63  ;;  %v302_v63 = vld [vmem:[%s13325_s4 + $0x68] sm:$0xff] }
 0x204   : > { %8663 = vmatprep.mubr.msk.bf16.mxu0 %vm391_vm2, %v10488_v40  ;;  %3265 = vperm.xlu1 %9691, %v302_v63   ;;  %v2505_v40 = vsel %vm2502_vm8, %v2503_v52, %v2504_v51  ;;  %v2518_v52 = vrot.slane %v9915_v57, 5  ;;  %v2520_v51 = vrot.slane %v9918_v59, 5  ;;  %v318_v63 = vld [vmem:[%s13325_s4 + $0xe8] sm:$0xff]  ;;  %v320_v57 = vld [vmem:[%s13325_s4 + $0xf8] sm:$0xff]  ;;  %v321_v59 = vld [vmem:[%s13325_s4 + $0x100] sm:$0xff] }
 0x205   : > { %3280 = vperm.xlu0 %9690, %v305_v16   ;;  %v2524_v16 = vrot.slane %v13531_v3, 5  ;;  %v2526_v3 = vrot.slane %v13532_v41, 5  ;;  %v2534_v41 = vrot.slane %v9983_v46, 5  ;;  %v2538_v46 = vrot.slane %v10549_v31, 5 }
 0x208   : > { %3275 = vperm.xlu1 %9691, %v304_v11   ;;  %v2522_v11 = vrot.slane %v13530_v45, 5  ;;  %v324_v45 = vld [vmem:[%s13325_s4 + $0x118] sm:$0xff] }
 0x209   : > { %3290 = vperm.xlu0 %9690, %v307_v24  }
 0x20a   : > { %v2525_v24 = vsel %vm2502_vm8, %v2522_v11, %v2524_v16 }
 0x20b   : > { %8664 = vmatmul.mubr.msk.bf16.gmra.mrb[32].mxu0 %vm391_vm2, %v2279_v21  ;;  %v2519_v21 = vsel %vm2502_vm8, %v2516_v4, %v2518_v52 }
 0x20c   : > { %8669 = vmatprep.mubr.msk.bf16.mxu0 %vm391_vm2, %v2505_v40  ;;  %3285 = vperm.xlu1 %9691, %v306_v42   ;;  %v2521_v40 = vsel %vm2502_vm8, %v2518_v52, %v2520_v51  ;;  %v2523_v42 = vsel %vm2502_vm8, %v2520_v51, %v2522_v11 }
 0x20d   : > { %3300 = vperm.xlu0 %9690, %v309_v36   ;;  %v2532_v36 = vrot.slane %v13535_v25, 5  ;;  %v2814_v25 = vrot.slane %v9995_v56, 6 }
 0x210   : > { %3295 = vperm.xlu1 %9691, %v308_v27   ;;  %v2530_v27 = vrot.slane %v13534_v44, 5  ;;  %v2813_v44 = vrot.slane %v9992_v55, 5  ;;  %v2821_v55 = vrot.slane %v10015_v12, 6 }
 0x211   : > { %3310 = vperm.xlu0 %9690, %v311_v10  }
 0x212   : > { %v2533_v34 = vsel %vm2502_vm8, %v2530_v27, %v2532_v36  ;;  %v2822_v4 = vor.u32 %v2821_v55, %v2820_v58  ;;  %v13562_v55 = vld [vmem:[#allocation25_spill] sm:$0xff] }
 0x213   : > { %8670 = vmatmul.mubr.msk.bf16.vlgmr.msra.gmra.mrb[0].mxu0 %vm391_vm2, %v2507_v5  ;;  %v2528_v5 = vrot.slane %v13533_v53, 5  ;;  %v2536_v53 = vrot.slane %v10303_v19, 5 }
 0x214   : > { %8706 = vmatpush3.bf16.msra.mxu0 %v2943_v54  ;;  %8673 = vmatprep.mubr.msk.bf16.mxu0 %vm391_vm2, %v2509_v23  ;;  %v2527_v54 = vsel %vm2502_vm8, %v2524_v16, %v2526_v3 }
 0x215   : > { %3305 = vperm.xlu1 %9691, %v310_v1   ;;  %3320 = vperm.xlu0 %9690, %v313_v39   ;;  %v2529_v23 = vsel %vm2502_vm8, %v2526_v3, %v2528_v5  ;;  %v2531_v18 = vsel %vm2502_vm8, %v2528_v5, %v2530_v27  ;;  %v2535_v1 = vsel %vm2502_vm8, %v2532_v36, %v2534_v41  ;;  %v13557_v27 = vld [vmem:[#allocation20_spill] sm:$0xff] }
 0x216   : > { %v2537_v10 = vsel %vm2502_vm8, %v2534_v41, %v2536_v53  ;;  %v2539_v39 = vsel %vm2502_vm8, %v2536_v53, %v2538_v46  ;;  %v2849_v36 = vrot.slane %v13557_v27, 6  ;;  %v13558_v53 = vld [vmem:[#allocation21_spill] sm:$0xff]  ;;  %v13561_v46 = vld [vmem:[#allocation24_spill] sm:$0xff] }
 0x219   : > { %3315 = vperm.xlu1 %9691, %v312_v37   ;;  %3330 = vperm.xlu0 %9690, %v315_v60   ;;  %v2815_v37 = vor.u32 %v2814_v25, %v2813_v44 }
 0x21b   : > { %8674 = vmatmul.mubr.msk.bf16.gmra.mrb[4].mxu0 %vm391_vm2, %v2511_v35  ;;  %v2816_v35 = vrot.slane %v9998_v61, 5  ;;  %v2824_v61 = vrot.slane %v10018_v14, 5 }
 0x21c   : > { %8677 = vmatprep.mubr.msk.bf16.mxu0 %vm391_vm2, %v2513_v38  ;;  %v2817_v38 = vrot.slane %v10001_v62, 6  ;;  %v2825_v62 = vrot.slane %v10021_v15, 6 }
 0x21d   : > { %3325 = vperm.xlu1 %9691, %v314_v50   ;;  %3340 = vperm.xlu0 %9690, %v317_v49   ;;  %v13549_v49 = vld [vmem:[#allocation12_spill] sm:$0xff] }
 0x21e   : > { %v2818_v19 = vor.u32 %v2817_v38, %v2816_v35  ;;  %v2826_v50 = vor.u32 %v2825_v62, %v2824_v61  ;;  %v2833_v14 = vrot.slane %v13549_v49, 6  ;;  %v13560_v35 = vld [vmem:[#allocation23_spill] sm:$0xff]  ;;  %v13563_v61 = vld [vmem:[#allocation26_spill] sm:$0xff] }
 0x21f   : > { %v2856_v38 = vrot.slane %v13560_v35, 5  ;;  %v2861_v62 = vrot.slane %v13563_v61, 6  ;;  %v13565_v49 = vld [vmem:[#allocation30_spill] sm:$0xff] }
 0x220   : > { %v2819_v56 = vsel %vm2812_vm9, %v2815_v37, %v2818_v19  ;;  %v2823_v60 = vsel %vm2812_vm9, %v2818_v19, %v2822_v4  ;;  %v2827_v12 = vsel %vm2812_vm9, %v2822_v4, %v2826_v50  ;;  %v2857_v37 = vrot.slane %v13561_v46, 6 }
 0x221   : > { %3335 = vperm.xlu1 %9691, %v316_v47   ;;  %3350 = vperm.xlu0 %9690, %v319_v6  }
 0x223   : > { %8678 = vmatmul.mubr.msk.bf16.gmra.mrb[8].mxu0 %vm391_vm2, %v2515_v28  ;;  %v2828_v28 = vrot.slane %v10039_v33, 5 }
 0x224   : > { %8681 = vmatprep.mubr.msk.bf16.mxu0 %vm391_vm2, %v2517_v26  ;;  %v13548_v26 = vld [vmem:[#allocation11_spill] sm:$0xff] }
 0x225   : > { %3345 = vperm.xlu1 %9691, %v318_v63   ;;  %3360 = vperm.xlu0 %9690, %v321_v59   ;;  %v2832_v47 = vrot.slane %v13548_v26, 5  ;;  %v2830_v15 = vor.u32 %v2829_v9, %v2828_v28  ;;  %v13550_v63 = vld [vmem:[#allocation13_spill] sm:$0xff]  ;;  %v13553_v59 = vld [vmem:[#allocation16_spill] sm:$0xff] }
 0x226   : > { %v2836_v6 = vrot.slane %v13550_v63, 5  ;;  %v2841_v11 = vrot.slane %v13553_v59, 6  ;;  %v13564_v26 = vld [vmem:[#allocation29_spill] sm:$0xff]  ;;  %v2884_v59 = vrot.slane %v2272_v17, 5 }
 0x227   : > { %v2834_v52 = vor.u32 %v2833_v14, %v2832_v47  ;;  %v2831_v51 = vsel %vm2812_vm9, %v2826_v50, %v2830_v15  ;;  %v2864_v50 = vrot.slane %v13546_v20, 5  ;;  %v2868_v47 = vrot.slane %v13564_v26, 5 }
 0x228   : > { %v2869_v14 = vrot.slane %v13565_v49, 6  ;;  %v2873_v20 = vrot.slane %v10150_v13, 6 }
 0x229   : > { %3355 = vperm.xlu1 %9691, %v320_v57   ;;  %3370 = vperm.xlu0 %9690, %v323_v22   ;;  %v2835_v29 = vsel %vm2812_vm9, %v2830_v15, %v2834_v52 }
 0x22b   : > { %8682 = vmatmul.mubr.msk.bf16.gmra.mrb[12].mxu0 %vm391_vm2, %v2519_v21  ;;  %v13551_v21 = vld [vmem:[#allocation14_spill] sm:$0xff] }
 0x22c   : > { %8685 = vmatprep.mubr.msk.bf16.mxu0 %vm391_vm2, %v2521_v40  ;;  %v2837_v33 = vrot.slane %v13551_v21, 6  ;;  %v13552_v40 = vld [vmem:[#allocation15_spill] sm:$0xff]  ;;  %v2877_v21 = vrot.slane %v10164_v30, 6 }
 0x22d   : > { %3365 = vperm.xlu1 %9691, %v322_v32   ;;  %v2840_v57 = vrot.slane %v13552_v40, 5 }
 0x22e   : > { %v2838_v16 = vor.u32 %v2837_v33, %v2836_v6  ;;  %v2876_v6 = vrot.slane %v10161_v2, 5  ;;  %v2885_v2 = vrot.slane %v2275_v48, 6 }
 0x22f   : > { %v2842_v32 = vor.u32 %v2841_v11, %v2840_v57 }
 0x230   : > { %v2839_v22 = vsel %vm2812_vm9, %v2834_v52, %v2838_v16  ;;  %v2872_v52 = vrot.slane %v10147_v7, 5  ;;  %v2881_v7 = vrot.slane %v10311_v0, 6  ;;  %v2878_v13 = vor.u32 %v2877_v21, %v2876_v6 }
 0x231   : > { %3375 = vperm.xlu1 %9691, %v324_v45   ;;  %v13555_v45 = vld [vmem:[#allocation18_spill] sm:$0xff]  ;;  %v2843_v5 = vsel %vm2812_vm9, %v2838_v16, %v2842_v32 }
 0x232   : > { %v2845_v3 = vrot.slane %v13555_v45, 6 }
 0x233   : > { %8686 = vmatmul.mubr.msk.bf16.gmra.mrb[16].mxu0 %vm391_vm2, %v2523_v42  ;;  %v13554_v42 = vld [vmem:[#allocation17_spill] sm:$0xff] }
 0x234   : > { %8689 = vmatprep.mubr.msk.bf16.mxu0 %vm391_vm2, %v2525_v24  ;;  %v2844_v24 = vrot.slane %v13554_v42, 5 }
 0x23b   : > { %8690 = vmatmul.mubr.msk.bf16.gmra.mrb[20].mxu0 %vm391_vm2, %v2527_v54  ;;  %v13556_v54 = vld [vmem:[#allocation19_spill] sm:$0xff] }
 0x23c   : > { %8693 = vmatprep.mubr.msk.bf16.mxu0 %vm391_vm2, %v2529_v23  ;;  %v2848_v23 = vrot.slane %v13556_v54, 5  ;;  %v10813_v54 = vld [vmem:[%s13324_s3] ss:$0 sm:$0xff] }
 0x243   : > { %8694 = vmatmul.mubr.msk.bf16.gmra.mrb[24].mxu0 %vm391_vm2, %v2531_v18  ;;  %v2846_v18 = vor.u32 %v2845_v3, %v2844_v24 }
 0x244   : > { %8697 = vmatprep.mubr.msk.bf16.mxu0 %vm391_vm2, %v2533_v34  ;;  %v2850_v34 = vor.u32 %v2849_v36, %v2848_v23  ;;  %v10786_v11 = vpop.permute.xlu0 %3200 }
 0x245   : > { %v2847_v41 = vsel %vm2812_vm9, %v2842_v32, %v2846_v18  ;;  %13566 = vst [vmem:[#allocation3_spill] sm:$0xff] %v10786_v11 }
 0x246   : > { %v2851_v25 = vsel %vm2812_vm9, %v2846_v18, %v2850_v34 }
 0x248   : > { %v10790_v32 = vpop.permute.xlu0 %3205 }
 0x249   : > { %13568 = vst [vmem:[#allocation5_spill] sm:$0xff] %v10790_v32 }
 0x24b   : > { %8698 = vmatmul.mubr.msk.bf16.gmra.mrb[28].mxu0 %vm391_vm2, %v2535_v1  ;;  %v2852_v1 = vrot.slane %v13558_v53, 5 }
 0x24c   : > { %8701 = vmatprep.mubr.msk.bf16.mxu0 %vm391_vm2, %v2537_v10  ;;  %v13559_v10 = vld [vmem:[#allocation22_spill] sm:$0xff]  ;;  %v10788_v16 = vpop.permute.xlu1 %3210 }
 0x24d   : > { %v2853_v44 = vrot.slane %v13559_v10, 6  ;;  %13567 = vst [vmem:[#allocation4_spill] sm:$0xff] %v10788_v16 }
 0x24f   : > { %v2854_v19 = vor.u32 %v2853_v44, %v2852_v1 }
 0x250   : > { %v10792_v17 = vpop.permute.xlu1 %3215 }
 0x251   : > { %v2855_v58 = vsel %vm2812_vm9, %v2850_v34, %v2854_v19  ;;  %13569 = vst [vmem:[#allocation6_spill] sm:$0xff] %v10792_v17 }
 0x253   : > { %8702 = vmatmul.mubr.msk.bf16.gmra.mrb[32].mxu0 %vm391_vm2, %v2539_v39  ;;  %v2858_v39 = vor.u32 %v2857_v37, %v2856_v38  ;;  %v10794_v31 = vpop.permute.xlu0 %3220 }
 0x254   : > { %8707 = vmatprep.mubr.msk.bf16.mxu0 %vm391_vm2, %v2819_v56  ;;  %v2860_v56 = vrot.slane %v13562_v55, 5  ;;  %13570 = vst [vmem:[#allocation7_spill] sm:$0xff] %v10794_v31 }
 0x255   : > { %v2859_v4 = vsel %vm2812_vm9, %v2854_v19, %v2858_v39 }
 0x256   : > { %v2862_v28 = vor.u32 %v2861_v62, %v2860_v56 }
 0x25b   : > { %8708 = vmatmul.mubr.msk.bf16.vlgmr.msra.gmra.mrb[0].mxu0 %vm391_vm2, %v2823_v60  ;;  %v2865_v60 = vrot.slane %v13547_v8, 6  ;;  %v2870_v8 = vor.u32 %v2869_v14, %v2868_v47  ;;  %v10796_v48 = vpop.permute.xlu1 %3225 }
 0x25c   : > { %8711 = vmatprep.mubr.msk.bf16.mxu0 %vm391_vm2, %v2827_v12  ;;  %v2863_v12 = vsel %vm2812_vm9, %v2858_v39, %v2862_v28  ;;  %13571 = vst [vmem:[#allocation8_spill] sm:$0xff] %v10796_v48 }
 0x25d   : > { %v2866_v9 = vor.u32 %v2865_v60, %v2864_v50 }
 0x25f   : > { %v2867_v15 = vsel %vm2812_vm9, %v2862_v28, %v2866_v9  ;;  %v2871_v63 = vsel %vm2812_vm9, %v2866_v9, %v2870_v8 }
 0x263   : > { %8712 = vmatmul.mubr.msk.bf16.gmra.mrb[4].mxu0 %vm391_vm2, %v2831_v51  ;;  %v2874_v51 = vor.u32 %v2873_v20, %v2872_v52 }
 0x264   : > { %8715 = vmatprep.mubr.msk.bf16.mxu0 %vm391_vm2, %v2835_v29  ;;  %v2880_v29 = vrot.slane %v10308_v43, 5  ;;  %v2886_v43 = vor.u32 %v2885_v2, %v2884_v59  ;;  %v10800_v42 = vpop.permute.xlu1 %3235 }
 0x265   : > { %v2875_v33 = vsel %vm2812_vm9, %v2870_v8, %v2874_v51  ;;  %v2879_v57 = vsel %vm2812_vm9, %v2874_v51, %v2878_v13  ;;  %13573 = vst [vmem:[#allocation10_spill] sm:$0xff] %v10800_v42 }
 0x266   : > { %v2882_v40 = vor.u32 %v2881_v7, %v2880_v29 }
 0x268   : > { %v2883_v30 = vsel %vm2812_vm9, %v2878_v13, %v2882_v40  ;;  %v2887_v0 = vsel %vm2812_vm9, %v2882_v40, %v2886_v43  ;;  %v10804_v45 = vpop.permute.xlu1 %3245 }
 0x269   : > { %13575 = vst [vmem:[#allocation28_spill] sm:$0xff] %v10804_v45 }
 0x26b   : > { %8716 = vmatmul.mubr.msk.bf16.gmra.mrb[8].mxu0 %vm391_vm2, %v2839_v22  ;;  %v10798_v22 = vpop.permute.xlu0 %3230 }
 0x26c   : > { %8719 = vmatprep.mubr.msk.bf16.mxu0 %vm391_vm2, %v2843_v5  ;;  %13572 = vst [vmem:[#allocation9_spill] sm:$0xff] %v10798_v22  ;;  %v10808_v5 = vpop.permute.xlu1 %3255 }
 0x26d   : > { %13577 = vst [vmem:[#allocation12_spill] sm:$0xff] %v10808_v5 }
 0x273   : > { %8720 = vmatmul.mubr.msk.bf16.gmra.mrb[12].mxu0 %vm391_vm2, %v2847_v41  ;;  %v10802_v24 = vpop.permute.xlu0 %3240 }
 0x274   : > { %8723 = vmatprep.mubr.msk.bf16.mxu0 %vm391_vm2, %v2851_v25  ;;  %13574 = vst [vmem:[#allocation27_spill] sm:$0xff] %v10802_v24 }
 0x277   : > { %v10806_v3 = vpop.permute.xlu0 %3250 }
 0x278   : > { %13576 = vst [vmem:[#allocation11_spill] sm:$0xff] %v10806_v3 }
 0x27b   : > { %8724 = vmatmul.mubr.msk.bf16.gmra.mrb[16].mxu0 %vm391_vm2, %v2855_v58 }
 0x27c   : > { %8727 = vmatprep.mubr.msk.bf16.mxu0 %vm391_vm2, %v2859_v4  ;;  %v10818_v18 = vpop.permute.xlu0 %3260 }
 0x27d   : > { %13578 = vst [vmem:[#allocation13_spill] sm:$0xff] %v10818_v18 }
 0x280   : > { %v10841_v39 = vpop.permute.xlu0 %3270 }
 0x281   : > { %13580 = vst [vmem:[#allocation15_spill] sm:$0xff] %v10841_v39 }
 0x283   : > { %8728 = vmatmul.mubr.msk.bf16.gmra.mrb[20].mxu0 %vm391_vm2, %v2863_v12  ;;  %v10828_v44 = vpop.permute.xlu1 %3265 }
 0x284   : > { %8731 = vmatprep.mubr.msk.bf16.mxu0 %vm391_vm2, %v2867_v15  ;;  %13579 = vst [vmem:[#allocation14_spill] sm:$0xff] %v10828_v44  ;;  %v10870_v7 = vpop.permute.xlu0 %3280 }
 0x285   : > { %13582 = vst [vmem:[#allocation17_spill] sm:$0xff] %v10870_v7 }
 0x287   : > { %v10850_v28 = vpop.permute.xlu1 %3275 }
 0x288   : > { %13581 = vst [vmem:[#allocation16_spill] sm:$0xff] %v10850_v28 }
 0x28b   : > { %8732 = vmatmul.mubr.msk.bf16.gmra.mrb[24].mxu0 %vm391_vm2, %v2871_v63 }
 0x28c   : > { %8735 = vmatprep.mubr.msk.bf16.mxu0 %vm391_vm2, %v2875_v33 }
 0x293   : > { %8736 = vmatmul.mubr.msk.bf16.gmra.mrb[28].mxu0 %vm391_vm2, %v2879_v57 }
 0x294   : > { %8739 = vmatprep.mubr.msk.bf16.mxu0 %vm391_vm2, %v2883_v30 }
 0x29b   : > { %8740 = vmatmul.mubr.msk.bf16.gmra.mrb[32].mxu0 %vm391_vm2, %v2887_v0  ;;  %v10879_v0 = vpop.permute.xlu1 %3285 }
 0x29c   : > { %13583 = vst [vmem:[#allocation18_spill] sm:$0xff] %v10879_v0 }
 0x32e   : > { %v8709_v23 = vpop.f32.mrb[0].mxu0 }
 0x32f   : > { %v10816_v27 = vadd.f32 %v8709_v23, %v10813_v54  ;;  %v2979_v36 = vpop.f32.mrb[1].mxu0 }
 0x330   : > { %v10821_v34 = vadd.f32 %v10813_v54, %v2979_v36  ;;  %v8710_v41 = vpop.f32.mrb[2].mxu0 }
 0x331   : > { %v3380_v53 = vmul.f32 %v10788_v16, %v10816_v27  ;;  %v10826_v1 = vadd.f32 %v8710_v41, %v10813_v54  ;;  %v2982_v10 = vpop.f32.mrb[3].mxu0 }
 0x332   : > { %v3378_v25 = vmul.f32 %v10786_v11, %v10821_v34  ;;  %v10833_v35 = vadd.f32 %v10813_v54, %v2982_v10 }
 0x333   : > { %v3381_v46 = vmul.f32 %v10792_v17, %v10826_v1  ;;  %v3493_v19 = vmul.f32 %v3380_v53, %v10816_v27  ;;  %v3417_v62 = vsel %vm391_vm2, %v3380_v53, 0.0 }
 0x334   : > { %v3491_v38 = vmul.f32 %v3378_v25, %v10821_v34  ;;  %v3379_v37 = vmul.f32 %v10790_v32, %v10833_v35  ;;  %v3414_v58 = vsel %vm391_vm2, %v3378_v25, 0.0 }
 0x335   : > { %v3494_v12 = vmul.f32 %v3381_v46, %v10826_v1  ;;  %v3530_v14 = vsel %vm391_vm2, %v3493_v19, 0.0  ;;  %v3419_v51 = vsel %vm391_vm2, %v3381_v46, 0.0 }
 0x336   : > { %v3415_v55 = vsel %vm391_vm2, %v3379_v37, 0.0  ;;  %v3492_v56 = vmul.f32 %v3379_v37, %v10833_v35  ;;  %v8713_v61 = vpop.f32.mrb[4].mxu0  ;;  %v3527_v9 = vsel %vm391_vm2, %v3491_v38, 0.0 }
 0x337   : > { %v3416_v4 = vadd.f32 %v3415_v55, %v3414_v58  ;;  %v10848_v50 = vadd.f32 %v8713_v61, %v10813_v54  ;;  %v2995_v60 = vpop.f32.mrb[5].mxu0  ;;  %v3532_v13 = vsel %vm391_vm2, %v3494_v12, 0.0 }
 0x338   : > { %v3528_v26 = vsel %vm391_vm2, %v3492_v56, 0.0  ;;  %v10856_v47 = vadd.f32 %v10813_v54, %v2995_v60  ;;  %v8714_v49 = vpop.f32.mrb[6].mxu0 }
 0x339   : > { %v3418_v15 = vadd.f32 %v3417_v62, %v3416_v4  ;;  %v3529_v52 = vadd.f32 %v3528_v26, %v3527_v9  ;;  %v10860_v20 = vadd.f32 %v8714_v49, %v10813_v54  ;;  %v2998_v8 = vpop.f32.mrb[7].mxu0  ;;  %v3384_v63 = vmul.f32 %v10798_v22, %v10848_v50  ;;  %v10897_v9 = vpop.permute.xlu0 %3290 }
 0x33a   : > { %v3382_v6 = vmul.f32 %v10794_v31, %v10856_v47  ;;  %v10868_v21 = vadd.f32 %v10813_v54, %v2998_v8  ;;  %13584 = vst [vmem:[#allocation19_spill] sm:$0xff] %v10897_v9 }
 0x33b   : > { %v3531_v33 = vadd.f32 %v3530_v14, %v3529_v52  ;;  %v3420_v29 = vadd.f32 %v3419_v51, %v3418_v15  ;;  %v3385_v43 = vmul.f32 %v10800_v42, %v10860_v20  ;;  %v3497_v23 = vmul.f32 %v3384_v63, %v10848_v50  ;;  %v10908_v51 = vpop.permute.xlu1 %3295 }
 0x33c   : > { %v3421_v40 = vsel %vm391_vm2, %v3382_v6, 0.0  ;;  %v3495_v57 = vmul.f32 %v3382_v6, %v10856_v47  ;;  %v3383_v59 = vmul.f32 %v10796_v48, %v10868_v21  ;;  %v3425_v19 = vsel %vm391_vm2, %v3384_v63, 0.0  ;;  %13585 = vst [vmem:[#allocation20_spill] sm:$0xff] %v10908_v51 }
 0x33d   : > { %v3422_v2 = vadd.f32 %v3421_v40, %v3420_v29  ;;  %v3533_v30 = vadd.f32 %v3532_v13, %v3531_v33  ;;  %v3498_v56 = vmul.f32 %v3385_v43, %v10860_v20  ;;  %v3427_v12 = vsel %vm391_vm2, %v3385_v43, 0.0 }
 0x33e   : > { %v3534_v36 = vsel %vm391_vm2, %v3495_v57, 0.0  ;;  %v3423_v41 = vsel %vm391_vm2, %v3383_v59, 0.0  ;;  %v8717_v53 = vpop.f32.mrb[8].mxu0  ;;  %v3496_v38 = vmul.f32 %v3383_v59, %v10868_v21  ;;  %v3538_v15 = vsel %vm391_vm2, %v3497_v23, 0.0 }
 0x33f   : > { %v3535_v10 = vadd.f32 %v3534_v36, %v3533_v30  ;;  %v3424_v25 = vadd.f32 %v3423_v41, %v3422_v2  ;;  %v10886_v46 = vadd.f32 %v8717_v53, %v10813_v54  ;;  %v3011_v37 = vpop.f32.mrb[9].mxu0  ;;  %v3540_v13 = vsel %vm391_vm2, %v3498_v56, 0.0 }
 0x340   : > { %v10890_v58 = vadd.f32 %v10813_v54, %v3011_v37  ;;  %v8718_v55 = vpop.f32.mrb[10].mxu0  ;;  %v3536_v62 = vsel %vm391_vm2, %v3496_v38, 0.0 }
 0x341   : > { %v3426_v61 = vadd.f32 %v3425_v19, %v3424_v25  ;;  %v10895_v4 = vadd.f32 %v8718_v55, %v10813_v54  ;;  %v3014_v60 = vpop.f32.mrb[11].mxu0  ;;  %v3537_v26 = vadd.f32 %v3536_v62, %v3535_v10  ;;  %v3388_v52 = vmul.f32 %v10806_v3, %v10886_v46  ;;  %v10924_v25 = vpop.permute.xlu0 %3300 }
 0x342   : > { %v3386_v49 = vmul.f32 %v10802_v24, %v10890_v58  ;;  %v10903_v14 = vadd.f32 %v10813_v54, %v3014_v60  ;;  %13586 = vst [vmem:[#allocation21_spill] sm:$0xff] %v10924_v25 }
 0x343   : > { %v3428_v8 = vadd.f32 %v3427_v12, %v3426_v61  ;;  %v3539_v63 = vadd.f32 %v3538_v15, %v3537_v26  ;;  %v3389_v57 = vmul.f32 %v10808_v5, %v10895_v4  ;;  %v3501_v36 = vmul.f32 %v3388_v52, %v10886_v46  ;;  %v10935_v26 = vpop.permute.xlu1 %3305 }
 0x344   : > { %v3429_v6 = vsel %vm391_vm2, %v3386_v49, 0.0  ;;  %v3499_v33 = vmul.f32 %v3386_v49, %v10890_v58  ;;  %v3387_v29 = vmul.f32 %v10804_v45, %v10903_v14  ;;  %v3433_v38 = vsel %vm391_vm2, %v3388_v52, 0.0  ;;  %13587 = vst [vmem:[#allocation22_spill] sm:$0xff] %v10935_v26 }
 0x345   : > { %v3430_v40 = vadd.f32 %v3429_v6, %v3428_v8  ;;  %v3541_v59 = vadd.f32 %v3540_v13, %v3539_v63  ;;  %v3502_v61 = vmul.f32 %v3389_v57, %v10895_v4  ;;  %v3435_v49 = vsel %vm391_vm2, %v3389_v57, 0.0 }
 0x346   : > { %v3542_v2 = vsel %vm391_vm2, %v3499_v33, 0.0  ;;  %v3431_v30 = vsel %vm391_vm2, %v3387_v29, 0.0  ;;  %v3500_v43 = vmul.f32 %v3387_v29, %v10903_v14  ;;  %v8721_v23 = vpop.f32.mrb[12].mxu0  ;;  %v3546_v63 = vsel %vm391_vm2, %v3501_v36, 0.0 }
 0x347   : > { %v3432_v41 = vadd.f32 %v3431_v30, %v3430_v40  ;;  %v10922_v53 = vadd.f32 %v8721_v23, %v10813_v54  ;;  %v3027_v10 = vpop.f32.mrb[13].mxu0  ;;  %v3543_v37 = vadd.f32 %v3542_v2, %v3541_v59  ;;  %v3548_v59 = vsel %vm391_vm2, %v3502_v61, 0.0 }
 0x348   : > { %v3544_v19 = vsel %vm391_vm2, %v3500_v43, 0.0  ;;  %v10929_v55 = vadd.f32 %v10813_v54, %v3027_v10  ;;  %v8722_v56 = vpop.f32.mrb[14].mxu0  ;;  %v10953_v43 = vpop.permute.xlu0 %3310 }
 0x349   : > { %v3434_v62 = vadd.f32 %v3433_v38, %v3432_v41  ;;  %v10933_v60 = vadd.f32 %v8722_v56, %v10813_v54  ;;  %v3030_v12 = vpop.f32.mrb[15].mxu0  ;;  %v3545_v15 = vadd.f32 %v3544_v19, %v3543_v37  ;;  %v3392_v6 = vmul.f32 %v10841_v39, %v10922_v53  ;;  %13588 = vst [vmem:[#allocation23_spill] sm:$0xff] %v10953_v43 }
 0x34a   : > { %v3390_v52 = vmul.f32 %v10818_v18, %v10929_v55  ;;  %v10941_v8 = vadd.f32 %v10813_v54, %v3030_v12 }
 0x34b   : > { %v3436_v33 = vadd.f32 %v3435_v49, %v3434_v62  ;;  %v3547_v29 = vadd.f32 %v3546_v63, %v3545_v15  ;;  %v3393_v30 = vmul.f32 %v10850_v28, %v10933_v60  ;;  %v3505_v37 = vmul.f32 %v3392_v6, %v10922_v53  ;;  %v10962_v62 = vpop.permute.xlu1 %3315 }
 0x34c   : > { %v3437_v13 = vsel %vm391_vm2, %v3390_v52, 0.0  ;;  %v3503_v40 = vmul.f32 %v3390_v52, %v10929_v55  ;;  %v3391_v57 = vmul.f32 %v10828_v44, %v10941_v8  ;;  %13589 = vst [vmem:[#allocation24_spill] sm:$0xff] %v10962_v62  ;;  %v3441_v12 = vsel %vm391_vm2, %v3392_v6, 0.0 }
 0x34d   : > { %v3438_v2 = vadd.f32 %v3437_v13, %v3436_v33  ;;  %v3549_v23 = vadd.f32 %v3548_v59, %v3547_v29  ;;  %v3506_v33 = vmul.f32 %v3393_v30, %v10933_v60 }
 0x34e   : > { %v3550_v36 = vsel %vm391_vm2, %v3503_v40, 0.0  ;;  %v3439_v41 = vsel %vm391_vm2, %v3391_v57, 0.0  ;;  %v3504_v10 = vmul.f32 %v3391_v57, %v10941_v8  ;;  %v8725_v38 = vpop.f32.mrb[16].mxu0  ;;  %v3443_v57 = vsel %vm391_vm2, %v3393_v30, 0.0 }
 0x34f   : > { %v3440_v19 = vadd.f32 %v3439_v41, %v3438_v2  ;;  %v10960_v56 = vadd.f32 %v8725_v38, %v10813_v54  ;;  %v3043_v61 = vpop.f32.mrb[17].mxu0  ;;  %v3551_v49 = vadd.f32 %v3550_v36, %v3549_v23  ;;  %v3554_v23 = vsel %vm391_vm2, %v3505_v37, 0.0 }
 0x350   : > { %v3552_v15 = vsel %vm391_vm2, %v3504_v10, 0.0  ;;  %v10967_v52 = vadd.f32 %v10813_v54, %v3043_v61  ;;  %v8726_v63 = vpop.f32.mrb[18].mxu0  ;;  %v10982_v10 = vpop.permute.xlu0 %3320 }
 0x351   : > { %v3442_v29 = vadd.f32 %v3441_v12, %v3440_v19  ;;  %v10971_v13 = vadd.f32 %v8726_v63, %v10813_v54  ;;  %v3046_v40 = vpop.f32.mrb[19].mxu0  ;;  %v3553_v59 = vadd.f32 %v3552_v15, %v3551_v49  ;;  %v3396_v36 = vmul.f32 %v10897_v9, %v10960_v56  ;;  %13590 = vst [vmem:[#allocation25_spill] sm:$0xff] %v10982_v10  ;;  %v10991_v15 = vpop.permute.xlu1 %3325 }
 0x352   : > { %v3394_v6 = vmul.f32 %v10870_v7, %v10967_v52  ;;  %v10977_v2 = vadd.f32 %v10813_v54, %v3046_v40  ;;  %v3556_v12 = vsel %vm391_vm2, %v3506_v33, 0.0  ;;  %13591 = vst [vmem:[#allocation26_spill] sm:$0xff] %v10991_v15 }
 0x353   : > { %v3444_v41 = vadd.f32 %v3443_v57, %v3442_v29  ;;  %v3555_v38 = vadd.f32 %v3554_v23, %v3553_v59  ;;  %v3397_v37 = vmul.f32 %v10908_v51, %v10971_v13  ;;  %v3509_v33 = vmul.f32 %v3396_v36, %v10960_v56 }
 0x354   : > { %v3445_v19 = vsel %vm391_vm2, %v3394_v6, 0.0  ;;  %v3507_v30 = vmul.f32 %v3394_v6, %v10967_v52  ;;  %v3395_v61 = vmul.f32 %v10879_v0, %v10977_v2  ;;  %v7806_v6 = vld [vmem:[%s13323_s2 + $0x2] sm:$0x3]  ;;  %v11014_v7 = vpop.permute.xlu0 %3330 }
 0x355   : > { %v3446_v49 = vadd.f32 %v3445_v19, %v3444_v41  ;;  %v3557_v63 = vadd.f32 %v3556_v12, %v3555_v38  ;;  %9670 = vmatprep.subr.msk.bf16.mxu1 %vm446_vm0, %v7806_v6  ;;  %v4261_v38 = vsel %vm446_vm0, %v7806_v6, 0  ;;  %13592 = vst [vmem:[#allocation29_spill] sm:$0xff] %v11014_v7  ;;  %v3451_v6 = vsel %vm391_vm2, %v3397_v37, 0.0 }
 0x356   : > { %v3558_v29 = vsel %vm391_vm2, %v3507_v30, 0.0  ;;  %v3447_v40 = vsel %vm391_vm2, %v3395_v61, 0.0  ;;  %v3508_v57 = vmul.f32 %v3395_v61, %v10977_v2  ;;  %v8729_v59 = vpop.f32.mrb[20].mxu0  ;;  %v3449_v30 = vsel %vm391_vm2, %v3396_v36, 0.0  ;;  %8744 = vmatpush3.bf16.msra.mxu1 %v4261_v38  ;;  %v11030_v38 = vpop.permute.xlu1 %3335 }
 0x357   : > { %v3448_v23 = vadd.f32 %v3447_v40, %v3446_v49  ;;  %v11001_v41 = vadd.f32 %v8729_v59, %v10813_v54  ;;  %v3059_v19 = vpop.f32.mrb[21].mxu0  ;;  %v3559_v12 = vadd.f32 %v3558_v29, %v3557_v63  ;;  %v3510_v49 = vmul.f32 %v3397_v37, %v10971_v13  ;;  %13593 = vst [vmem:[#allocation30_spill] sm:$0xff] %v11030_v38 }
 0x358   : > { %v3560_v61 = vsel %vm391_vm2, %v3508_v57, 0.0  ;;  %v11008_v51 = vadd.f32 %v10813_v54, %v3059_v19  ;;  %v8730_v9 = vpop.f32.mrb[22].mxu0  ;;  %v3562_v57 = vsel %vm391_vm2, %v3509_v33, 0.0 }
 0x359   : > { %v3450_v40 = vadd.f32 %v3449_v30, %v3448_v23  ;;  %v11012_v59 = vadd.f32 %v8730_v9, %v10813_v54  ;;  %v3062_v0 = vpop.f32.mrb[23].mxu0  ;;  %v3561_v36 = vadd.f32 %v3560_v61, %v3559_v12  ;;  %v3400_v23 = vmul.f32 %v10953_v43, %v11001_v41  ;;  %v11028_v9 = vld [vmem:[%s13323_s2] sm:$0x3] }
 0x35a   : > { %v3398_v63 = vmul.f32 %v10924_v25, %v11008_v51  ;;  %v11020_v29 = vadd.f32 %v10813_v54, %v3062_v0  ;;  %9671 = vmatprep.subr.msk.bf16.mxu1 %vm446_vm0, %v11028_v9  ;;  %v3564_v33 = vsel %vm391_vm2, %v3510_v49, 0.0  ;;  %v11048_v49 = vpop.permute.xlu0 %3340 }
 0x35b   : > { %v3452_v19 = vadd.f32 %v3451_v6, %v3450_v40  ;;  %v3563_v37 = vadd.f32 %v3562_v57, %v3561_v36  ;;  %v3401_v40 = vmul.f32 %v10962_v62, %v11012_v59  ;;  %v3513_v25 = vmul.f32 %v3400_v23, %v11001_v41  ;;  %13594 = vst [vmem:[#allocation31_spill] sm:$0xff] %v11048_v49 }
 0x35c   : > { %v3453_v30 = vsel %vm391_vm2, %v3398_v63, 0.0  ;;  %v3511_v12 = vmul.f32 %v3398_v63, %v11008_v51  ;;  %v3399_v0 = vmul.f32 %v10935_v26, %v11020_v29 }
 0x35d   : > { %v3454_v61 = vadd.f32 %v3453_v30, %v3452_v19  ;;  %v3565_v6 = vadd.f32 %v3564_v33, %v3563_v37  ;;  %v3457_v19 = vsel %vm391_vm2, %v3400_v23, 0.0  ;;  %v3459_v44 = vsel %vm391_vm2, %v3401_v40, 0.0 }
 0x35e   : > { %v3566_v43 = vsel %vm391_vm2, %v3511_v12, 0.0  ;;  %v3455_v36 = vsel %vm391_vm2, %v3399_v0, 0.0  ;;  %v3512_v57 = vmul.f32 %v3399_v0, %v11020_v29  ;;  %v8733_v63 = vpop.f32.mrb[24].mxu0  ;;  %v3514_v0 = vmul.f32 %v3401_v40, %v11012_v59 }
 0x35f   : > { %v3456_v26 = vadd.f32 %v3455_v36, %v3454_v61  ;;  %v11046_v28 = vadd.f32 %v8733_v63, %v10813_v54  ;;  %v3075_v39 = vpop.f32.mrb[25].mxu0  ;;  %v3567_v30 = vadd.f32 %v3566_v43, %v3565_v6  ;;  %v11059_v63 = vpop.permute.xlu1 %3345 }
 0x360   : > { %v3568_v37 = vsel %vm391_vm2, %v3512_v57, 0.0  ;;  %v11053_v12 = vadd.f32 %v10813_v54, %v3075_v39  ;;  %v8734_v33 = vpop.f32.mrb[26].mxu0  ;;  %13595 = vst [vmem:[#allocation32_spill] sm:$0xff] %v11059_v63  ;;  %v3570_v39 = vsel %vm391_vm2, %v3513_v25, 0.0 }
 0x361   : > { %v3458_v62 = vadd.f32 %v3457_v19, %v3456_v26  ;;  %v11057_v61 = vadd.f32 %v8734_v33, %v10813_v54  ;;  %v3078_v36 = vpop.f32.mrb[27].mxu0  ;;  %v3569_v18 = vadd.f32 %v3568_v37, %v3567_v30  ;;  %v3404_v26 = vmul.f32 %v11014_v7, %v11046_v28 }
 0x362   : > { %v3402_v43 = vmul.f32 %v10982_v10, %v11053_v12  ;;  %v11065_v23 = vadd.f32 %v10813_v54, %v3078_v36  ;;  %v3572_v30 = vsel %vm391_vm2, %v3514_v0, 0.0  ;;  %v11077_v10 = vpop.permute.xlu0 %3350 }
 0x363   : > { %v3460_v6 = vadd.f32 %v3459_v44, %v3458_v62  ;;  %v3571_v57 = vadd.f32 %v3570_v39, %v3569_v18  ;;  %v3405_v36 = vmul.f32 %v11030_v38, %v11057_v61  ;;  %13596 = vst [vmem:[#allocation33_spill] sm:$0xff] %v11077_v10 }
 0x364   : > { %v3461_v19 = vsel %vm391_vm2, %v3402_v43, 0.0  ;;  %v3515_v33 = vmul.f32 %v3402_v43, %v11053_v12  ;;  %v3403_v40 = vmul.f32 %v10991_v15, %v11065_v23  ;;  %v3517_v43 = vmul.f32 %v3404_v26, %v11046_v28 }
 0x365   : > { %v3462_v37 = vadd.f32 %v3461_v19, %v3460_v6  ;;  %v3573_v25 = vadd.f32 %v3572_v30, %v3571_v57  ;;  %v11086_v6 = vpop.permute.xlu1 %3355  ;;  %v3465_v19 = vsel %vm391_vm2, %v3404_v26, 0.0 }
 0x366   : > { %v3574_v7 = vsel %vm391_vm2, %v3515_v33, 0.0  ;;  %v3463_v18 = vsel %vm391_vm2, %v3403_v40, 0.0  ;;  %v3516_v44 = vmul.f32 %v3403_v40, %v11065_v23  ;;  %v8737_v62 = vpop.f32.mrb[28].mxu0  ;;  %13597 = vst [vmem:[#allocation34_spill] sm:$0xff] %v11086_v6  ;;  %v3518_v40 = vmul.f32 %v3405_v36, %v11057_v61 }
 0x367   : > { %v3464_v39 = vadd.f32 %v3463_v18, %v3462_v37  ;;  %v11084_v15 = vadd.f32 %v8737_v62, %v10813_v54  ;;  %v3091_v0 = vpop.f32.mrb[29].mxu0  ;;  %v3575_v38 = vadd.f32 %v3574_v7, %v3573_v25  ;;  %v3467_v62 = vsel %vm391_vm2, %v3405_v36, 0.0 }
 0x368   : > { %v3576_v57 = vsel %vm391_vm2, %v3516_v44, 0.0  ;;  %v11091_v33 = vadd.f32 %v10813_v54, %v3091_v0  ;;  %v8738_v30 = vpop.f32.mrb[30].mxu0  ;;  %v3578_v25 = vsel %vm391_vm2, %v3517_v43, 0.0 }
 0x369   : > { %v3466_v5 = vadd.f32 %v3465_v19, %v3464_v39  ;;  %v11095_v37 = vadd.f32 %v8738_v30, %v10813_v54  ;;  %v3094_v18 = vpop.f32.mrb[31].mxu0  ;;  %v3577_v3 = vadd.f32 %v3576_v57, %v3575_v38  ;;  %v3408_v44 = vmul.f32 %v11077_v10, %v11084_v15  ;;  %v11106_v39 = vpop.permute.xlu0 %3360 }
 0x36a   : > { %v3406_v26 = vmul.f32 %v11048_v49, %v11091_v33  ;;  %v11101_v7 = vadd.f32 %v10813_v54, %v3094_v18  ;;  %13598 = vst [vmem:[#allocation35_spill] sm:$0xff] %v11106_v39  ;;  %v3580_v57 = vsel %vm391_vm2, %v3518_v40, 0.0  ;;  %v11115_v49 = vpop.permute.xlu1 %3365 }
 0x36b   : > { %v3468_v0 = vadd.f32 %v3467_v62, %v3466_v5  ;;  %v3579_v19 = vadd.f32 %v3578_v25, %v3577_v3  ;;  %v3409_v43 = vmul.f32 %v11086_v6, %v11095_v37  ;;  %13599 = vst [vmem:[#allocation36_spill] sm:$0xff] %v11115_v49 }
 0x36c   : > { %v3469_v30 = vsel %vm391_vm2, %v3406_v26, 0.0  ;;  %v3519_v36 = vmul.f32 %v3406_v26, %v11091_v33  ;;  %v3407_v38 = vmul.f32 %v11059_v63, %v11101_v7  ;;  %v3521_v26 = vmul.f32 %v3408_v44, %v11084_v15 }
 0x36d   : > { %v3470_v18 = vadd.f32 %v3469_v30, %v3468_v0  ;;  %v3581_v10 = vadd.f32 %v3580_v57, %v3579_v19  ;;  %v3473_v0 = vsel %vm391_vm2, %v3408_v44, 0.0  ;;  %v3522_v57 = vmul.f32 %v3409_v43, %v11095_v37 }
 0x36e   : > { %v3582_v5 = vsel %vm391_vm2, %v3519_v36, 0.0  ;;  %v3471_v3 = vsel %vm391_vm2, %v3407_v38, 0.0  ;;  %v3520_v62 = vmul.f32 %v3407_v38, %v11101_v7  ;;  %v8741_v25 = vpop.f32.mrb[32].mxu0 }
 0x36f   : > { %v3472_v45 = vadd.f32 %v3471_v3, %v3470_v18  ;;  %v11122_v63 = vadd.f32 %v8741_v25, %v10813_v54  ;;  %v3107_v40 = vpop.f32.mrb[33].mxu0  ;;  %v3583_v30 = vadd.f32 %v3582_v5, %v3581_v10  ;;  %v11133_v3 = vpop.permute.xlu0 %3370  ;;  %v3475_v25 = vsel %vm391_vm2, %v3409_v43, 0.0 }
 0x370   : > { %v3584_v6 = vsel %vm391_vm2, %v3520_v62, 0.0  ;;  %v11127_v19 = vadd.f32 %v10813_v54, %v3107_v40  ;;  %v8742_v36 = vpop.f32.mrb[34].mxu0  ;;  %13600 = vst [vmem:[#allocation37_spill] sm:$0xff] %v11133_v3  ;;  %v3586_v5 = vsel %vm391_vm2, %v3521_v26, 0.0  ;;  %v11144_v40 = vpop.permute.xlu1 %3375 }
 0x371   : > { %v3474_v38 = vadd.f32 %v3473_v0, %v3472_v45  ;;  %v11131_v24 = vadd.f32 %v8742_v36, %v10813_v54  ;;  %v3110_v18 = vpop.f32.mrb[35].mxu0  ;;  %v3585_v42 = vadd.f32 %v3584_v6, %v3583_v30  ;;  %v3412_v45 = vmul.f32 %v11133_v3, %v11122_v63  ;;  %13601 = vst [vmem:[#allocation38_spill] sm:$0xff] %v11144_v40 }
 0x372   : > { %v3410_v10 = vmul.f32 %v11106_v39, %v11127_v19  ;;  %v11139_v44 = vadd.f32 %v10813_v54, %v3110_v18  ;;  %v3588_v30 = vsel %vm391_vm2, %v3522_v57, 0.0 }
 0x373   : > { %v3476_v62 = vadd.f32 %v3475_v25, %v3474_v38  ;;  %v3587_v0 = vadd.f32 %v3586_v5, %v3585_v42  ;;  %v3413_v26 = vmul.f32 %v11144_v40, %v11131_v24  ;;  %v3525_v25 = vmul.f32 %v3412_v45, %v11122_v63 }
 0x374   : > { %v3477_v36 = vsel %vm391_vm2, %v3410_v10, 0.0  ;;  %v3523_v43 = vmul.f32 %v3410_v10, %v11127_v19  ;;  %v3411_v6 = vmul.f32 %v11115_v49, %v11139_v44  ;;  %v11157_v10 = vld [vmem:[#allocation2 + $0x18] sm:$0xff]   ;;  %v3481_v39 = vsel %vm391_vm2, %v3412_v45, 0.0 }
 0x375   : > { %v3478_v54 = vadd.f32 %v3477_v36, %v3476_v62  ;;  %v3589_v18 = vadd.f32 %v3588_v30, %v3587_v0  ;;  %v3526_v62 = vmul.f32 %v3413_v26, %v11131_v24  ;;  %v3483_v0 = vsel %vm391_vm2, %v3413_v26, 0.0 }
 0x376   : > { %v3590_v3 = vsel %vm391_vm2, %v3523_v43, 0.0  ;;  %v3479_v38 = vsel %vm391_vm2, %v3411_v6, 0.0  ;;  %v3524_v42 = vmul.f32 %v3411_v6, %v11139_v44  ;;  %v3594_v30 = vsel %vm391_vm2, %v3525_v25, 0.0 }
 0x377   : > { %v3480_v5 = vadd.f32 %v3479_v38, %v3478_v54  ;;  %v3591_v22 = vadd.f32 %v3590_v3, %v3589_v18  ;;  %v13432_v6 = vshrl.u32 %v11157_v10, 16  ;;  %v13431_v54 = vshll.u32 %v11157_v10, 16 }
 0x378   : > { %v3592_v57 = vsel %vm391_vm2, %v3524_v42, 0.0  ;;  %v3596_v48 = vsel %vm391_vm2, %v3526_v62, 0.0 }
 0x379   : > { %v3482_v36 = vadd.f32 %v3481_v39, %v3480_v5  ;;  %v3593_v43 = vadd.f32 %v3592_v57, %v3591_v22  ;;  %v11169_v42 = vrot.slane %v13432_v6, 3  ;;  %v11173_v22 = vrot.slane %v13431_v54, 4 }
 0x37b   : > { %v3484_v40 = vadd.f32 %v3483_v0, %v3482_v36  ;;  %v3595_v38 = vadd.f32 %v3594_v30, %v3593_v43  ;;  %13602 = vst [vmem:[#allocation39_spill] sm:$0xff] %v11169_v42  ;;  %13603 = vst [vmem:[#allocation40_spill] sm:$0xff] %v11173_v22 }
 0x37d   : > { %v3485_v45 = vrot.slane %v3484_v40, 4  ;;  %v3597_v3 = vadd.f32 %v3596_v48, %v3595_v38 }
 0x37f   : > { %v3486_v18 = vadd.f32 %v3485_v45, %v3484_v40  ;;  %v3598_v39 = vrot.slane %v3597_v3, 4 }
 0x381   : > { %v3487_v26 = vrot.slane %v3486_v18, 2  ;;  %v3599_v5 = vadd.f32 %v3598_v39, %v3597_v3 }
 0x383   : > { %v3488_v57 = vadd.f32 %v3487_v26, %v3486_v18  ;;  %v3600_v36 = vrot.slane %v3599_v5, 2 }
 0x385   : > { %v3489_v62 = vrot.slane %v3488_v57, 1  ;;  %v3601_v0 = vadd.f32 %v3600_v36, %v3599_v5 }
 0x387   : > { %v3490_v48 = vadd.f32 %v3489_v62, %v3488_v57  ;;  %v3602_v40 = vrot.slane %v3601_v0, 1 }
 0x389   : > { %v11177_v43 = vmul.f32 0.00390625, %v3490_v48  ;;  %v3603_v30 = vadd.f32 %v3602_v40, %v3601_v0  ;;  %v11266_v0 = vld [vmem:[%s13324_s3 + $0x2] ss:$0 sm:$0xff] }
 0x38b   : > { %v3606_v38 = vmul.f32 %v11177_v43, %v11177_v43  ;;  %v3642_v45 = vsub.f32 %v11139_v44, %v11177_v43  ;;  %v3605_v54 = vmul.f32 0.00390625, %v3603_v30  ;;  %v3625_v3 = vsub.f32 %v10967_v52, %v11177_v43 }
 0x38c   : > { %v3626_v18 = vsub.f32 %v10977_v2, %v11177_v43  ;;  %v3627_v39 = vsub.f32 %v10960_v56, %v11177_v43  ;;  %v3628_v26 = vsub.f32 %v10971_v13, %v11177_v43  ;;  %v3629_v5 = vsub.f32 %v11008_v51, %v11177_v43 }
 0x38d   : > { %v3607_v6 = vsub.f32 %v3605_v54, %v3606_v38  ;;  %v3630_v44 = vsub.f32 %v11020_v29, %v11177_v43  ;;  %v3632_v52 = vsub.f32 %v11012_v59, %v11177_v43  ;;  %v3633_v2 = vsub.f32 %v11053_v12, %v11177_v43 }
 0x38e   : > { %v3634_v56 = vsub.f32 %v11065_v23, %v11177_v43  ;;  %v3635_v13 = vsub.f32 %v11046_v28, %v11177_v43  ;;  %v3636_v51 = vsub.f32 %v11057_v61, %v11177_v43  ;;  %v3637_v29 = vsub.f32 %v11091_v33, %v11177_v43 }
 0x38f   : > { %v3608_v31 = vmax.f32 %v3607_v6, 0.0  ;;  %v3631_v6 = vsub.f32 %v11001_v41, %v11177_v43  ;;  %v3639_v41 = vsub.f32 %v11084_v15, %v11177_v43  ;;  %v3640_v59 = vsub.f32 %v11095_v37, %v11177_v43 }
 0x390   : > { %v3641_v12 = vsub.f32 %v11127_v19, %v11177_v43  ;;  %v3643_v28 = vsub.f32 %v11122_v63, %v11177_v43  ;;  %v3644_v61 = vsub.f32 %v11131_v24, %v11177_v43  ;;  %v11224_v33 = vsel %vm446_vm0, %v11028_v9, 0 }
 0x391   : > { %v3645_v54 = vadd.f32 1e-05, %v3608_v31  ;;  %v3638_v31 = vsub.f32 %v11101_v7, %v11177_v43  ;;  %13604 = vst [vmem:[#allocation41_spill] sm:$0xff] %v11224_v33  ;;  %v3609_v15 = vsub.f32 %v10821_v34, %v11177_v43  ;;  %v3610_v37 = vsub.f32 %v10833_v35, %v11177_v43 }
 0x392   : > { %v3611_v7 = vsub.f32 %v10816_v27, %v11177_v43  ;;  %v3612_v63 = vsub.f32 %v10826_v1, %v11177_v43  ;;  %v3613_v24 = vsub.f32 %v10856_v47, %v11177_v43  ;;  %v3614_v19 = vsub.f32 %v10868_v21, %v11177_v43 }
 0x393   : > { %9734 = vrsqrt.f32 %v3645_v54  ;;  %v3615_v9 = vsub.f32 %v10848_v50, %v11177_v43  ;;  %v3616_v34 = vsub.f32 %v10860_v20, %v11177_v43  ;;  %v3617_v35 = vsub.f32 %v10890_v58, %v11177_v43  ;;  %v11253_v50 = vld [vmem:[%s13324_s3 + $0x1] ss:$0 sm:$0xff] }
 0x394   : > { %v3618_v27 = vsub.f32 %v10903_v14, %v11177_v43  ;;  %v3619_v1 = vsub.f32 %v10886_v46, %v11177_v43  ;;  %v3620_v47 = vsub.f32 %v10895_v4, %v11177_v43  ;;  %v3621_v20 = vsub.f32 %v10929_v55, %v11177_v43 }
 0x395   : > { %v3622_v21 = vsub.f32 %v10941_v8, %v11177_v43  ;;  %v3623_v58 = vsub.f32 %v10922_v53, %v11177_v43  ;;  %v3624_v46 = vsub.f32 %v10933_v60, %v11177_v43 }
 0x39d   : > { %v9735_v57 = vpop.eup %9734 }
 0x39e   : > { %v3680_v14 = vmul.f32 %v9735_v57, %v3642_v45  ;;  %v3647_v4 = vmul.f32 %v9735_v57, %v3609_v15  ;;  %v3648_v36 = vmul.f32 %v9735_v57, %v3610_v37  ;;  %v3649_v62 = vmul.f32 %v9735_v57, %v3611_v7 }
 0x39f   : > { %v3650_v48 = vmul.f32 %v9735_v57, %v3612_v63  ;;  %v3651_v55 = vmul.f32 %v9735_v57, %v3613_v24  ;;  %v3652_v40 = vmul.f32 %v9735_v57, %v3614_v19  ;;  %v3653_v30 = vmul.f32 %v9735_v57, %v3615_v9 }
 0x3a0   : > { %v3720_v8 = vmul.f32 %v11253_v50, %v3680_v14  ;;  %v3654_v38 = vmul.f32 %v9735_v57, %v3616_v34  ;;  %v3655_v53 = vmul.f32 %v9735_v57, %v3617_v35  ;;  %v3656_v54 = vmul.f32 %v9735_v57, %v3618_v27 }
 0x3a1   : > { %v3657_v25 = vmul.f32 %v9735_v57, %v3619_v1  ;;  %v3658_v60 = vmul.f32 %v9735_v57, %v3620_v47  ;;  %v3659_v43 = vmul.f32 %v9735_v57, %v3621_v20  ;;  %v3660_v45 = vmul.f32 %v9735_v57, %v3622_v21 }
 0x3a2   : > { %v3760_v15 = vadd.f32 %v11266_v0, %v3720_v8  ;;  %v3661_v37 = vmul.f32 %v9735_v57, %v3623_v58  ;;  %v3662_v7 = vmul.f32 %v9735_v57, %v3624_v46  ;;  %v3663_v23 = vmul.f32 %v9735_v57, %v3625_v3 }
 0x3a3   : > { %v3664_v42 = vmul.f32 %v9735_v57, %v3626_v18  ;;  %v3665_v22 = vmul.f32 %v9735_v57, %v3627_v39  ;;  %v3666_v63 = vmul.f32 %v9735_v57, %v3628_v26  ;;  %v3667_v24 = vmul.f32 %v9735_v57, %v3629_v5 }
 0x3a4   : > { %v3796_v19 = vmax.f32 %v3760_v15, 0.0  ;;  %v3668_v9 = vmul.f32 %v9735_v57, %v3630_v44  ;;  %v3669_v33 = vmul.f32 %v9735_v57, %v3631_v6  ;;  %v3670_v14 = vmul.f32 %v9735_v57, %v3632_v52 }
 0x3a5   : > { %v3671_v34 = vmul.f32 %v9735_v57, %v3633_v2  ;;  %v3672_v35 = vmul.f32 %v9735_v57, %v3634_v56  ;;  %v3673_v27 = vmul.f32 %v9735_v57, %v3635_v13  ;;  %v3674_v1 = vmul.f32 %v9735_v57, %v3636_v51 }
 0x3a6   : > { %v3832_v47 = vmul.f32 %v3796_v19, %v11115_v49  ;;  %v3675_v20 = vmul.f32 %v9735_v57, %v3637_v29  ;;  %v3676_v21 = vmul.f32 %v9735_v57, %v3638_v31  ;;  %v3677_v8 = vmul.f32 %v9735_v57, %v3639_v41 }
 0x3a7   : > { %v3678_v58 = vmul.f32 %v9735_v57, %v3640_v59  ;;  %v3679_v46 = vmul.f32 %v9735_v57, %v3641_v12  ;;  %v3681_v3 = vmul.f32 %v9735_v57, %v3643_v28  ;;  %v3682_v18 = vmul.f32 %v9735_v57, %v3644_v61 }
 0x3a8   : > { %v8056_v39 = vpack.c.bf16 %v3832_v47, %v3832_v47  ;;  %v3687_v26 = vmul.f32 %v11253_v50, %v3647_v4  ;;  %v3688_v5 = vmul.f32 %v11253_v50, %v3648_v36  ;;  %v3689_v44 = vmul.f32 %v11253_v50, %v3649_v62 }
 0x3a9   : > { %v3690_v6 = vmul.f32 %v11253_v50, %v3650_v48  ;;  %v3691_v52 = vmul.f32 %v11253_v50, %v3651_v55  ;;  %v3692_v2 = vmul.f32 %v11253_v50, %v3652_v40  ;;  %v3693_v56 = vmul.f32 %v11253_v50, %v3653_v30 }
 0x3aa   : > { %4028 = vst.msk [vmem:[#allocation2 + $0xa8] sm:$0xf] %vm3835_vm7, %v8056_v39  ;;  %v3694_v13 = vmul.f32 %v11253_v50, %v3654_v38  ;;  %v3695_v51 = vmul.f32 %v11253_v50, %v3655_v53  ;;  %v3696_v29 = vmul.f32 %v11253_v50, %v3656_v54  ;;  %v3697_v31 = vmul.f32 %v11253_v50, %v3657_v25 }
 0x3ab   : > { %v3698_v41 = vmul.f32 %v11253_v50, %v3658_v60  ;;  %v3699_v59 = vmul.f32 %v11253_v50, %v3659_v43  ;;  %v3700_v12 = vmul.f32 %v11253_v50, %v3660_v45  ;;  %v3701_v28 = vmul.f32 %v11253_v50, %v3661_v37 }
 0x3ac   : > { %v3702_v61 = vmul.f32 %v11253_v50, %v3662_v7  ;;  %v3703_v57 = vmul.f32 %v11253_v50, %v3663_v23  ;;  %v3704_v4 = vmul.f32 %v11253_v50, %v3664_v42  ;;  %v3705_v36 = vmul.f32 %v11253_v50, %v3665_v22 }
 0x3ad   : > { %v3706_v62 = vmul.f32 %v11253_v50, %v3666_v63  ;;  %v3707_v25 = vmul.f32 %v11253_v50, %v3667_v24  ;;  %v3708_v48 = vmul.f32 %v11253_v50, %v3668_v9  ;;  %v3709_v55 = vmul.f32 %v11253_v50, %v3669_v33 }
 0x3ae   : > { %v3710_v40 = vmul.f32 %v11253_v50, %v3670_v14  ;;  %v3711_v30 = vmul.f32 %v11253_v50, %v3671_v34  ;;  %v3712_v38 = vmul.f32 %v11253_v50, %v3672_v35  ;;  %v3713_v23 = vmul.f32 %v11253_v50, %v3673_v27 }
 0x3af   : > { %v3714_v42 = vmul.f32 %v11253_v50, %v3674_v1  ;;  %v3715_v22 = vmul.f32 %v11253_v50, %v3675_v20  ;;  %v3716_v53 = vmul.f32 %v11253_v50, %v3676_v21  ;;  %v3717_v54 = vmul.f32 %v11253_v50, %v3677_v8 }
 0x3b0   : > { %v3718_v60 = vmul.f32 %v11253_v50, %v3678_v58  ;;  %v3719_v33 = vmul.f32 %v11253_v50, %v3679_v46  ;;  %v3721_v43 = vmul.f32 %v11253_v50, %v3681_v3  ;;  %v3722_v45 = vmul.f32 %v11253_v50, %v3682_v18 }
 0x3b1   : > { %v11308_v15 = vadd.f32 %v11266_v0, %v3687_v26  ;;  %v11311_v37 = vadd.f32 %v11266_v0, %v3688_v5  ;;  %v11314_v7 = vadd.f32 %v11266_v0, %v3689_v44  ;;  %v11317_v63 = vadd.f32 %v11266_v0, %v3690_v6 }
 0x3b2   : > { %v11320_v24 = vadd.f32 %v11266_v0, %v3691_v52  ;;  %v11323_v19 = vadd.f32 %v11266_v0, %v3692_v2  ;;  %v11326_v50 = vadd.f32 %v11266_v0, %v3693_v56  ;;  %v11329_v9 = vadd.f32 %v11266_v0, %v3694_v13 }
 0x3b3   : > { %v11332_v14 = vadd.f32 %v11266_v0, %v3695_v51  ;;  %v11335_v34 = vadd.f32 %v11266_v0, %v3696_v29  ;;  %v11338_v35 = vadd.f32 %v11266_v0, %v3697_v31  ;;  %v11341_v27 = vadd.f32 %v11266_v0, %v3698_v41 }
 0x3b4   : > { %v11344_v1 = vadd.f32 %v11266_v0, %v3699_v59  ;;  %v11347_v47 = vadd.f32 %v11266_v0, %v3700_v12  ;;  %v11350_v20 = vadd.f32 %v11266_v0, %v3701_v28  ;;  %v11353_v21 = vadd.f32 %v11266_v0, %v3702_v61 }
 0x3b5   : > { %v11356_v8 = vadd.f32 %v11266_v0, %v3703_v57  ;;  %v11359_v58 = vadd.f32 %v11266_v0, %v3704_v4  ;;  %v11362_v46 = vadd.f32 %v11266_v0, %v3705_v36  ;;  %v11365_v3 = vadd.f32 %v11266_v0, %v3706_v62 }
 0x3b6   : > { %v11368_v18 = vadd.f32 %v11266_v0, %v3707_v25  ;;  %v11371_v39 = vadd.f32 %v11266_v0, %v3708_v48  ;;  %v11374_v26 = vadd.f32 %v11266_v0, %v3709_v55  ;;  %v11377_v5 = vadd.f32 %v11266_v0, %v3710_v40 }
 0x3b7   : > { %v11380_v44 = vadd.f32 %v11266_v0, %v3711_v30  ;;  %v11383_v6 = vadd.f32 %v11266_v0, %v3712_v38  ;;  %v11386_v52 = vadd.f32 %v11266_v0, %v3713_v23  ;;  %v11389_v2 = vadd.f32 %v11266_v0, %v3714_v42 }
 0x3b8   : > { %v11392_v56 = vadd.f32 %v11266_v0, %v3715_v22  ;;  %v11395_v13 = vadd.f32 %v11266_v0, %v3716_v53  ;;  %v11398_v51 = vadd.f32 %v11266_v0, %v3717_v54  ;;  %v11401_v29 = vadd.f32 %v11266_v0, %v3718_v60 }
 0x3b9   : > { %v11404_v31 = vadd.f32 %v11266_v0, %v3719_v33  ;;  %v11407_v41 = vadd.f32 %v11266_v0, %v3721_v43  ;;  %v11410_v59 = vadd.f32 %v11266_v0, %v3722_v45  ;;  %v3763_v12 = vmax.f32 %v11308_v15, 0.0 }
 0x3ba   : > { %v3764_v28 = vmax.f32 %v11311_v37, 0.0  ;;  %v3765_v61 = vmax.f32 %v11314_v7, 0.0  ;;  %v3766_v57 = vmax.f32 %v11317_v63, 0.0  ;;  %v3767_v4 = vmax.f32 %v11320_v24, 0.0 }
 0x3bb   : > { %v3768_v36 = vmax.f32 %v11323_v19, 0.0  ;;  %v3769_v62 = vmax.f32 %v11326_v50, 0.0  ;;  %v3770_v25 = vmax.f32 %v11329_v9, 0.0  ;;  %v3771_v48 = vmax.f32 %v11332_v14, 0.0 }
 0x3bc   : > { %v3772_v0 = vmax.f32 %v11335_v34, 0.0  ;;  %v3773_v55 = vmax.f32 %v11338_v35, 0.0  ;;  %v3774_v40 = vmax.f32 %v11341_v27, 0.0  ;;  %v3775_v30 = vmax.f32 %v11344_v1, 0.0 }
 0x3bd   : > { %v3776_v38 = vmax.f32 %v11347_v47, 0.0  ;;  %v3777_v23 = vmax.f32 %v11350_v20, 0.0  ;;  %v3778_v42 = vmax.f32 %v11353_v21, 0.0  ;;  %v3779_v22 = vmax.f32 %v11356_v8, 0.0  ;;  %v13605_v8 = vld [vmem:[#allocation7_spill] sm:$0xff] }
 0x3be   : > { %v3780_v53 = vmax.f32 %v11359_v58, 0.0  ;;  %v3781_v54 = vmax.f32 %v11362_v46, 0.0  ;;  %v3782_v60 = vmax.f32 %v11365_v3, 0.0  ;;  %v3783_v33 = vmax.f32 %v11368_v18, 0.0  ;;  %v13606_v46 = vld [vmem:[#allocation8_spill] sm:$0xff]  ;;  %v13607_v18 = vld [vmem:[#allocation9_spill] sm:$0xff] }
 0x3bf   : > { %v3784_v43 = vmax.f32 %v11371_v39, 0.0  ;;  %v3785_v45 = vmax.f32 %v11374_v26, 0.0  ;;  %v3786_v15 = vmax.f32 %v11377_v5, 0.0  ;;  %v3787_v37 = vmax.f32 %v11380_v44, 0.0  ;;  %v13608_v26 = vld [vmem:[#allocation10_spill] sm:$0xff]  ;;  %v13609_v44 = vld [vmem:[#allocation27_spill] sm:$0xff] }
 0x3c0   : > { %v3788_v7 = vmax.f32 %v11383_v6, 0.0  ;;  %v3789_v63 = vmax.f32 %v11386_v52, 0.0  ;;  %v3790_v24 = vmax.f32 %v11389_v2, 0.0  ;;  %v3791_v19 = vmax.f32 %v11392_v56, 0.0  ;;  %v13610_v52 = vld [vmem:[#allocation28_spill] sm:$0xff]  ;;  %v13611_v56 = vld [vmem:[#allocation11_spill] sm:$0xff] }
 0x3c1   : > { %v3792_v50 = vmax.f32 %v11395_v13, 0.0  ;;  %v3793_v9 = vmax.f32 %v11398_v51, 0.0  ;;  %v3794_v14 = vmax.f32 %v11401_v29, 0.0  ;;  %v3795_v34 = vmax.f32 %v11404_v31, 0.0  ;;  %v13612_v51 = vld [vmem:[#allocation12_spill] sm:$0xff]  ;;  %v13613_v31 = vld [vmem:[#allocation13_spill] sm:$0xff] }
 0x3c2   : > { %v3797_v35 = vmax.f32 %v11407_v41, 0.0  ;;  %v3798_v27 = vmax.f32 %v11410_v59, 0.0  ;;  %v3799_v1 = vmul.f32 %v3763_v12, %v10786_v11  ;;  %v3800_v47 = vmul.f32 %v3764_v28, %v10790_v32  ;;  %v13614_v59 = vld [vmem:[#allocation14_spill] sm:$0xff]  ;;  %v13615_v28 = vld [vmem:[#allocation15_spill] sm:$0xff] }
 0x3c3   : > { %v3801_v20 = vmul.f32 %v3765_v61, %v10788_v16  ;;  %v3802_v21 = vmul.f32 %v3766_v57, %v10792_v17  ;;  %v3803_v58 = vmul.f32 %v3767_v4, %v13605_v8  ;;  %v3804_v3 = vmul.f32 %v3768_v36, %v13606_v46  ;;  %v13616_v57 = vld [vmem:[#allocation16_spill] sm:$0xff]  ;;  %v13617_v36 = vld [vmem:[#allocation17_spill] sm:$0xff] }
 0x3c4   : > { %v3805_v39 = vmul.f32 %v3769_v62, %v13607_v18  ;;  %v3806_v5 = vmul.f32 %v3770_v25, %v13608_v26  ;;  %v3807_v6 = vmul.f32 %v3771_v48, %v13609_v44  ;;  %v3808_v2 = vmul.f32 %v3772_v0, %v13610_v52  ;;  %v13618_v25 = vld [vmem:[#allocation18_spill] sm:$0xff]  ;;  %v13619_v0 = vld [vmem:[#allocation19_spill] sm:$0xff] }
 0x3c5   : > { %v3809_v13 = vmul.f32 %v3773_v55, %v13611_v56  ;;  %v3810_v29 = vmul.f32 %v3774_v40, %v13612_v51  ;;  %v3811_v41 = vmul.f32 %v3775_v30, %v13613_v31  ;;  %v3812_v12 = vmul.f32 %v3776_v38, %v13614_v59  ;;  %v13620_v55 = vld [vmem:[#allocation20_spill] sm:$0xff]  ;;  %v13621_v30 = vld [vmem:[#allocation21_spill] sm:$0xff]  ;;  %v13622_v38 = vld [vmem:[#allocation22_spill] sm:$0xff] }
 0x3c6   : > { %v3813_v61 = vmul.f32 %v3777_v23, %v13615_v28  ;;  %v11463_v4 = vmul.f32 %v3778_v42, %v13616_v57  ;;  %v11466_v62 = vmul.f32 %v3779_v22, %v13617_v36  ;;  %v11469_v48 = vmul.f32 %v3780_v53, %v13618_v25  ;;  %v13623_v42 = vld [vmem:[#allocation23_spill] sm:$0xff]  ;;  %v13624_v22 = vld [vmem:[#allocation24_spill] sm:$0xff]  ;;  %v13625_v53 = vld [vmem:[#allocation25_spill] sm:$0xff] }
 0x3c7   : > { %v11472_v49 = vmul.f32 %v3781_v54, %v13619_v0  ;;  %v11475_v40 = vmul.f32 %v3782_v60, %v13620_v55  ;;  %v11478_v31 = vmul.f32 %v3783_v33, %v13621_v30  ;;  %v11481_v23 = vmul.f32 %v3784_v43, %v13622_v38  ;;  %v13626_v54 = vld [vmem:[#allocation26_spill] sm:$0xff]  ;;  %v13627_v60 = vld [vmem:[#allocation29_spill] sm:$0xff]  ;;  %v13629_v43 = vld [vmem:[#allocation31_spill] sm:$0xff] }
 0x3c8   : > { %v11484_v57 = vmul.f32 %v3785_v45, %v13623_v42  ;;  %v11487_v36 = vmul.f32 %v3786_v15, %v13624_v22  ;;  %v11490_v25 = vmul.f32 %v3787_v37, %v13625_v53  ;;  %v11493_v0 = vmul.f32 %v3788_v7, %v13626_v54  ;;  %v13628_v33 = vld [vmem:[#allocation30_spill] sm:$0xff]  ;;  %v13630_v45 = vld [vmem:[#allocation32_spill] sm:$0xff]  ;;  %v13631_v15 = vld [vmem:[#allocation33_spill] sm:$0xff] }
 0x3c9   : > { %v11496_v55 = vmul.f32 %v3789_v63, %v13627_v60  ;;  %v11499_v30 = vmul.f32 %v3790_v24, %v13628_v33  ;;  %v11502_v38 = vmul.f32 %v3791_v19, %v13629_v43  ;;  %v11505_v42 = vmul.f32 %v3792_v50, %v13630_v45  ;;  %v13632_v37 = vld [vmem:[#allocation34_spill] sm:$0xff]  ;;  %v13633_v7 = vld [vmem:[#allocation35_spill] sm:$0xff]  ;;  %v13634_v63 = vld [vmem:[#allocation37_spill] sm:$0xff] }
 0x3ca   : > { %v11508_v22 = vmul.f32 %v3793_v9, %v13631_v15  ;;  %v11511_v53 = vmul.f32 %v3794_v14, %v13632_v37  ;;  %v11514_v54 = vmul.f32 %v3795_v34, %v13633_v7  ;;  %v11517_v60 = vmul.f32 %v3797_v35, %v13634_v63  ;;  %v13635_v24 = vld [vmem:[#allocation38_spill] sm:$0xff] }
 0x3cb   : > { %v11520_v33 = vmul.f32 %v3798_v27, %v13635_v24  ;;  %v8023_v19 = vpack.c.bf16 %v3799_v1, %v3799_v1  ;;  %v8024_v43 = vpack.c.bf16 %v3800_v47, %v3800_v47  ;;  %v8025_v59 = vpack.c.bf16 %v3801_v20, %v3801_v20 }
 0x3cc   : > { %v8026_v50 = vpack.c.bf16 %v3802_v21, %v3802_v21  ;;  %v8027_v45 = vpack.c.bf16 %v3803_v58, %v3803_v58  ;;  %v8028_v28 = vpack.c.bf16 %v3804_v3, %v3804_v3  ;;  %v8029_v9 = vpack.c.bf16 %v3805_v39, %v3805_v39 }
 0x3cd   : > { %v8030_v15 = vpack.c.bf16 %v3806_v5, %v3806_v5  ;;  %v8031_v51 = vpack.c.bf16 %v3807_v6, %v3807_v6  ;;  %v8032_v14 = vpack.c.bf16 %v3808_v2, %v3808_v2  ;;  %v8033_v37 = vpack.c.bf16 %v3809_v13, %v3809_v13  ;;  %3995 = vst.msk [vmem:[#allocation2 + $0x24] sm:$0xf] %vm3835_vm7, %v8023_v19 }
 0x3ce   : > { %3996 = vst.msk [vmem:[#allocation2 + $0x28] sm:$0xf] %vm3835_vm7, %v8024_v43  ;;  %3997 = vst.msk [vmem:[#allocation2 + $0x2c] sm:$0xf] %vm3835_vm7, %v8025_v59  ;;  %v8034_v34 = vpack.c.bf16 %v3810_v29, %v3810_v29  ;;  %v8035_v35 = vpack.c.bf16 %v3811_v41, %v3811_v41  ;;  %v8036_v27 = vpack.c.bf16 %v3812_v12, %v3812_v12  ;;  %v4033_v12 = vld [vmem:[#allocation2 + $0x20] sm:$0xf] }
 0x3cf   : > { %v8037_v1 = vpack.c.bf16 %v3813_v61, %v3813_v61  ;;  %3998 = vst.msk [vmem:[#allocation2 + $0x30] sm:$0xf] %vm3835_vm7, %v8026_v50  ;;  %3999 = vst.msk [vmem:[#allocation2 + $0x34] sm:$0xf] %vm3835_vm7, %v8027_v45  ;;  %v8038_v47 = vpack.c.bf16 %v11463_v4, %v11463_v4  ;;  %v8039_v20 = vpack.c.bf16 %v11466_v62, %v11466_v62 }
 0x3d0   : > { %4000 = vst.msk [vmem:[#allocation2 + $0x38] sm:$0xf] %vm3835_vm7, %v8028_v28  ;;  %4001 = vst.msk [vmem:[#allocation2 + $0x3c] sm:$0xf] %vm3835_vm7, %v8029_v9  ;;  %v8040_v21 = vpack.c.bf16 %v11469_v48, %v11469_v48  ;;  %v8041_v58 = vpack.c.bf16 %v11472_v49, %v11472_v49  ;;  %v8042_v3 = vpack.c.bf16 %v11475_v40, %v11475_v40 }
 0x3d1   : > { %4002 = vst.msk [vmem:[#allocation2 + $0x40] sm:$0xf] %vm3835_vm7, %v8030_v15  ;;  %4003 = vst.msk [vmem:[#allocation2 + $0x44] sm:$0xf] %vm3835_vm7, %v8031_v51  ;;  %v8043_v39 = vpack.c.bf16 %v11478_v31, %v11478_v31  ;;  %v8044_v5 = vpack.c.bf16 %v11481_v23, %v11481_v23  ;;  %v8045_v49 = vpack.c.bf16 %v11484_v57, %v11484_v57 }
 0x3d2   : > { %4004 = vst.msk [vmem:[#allocation2 + $0x48] sm:$0xf] %vm3835_vm7, %v8032_v14  ;;  %4005 = vst.msk [vmem:[#allocation2 + $0x4c] sm:$0xf] %vm3835_vm7, %v8033_v37  ;;  %v8046_v6 = vpack.c.bf16 %v11487_v36, %v11487_v36  ;;  %v8047_v2 = vpack.c.bf16 %v11490_v25, %v11490_v25  ;;  %v8048_v13 = vpack.c.bf16 %v11493_v0, %v11493_v0 }
 0x3d3   : > { %4006 = vst.msk [vmem:[#allocation2 + $0x50] sm:$0xf] %vm3835_vm7, %v8034_v34  ;;  %4007 = vst.msk [vmem:[#allocation2 + $0x54] sm:$0xf] %vm3835_vm7, %v8035_v35  ;;  %v8049_v51 = vpack.c.bf16 %v11496_v55, %v11496_v55  ;;  %v8050_v29 = vpack.c.bf16 %v11499_v30, %v11499_v30  ;;  %v8051_v31 = vpack.c.bf16 %v11502_v38, %v11502_v38  ;;  %v13640_v35 = vrot.slane %v11157_v10, 3 }
 0x3d4   : > { %4008 = vst.msk [vmem:[#allocation2 + $0x58] sm:$0xf] %vm3835_vm7, %v8036_v27  ;;  %4009 = vst.msk [vmem:[#allocation2 + $0x5c] sm:$0xf] %vm3835_vm7, %v8037_v1  ;;  %v8052_v41 = vpack.c.bf16 %v11505_v42, %v11505_v42  ;;  %v8053_v59 = vpack.c.bf16 %v11508_v22, %v11508_v22  ;;  %v8054_v28 = vpack.c.bf16 %v11511_v53, %v11511_v53  ;;  %v4034_v36 = vld [vmem:[#allocation2 + $0x24] sm:$0xf] }
 0x3d5   : > { %4010 = vst.msk [vmem:[#allocation2 + $0x60] sm:$0xf] %vm3835_vm7, %v8038_v47  ;;  %4011 = vst.msk [vmem:[#allocation2 + $0x64] sm:$0xf] %vm3835_vm7, %v8039_v20  ;;  %v8055_v61 = vpack.c.bf16 %v11514_v54, %v11514_v54  ;;  %v8057_v57 = vpack.c.bf16 %v11517_v60, %v11517_v60  ;;  %v8058_v4 = vpack.c.bf16 %v11520_v33, %v11520_v33  ;;  %v4035_v62 = vld [vmem:[#allocation2 + $0x28] sm:$0xf] }
 0x3d6   : > { %4012 = vst.msk [vmem:[#allocation2 + $0x68] sm:$0xf] %vm3835_vm7, %v8040_v21  ;;  %4013 = vst.msk [vmem:[#allocation2 + $0x6c] sm:$0xf] %vm3835_vm7, %v8041_v58  ;;  %v4036_v25 = vld [vmem:[#allocation2 + $0x2c] sm:$0xf]  ;;  %v11597_v48 = vcombine.low %v4033_v12, %v4034_v36  ;;  %v11601_v38 = vcombine.low %v4034_v36, %v4035_v62 }
 0x3d7   : > { %4014 = vst.msk [vmem:[#allocation2 + $0x70] sm:$0xf] %vm3835_vm7, %v8042_v3  ;;  %4015 = vst.msk [vmem:[#allocation2 + $0x74] sm:$0xf] %vm3835_vm7, %v8043_v39  ;;  %v11599_v0 = vcombine.low %v4035_v62, %v4036_v25  ;;  %v4037_v55 = vld [vmem:[#allocation2 + $0x30] sm:$0xf] }
 0x3d8   : > { %4016 = vst.msk [vmem:[#allocation2 + $0x78] sm:$0xf] %vm3835_vm7, %v8044_v5  ;;  %4017 = vst.msk [vmem:[#allocation2 + $0x7c] sm:$0xf] %vm3835_vm7, %v8045_v49  ;;  %v4038_v40 = vld [vmem:[#allocation2 + $0x34] sm:$0xf]  ;;  %v11605_v42 = vcombine.low %v4036_v25, %v4037_v55 }
 0x3d9   : > { %4018 = vst.msk [vmem:[#allocation2 + $0x80] sm:$0xf] %vm3835_vm7, %v8046_v6  ;;  %4019 = vst.msk [vmem:[#allocation2 + $0x84] sm:$0xf] %vm3835_vm7, %v8047_v2  ;;  %v4039_v30 = vld [vmem:[#allocation2 + $0x38] sm:$0xf]  ;;  %v11603_v23 = vcombine.low %v4037_v55, %v4038_v40 }
 0x3da   : > { %4020 = vst.msk [vmem:[#allocation2 + $0x88] sm:$0xf] %vm3835_vm7, %v8048_v13  ;;  %4021 = vst.msk [vmem:[#allocation2 + $0x8c] sm:$0xf] %vm3835_vm7, %v8049_v51  ;;  %v4040_v22 = vld [vmem:[#allocation2 + $0x3c] sm:$0xf]  ;;  %v11607_v60 = vcombine.low %v4038_v40, %v4039_v30 }
 0x3db   : > { %4022 = vst.msk [vmem:[#allocation2 + $0x90] sm:$0xf] %vm3835_vm7, %v8050_v29  ;;  %4023 = vst.msk [vmem:[#allocation2 + $0x94] sm:$0xf] %vm3835_vm7, %v8051_v31  ;;  %v4041_v53 = vld [vmem:[#allocation2 + $0x40] sm:$0xf]  ;;  %v11612_v19 = vcombine.low %v4039_v30, %v4040_v22 }
 0x3dc   : > { %4024 = vst.msk [vmem:[#allocation2 + $0x98] sm:$0xf] %vm3835_vm7, %v8052_v41  ;;  %4025 = vst.msk [vmem:[#allocation2 + $0x9c] sm:$0xf] %vm3835_vm7, %v8053_v59  ;;  %v4042_v54 = vld [vmem:[#allocation2 + $0x44] sm:$0xf]  ;;  %v11618_v34 = vcombine.low %v4040_v22, %v4041_v53 }
 0x3dd   : > { %4026 = vst.msk [vmem:[#allocation2 + $0xa0] sm:$0xf] %vm3835_vm7, %v8054_v28  ;;  %4027 = vst.msk [vmem:[#allocation2 + $0xa4] sm:$0xf] %vm3835_vm7, %v8055_v61  ;;  %v4170_v33 = vrot.slane %v11597_v48, 3  ;;  %v4172_v43 = vrot.slane %v11599_v0, 3  ;;  %v11614_v50 = vcombine.low %v4041_v53, %v4042_v54 }
 0x3de   : > { %4029 = vst.msk [vmem:[#allocation2 + $0xac] sm:$0xf] %vm3835_vm7, %v8057_v57  ;;  %4030 = vst.msk [vmem:[#allocation2 + $0xb0] sm:$0xf] %vm3835_vm7, %v8058_v4  ;;  %v4043_v45 = vld [vmem:[#allocation2 + $0x48] sm:$0xf] }
 0x3df   : > { %13636 = vst [vmem:[#allocation42_spill] sm:$0xff] %v11601_v38  ;;  %13637 = vst [vmem:[#allocation43_spill] sm:$0xff] %v11605_v42  ;;  %v4044_v15 = vld [vmem:[#allocation2 + $0x4c] sm:$0xf]  ;;  %v4174_v37 = vrot.slane %v11603_v23, 3  ;;  %v4171_v27 = vsel %vm353_vm1, %v13640_v35, %v4170_v33  ;;  %v4173_v1 = vsel %vm353_vm1, %v4170_v33, %v4172_v43  ;;  %v11661_v41 = vcombine.low %v4042_v54, %v4043_v45  ;;  %v13644_v59 = vld [vmem:[#allocation41_spill] sm:$0xff] }
 0x3e0   : > { %13638 = vst [vmem:[#allocation44_spill] sm:$0xff] %v11607_v60  ;;  %v4045_v9 = vld [vmem:[#allocation2 + $0x50] sm:$0xf]  ;;  %v11616_v14 = vld [vmem:[#allocation2 + $0x54] sm:$0xf]  ;;  %13639 = vst [vmem:[#allocation45_spill] sm:$0xff] %v11618_v34  ;;  %8745 = vmatprep.mubr.msk.bf16.mxu1 %vm391_vm2, %v4171_v27  ;;  %v11634_v58 = vcombine.low %v4043_v45, %v4044_v15 }
 0x3e1   : > { %v11624_v47 = vld [vmem:[#allocation2 + $0x58] sm:$0xf]  ;;  %v11626_v20 = vld [vmem:[#allocation2 + $0x5c] sm:$0xf]  ;;  %v11631_v21 = vld [vmem:[%s13323_s2 + $0x4] sm:$0x3]  ;;  %v11637_v3 = vcombine.low %v4045_v9, %v11616_v14  ;;  %8746 = vmatmul.mubr.msk.bf16.vlgmr.msra.gmra.mrb[0].mxu1 %vm391_vm2, %v4173_v1  ;;  %v4175_v6 = vsel %vm353_vm1, %v4172_v43, %v4174_v37  ;;  %v11685_v55 = vcombine.low %v4044_v15, %v4045_v9 }
 0x3e2   : > { %13641 = vst [vmem:[#allocation46_spill] sm:$0xff] %v11631_v21  ;;  %v11639_v39 = vld [vmem:[#allocation2 + $0x60] sm:$0xf]  ;;  %v11641_v5 = vld [vmem:[#allocation2 + $0x64] sm:$0xf]  ;;  %v11649_v2 = vcombine.low %v11624_v47, %v11626_v20  ;;  %13643 = vst [vmem:[#allocation48_spill] sm:$0xff] %v11661_v41  ;;  %8782 = vmatpush3.bf16.msra.mxu1 %v13644_v59  ;;  %8749 = vmatprep.mubr.msk.bf16.mxu1 %vm391_vm2, %v4175_v6 }
 0x3e3   : > { %v11643_v49 = vld [vmem:[#allocation2 + $0xa8] sm:$0xf]  ;;  %v11653_v13 = vcombine.low %v11639_v39, %v11641_v5  ;;  %v11657_v29 = vld [vmem:[#allocation2 + $0x6c] sm:$0xf]  ;;  %v11659_v31 = vld [vmem:[#allocation2 + $0x70] sm:$0xf]  ;;  %9672 = vmatprep.subr.msk.bf16.mxu1 %vm446_vm0, %v11631_v21 }
 0x3e4   : > { %13642 = vst [vmem:[#allocation47_spill] sm:$0xff] %v11643_v49  ;;  %v11655_v51 = vld [vmem:[#allocation2 + $0x68] sm:$0xf]  ;;  %v4176_v12 = vrot.slane %v11612_v19, 3  ;;  %v4178_v28 = vrot.slane %v11614_v50, 3  ;;  %13645 = vst [vmem:[#allocation41_spill] sm:$0xff] %v11685_v55  ;;  %v11709_v35 = vcombine.low %v11643_v49, %v11643_v49 }
 0x3e5   : > { %v11669_v61 = vcombine.low %v11655_v51, %v11657_v29  ;;  %v11671_v57 = vld [vmem:[#allocation2 + $0x74] sm:$0xf]  ;;  %v11673_v4 = vld [vmem:[#allocation2 + $0x78] sm:$0xf]  ;;  %v11679_v62 = vld [vmem:[#allocation2 + $0x7c] sm:$0xf] }
 0x3e6   : > { %v11677_v36 = vcombine.low %v11659_v31, %v11671_v57  ;;  %v11681_v25 = vld [vmem:[#allocation2 + $0x80] sm:$0xf]  ;;  %v4180_v40 = vrot.slane %v11634_v58, 3  ;;  %v4182_v30 = vrot.slane %v11637_v3, 3  ;;  %v11691_v22 = vcombine.low %v11673_v4, %v11679_v62  ;;  %v11693_v53 = vld [vmem:[#allocation2 + $0x84] sm:$0xf] }
 0x3e7   : > { %v11695_v54 = vld [vmem:[#allocation2 + $0x88] sm:$0xf]  ;;  %v4184_v33 = vrot.slane %v11649_v2, 3  ;;  %v4186_v43 = vrot.slane %v11653_v13, 3  ;;  %v11701_v45 = vcombine.low %v11681_v25, %v11693_v53  ;;  %v11703_v15 = vld [vmem:[#allocation2 + $0x8c] sm:$0xf]  ;;  %v4177_v27 = vsel %vm353_vm1, %v4174_v37, %v4176_v12 }
 0x3e8   : > { %v11705_v9 = vld [vmem:[#allocation2 + $0x90] sm:$0xf]  ;;  %v4179_v1 = vsel %vm353_vm1, %v4176_v12, %v4178_v28  ;;  %v4188_v6 = vrot.slane %v11669_v61, 3  ;;  %v11716_v59 = vcombine.low %v11695_v54, %v11703_v15  ;;  %v11718_v24 = vld [vmem:[#allocation2 + $0x94] sm:$0xf]  ;;  %v4190_v7 = vrot.slane %v11677_v36, 3 }
 0x3e9   : > { %v11720_v63 = vld [vmem:[#allocation2 + $0x98] sm:$0xf]  ;;  %v4192_v52 = vrot.slane %v11691_v22, 3  ;;  %v4194_v56 = vrot.slane %v11701_v45, 3  ;;  %v11725_v44 = vld [vmem:[#allocation2 + $0x9c] sm:$0xf]  ;;  %v4181_v12 = vsel %vm353_vm1, %v4178_v28, %v4180_v40  ;;  %v4183_v26 = vsel %vm353_vm1, %v4180_v40, %v4182_v30  ;;  %8750 = vmatmul.mubr.msk.bf16.gmra.mrb[4].mxu1 %vm391_vm2, %v4177_v27 }
 0x3ea   : > { %13646 = vst [vmem:[#allocation49_spill] sm:$0xff] %v11725_v44  ;;  %v11732_v46 = vcombine.low %v11705_v9, %v11718_v24  ;;  %v11737_v18 = vsel %vm353_vm1, %v4182_v30, %v4184_v33  ;;  %v11740_v32 = vsel %vm353_vm1, %v4184_v33, %v4186_v43  ;;  %v4196_v37 = vrot.slane %v11716_v59, 3  ;;  %v11747_v40 = vld [vmem:[#allocation2 + $0xa0] sm:$0xf]  ;;  %v11749_v17 = vld [vmem:[#allocation2 + $0xa4] sm:$0xf]  ;;  %8753 = vmatprep.mubr.msk.bf16.mxu1 %vm391_vm2, %v4179_v1 }
 0x3eb   : > { %v11745_v28 = vcombine.low %v11720_v63, %v11725_v44  ;;  %13647 = vst [vmem:[#allocation50_spill] sm:$0xff] %v11747_v40  ;;  %13648 = vst [vmem:[#allocation51_spill] sm:$0xff] %v11749_v17  ;;  %v11753_v27 = vsel %vm353_vm1, %v4186_v43, %v4188_v6  ;;  %v13649_v33 = vshrl.u32 %v11599_v0, 16  ;;  %v13448_v11 = vshll.u32 %v11599_v0, 16 }
 0x3ec   : > { %v11760_v16 = vsel %vm353_vm1, %v4188_v6, %v4190_v7  ;;  %v11763_v38 = vsel %vm353_vm1, %v4190_v7, %v4192_v52  ;;  %v11766_v55 = vsel %vm353_vm1, %v4192_v52, %v4194_v56  ;;  %v13451_v1 = vshrl.u32 %v11603_v23, 16 }
 0x3ed   : > { %v4460_v8 = vrot.slane %v13649_v33, 2  ;;  %v11772_v30 = vcombine.low %v11747_v40, %v11749_v17  ;;  %v4463_v33 = vrot.slane %v13448_v11, 3  ;;  %v13453_v6 = vshll.u32 %v11603_v23, 16 }
 0x3ee   : > { %v11778_v41 = vsel %vm353_vm1, %v4194_v56, %v4196_v37  ;;  %v4469_v52 = vrot.slane %v13451_v1, 2  ;;  %v13455_v60 = vshrl.u32 %v11612_v19, 16  ;;  %v13461_v17 = vshll.u32 %v11612_v19, 16 }
 0x3ef   : > { %v11784_v43 = vor.u32 %v4463_v33, %v4460_v8  ;;  %v4472_v42 = vrot.slane %v13453_v6, 3  ;;  %v13459_v11 = vshrl.u32 %v11614_v50, 16  ;;  %v13458_v49 = vshll.u32 %v11614_v50, 16 }
 0x3f0   : > { %v4478_v56 = vrot.slane %v13455_v60, 2  ;;  %v13460_v7 = vshrl.u32 %v11634_v58, 16  ;;  %v13650_v34 = vrot.slane %v11732_v46, 3  ;;  %v4481_v6 = vrot.slane %v13461_v17, 3 }
 0x3f1   : > { %v4473_v33 = vor.u32 %v4472_v42, %v4469_v52  ;;  %v4487_v21 = vrot.slane %v13459_v11, 2  ;;  %8754 = vmatmul.mubr.msk.bf16.gmra.mrb[8].mxu1 %vm391_vm2, %v4181_v12  ;;  %v4490_v60 = vrot.slane %v13458_v49, 3  ;;  %v13651_v44 = vshll.u32 %v11634_v58, 16 }
 0x3f2   : > { %v11798_v8 = vsel %vm353_vm1, %v4196_v37, %v13650_v34  ;;  %v4496_v1 = vrot.slane %v13460_v7, 2  ;;  %v13464_v34 = vshrl.u32 %v11637_v3, 16  ;;  %8757 = vmatprep.mubr.msk.bf16.mxu1 %vm391_vm2, %v4183_v26  ;;  %v4482_v37 = vor.u32 %v4481_v6, %v4478_v56 }
 0x3f3   : > { %v4499_v40 = vrot.slane %v13651_v44, 3  ;;  %v11815_v42 = vsel %vm627_vm3, %v11784_v43, %v4473_v33  ;;  %v13462_v12 = vshll.u32 %v11637_v3, 16  ;;  %v13463_v52 = vshrl.u32 %v11649_v2, 16 }
 0x3f4   : > { %13652 = vst [vmem:[#allocation52_spill] sm:$0xff] %v11815_v42  ;;  %v4491_v49 = vor.u32 %v4490_v60, %v4487_v21  ;;  %v4505_v7 = vrot.slane %v13464_v34, 2  ;;  %v13465_v44 = vshll.u32 %v11649_v2, 16  ;;  %v11823_v17 = vsel %vm627_vm3, %v4473_v33, %v4482_v37 }
 0x3f5   : > { %v4500_v11 = vor.u32 %v4499_v40, %v4496_v1  ;;  %13653 = vst [vmem:[#allocation53_spill] sm:$0xff] %v11823_v17  ;;  %v4508_v26 = vrot.slane %v13462_v12, 3  ;;  %v4514_v6 = vrot.slane %v13463_v52, 2  ;;  %v13466_v56 = vshrl.u32 %v11653_v13, 16 }
 0x3f6   : > { %v11831_v42 = vsel %vm627_vm3, %v4482_v37, %v4491_v49  ;;  %v4517_v21 = vrot.slane %v13465_v44, 3  ;;  %v13467_v40 = vshll.u32 %v11653_v13, 16  ;;  %v13468_v12 = vshrl.u32 %v11669_v61, 16 }
 0x3f7   : > { %13654 = vst [vmem:[#allocation54_spill] sm:$0xff] %v11831_v42  ;;  %v11834_v60 = vsel %vm627_vm3, %v4491_v49, %v4500_v11  ;;  %v4509_v1 = vor.u32 %v4508_v26, %v4505_v7  ;;  %v4523_v33 = vrot.slane %v13466_v56, 2  ;;  %v13469_v52 = vshll.u32 %v11669_v61, 16 }
 0x3f8   : > { %13655 = vst [vmem:[#allocation55_spill] sm:$0xff] %v11834_v60  ;;  %v4518_v34 = vor.u32 %v4517_v21, %v4514_v6  ;;  %v4526_v37 = vrot.slane %v13467_v40, 3  ;;  %v13470_v49 = vshrl.u32 %v11677_v36, 16  ;;  %v13471_v60 = vshll.u32 %v11677_v36, 16 }
 0x3f9   : > { %v11848_v44 = vsel %vm627_vm3, %v4500_v11, %v4509_v1  ;;  %v4532_v7 = vrot.slane %v13468_v12, 2  ;;  %v4535_v26 = vrot.slane %v13469_v52, 3  ;;  %v13472_v56 = vshrl.u32 %v11691_v22, 16  ;;  %8758 = vmatmul.mubr.msk.bf16.gmra.mrb[12].mxu1 %vm391_vm2, %v11737_v18 }
 0x3fa   : > { %13656 = vst [vmem:[#allocation56_spill] sm:$0xff] %v11848_v44  ;;  %v11858_v6 = vsel %vm627_vm3, %v4509_v1, %v4518_v34  ;;  %v4527_v21 = vor.u32 %v4526_v37, %v4523_v33  ;;  %v4541_v40 = vrot.slane %v13470_v49, 2  ;;  %v4544_v11 = vrot.slane %v13471_v60, 3  ;;  %8761 = vmatprep.mubr.msk.bf16.mxu1 %vm391_vm2, %v11740_v32 }
 0x3fb   : > { %13657 = vst [vmem:[#allocation57_spill] sm:$0xff] %v11858_v6  ;;  %v4536_v12 = vor.u32 %v4535_v26, %v4532_v7  ;;  %v4550_v52 = vrot.slane %v13472_v56, 2  ;;  %v13473_v44 = vshll.u32 %v11691_v22, 16  ;;  %v13474_v18 = vshrl.u32 %v11701_v45, 16 }
 0x3fc   : > { %v11871_v1 = vsel %vm627_vm3, %v4518_v34, %v4527_v21  ;;  %v4545_v33 = vor.u32 %v4544_v11, %v4541_v40  ;;  %v13475_v37 = vshll.u32 %v11701_v45, 16  ;;  %v13476_v49 = vshrl.u32 %v11716_v59, 16 }
 0x3fd   : > { %13658 = vst [vmem:[#allocation58_spill] sm:$0xff] %v11871_v1  ;;  %v11876_v60 = vsel %vm627_vm3, %v4527_v21, %v4536_v12  ;;  %v4553_v32 = vrot.slane %v13473_v44, 3  ;;  %v4559_v7 = vrot.slane %v13474_v18, 2  ;;  %v13482_v26 = vshll.u32 %v11716_v59, 16 }
 0x3fe   : > { %13659 = vst [vmem:[#allocation59_spill] sm:$0xff] %v11876_v60  ;;  %v11884_v56 = vsel %vm627_vm3, %v4536_v12, %v4545_v33  ;;  %v4562_v34 = vrot.slane %v13475_v37, 3  ;;  %v4568_v40 = vrot.slane %v13476_v49, 2  ;;  %v13480_v21 = vshrl.u32 %v11732_v46, 16 }
 0x3ff   : > { %13660 = vst [vmem:[#allocation60_spill] sm:$0xff] %v11884_v56  ;;  %v4554_v11 = vor.u32 %v4553_v32, %v4550_v52  ;;  %v4571_v44 = vrot.slane %v13482_v26, 3  ;;  %v13478_v60 = vshll.u32 %v11732_v46, 16  ;;  %v13477_v18 = vshrl.u32 %v11745_v28, 16 }
 0x400   : > { %v4563_v1 = vor.u32 %v4562_v34, %v4559_v7  ;;  %v4577_v12 = vrot.slane %v13480_v21, 2  ;;  %v13479_v56 = vshll.u32 %v11745_v28, 16  ;;  %v13481_v37 = vshrl.u32 %v11772_v30, 16 }
 0x401   : > { %v11900_v49 = vsel %vm627_vm3, %v4545_v33, %v4554_v11  ;;  %v4572_v6 = vor.u32 %v4571_v44, %v4568_v40  ;;  %v4580_v52 = vrot.slane %v13478_v60, 3  ;;  %v4586_v32 = vrot.slane %v13477_v18, 2  ;;  %8762 = vmatmul.mubr.msk.bf16.gmra.mrb[16].mxu1 %vm391_vm2, %v11753_v27 }
 0x402   : > { %13661 = vst [vmem:[#allocation61_spill] sm:$0xff] %v11900_v49  ;;  %v11909_v7 = vsel %vm627_vm3, %v4554_v11, %v4563_v1  ;;  %v4589_v34 = vrot.slane %v13479_v56, 3  ;;  %v4595_v33 = vrot.slane %v13481_v37, 2  ;;  %v13483_v44 = vshll.u32 %v11772_v30, 16  ;;  %8765 = vmatprep.mubr.msk.bf16.mxu1 %vm391_vm2, %v11760_v16 }
 0x403   : > { %13662 = vst [vmem:[#allocation62_spill] sm:$0xff] %v11909_v7  ;;  %v11919_v40 = vsel %vm627_vm3, %v4563_v1, %v4572_v6  ;;  %v4581_v18 = vor.u32 %v4580_v52, %v4577_v12  ;;  %v13484_v27 = vshrl.u32 %v11709_v35, 16  ;;  %v13485_v11 = vshll.u32 %v11709_v35, 16 }
 0x404   : > { %13663 = vst [vmem:[#allocation63_spill] sm:$0xff] %v11919_v40  ;;  %v4590_v60 = vor.u32 %v4589_v34, %v4586_v32  ;;  %v4598_v56 = vrot.slane %v13483_v44, 3  ;;  %v13664_v21 = vshrl.u32 %v11597_v48, 16  ;;  %v13665_v26 = vshll.u32 %v11597_v48, 16 }
 0x405   : > { %v11930_v16 = vsel %vm627_vm3, %v4572_v6, %v4581_v18  ;;  %v4604_v1 = vrot.slane %v13484_v27, 2  ;;  %v4607_v12 = vrot.slane %v13485_v11, 3  ;;  %v13667_v52 = vshrl.u32 %v11599_v0, 16 }
 0x406   : > { %v4849_v37 = vrot.slane %v13664_v21, 3  ;;  %v4850_v7 = vrot.slane %v13665_v26, 4  ;;  %13666 = vst [vmem:[#allocation64_spill] sm:$0xff] %v11930_v16  ;;  %v11939_v34 = vsel %vm627_vm3, %v4581_v18, %v4590_v60  ;;  %v4599_v44 = vor.u32 %v4598_v56, %v4595_v33  ;;  %v13673_v18 = vld [vmem:[#allocation39_spill] sm:$0xff] }
 0x407   : > { %v4853_v32 = vrot.slane %v13667_v52, 3  ;;  %13668 = vst [vmem:[#allocation65_spill] sm:$0xff] %v11939_v34  ;;  %v13669_v40 = vshll.u32 %v11599_v0, 16  ;;  %v4202_v6 = vrot.slane %v11772_v30, 3  ;;  %v4608_v16 = vor.u32 %v4607_v12, %v4604_v1  ;;  %v13672_v52 = vld [vmem:[#allocation40_spill] sm:$0xff] }
 0x408   : > { %v4851_v21 = vor.u32 %v4850_v7, %v4849_v37  ;;  %v13670_v49 = vshrl.u32 %v11603_v23, 16  ;;  %v13671_v42 = vshll.u32 %v11603_v23, 16  ;;  %v11949_v17 = vsel %vm627_vm3, %v4590_v60, %v4599_v44 }
 0x409   : > { %v4854_v26 = vrot.slane %v13669_v40, 4  ;;  %v13674_v34 = vor.u32 %v13672_v52, %v13673_v18  ;;  %v13675_v37 = vshrl.u32 %v11612_v19, 16  ;;  %v11960_v33 = vsel %vm627_vm3, %v4599_v44, %v4608_v16  ;;  %8766 = vmatmul.mubr.msk.bf16.gmra.mrb[20].mxu1 %vm391_vm2, %v11763_v38 }
 0x40a   : > { %v4857_v27 = vrot.slane %v13670_v49, 3  ;;  %v4858_v11 = vrot.slane %v13671_v42, 4  ;;  %v13676_v23 = vshll.u32 %v11612_v19, 16  ;;  %v13677_v60 = vshrl.u32 %v11614_v50, 16  ;;  %8769 = vmatprep.mubr.msk.bf16.mxu1 %vm391_vm2, %v11766_v55 }
 0x40b   : > { %v11955_v56 = vsel %vm1034_vm4, %v13674_v34, %v4851_v21  ;;  %v4855_v0 = vor.u32 %v4854_v26, %v4853_v32  ;;  %v4861_v7 = vrot.slane %v13675_v37, 3  ;;  %v13678_v12 = vshll.u32 %v11614_v50, 16 }
 0x40c   : > { %v4859_v49 = vor.u32 %v4858_v11, %v4857_v27  ;;  %v4862_v42 = vrot.slane %v13676_v23, 4  ;;  %v4865_v40 = vrot.slane %v13677_v60, 3  ;;  %v13679_v34 = vshrl.u32 %v11634_v58, 16 }
 0x40d   : > { %v11969_v1 = vsel %vm1034_vm4, %v4851_v21, %v4855_v0  ;;  %v4866_v32 = vrot.slane %v13678_v12, 4  ;;  %v13680_v27 = vshll.u32 %v11634_v58, 16  ;;  %v13681_v38 = vshrl.u32 %v11637_v3, 16 }
 0x40e   : > { %v4869_v44 = vrot.slane %v13679_v34, 3  ;;  %v11980_v19 = vsel %vm1034_vm4, %v4855_v0, %v4859_v49  ;;  %v4863_v16 = vor.u32 %v4862_v42, %v4861_v7  ;;  %v13682_v26 = vshll.u32 %v11637_v3, 16 }
 0x40f   : > { %v4870_v11 = vrot.slane %v13680_v27, 4  ;;  %v4873_v21 = vrot.slane %v13681_v38, 3  ;;  %v4867_v52 = vor.u32 %v4866_v32, %v4865_v40  ;;  %v13683_v37 = vshrl.u32 %v11649_v2, 16 }
 0x410   : > { %v4874_v50 = vrot.slane %v13682_v26, 4  ;;  %v13684_v58 = vshll.u32 %v11649_v2, 16  ;;  %v11991_v55 = vsel %vm1034_vm4, %v4859_v49, %v4863_v16  ;;  %v13685_v7 = vshrl.u32 %v11653_v13, 16 }
 0x411   : > { %v4871_v18 = vor.u32 %v4870_v11, %v4869_v44  ;;  %v4877_v23 = vrot.slane %v13683_v37, 3  ;;  %v13686_v12 = vshll.u32 %v11653_v13, 16  ;;  %v11998_v3 = vsel %vm1034_vm4, %v4863_v16, %v4867_v52  ;;  %8770 = vmatmul.mubr.msk.bf16.gmra.mrb[24].mxu1 %vm391_vm2, %v11778_v41 }
 0x412   : > { %v4878_v60 = vrot.slane %v13684_v58, 4  ;;  %v4875_v0 = vor.u32 %v4874_v50, %v4873_v21  ;;  %v4881_v42 = vrot.slane %v13685_v7, 3  ;;  %v13687_v2 = vshrl.u32 %v11669_v61, 16  ;;  %8773 = vmatprep.mubr.msk.bf16.mxu1 %vm391_vm2, %v11798_v8 }
 0x413   : > { %v4882_v34 = vrot.slane %v13686_v12, 4  ;;  %v12001_v40 = vsel %vm1034_vm4, %v4867_v52, %v4871_v18  ;;  %v13688_v11 = vshll.u32 %v11669_v61, 16  ;;  %v13689_v13 = vshrl.u32 %v11677_v36, 16 }
 0x414   : > { %v4879_v32 = vor.u32 %v4878_v60, %v4877_v23  ;;  %v4885_v44 = vrot.slane %v13687_v2, 3  ;;  %v12006_v49 = vsel %vm1034_vm4, %v4871_v18, %v4875_v0  ;;  %v13690_v26 = vshll.u32 %v11677_v36, 16 }
 0x415   : > { %v4883_v27 = vor.u32 %v4882_v34, %v4881_v42  ;;  %v4886_v38 = vrot.slane %v13688_v11, 4  ;;  %v4889_v21 = vrot.slane %v13689_v13, 3  ;;  %v13691_v52 = vshrl.u32 %v11691_v22, 16 }
 0x416   : > { %v12013_v16 = vsel %vm1034_vm4, %v4875_v0, %v4879_v32  ;;  %v4890_v50 = vrot.slane %v13690_v26, 4  ;;  %v13692_v23 = vshll.u32 %v11691_v22, 16  ;;  %v13693_v60 = vshrl.u32 %v11701_v45, 16 }
 0x417   : > { %v4893_v37 = vrot.slane %v13691_v52, 3  ;;  %v12022_v58 = vsel %vm1034_vm4, %v4879_v32, %v4883_v27  ;;  %v4887_v61 = vor.u32 %v4886_v38, %v4885_v44  ;;  %v13694_v42 = vshll.u32 %v11701_v45, 16 }
 0x418   : > { %v4894_v18 = vrot.slane %v13692_v23, 4  ;;  %v4897_v7 = vrot.slane %v13693_v60, 3  ;;  %v4891_v36 = vor.u32 %v4890_v50, %v4889_v21  ;;  %v13695_v34 = vshrl.u32 %v11716_v59, 16 }
 0x419   : > { %v4898_v0 = vrot.slane %v13694_v42, 4  ;;  %v13696_v22 = vshll.u32 %v11716_v59, 16  ;;  %v12037_v32 = vsel %vm1034_vm4, %v4883_v27, %v4887_v61  ;;  %v13697_v45 = vshrl.u32 %v11732_v46, 16 }
 0x41a   : > { %v4895_v12 = vor.u32 %v4894_v18, %v4893_v37  ;;  %v4901_v2 = vrot.slane %v13695_v34, 3  ;;  %v13698_v41 = vshll.u32 %v11732_v46, 16  ;;  %v12044_v21 = vsel %vm1034_vm4, %v4887_v61, %v4891_v36 }
 0x41b   : > { %v4902_v11 = vrot.slane %v13696_v22, 4  ;;  %v4899_v44 = vor.u32 %v4898_v0, %v4897_v7  ;;  %v4905_v38 = vrot.slane %v13697_v45, 3  ;;  %v13699_v50 = vshrl.u32 %v11745_v28, 16 }
 0x41c   : > { %v4906_v13 = vrot.slane %v13698_v41, 4  ;;  %v12047_v26 = vsel %vm1034_vm4, %v4891_v36, %v4895_v12  ;;  %v13700_v37 = vshll.u32 %v11745_v28, 16  ;;  %v13701_v18 = vshrl.u32 %v11772_v30, 16 }
 0x41d   : > { %v4903_v59 = vor.u32 %v4902_v11, %v4901_v2  ;;  %v4909_v8 = vrot.slane %v13699_v50, 3  ;;  %v12052_v27 = vsel %vm1034_vm4, %v4895_v12, %v4899_v44  ;;  %v13702_v7 = vshll.u32 %v11772_v30, 16  ;;  %v13716_v30 = vld [vmem:[#allocation52_spill] sm:$0xff] }
 0x41e   : > { %v4907_v52 = vor.u32 %v4906_v13, %v4905_v38  ;;  %v4910_v23 = vrot.slane %v13700_v37, 4  ;;  %v4913_v60 = vrot.slane %v13701_v18, 3  ;;  %v13703_v0 = vshrl.u32 %v11709_v35, 16 }
 0x41f   : > { %v12059_v61 = vsel %vm1034_vm4, %v4899_v44, %v4903_v59  ;;  %v4914_v42 = vrot.slane %v13702_v7, 4  ;;  %v13704_v34 = vshll.u32 %v11709_v35, 16  ;;  %v13705_v2 = vshrl.u32 %v11157_v10, 16 }
 0x420   : > { %v4917_v36 = vrot.slane %v13703_v0, 3  ;;  %v13706_v11 = vshll.u32 %v11157_v10, 16  ;;  %v12072_v38 = vsel %vm1034_vm4, %v4903_v59, %v4907_v52  ;;  %v4911_v44 = vor.u32 %v4910_v23, %v4909_v8 }
 0x421   : > { %v4918_v12 = vrot.slane %v13704_v34, 4  ;;  %v4443_v22 = vrot.slane %v13705_v2, 2  ;;  %v12074_v41 = vor.u32 %v4914_v42, %v4913_v60  ;;  %v12078_v50 = vcombine.low %v11616_v14, %v11624_v47 }
 0x422   : > { %v4446_v45 = vrot.slane %v13706_v11, 3  ;;  %v12082_v37 = vcombine.low %v11626_v20, %v11639_v39  ;;  %v13708_v18 = vrot.slane %v11745_v28, 3  ;;  %v13709_v10 = vrot.slane %v11732_v46, 3  ;;  %v12115_v39 = vld [vmem:[#allocation2 + $0xac] sm:$0xf] }
 0x423   : > { %v4919_v13 = vor.u32 %v4918_v12, %v4917_v36  ;;  %13707 = vst [vmem:[#allocation40_spill] sm:$0xff] %v12078_v50  ;;  %v13710_v59 = vshrl.u32 %v11597_v48, 16  ;;  %v13711_v23 = vshll.u32 %v11597_v48, 16  ;;  %v12094_v42 = vsel %vm1034_vm4, %v4907_v52, %v4911_v44  ;;  %v12117_v52 = vld [vmem:[#allocation2 + $0xb0] sm:$0xf] }
 0x424   : > { %v4201_v7 = vsel %vm353_vm1, %v13709_v10, %v13708_v18  ;;  %v13712_v14 = vmov %v13708_v18  ;;  %v12104_v46 = vsel %vm1034_vm4, %v4911_v44, %v12074_v41  ;;  %v12112_v48 = vcombine.low %v11641_v5, %v11655_v51  ;;  %v4071_v12 = vld [vmem:[#allocation2 + $0xb8] sm:$0xf] }
 0x425   : > { %v4451_v8 = vrot.slane %v13710_v59, 2  ;;  %v4454_v60 = vrot.slane %v13711_v23, 3  ;;  %8774 = vmatmul.mubr.msk.bf16.gmra.mrb[28].mxu1 %vm391_vm2, %v4201_v7  ;;  %v4203_v47 = vsel %vm353_vm1, %v13712_v14, %v4202_v6  ;;  %v12108_v20 = vsel %vm1034_vm4, %v12074_v41, %v4919_v13  ;;  %v13721_v18 = vld [vmem:[#allocation45_spill] sm:$0xff]  ;;  %v13724_v23 = vld [vmem:[#allocation47_spill] sm:$0xff] }
 0x426   : > { %8777 = vmatprep.mubr.msk.bf16.mxu1 %vm391_vm2, %v4203_v47  ;;  %v12121_v28 = vcombine.low %v11657_v29, %v11659_v31  ;;  %v12125_v0 = vcombine.low %v11671_v57, %v11673_v4  ;;  %v12129_v36 = vcombine.low %v11679_v62, %v11681_v25  ;;  %v12133_v5 = vcombine.low %v11693_v53, %v11695_v54  ;;  %v13713_v31 = vld [vmem:[#allocation50_spill] sm:$0xff]  ;;  %v13714_v57 = vld [vmem:[#allocation49_spill] sm:$0xff]  ;;  %v13726_v47 = vld [vmem:[#allocation43_spill] sm:$0xff] }
 0x427   : > { %v4204_v51 = vrot.slane %v11709_v35, 3  ;;  %v12138_v34 = vcombine.low %v11703_v15, %v11705_v9  ;;  %v12142_v29 = vcombine.low %v11718_v24, %v11720_v63  ;;  %v12146_v4 = vcombine.low %v13714_v57, %v13713_v31  ;;  %v13715_v63 = vld [vmem:[#allocation46_spill] sm:$0xff]  ;;  %v13727_v57 = vld [vmem:[#allocation44_spill] sm:$0xff] }
 0x428   : > { %v4447_v62 = vor.u32 %v4446_v45, %v4443_v22  ;;  %v4455_v25 = vor.u32 %v4454_v60, %v4451_v8  ;;  %v12150_v53 = vcombine.low %v12115_v39, %v12117_v52  ;;  %v4976_v24 = vsel %vm446_vm0, %v13715_v63, 0  ;;  %v12165_v35 = vld [vmem:[%s13323_s2 + $0x6] sm:$0x3]  ;;  %v13725_v60 = vld [vmem:[#allocation51_spill] sm:$0xff] }
 0x429   : > { %v4205_v54 = vsel %vm353_vm1, %v4202_v6, %v4204_v51  ;;  %v12172_v6 = vld [vmem:[#allocation2 + $0xb4] sm:$0xf]  ;;  %v13719_v22 = vld [vmem:[#allocation54_spill] sm:$0xff]  ;;  %v13488_v10 = vshll.u32 %v13721_v18, 16  ;;  %v13490_v59 = vshrl.u32 %v13721_v18, 16  ;;  %v12201_v14 = vcombine.low %v13725_v60, %v13724_v23 }
 0x42a   : > { %v4456_v15 = vsel %vm627_vm3, %v4447_v62, %v4455_v25  ;;  %v4465_v9 = vsel %vm627_vm3, %v4455_v25, %v11784_v43  ;;  %13717 = vst [vmem:[#allocation39_spill] sm:$0xff] %v12172_v6  ;;  %v12175_v2 = vcombine.low %v12172_v6, %v4071_v12  ;;  %v13718_v43 = vld [vmem:[#allocation53_spill] sm:$0xff]  ;;  %v13487_v11 = vshll.u32 %v12150_v53, 16 }
 0x42b   : > { %v13489_v13 = vshrl.u32 %v12150_v53, 16  ;;  %v13492_v51 = vshll.u32 %v13726_v47, 16  ;;  %v13491_v31 = vshrl.u32 %v13726_v47, 16  ;;  %v13495_v62 = vshll.u32 %v13727_v57, 16  ;;  %v13731_v12 = vld [vmem:[#allocation41_spill] sm:$0xff] }
 0x42c   : > { %v13486_v45 = vshll.u32 %v12175_v2, 16  ;;  %v12185_v44 = vrot.slane %v13487_v11, 1  ;;  %v13493_v25 = vshrl.u32 %v13727_v57, 16  ;;  %v6699_v63 = vrot.slane %v13488_v10, 2  ;;  %v13735_v10 = vld [vmem:[#allocation58_spill] sm:$0xff] }
 0x42d   : > { %8778 = vmatmul.mubr.msk.bf16.gmra.mrb[32].mxu1 %vm391_vm2, %v4205_v54  ;;  %v6698_v60 = vrot.slane %v13490_v59, 1  ;;  %v13739_v59 = vshrl.u32 %v12078_v50, 16 }
 0x42e   : > { %8783 = vmatprep.mubr.msk.bf16.mxu1 %vm391_vm2, %v4456_v15  ;;  %13720 = vst [vmem:[#allocation50_spill] sm:$0xff] %v12185_v44  ;;  %v12191_v7 = vrot.slane %v13486_v45, 1  ;;  %v12197_v8 = vor.u32 %v13489_v13, %v12185_v44  ;;  %v13729_v15 = vld [vmem:[#allocation55_spill] sm:$0xff]  ;;  %v13741_v44 = vshrl.u32 %v12082_v37, 16 }
 0x42f   : > { %v6700_v11 = vor.u32 %v6699_v63, %v6698_v60  ;;  %v6710_v63 = vrot.slane %v13739_v59, 1  ;;  %v13740_v60 = vshll.u32 %v12078_v50, 16  ;;  %v13744_v59 = vshrl.u32 %v12112_v48, 16 }
 0x430   : > { %13722 = vst [vmem:[#allocation49_spill] sm:$0xff] %v12191_v7  ;;  %13723 = vst [vmem:[#allocation46_spill] sm:$0xff] %v12197_v8  ;;  %v12210_v54 = vsel %vm5734_vm10, %v12197_v8, %v12191_v7 }
 0x431   : > { %13728 = vst [vmem:[#allocation52_spill] sm:$0xff] %v12210_v54  ;;  %v6718_v6 = vrot.slane %v13744_v59, 1  ;;  %v13754_v59 = vshrl.u32 %v12129_v36, 16 }
 0x435   : > { %8784 = vmatmul.mubr.msk.bf16.vlgmr.msra.gmra.mrb[0].mxu1 %vm391_vm2, %v4465_v9  ;;  %v6692_v9 = vrot.slane %v13492_v51, 2 }
 0x436   : > { %8820 = vmatpush3.bf16.msra.mxu1 %v4976_v24  ;;  %8787 = vmatprep.mubr.msk.bf16.mxu1 %vm391_vm2, %v13716_v30  ;;  %v13730_v24 = vld [vmem:[#allocation48_spill] sm:$0xff]  ;;  %v6695_v30 = vrot.slane %v13495_v62, 2  ;;  %v13737_v62 = vshrl.u32 %v13731_v12, 16 }
 0x437   : > { %9673 = vmatprep.subr.msk.bf16.mxu1 %vm446_vm0, %v12165_v35 }
 0x438   : > { %v6706_v54 = vrot.slane %v13737_v62, 1  ;;  %v13743_v62 = vshll.u32 %v12082_v37, 16 }
 0x43d   : > { %8788 = vmatmul.mubr.msk.bf16.gmra.mrb[4].mxu1 %vm391_vm2, %v13718_v43  ;;  %v6694_v43 = vrot.slane %v13493_v25, 1  ;;  %v13736_v25 = vshll.u32 %v13730_v24, 16 }
 0x43e   : > { %8791 = vmatprep.mubr.msk.bf16.mxu1 %vm391_vm2, %v13719_v22  ;;  %v13732_v22 = vld [vmem:[#allocation56_spill] sm:$0xff] }
 0x43f   : > { %v6696_v13 = vor.u32 %v6695_v30, %v6694_v43  ;;  %v6703_v7 = vrot.slane %v13736_v25, 2  ;;  %v6715_v43 = vrot.slane %v13743_v62, 2 }
 0x441   : > { %v12277_v25 = vsel %vm6690_vm11, %v6696_v13, %v6700_v11 }
 0x445   : > { %8792 = vmatmul.mubr.msk.bf16.gmra.mrb[8].mxu1 %vm391_vm2, %v13729_v15  ;;  %v6691_v15 = vrot.slane %v13491_v31, 1  ;;  %v13734_v31 = vshrl.u32 %v13730_v24, 16 }
 0x446   : > { %8795 = vmatprep.mubr.msk.bf16.mxu1 %vm391_vm2, %v13732_v22  ;;  %v13733_v22 = vld [vmem:[#allocation57_spill] sm:$0xff] }
 0x447   : > { %v6702_v45 = vrot.slane %v13734_v31, 1  ;;  %v6693_v51 = vor.u32 %v6692_v9, %v6691_v15  ;;  %v6711_v31 = vrot.slane %v13740_v60, 2  ;;  %v13745_v60 = vshll.u32 %v12112_v48, 16 }
 0x449   : > { %v12274_v9 = vsel %vm6690_vm11, %v6693_v51, %v6696_v13  ;;  %v6704_v30 = vor.u32 %v6703_v7, %v6702_v45  ;;  %v6719_v50 = vrot.slane %v13745_v60, 2  ;;  %v13748_v45 = vshll.u32 %v12121_v28, 16 }
 0x44a   : > { %13742 = vst [vmem:[#allocation53_spill] sm:$0xff] %v12274_v9  ;;  %v13747_v9 = vshrl.u32 %v12121_v28, 16  ;;  %v6730_v60 = vrot.slane %v13754_v59, 1 }
 0x44b   : > { %v6723_v7 = vrot.slane %v13748_v45, 2  ;;  %v13755_v45 = vld [vmem:[#allocation59_spill] sm:$0xff] }
 0x44c   : > { %v6722_v13 = vrot.slane %v13747_v9, 1 }
 0x44d   : > { %8796 = vmatmul.mubr.msk.bf16.gmra.mrb[12].mxu1 %vm391_vm2, %v13733_v22  ;;  %v13738_v22 = vshll.u32 %v13731_v12, 16 }
 0x44e   : > { %8799 = vmatprep.mubr.msk.bf16.mxu1 %vm391_vm2, %v13735_v10  ;;  %v6714_v10 = vrot.slane %v13741_v44, 1  ;;  %v12286_v44 = vsel %vm6690_vm11, %v6700_v11, %v6704_v30 }
 0x44f   : > { %v6707_v8 = vrot.slane %v13738_v22, 2  ;;  %v6712_v22 = vor.u32 %v6711_v31, %v6710_v63  ;;  %13746 = vst [vmem:[#allocation54_spill] sm:$0xff] %v12286_v44  ;;  %v13751_v63 = vshrl.u32 %v12125_v0, 16 }
 0x450   : > { %v6716_v51 = vor.u32 %v6715_v43, %v6714_v10  ;;  %v6724_v10 = vor.u32 %v6723_v7, %v6722_v13  ;;  %v13753_v43 = vshll.u32 %v12125_v0, 16  ;;  %v13759_v13 = vshll.u32 %v12133_v5, 16 }
 0x451   : > { %v6708_v15 = vor.u32 %v6707_v8, %v6706_v54  ;;  %v6720_v54 = vor.u32 %v6719_v50, %v6718_v6  ;;  %v6726_v31 = vrot.slane %v13751_v63, 1  ;;  %v13757_v50 = vshll.u32 %v12129_v36, 16  ;;  %v13760_v63 = vld [vmem:[#allocation60_spill] sm:$0xff] }
 0x452   : > { %v12301_v11 = vsel %vm6690_vm11, %v6712_v22, %v6716_v51  ;;  %v6727_v9 = vrot.slane %v13753_v43, 2  ;;  %v6735_v7 = vrot.slane %v13759_v13, 2  ;;  %v13765_v13 = vshll.u32 %v12142_v29, 16 }
 0x453   : > { %v12293_v62 = vsel %vm6690_vm11, %v6704_v30, %v6708_v15  ;;  %v12296_v8 = vsel %vm6690_vm11, %v6708_v15, %v6712_v22  ;;  %13752 = vst [vmem:[#allocation51_spill] sm:$0xff] %v12301_v11  ;;  %v12310_v30 = vsel %vm6690_vm11, %v6716_v51, %v6720_v54  ;;  %v6731_v6 = vrot.slane %v13757_v50, 2 }
 0x454   : > { %13749 = vst [vmem:[#allocation45_spill] sm:$0xff] %v12293_v62  ;;  %13750 = vst [vmem:[#allocation47_spill] sm:$0xff] %v12296_v8  ;;  %v13758_v15 = vshrl.u32 %v12133_v5, 16  ;;  %v12321_v43 = vsel %vm6690_vm11, %v6720_v54, %v6724_v10  ;;  %v6728_v59 = vor.u32 %v6727_v9, %v6726_v31  ;;  %v6743_v44 = vrot.slane %v13765_v13, 2 }
 0x455   : > { %8800 = vmatmul.mubr.msk.bf16.gmra.mrb[16].mxu1 %vm391_vm2, %v13755_v45  ;;  %13756 = vst [vmem:[#allocation43_spill] sm:$0xff] %v12310_v30  ;;  %13761 = vst [vmem:[#allocation44_spill] sm:$0xff] %v12321_v43  ;;  %v13762_v45 = vshrl.u32 %v12138_v34, 16  ;;  %v13763_v30 = vshll.u32 %v12138_v34, 16  ;;  %v6732_v50 = vor.u32 %v6731_v6, %v6730_v60  ;;  %v13766_v31 = vshrl.u32 %v12146_v4, 16 }
 0x456   : > { %v6734_v22 = vrot.slane %v13758_v15, 1  ;;  %8803 = vmatprep.mubr.msk.bf16.mxu1 %vm391_vm2, %v13760_v63  ;;  %v13764_v15 = vshrl.u32 %v12142_v29, 16  ;;  %v12332_v63 = vsel %vm6690_vm11, %v6724_v10, %v6728_v59  ;;  %v13771_v13 = vshrl.u32 %v12150_v53, 16 }
 0x457   : > { %v6738_v51 = vrot.slane %v13762_v45, 1  ;;  %v6739_v11 = vrot.slane %v13763_v30, 2  ;;  %v6746_v9 = vrot.slane %v13766_v31, 1  ;;  %v13767_v45 = vshll.u32 %v12146_v4, 16 }
 0x458   : > { %v6736_v8 = vor.u32 %v6735_v7, %v6734_v22  ;;  %v6742_v62 = vrot.slane %v13764_v15, 1  ;;  %v12339_v30 = vsel %vm6690_vm11, %v6728_v59, %v6732_v50  ;;  %v13768_v22 = vshrl.u32 %v12201_v14, 16 }
 0x459   : > { %v6740_v54 = vor.u32 %v6739_v11, %v6738_v51  ;;  %v6747_v43 = vrot.slane %v13767_v45, 2  ;;  %v13770_v51 = vshll.u32 %v12201_v14, 16  ;;  %v6754_v31 = vrot.slane %v13771_v13, 1 }
 0x45a   : > { %v12342_v60 = vsel %vm6690_vm11, %v6732_v50, %v6736_v8  ;;  %v6744_v6 = vor.u32 %v6743_v44, %v6742_v62  ;;  %v6750_v7 = vrot.slane %v13768_v22, 1  ;;  %v13772_v50 = vshll.u32 %v12150_v53, 16 }
 0x45b   : > { %v12347_v10 = vsel %vm6690_vm11, %v6736_v8, %v6740_v54  ;;  %v6748_v11 = vor.u32 %v6747_v43, %v6746_v9  ;;  %v6751_v15 = vrot.slane %v13770_v51, 2  ;;  %v13773_v44 = vshrl.u32 %v12175_v2, 16  ;;  %v13775_v51 = vld [vmem:[#allocation61_spill] sm:$0xff] }
 0x45c   : > { %13769 = vst [vmem:[#allocation55_spill] sm:$0xff] %v12347_v10  ;;  %v12354_v59 = vsel %vm6690_vm11, %v6740_v54, %v6744_v6  ;;  %v6755_v45 = vrot.slane %v13772_v50, 2  ;;  %v13774_v22 = vshll.u32 %v12175_v2, 16  ;;  %v13776_v54 = vld [vmem:[#allocation62_spill] sm:$0xff] }
 0x45d   : > { %v6758_v62 = vrot.slane %v13773_v44, 1  ;;  %v12363_v43 = vsel %vm6690_vm11, %v6744_v6, %v6748_v11  ;;  %v6752_v9 = vor.u32 %v6751_v15, %v6750_v7  ;;  %8804 = vmatmul.mubr.msk.bf16.gmra.mrb[20].mxu1 %vm391_vm2, %v13775_v51  ;;  %v13777_v7 = vld [vmem:[#allocation63_spill] sm:$0xff]  ;;  %v13778_v15 = vld [vmem:[#allocation64_spill] sm:$0xff]  ;;  %v13784_v51 = vshrl.u32 %v13726_v47, 16 }
 0x45e   : > { %v6759_v8 = vrot.slane %v13774_v22, 2  ;;  %v6756_v13 = vor.u32 %v6755_v45, %v6754_v31  ;;  %8807 = vmatprep.mubr.msk.bf16.mxu1 %vm391_vm2, %v13776_v54  ;;  %v13779_v31 = vld [vmem:[#allocation65_spill] sm:$0xff]  ;;  %v7902_v45 = vld [vmem:[%s13323_s2 + $0x8] sm:$0x3]  ;;  %v13785_v54 = vshrl.u32 %v13727_v57, 16 }
 0x45f   : > { %v12372_v50 = vsel %vm6690_vm11, %v6748_v11, %v6752_v9  ;;  %v5224_v11 = vsel %vm446_vm0, %v12165_v35, 0 }
 0x460   : > { %v12367_v10 = vor.u32 %v6759_v8, %v6758_v62  ;;  %v12375_v44 = vsel %vm6690_vm11, %v6752_v9, %v6756_v13  ;;  %v13783_v8 = vshll.u32 %v13727_v57, 16 }
 0x462   : > { %v12379_v6 = vsel %vm6690_vm11, %v6756_v13, %v12367_v10  ;;  %v5750_v9 = vrot.slane %v13783_v8, 1  ;;  %v13797_v8 = vshrl.u32 %v12112_v48, 16 }
 0x465   : > { %8808 = vmatmul.mubr.msk.bf16.gmra.mrb[24].mxu1 %vm391_vm2, %v13777_v7  ;;  %v5754_v7 = vor.u32 %v13785_v54, %v5750_v9 }
 0x466   : > { %8811 = vmatprep.mubr.msk.bf16.mxu1 %vm391_vm2, %v13778_v15 }
 0x46d   : > { %8812 = vmatmul.mubr.msk.bf16.gmra.mrb[28].mxu1 %vm391_vm2, %v13779_v31  ;;  %v13786_v31 = vshll.u32 %v13721_v18, 16 }
 0x46e   : > { %8815 = vmatprep.mubr.msk.bf16.mxu1 %vm391_vm2, %v11949_v17  ;;  %v5514_v17 = vsel %vm446_vm0, %v7902_v45, 0 }
 0x475   : > { %8816 = vmatmul.mubr.msk.bf16.gmra.mrb[32].mxu1 %vm391_vm2, %v11960_v33  ;;  %v7882_v33 = vcombine.low %v13724_v23, %v12115_v39  ;;  %v13782_v23 = vshll.u32 %v13726_v47, 16 }
 0x476   : > { %8821 = vmatprep.mubr.msk.bf16.mxu1 %vm391_vm2, %v11955_v56  ;;  %v7939_v56 = vld [vmem:[%s13323_s2 + $0xa] sm:$0x3] }
 0x477   : > { %v5743_v62 = vrot.slane %v13782_v23, 1 }
 0x479   : > { %v5747_v13 = vor.u32 %v13784_v51, %v5743_v62  ;;  %v13798_v51 = vshll.u32 %v12121_v28, 16 }
 0x47d   : > { %8822 = vmatmul.mubr.msk.bf16.vlgmr.msra.gmra.mrb[0].mxu1 %vm391_vm2, %v11969_v1 }
 0x47e   : > { %8858 = vmatpush3.bf16.msra.mxu1 %v5224_v11  ;;  %8825 = vmatprep.mubr.msk.bf16.mxu1 %vm391_vm2, %v11980_v19  ;;  %v5757_v11 = vrot.slane %v13786_v31, 1 }
 0x47f   : > { %9674 = vmatprep.subr.msk.bf16.mxu1 %vm446_vm0, %v7902_v45  ;;  %v12536_v45 = vsel %vm5734_vm10, %v5747_v13, %v5750_v9  ;;  %v5799_v13 = vrot.slane %v13798_v51, 1 }
 0x485   : > { %8826 = vmatmul.mubr.msk.bf16.gmra.mrb[4].mxu1 %vm391_vm2, %v11991_v55 }
 0x486   : > { %8829 = vmatprep.mubr.msk.bf16.mxu1 %vm391_vm2, %v11998_v3 }
 0x48d   : > { %8830 = vmatmul.mubr.msk.bf16.gmra.mrb[8].mxu1 %vm391_vm2, %v12001_v40 }
 0x48e   : > { %8833 = vmatprep.mubr.msk.bf16.mxu1 %vm391_vm2, %v12006_v49 }
 0x495   : > { %8834 = vmatmul.mubr.msk.bf16.gmra.mrb[12].mxu1 %vm391_vm2, %v12013_v16 }
 0x496   : > { %8837 = vmatprep.mubr.msk.bf16.mxu1 %vm391_vm2, %v12022_v58 }
 0x49d   : > { %8838 = vmatmul.mubr.msk.bf16.gmra.mrb[16].mxu1 %vm391_vm2, %v12037_v32 }
 0x49e   : > { %8841 = vmatprep.mubr.msk.bf16.mxu1 %vm391_vm2, %v12044_v21 }
 0x4a5   : > { %8842 = vmatmul.mubr.msk.bf16.gmra.mrb[20].mxu1 %vm391_vm2, %v12047_v26 }
 0x4a6   : > { %8845 = vmatprep.mubr.msk.bf16.mxu1 %vm391_vm2, %v12052_v27 }
 0x4ad   : > { %8846 = vmatmul.mubr.msk.bf16.gmra.mrb[24].mxu1 %vm391_vm2, %v12059_v61 }
 0x4ae   : > { %8849 = vmatprep.mubr.msk.bf16.mxu1 %vm391_vm2, %v12072_v38 }
 0x4b5   : > { %8850 = vmatmul.mubr.msk.bf16.gmra.mrb[28].mxu1 %vm391_vm2, %v12094_v42 }
 0x4b6   : > { %8853 = vmatprep.mubr.msk.bf16.mxu1 %vm391_vm2, %v12104_v46 }
 0x4bd   : > { %8854 = vmatmul.mubr.msk.bf16.gmra.mrb[32].mxu1 %vm391_vm2, %v12108_v20  ;;  %v7959_v20 = vld [vmem:[%s13323_s2 + $0xc] sm:$0x3] }
 0x4be   : > { %8859 = vmatprep.mubr.msk.bf16.mxu1 %vm391_vm2, %v11969_v1  ;;  %v5200_v1 = vshrl.u32 %v7882_v33, 16  ;;  %v6163_v15 = vsel %vm446_vm0, %v7959_v20, 0 }
 0x4c5   : > { %8860 = vmatmul.mubr.msk.bf16.vlgmr.msra.gmra.mrb[0].mxu1 %vm391_vm2, %v11980_v19  ;;  %v5203_v19 = vshll.u32 %v7882_v33, 16  ;;  %v13787_v33 = vshll.u32 %v13730_v24, 16 }
 0x4c6   : > { %8896 = vmatpush3.bf16.msra.mxu1 %v5514_v17  ;;  %8863 = vmatprep.mubr.msk.bf16.mxu1 %vm391_vm2, %v11991_v55  ;;  %v7883_v55 = vcombine.low %v12117_v52, %v12117_v52  ;;  %v12541_v17 = vld [vmem:[%s13323_s2 + $0xe] sm:$0x3] }
 0x4c7   : > { %9675 = vmatprep.subr.msk.bf16.mxu1 %vm446_vm0, %v7939_v56 }
 0x4cd   : > { %8864 = vmatmul.mubr.msk.bf16.gmra.mrb[4].mxu1 %vm391_vm2, %v11998_v3  ;;  %v5202_v3 = vrot.slane %v5200_v1, 3  ;;  %v5764_v1 = vrot.slane %v13787_v33, 1 }
 0x4ce   : > { %8867 = vmatprep.mubr.msk.bf16.mxu1 %vm391_vm2, %v12001_v40  ;;  %v5205_v40 = vrot.slane %v5203_v19, 4  ;;  %v13788_v19 = vshrl.u32 %v13721_v18, 16 }
 0x4d5   : > { %8868 = vmatmul.mubr.msk.bf16.gmra.mrb[8].mxu1 %vm391_vm2, %v12006_v49  ;;  %v5209_v49 = vshrl.u32 %v7883_v55, 16 }
 0x4d6   : > { %8871 = vmatprep.mubr.msk.bf16.mxu1 %vm391_vm2, %v12013_v16  ;;  %v5212_v16 = vshll.u32 %v7883_v55, 16  ;;  %v5761_v55 = vor.u32 %v13788_v19, %v5757_v11 }
 0x4dd   : > { %8872 = vmatmul.mubr.msk.bf16.gmra.mrb[12].mxu1 %vm391_vm2, %v12022_v58  ;;  %v5206_v58 = vor.u32 %v5205_v40, %v5202_v3  ;;  %v13789_v3 = vshrl.u32 %v13730_v24, 16 }
 0x4de   : > { %8875 = vmatprep.mubr.msk.bf16.mxu1 %vm391_vm2, %v12037_v32  ;;  %v5211_v32 = vrot.slane %v5209_v49, 3  ;;  %v13790_v49 = vshll.u32 %v13731_v12, 16 }
 0x4df   : > { %v5768_v40 = vor.u32 %v13789_v3, %v5764_v1 }
 0x4e5   : > { %8876 = vmatmul.mubr.msk.bf16.gmra.mrb[16].mxu1 %vm391_vm2, %v12044_v21  ;;  %v5214_v21 = vrot.slane %v5212_v16, 4  ;;  %v5771_v16 = vrot.slane %v13790_v49, 1 }
 0x4e6   : > { %8879 = vmatprep.mubr.msk.bf16.mxu1 %vm391_vm2, %v12047_v26  ;;  %v5207_v26 = vsel %vm1034_vm4, %v12074_v41, %v5206_v58  ;;  %v13781_v41 = vld [vmem:[#allocation40_spill] sm:$0xff] }
 0x4ed   : > { %8880 = vmatmul.mubr.msk.bf16.gmra.mrb[20].mxu1 %vm391_vm2, %v12052_v27  ;;  %v5215_v27 = vor.u32 %v5214_v21, %v5211_v32  ;;  %v5772_v32 = vsel %vm5734_vm10, %v5768_v40, %v5771_v16  ;;  %v13791_v21 = vshll.u32 %v13781_v41, 16 }
 0x4ee   : > { %8883 = vmatprep.mubr.msk.bf16.mxu1 %vm391_vm2, %v12059_v61 }
 0x4ef   : > { %v5216_v61 = vsel %vm1034_vm4, %v5206_v58, %v5215_v27  ;;  %v5765_v58 = vsel %vm5734_vm10, %v5761_v55, %v5764_v1  ;;  %v13792_v27 = vshrl.u32 %v13731_v12, 16  ;;  %v13801_v1 = vshrl.u32 %v12125_v0, 16 }
 0x4f0   : > { %v13802_v55 = vshll.u32 %v12129_v36, 16 }
 0x4f2   : > { %v5813_v3 = vrot.slane %v13802_v55, 1 }
 0x4f5   : > { %8884 = vmatmul.mubr.msk.bf16.gmra.mrb[24].mxu1 %vm391_vm2, %v12072_v38  ;;  %v13780_v38 = vld [vmem:[#allocation42_spill] sm:$0xff] }
 0x4f6   : > { %8887 = vmatprep.mubr.msk.bf16.mxu1 %vm391_vm2, %v12094_v42  ;;  %v5920_v42 = vsel %vm446_vm0, %v7939_v56, 0  ;;  %v5735_v52 = vshrl.u32 %v13780_v38, 16  ;;  %v12546_v56 = vsel %vm5734_vm10, %v5754_v7, %v5757_v11  ;;  %v13800_v11 = vshrl.u32 %v12121_v28, 16 }
 0x4f8   : > { %v5803_v33 = vor.u32 %v13800_v11, %v5799_v13 }
 0x4fd   : > { %8888 = vmatmul.mubr.msk.bf16.gmra.mrb[28].mxu1 %vm391_vm2, %v12104_v46  ;;  %v5737_v46 = vshll.u32 %v13780_v38, 16 }
 0x4fe   : > { %8891 = vmatprep.mubr.msk.bf16.mxu1 %vm391_vm2, %v5207_v26  ;;  %v5778_v26 = vrot.slane %v13791_v21, 1 }
 0x4ff   : > { %v5739_v39 = vrot.slane %v5737_v46, 1 }
 0x501   : > { %v5740_v35 = vor.u32 %v5739_v39, %v5735_v52 }
 0x503   : > { %v5744_v22 = vsel %vm5734_vm10, %v5740_v35, %v5743_v62  ;;  %v13795_v35 = vshll.u32 %v12112_v48, 16  ;;  %v13796_v62 = vshrl.u32 %v12082_v37, 16 }
 0x505   : > { %8892 = vmatmul.mubr.msk.bf16.gmra.mrb[32].mxu1 %vm391_vm2, %v5216_v61  ;;  %v5775_v61 = vor.u32 %v13792_v27, %v5771_v16  ;;  %v5792_v23 = vrot.slane %v13795_v35, 1  ;;  %v13803_v16 = vshll.u32 %v12133_v5, 16 }
 0x506   : > { %8897 = vmatprep.mubr.msk.bf16.mxu1 %vm391_vm2, %v13780_v38  ;;  %v13793_v38 = vshrl.u32 %v13781_v41, 16 }
 0x507   : > { %v5779_v39 = vsel %vm5734_vm10, %v5775_v61, %v5778_v26  ;;  %v5796_v9 = vor.u32 %v13797_v8, %v5792_v23  ;;  %v5820_v21 = vrot.slane %v13803_v16, 1  ;;  %v13805_v61 = vshrl.u32 %v12133_v5, 16 }
 0x509   : > { %v5800_v7 = vsel %vm5734_vm10, %v5796_v9, %v5799_v13  ;;  %v13809_v9 = vshrl.u32 %v12142_v29, 16  ;;  %v13810_v13 = vshll.u32 %v12146_v4, 16 }
 0x50d   : > { %8898 = vmatmul.mubr.msk.bf16.vlgmr.msra.gmra.mrb[0].mxu1 %vm391_vm2, %v13726_v47 }
 0x50e   : > { %8934 = vmatpush3.bf16.msra.mxu1 %v5920_v42  ;;  %8901 = vmatprep.mubr.msk.bf16.mxu1 %vm391_vm2, %v13727_v57  ;;  %v5782_v42 = vor.u32 %v13793_v38, %v5778_v26  ;;  %v13804_v26 = vshrl.u32 %v12129_v36, 16  ;;  %v5824_v38 = vor.u32 %v13805_v61, %v5820_v21 }
 0x50f   : > { %9676 = vmatprep.subr.msk.bf16.mxu1 %vm446_vm0, %v7959_v20  ;;  %v13794_v20 = vshll.u32 %v12082_v37, 16 }
 0x510   : > { %v5817_v27 = vor.u32 %v13804_v26, %v5813_v3 }
 0x511   : > { %v5785_v46 = vrot.slane %v13794_v20, 1 }
 0x513   : > { %v5786_v52 = vsel %vm5734_vm10, %v5782_v42, %v5785_v46  ;;  %v13806_v42 = vshll.u32 %v12138_v34, 16 }
 0x515   : > { %8902 = vmatmul.mubr.msk.bf16.gmra.mrb[4].mxu1 %vm391_vm2, %v13721_v18  ;;  %v5827_v20 = vrot.slane %v13806_v42, 1 }
 0x516   : > { %8905 = vmatprep.mubr.msk.bf16.mxu1 %vm391_vm2, %v13730_v24 }
 0x517   : > { %v5828_v35 = vsel %vm5734_vm10, %v5824_v38, %v5827_v20  ;;  %v13815_v38 = vld [vmem:[#allocation50_spill] sm:$0xff] }
 0x51d   : > { %8906 = vmatmul.mubr.msk.bf16.gmra.mrb[8].mxu1 %vm391_vm2, %v13731_v12 }
 0x51e   : > { %8909 = vmatprep.mubr.msk.bf16.mxu1 %vm391_vm2, %v13781_v41 }
 0x525   : > { %8910 = vmatmul.mubr.msk.bf16.gmra.mrb[12].mxu1 %vm391_vm2, %v12082_v37 }
 0x526   : > { %8913 = vmatprep.mubr.msk.bf16.mxu1 %vm391_vm2, %v12112_v48 }
 0x52d   : > { %8914 = vmatmul.mubr.msk.bf16.gmra.mrb[16].mxu1 %vm391_vm2, %v12121_v28 }
 0x52e   : > { %8917 = vmatprep.mubr.msk.bf16.mxu1 %vm391_vm2, %v12125_v0 }
 0x535   : > { %8918 = vmatmul.mubr.msk.bf16.gmra.mrb[20].mxu1 %vm391_vm2, %v12129_v36 }
 0x536   : > { %8921 = vmatprep.mubr.msk.bf16.mxu1 %vm391_vm2, %v12133_v5 }
 0x53d   : > { %8922 = vmatmul.mubr.msk.bf16.gmra.mrb[24].mxu1 %vm391_vm2, %v12138_v34 }
 0x53e   : > { %8925 = vmatprep.mubr.msk.bf16.mxu1 %vm391_vm2, %v12142_v29 }
 0x545   : > { %8926 = vmatmul.mubr.msk.bf16.gmra.mrb[28].mxu1 %vm391_vm2, %v12146_v4 }
 0x546   : > { %8929 = vmatprep.mubr.msk.bf16.mxu1 %vm391_vm2, %v12201_v14 }
 0x54d   : > { %8930 = vmatmul.mubr.msk.bf16.gmra.mrb[32].mxu1 %vm391_vm2, %v12150_v53 }
 0x54e   : > { %8935 = vmatprep.mubr.msk.bf16.mxu1 %vm391_vm2, %v5744_v22  ;;  %v5789_v22 = vor.u32 %v13796_v62, %v5785_v46  ;;  %v5821_v46 = vsel %vm5734_vm10, %v5817_v27, %v5820_v21  ;;  %v13814_v21 = vshrl.u32 %v12201_v14, 16 }
 0x550   : > { %v5793_v54 = vsel %vm5734_vm10, %v5789_v22, %v5792_v23  ;;  %v13807_v23 = vshll.u32 %v12142_v29, 16  ;;  %v13808_v22 = vshrl.u32 %v12138_v34, 16 }
 0x552   : > { %v5834_v62 = vrot.slane %v13807_v23, 1  ;;  %v5831_v8 = vor.u32 %v13808_v22, %v5827_v20  ;;  %v13816_v23 = vld [vmem:[#allocation46_spill] sm:$0xff]  ;;  %v6473_v22 = vsel %vm446_vm0, %v12541_v17, 0 }
 0x554   : > { %v5838_v51 = vor.u32 %v13809_v9, %v5834_v62 }
 0x555   : > { %8936 = vmatmul.mubr.msk.bf16.vlgmr.msra.gmra.mrb[0].mxu1 %vm391_vm2, %v12536_v45 }
 0x556   : > { %8972 = vmatpush3.bf16.msra.mxu1 %v6163_v15  ;;  %8939 = vmatprep.mubr.msk.bf16.mxu1 %vm391_vm2, %v12546_v56  ;;  %v13799_v15 = vshll.u32 %v12125_v0, 16 }
 0x557   : > { %9677 = vmatprep.subr.msk.bf16.mxu1 %vm446_vm0, %v12541_v17 }
 0x558   : > { %v5806_v31 = vrot.slane %v13799_v15, 1  ;;  %v5841_v15 = vrot.slane %v13810_v13, 1  ;;  %v6390_v13 = vrot.slane %v13781_v41, 1  ;;  %v6396_v41 = vrot.slane %v12121_v28, 1 }
 0x55a   : > { %v5810_v19 = vor.u32 %v13801_v1, %v5806_v31  ;;  %v5807_v40 = vsel %vm5734_vm10, %v5803_v33, %v5806_v31  ;;  %v5835_v31 = vsel %vm5734_vm10, %v5831_v8, %v5834_v62  ;;  %v5842_v11 = vsel %vm5734_vm10, %v5838_v51, %v5841_v15  ;;  %v7999_v8 = vld [vmem:[%s13323_s2 + $0x10] sm:$0x3] }
 0x55b   : > { %v13811_v33 = vshll.u32 %v12201_v14, 16  ;;  %v6823_v9 = vsel %vm446_vm0, %v7999_v8, 0 }
 0x55c   : > { %v5814_v49 = vsel %vm5734_vm10, %v5810_v19, %v5813_v3  ;;  %v13812_v19 = vshrl.u32 %v12146_v4, 16  ;;  %v13813_v3 = vld [vmem:[#allocation39_spill] sm:$0xff] }
 0x55d   : > { %8940 = vmatmul.mubr.msk.bf16.gmra.mrb[4].mxu1 %vm391_vm2, %v5765_v58  ;;  %v5848_v1 = vrot.slane %v13811_v33, 1  ;;  %v7940_v16 = vcombine.low %v13813_v3, %v13813_v3  ;;  %v6398_v33 = vrot.slane %v12125_v0, 1  ;;  %v6404_v0 = vrot.slane %v12138_v34, 1 }
 0x55e   : > { %8943 = vmatprep.mubr.msk.bf16.mxu1 %vm391_vm2, %v5772_v32  ;;  %v5845_v55 = vor.u32 %v13812_v19, %v5841_v15  ;;  %v6402_v19 = vrot.slane %v12133_v5, 1  ;;  %v6406_v3 = vrot.slane %v12142_v29, 1  ;;  %v6408_v5 = vrot.slane %v12146_v4, 1 }
 0x55f   : > { %v5852_v26 = vor.u32 %v13814_v21, %v5848_v1  ;;  %v5861_v61 = vshll.u32 %v7940_v16, 16  ;;  %v6410_v21 = vrot.slane %v12201_v14, 1  ;;  %v6412_v29 = vrot.slane %v12150_v53, 1  ;;  %v13821_v53 = vld [vmem:[#allocation54_spill] sm:$0xff] }
 0x560   : > { %v5849_v27 = vsel %vm5734_vm10, %v5845_v55, %v5848_v1  ;;  %v6405_v16 = vsel %vm6380_vm12, %v6402_v19, %v6404_v0 }
 0x561   : > { %v5856_v42 = vsel %vm5734_vm10, %v5852_v26, %v13815_v38  ;;  %v5863_v20 = vrot.slane %v5861_v61, 1  ;;  %v6409_v26 = vsel %vm6380_vm12, %v6406_v3, %v6408_v5  ;;  %v6411_v34 = vsel %vm6380_vm12, %v6408_v5, %v6410_v21 }
 0x562   : > { %v6413_v61 = vsel %vm6380_vm12, %v6410_v21, %v6412_v29 }
 0x563   : > { %v5864_v62 = vsel %vm5734_vm10, %v13816_v23, %v5863_v20  ;;  %v13823_v20 = vld [vmem:[#allocation47_spill] sm:$0xff] }
 0x564   : > { %v13824_v23 = vld [vmem:[#allocation51_spill] sm:$0xff] }
 0x565   : > { %8944 = vmatmul.mubr.msk.bf16.gmra.mrb[8].mxu1 %vm391_vm2, %v5779_v39 }
 0x566   : > { %8947 = vmatprep.mubr.msk.bf16.mxu1 %vm391_vm2, %v5786_v52 }
 0x56d   : > { %8948 = vmatmul.mubr.msk.bf16.gmra.mrb[12].mxu1 %vm391_vm2, %v5793_v54 }
 0x56e   : > { %8951 = vmatprep.mubr.msk.bf16.mxu1 %vm391_vm2, %v5800_v7 }
 0x575   : > { %8952 = vmatmul.mubr.msk.bf16.gmra.mrb[16].mxu1 %vm391_vm2, %v5807_v40 }
 0x576   : > { %8955 = vmatprep.mubr.msk.bf16.mxu1 %vm391_vm2, %v5814_v49 }
 0x57d   : > { %8956 = vmatmul.mubr.msk.bf16.gmra.mrb[20].mxu1 %vm391_vm2, %v5821_v46 }
 0x57e   : > { %8959 = vmatprep.mubr.msk.bf16.mxu1 %vm391_vm2, %v5828_v35 }
 0x585   : > { %8960 = vmatmul.mubr.msk.bf16.gmra.mrb[24].mxu1 %vm391_vm2, %v5835_v31 }
 0x586   : > { %8963 = vmatprep.mubr.msk.bf16.mxu1 %vm391_vm2, %v5842_v11 }
 0x58d   : > { %8964 = vmatmul.mubr.msk.bf16.gmra.mrb[28].mxu1 %vm391_vm2, %v5849_v27 }
 0x58e   : > { %8967 = vmatprep.mubr.msk.bf16.mxu1 %vm391_vm2, %v5856_v42 }
 0x595   : > { %8968 = vmatmul.mubr.msk.bf16.gmra.mrb[32].mxu1 %vm391_vm2, %v5864_v62  ;;  %v13825_v62 = vld [vmem:[#allocation43_spill] sm:$0xff] }
 0x596   : > { %8973 = vmatprep.mubr.msk.bf16.mxu1 %vm391_vm2, %v12536_v45  ;;  %v12663_v45 = vld [vmem:[#allocation2 + $0xbc] ss:$0 sps:$4 sm:$0xff]  }
 0x597   : > { %v6152_v17 = vshll.u32 %v12663_v45, 16  ;;  %v6416_v14 = vrot.slane %v12663_v45, 1 }
 0x59d   : > { %8974 = vmatmul.mubr.msk.bf16.vlgmr.msra.gmra.mrb[0].mxu1 %vm391_vm2, %v12546_v56  ;;  %v13817_v56 = vld [vmem:[#allocation52_spill] sm:$0xff] }
 0x59e   : > { %9010 = vmatpush3.bf16.msra.mxu1 %v6473_v22  ;;  %8977 = vmatprep.mubr.msk.bf16.mxu1 %vm391_vm2, %v5765_v58  ;;  %v13818_v58 = vld [vmem:[#allocation49_spill] sm:$0xff]  ;;  %v13826_v22 = vld [vmem:[#allocation44_spill] sm:$0xff] }
 0x59f   : > { %9678 = vmatprep.subr.msk.bf16.mxu1 %vm446_vm0, %v7999_v8 }
 0x5a5   : > { %8978 = vmatmul.mubr.msk.bf16.gmra.mrb[4].mxu1 %vm391_vm2, %v5772_v32  ;;  %v13819_v32 = vshrl.u32 %v12175_v2, 16 }
 0x5a6   : > { %8981 = vmatprep.mubr.msk.bf16.mxu1 %vm391_vm2, %v5779_v39 }
 0x5a7   : > { %v6150_v39 = vor.u32 %v13819_v32, %v13818_v58 }
 0x5ad   : > { %8982 = vmatmul.mubr.msk.bf16.gmra.mrb[8].mxu1 %vm391_vm2, %v5786_v52  ;;  %v6154_v52 = vrot.slane %v6152_v17, 1 }
 0x5ae   : > { %8985 = vmatprep.mubr.msk.bf16.mxu1 %vm391_vm2, %v5793_v54  ;;  %v6381_v54 = vrot.slane %v13726_v47, 1 }
 0x5b5   : > { %8986 = vmatmul.mubr.msk.bf16.gmra.mrb[12].mxu1 %vm391_vm2, %v5800_v7  ;;  %v6382_v7 = vrot.slane %v13727_v57, 1  ;;  %v6388_v57 = vrot.slane %v13731_v12, 1 }
 0x5b6   : > { %8989 = vmatprep.mubr.msk.bf16.mxu1 %vm391_vm2, %v5807_v40  ;;  %v6155_v40 = vsel %vm5734_vm10, %v6150_v39, %v6154_v52  ;;  %v13829_v39 = vld [vmem:[#allocation3_spill] sm:$0xff] }
 0x5bd   : > { %8990 = vmatmul.mubr.msk.bf16.gmra.mrb[16].mxu1 %vm391_vm2, %v5814_v49  ;;  %v6383_v49 = vsel %vm6380_vm12, %v6381_v54, %v6382_v7 }
 0x5be   : > { %8993 = vmatprep.mubr.msk.bf16.mxu1 %vm391_vm2, %v5821_v46  ;;  %v6384_v46 = vrot.slane %v13721_v18, 1  ;;  %v6391_v18 = vsel %vm6380_vm12, %v6388_v57, %v6390_v13 }
 0x5c0   : > { %v6385_v51 = vsel %vm6380_vm12, %v6382_v7, %v6384_v46 }
 0x5c5   : > { %8994 = vmatmul.mubr.msk.bf16.gmra.mrb[20].mxu1 %vm391_vm2, %v5828_v35  ;;  %v6386_v35 = vrot.slane %v13730_v24, 1  ;;  %v6392_v24 = vrot.slane %v12082_v37, 1  ;;  %v6399_v37 = vsel %vm6380_vm12, %v6396_v41, %v6398_v33 }
 0x5c6   : > { %8997 = vmatprep.mubr.msk.bf16.mxu1 %vm391_vm2, %v5835_v31  ;;  %v6394_v31 = vrot.slane %v12112_v48, 1  ;;  %v6400_v48 = vrot.slane %v12129_v36, 1  ;;  %v6407_v36 = vsel %vm6380_vm12, %v6404_v0, %v6406_v3  ;;  %v13832_v3 = vld [vmem:[#allocation9_spill] sm:$0xff] }
 0x5c7   : > { %v6387_v47 = vsel %vm6380_vm12, %v6384_v46, %v6386_v35  ;;  %v6389_v15 = vsel %vm6380_vm12, %v6386_v35, %v6388_v57  ;;  %v13831_v46 = vld [vmem:[#allocation5_spill] sm:$0xff] }
 0x5c8   : > { %v6395_v12 = vsel %vm6380_vm12, %v6392_v24, %v6394_v31  ;;  %v6397_v1 = vsel %vm6380_vm12, %v6394_v31, %v6396_v41  ;;  %v6401_v55 = vsel %vm6380_vm12, %v6398_v33, %v6400_v48  ;;  %v6403_v28 = vsel %vm6380_vm12, %v6400_v48, %v6402_v19 }
 0x5cd   : > { %8998 = vmatmul.mubr.msk.bf16.gmra.mrb[24].mxu1 %vm391_vm2, %v5842_v11  ;;  %v6393_v11 = vsel %vm6380_vm12, %v6390_v13, %v6392_v24 }
 0x5ce   : > { %9001 = vmatprep.mubr.msk.bf16.mxu1 %vm391_vm2, %v5849_v27  ;;  %v6414_v27 = vrot.slane %v12175_v2, 1  ;;  %v13822_v2 = vld [vmem:[#allocation45_spill] sm:$0xff] }
 0x5d0   : > { %v6415_v4 = vsel %vm6380_vm12, %v6412_v29, %v6414_v27  ;;  %v6417_v38 = vsel %vm6380_vm12, %v6414_v27, %v6416_v14 }
 0x5d5   : > { %9002 = vmatmul.mubr.msk.bf16.gmra.mrb[28].mxu1 %vm391_vm2, %v5856_v42  ;;  %v13820_v42 = vld [vmem:[#allocation53_spill] sm:$0xff] }
 0x5d6   : > { %9005 = vmatprep.mubr.msk.bf16.mxu1 %vm391_vm2, %v13817_v56  ;;  %v13828_v56 = vld [vmem:[#allocation4_spill] sm:$0xff] }
 0x5dd   : > { %9006 = vmatmul.mubr.msk.bf16.gmra.mrb[32].mxu1 %vm391_vm2, %v6155_v40  ;;  %v13830_v40 = vld [vmem:[#allocation6_spill] sm:$0xff] }
 0x5de   : > { %9011 = vmatprep.mubr.msk.bf16.mxu1 %vm391_vm2, %v6383_v49 }
 0x5e5   : > { %9012 = vmatmul.mubr.msk.bf16.vlgmr.msra.gmra.mrb[0].mxu1 %vm391_vm2, %v6385_v51 }
 0x5e6   : > { %9048 = vmatpush3.bf16.msra.mxu1 %v6823_v9  ;;  %9015 = vmatprep.mubr.msk.bf16.mxu1 %vm391_vm2, %v6387_v47 }
 0x5ed   : > { %9016 = vmatmul.mubr.msk.bf16.gmra.mrb[4].mxu1 %vm391_vm2, %v6389_v15 }
 0x5ee   : > { %9019 = vmatprep.mubr.msk.bf16.mxu1 %vm391_vm2, %v6391_v18 }
 0x5f5   : > { %9020 = vmatmul.mubr.msk.bf16.gmra.mrb[8].mxu1 %vm391_vm2, %v6393_v11 }
 0x5f6   : > { %9023 = vmatprep.mubr.msk.bf16.mxu1 %vm391_vm2, %v6395_v12 }
 0x5fd   : > { %9024 = vmatmul.mubr.msk.bf16.gmra.mrb[12].mxu1 %vm391_vm2, %v6397_v1 }
 0x5fe   : > { %9027 = vmatprep.mubr.msk.bf16.mxu1 %vm391_vm2, %v6399_v37 }
 0x605   : > { %9028 = vmatmul.mubr.msk.bf16.gmra.mrb[16].mxu1 %vm391_vm2, %v6401_v55 }
 0x606   : > { %9031 = vmatprep.mubr.msk.bf16.mxu1 %vm391_vm2, %v6403_v28 }
 0x60d   : > { %9032 = vmatmul.mubr.msk.bf16.gmra.mrb[20].mxu1 %vm391_vm2, %v6405_v16 }
 0x60e   : > { %9035 = vmatprep.mubr.msk.bf16.mxu1 %vm391_vm2, %v6407_v36  ;;  %v13833_v36 = vld [vmem:[#allocation7_spill] sm:$0xff] }
 0x615   : > { %9036 = vmatmul.mubr.msk.bf16.gmra.mrb[24].mxu1 %vm391_vm2, %v6409_v26 }
 0x616   : > { %9039 = vmatprep.mubr.msk.bf16.mxu1 %vm391_vm2, %v6411_v34 }
 0x61d   : > { %9040 = vmatmul.mubr.msk.bf16.gmra.mrb[28].mxu1 %vm391_vm2, %v6413_v61 }
 0x61e   : > { %9043 = vmatprep.mubr.msk.bf16.mxu1 %vm391_vm2, %v6415_v4  ;;  %v13834_v4 = vld [vmem:[#allocation8_spill] sm:$0xff] }
 0x625   : > { %9044 = vmatmul.mubr.msk.bf16.gmra.mrb[32].mxu1 %vm391_vm2, %v6417_v38 }
 0x626   : > { %9049 = vmatprep.mubr.msk.bf16.mxu1 %vm391_vm2, %v13820_v42 }
 0x62d   : > { %9050 = vmatmul.mubr.msk.bf16.vlgmr.msra.gmra.mrb[0].mxu1 %vm391_vm2, %v12277_v25  ;;  %v13827_v25 = vld [vmem:[#allocation55_spill] sm:$0xff] }
 0x62e   : > { %9053 = vmatprep.mubr.msk.bf16.mxu1 %vm391_vm2, %v13821_v53  ;;  %v13835_v53 = vld [vmem:[#allocation10_spill] sm:$0xff] }
 0x635   : > { %9054 = vmatmul.mubr.msk.bf16.gmra.mrb[4].mxu1 %vm391_vm2, %v13822_v2 }
 0x636   : > { %9057 = vmatprep.mubr.msk.bf16.mxu1 %vm391_vm2, %v13823_v20 }
 0x63d   : > { %9058 = vmatmul.mubr.msk.bf16.gmra.mrb[8].mxu1 %vm391_vm2, %v13824_v23 }
 0x63e   : > { %9061 = vmatprep.mubr.msk.bf16.mxu1 %vm391_vm2, %v13825_v62 }
 0x645   : > { %9062 = vmatmul.mubr.msk.bf16.gmra.mrb[12].mxu1 %vm391_vm2, %v13826_v22 }
 0x646   : > { %9065 = vmatprep.mubr.msk.bf16.mxu1 %vm391_vm2, %v12332_v63  ;;  %v6762_v63 = vshrl.u32 %v12663_v45, 16 }
 0x648   : > { %v6764_v8 = vrot.slane %v6762_v63, 1 }
 0x64d   : > { %9066 = vmatmul.mubr.msk.bf16.gmra.mrb[16].mxu1 %vm391_vm2, %v12339_v30  ;;  %v6765_v30 = vrot.slane %v6152_v17, 2 }
 0x64e   : > { %9069 = vmatprep.mubr.msk.bf16.mxu1 %vm391_vm2, %v12342_v60 }
 0x64f   : > { %v6766_v60 = vor.u32 %v6765_v30, %v6764_v8 }
 0x655   : > { %9070 = vmatmul.mubr.msk.bf16.gmra.mrb[20].mxu1 %vm391_vm2, %v13827_v25 }
 0x656   : > { %9073 = vmatprep.mubr.msk.bf16.mxu1 %vm391_vm2, %v12354_v59  ;;  %v6767_v59 = vsel %vm6690_vm11, %v12367_v10, %v6766_v60 }
 0x65d   : > { %9074 = vmatmul.mubr.msk.bf16.gmra.mrb[24].mxu1 %vm391_vm2, %v12363_v43  ;;  %v12775_v43 = vld [vmem:[%s13324_s3 + $0x3] ss:$0 sm:$0xff] }
 0x65e   : > { %9077 = vmatprep.mubr.msk.bf16.mxu1 %vm391_vm2, %v12372_v50 }
 0x665   : > { %9078 = vmatmul.mubr.msk.bf16.gmra.mrb[28].mxu1 %vm391_vm2, %v12375_v44 }
 0x666   : > { %9081 = vmatprep.mubr.msk.bf16.mxu1 %vm391_vm2, %v12379_v6 }
 0x66d   : > { %9082 = vmatmul.mubr.msk.bf16.gmra.mrb[32].mxu1 %vm391_vm2, %v6767_v59 }
 0x700   : > { %v9051_v50 = vpop.f32.mrb[0].mxu1 }
 0x701   : > { %v12778_v45 = vadd.f32 %v9051_v50, %v12775_v43  ;;  %v6859_v17 = vpop.f32.mrb[1].mxu1 }
 0x702   : > { %v12781_v44 = vadd.f32 %v12775_v43, %v6859_v17  ;;  %v9052_v6 = vpop.f32.mrb[2].mxu1 }
 0x703   : > { %v7080_v58 = vmul.f32 %v12778_v45, %v13828_v56  ;;  %v12786_v10 = vadd.f32 %v9052_v6, %v12775_v43  ;;  %v6862_v32 = vpop.f32.mrb[3].mxu1 }
 0x704   : > { %v7078_v52 = vmul.f32 %v12781_v44, %v13829_v39  ;;  %v12791_v54 = vadd.f32 %v12775_v43, %v6862_v32 }
 0x705   : > { %v7081_v49 = vmul.f32 %v12786_v10, %v13830_v40  ;;  %v7193_v9 = vmul.f32 %v7080_v58, %v12778_v45  ;;  %v7117_v15 = vsel %vm391_vm2, %v7080_v58, 0.0  ;;  %v13836_v40 = vld [vmem:[#allocation27_spill] sm:$0xff] }
 0x706   : > { %v7191_v7 = vmul.f32 %v7078_v52, %v12781_v44  ;;  %v7079_v35 = vmul.f32 %v12791_v54, %v13831_v46  ;;  %v7114_v51 = vsel %vm391_vm2, %v7078_v52, 0.0 }
 0x707   : > { %v7194_v12 = vmul.f32 %v7081_v49, %v12786_v10  ;;  %v7230_v37 = vsel %vm391_vm2, %v7193_v9, 0.0  ;;  %v7119_v0 = vsel %vm391_vm2, %v7081_v49, 0.0  ;;  %v13837_v9 = vld [vmem:[#allocation11_spill] sm:$0xff] }
 0x708   : > { %v7115_v47 = vsel %vm391_vm2, %v7079_v35, 0.0  ;;  %v7192_v57 = vmul.f32 %v7079_v35, %v12791_v54  ;;  %v9055_v13 = vpop.f32.mrb[4].mxu1  ;;  %v7227_v11 = vsel %vm391_vm2, %v7191_v7, 0.0 }
 0x709   : > { %v7116_v18 = vadd.f32 %v7115_v47, %v7114_v51  ;;  %v12804_v24 = vadd.f32 %v9055_v13, %v12775_v43  ;;  %v6875_v31 = vpop.f32.mrb[5].mxu1  ;;  %v7232_v29 = vsel %vm391_vm2, %v7194_v12, 0.0 }
 0x70a   : > { %v7228_v41 = vsel %vm391_vm2, %v7192_v57, 0.0  ;;  %v12810_v33 = vadd.f32 %v12775_v43, %v6875_v31  ;;  %v9056_v1 = vpop.f32.mrb[6].mxu1 }
 0x70b   : > { %v7118_v48 = vadd.f32 %v7117_v15, %v7116_v18  ;;  %v7229_v19 = vadd.f32 %v7228_v41, %v7227_v11  ;;  %v12814_v55 = vadd.f32 %v9056_v1, %v12775_v43  ;;  %v6878_v28 = vpop.f32.mrb[7].mxu1  ;;  %v7084_v16 = vmul.f32 %v12804_v24, %v13832_v3  ;;  %v13838_v18 = vld [vmem:[#allocation28_spill] sm:$0xff] }
 0x70c   : > { %v7082_v5 = vmul.f32 %v12810_v33, %v13833_v36  ;;  %v12822_v21 = vadd.f32 %v12775_v43, %v6878_v28  ;;  %v13839_v41 = vld [vmem:[#allocation12_spill] sm:$0xff] }
 0x70d   : > { %v7231_v26 = vadd.f32 %v7230_v37, %v7229_v19  ;;  %v7120_v34 = vadd.f32 %v7119_v0, %v7118_v48  ;;  %v7085_v2 = vmul.f32 %v12814_v55, %v13835_v53  ;;  %v7197_v20 = vmul.f32 %v7084_v16, %v12804_v24 }
 0x70e   : > { %v7121_v27 = vsel %vm391_vm2, %v7082_v5, 0.0  ;;  %v7195_v61 = vmul.f32 %v7082_v5, %v12810_v33  ;;  %v7083_v14 = vmul.f32 %v12822_v21, %v13834_v4  ;;  %v7125_v59 = vsel %vm391_vm2, %v7084_v16, 0.0 }
 0x70f   : > { %v7122_v38 = vadd.f32 %v7121_v27, %v7120_v34  ;;  %v7233_v42 = vadd.f32 %v7232_v29, %v7231_v26  ;;  %v7198_v6 = vmul.f32 %v7085_v2, %v12814_v55  ;;  %v7127_v52 = vsel %vm391_vm2, %v7085_v2, 0.0 }
 0x710   : > { %v7234_v23 = vsel %vm391_vm2, %v7195_v61, 0.0  ;;  %v7123_v62 = vsel %vm391_vm2, %v7083_v14, 0.0  ;;  %v9059_v22 = vpop.f32.mrb[8].mxu1  ;;  %v7196_v8 = vmul.f32 %v7083_v14, %v12822_v21  ;;  %v7238_v35 = vsel %vm391_vm2, %v7197_v20, 0.0  ;;  %v13840_v20 = vld [vmem:[#allocation13_spill] sm:$0xff] }
 0x711   : > { %v7235_v25 = vadd.f32 %v7234_v23, %v7233_v42  ;;  %v7124_v63 = vadd.f32 %v7123_v62, %v7122_v38  ;;  %v12836_v30 = vadd.f32 %v9059_v22, %v12775_v43  ;;  %v6891_v60 = vpop.f32.mrb[9].mxu1  ;;  %v7240_v11 = vsel %vm391_vm2, %v7198_v6, 0.0  ;;  %v13842_v6 = vld [vmem:[#allocation14_spill] sm:$0xff] }
 0x712   : > { %v12840_v50 = vadd.f32 %v12775_v43, %v6891_v60  ;;  %v9060_v17 = vpop.f32.mrb[10].mxu1  ;;  %v7236_v58 = vsel %vm391_vm2, %v7196_v8, 0.0 }
 0x713   : > { %v7126_v56 = vadd.f32 %v7125_v59, %v7124_v63  ;;  %v12845_v32 = vadd.f32 %v9060_v17, %v12775_v43  ;;  %v6894_v39 = vpop.f32.mrb[11].mxu1  ;;  %v7237_v7 = vadd.f32 %v7236_v58, %v7235_v25  ;;  %v7088_v51 = vmul.f32 %v12836_v30, %v13837_v9  ;;  %v13841_v25 = vld [vmem:[#allocation15_spill] sm:$0xff] }
 0x714   : > { %v7086_v49 = vmul.f32 %v12840_v50, %v13836_v40  ;;  %v12851_v46 = vadd.f32 %v12775_v43, %v6894_v39 }
 0x715   : > { %v7128_v47 = vadd.f32 %v7127_v52, %v7126_v56  ;;  %v7239_v57 = vadd.f32 %v7238_v35, %v7237_v7  ;;  %v7089_v1 = vmul.f32 %v12845_v32, %v13839_v41  ;;  %v7201_v3 = vmul.f32 %v7088_v51, %v12836_v30  ;;  %v13843_v52 = vld [vmem:[#allocation16_spill] sm:$0xff] }
 0x716   : > { %v7129_v13 = vsel %vm391_vm2, %v7086_v49, 0.0  ;;  %v7199_v15 = vmul.f32 %v7086_v49, %v12840_v50  ;;  %v7087_v31 = vmul.f32 %v12851_v46, %v13838_v18  ;;  %v7133_v26 = vsel %vm391_vm2, %v7088_v51, 0.0 }
 0x717   : > { %v7130_v12 = vadd.f32 %v7129_v13, %v7128_v47  ;;  %v7241_v37 = vadd.f32 %v7240_v11, %v7239_v57  ;;  %v7202_v4 = vmul.f32 %v7089_v1, %v12845_v32  ;;  %v7135_v53 = vsel %vm391_vm2, %v7089_v1, 0.0 }
 0x718   : > { %v7242_v48 = vsel %vm391_vm2, %v7199_v15, 0.0  ;;  %v7131_v19 = vsel %vm391_vm2, %v7087_v31, 0.0  ;;  %v7200_v28 = vmul.f32 %v7087_v31, %v12851_v46  ;;  %v9063_v0 = vpop.f32.mrb[12].mxu1  ;;  %v7246_v22 = vsel %vm391_vm2, %v7201_v3, 0.0  ;;  %v13844_v3 = vld [vmem:[#allocation17_spill] sm:$0xff] }
 0x719   : > { %v7132_v16 = vadd.f32 %v7131_v19, %v7130_v12  ;;  %v12868_v36 = vadd.f32 %v9063_v0, %v12775_v43  ;;  %v6907_v5 = vpop.f32.mrb[13].mxu1  ;;  %v7243_v34 = vadd.f32 %v7242_v48, %v7241_v37  ;;  %v7248_v58 = vsel %vm391_vm2, %v7202_v4, 0.0 }
 0x71a   : > { %v7244_v29 = vsel %vm391_vm2, %v7200_v28, 0.0  ;;  %v12873_v27 = vadd.f32 %v12775_v43, %v6907_v5  ;;  %v9064_v61 = vpop.f32.mrb[14].mxu1 }
 0x71b   : > { %v7134_v14 = vadd.f32 %v7133_v26, %v7132_v16  ;;  %v12877_v38 = vadd.f32 %v9064_v61, %v12775_v43  ;;  %v6910_v42 = vpop.f32.mrb[15].mxu1  ;;  %v7245_v2 = vadd.f32 %v7244_v29, %v7243_v34  ;;  %v7092_v63 = vmul.f32 %v12868_v36, %v13841_v25  ;;  %v13845_v34 = vld [vmem:[#allocation19_spill] sm:$0xff] }
 0x71c   : > { %v7090_v23 = vmul.f32 %v12873_v27, %v13840_v20  ;;  %v12883_v62 = vadd.f32 %v12775_v43, %v6910_v42 }
 0x71d   : > { %v7136_v8 = vadd.f32 %v7135_v53, %v7134_v14  ;;  %v7247_v60 = vadd.f32 %v7246_v22, %v7245_v2  ;;  %v7093_v7 = vmul.f32 %v12877_v38, %v13843_v52  ;;  %v7205_v47 = vmul.f32 %v7092_v63, %v12868_v36  ;;  %v13846_v53 = vld [vmem:[#allocation18_spill] sm:$0xff]  ;;  %v13847_v22 = vld [vmem:[#allocation20_spill] sm:$0xff] }
 0x71e   : > { %v7137_v59 = vsel %vm391_vm2, %v7090_v23, 0.0  ;;  %v7203_v17 = vmul.f32 %v7090_v23, %v12873_v27  ;;  %v7091_v56 = vmul.f32 %v12883_v62, %v13842_v6  ;;  %v7141_v18 = vsel %vm391_vm2, %v7092_v63, 0.0 }
 0x71f   : > { %v7138_v39 = vadd.f32 %v7137_v59, %v7136_v8  ;;  %v7249_v40 = vadd.f32 %v7248_v58, %v7247_v60  ;;  %v7206_v1 = vmul.f32 %v7093_v7, %v12877_v38  ;;  %v7143_v28 = vsel %vm391_vm2, %v7093_v7, 0.0 }
 0x720   : > { %v7250_v49 = vsel %vm391_vm2, %v7203_v17, 0.0  ;;  %v7139_v35 = vsel %vm391_vm2, %v7091_v56, 0.0  ;;  %v7204_v9 = vmul.f32 %v7091_v56, %v12883_v62  ;;  %v9067_v51 = vpop.f32.mrb[16].mxu1  ;;  %v7254_v26 = vsel %vm391_vm2, %v7205_v47, 0.0 }
 0x721   : > { %v7140_v57 = vadd.f32 %v7139_v35, %v7138_v39  ;;  %v12900_v13 = vadd.f32 %v9067_v51, %v12775_v43  ;;  %v6923_v15 = vpop.f32.mrb[17].mxu1  ;;  %v7251_v31 = vadd.f32 %v7250_v49, %v7249_v40  ;;  %v7256_v20 = vsel %vm391_vm2, %v7206_v1, 0.0 }
 0x722   : > { %v7252_v11 = vsel %vm391_vm2, %v7204_v9, 0.0  ;;  %v12905_v12 = vadd.f32 %v12775_v43, %v6923_v15  ;;  %v9068_v41 = vpop.f32.mrb[18].mxu1 }
 0x723   : > { %v7142_v37 = vadd.f32 %v7141_v18, %v7140_v57  ;;  %v12909_v48 = vadd.f32 %v9068_v41, %v12775_v43  ;;  %v6926_v19 = vpop.f32.mrb[19].mxu1  ;;  %v7253_v0 = vadd.f32 %v7252_v11, %v7251_v31  ;;  %v7096_v29 = vmul.f32 %v12900_v13, %v13845_v34  ;;  %v13848_v31 = vld [vmem:[#allocation21_spill] sm:$0xff] }
 0x724   : > { %v7094_v16 = vmul.f32 %v12905_v12, %v13844_v3  ;;  %v12915_v5 = vadd.f32 %v12775_v43, %v6926_v19 }
 0x725   : > { %v7144_v61 = vadd.f32 %v7143_v28, %v7142_v37  ;;  %v7255_v4 = vadd.f32 %v7254_v26, %v7253_v0  ;;  %v7097_v25 = vmul.f32 %v12909_v48, %v13847_v22  ;;  %v7209_v6 = vmul.f32 %v7096_v29, %v12900_v13  ;;  %v13849_v37 = vld [vmem:[#allocation23_spill] sm:$0xff]  ;;  %v13850_v26 = vld [vmem:[#allocation22_spill] sm:$0xff] }
 0x726   : > { %v7145_v14 = vsel %vm391_vm2, %v7094_v16, 0.0  ;;  %v7207_v42 = vmul.f32 %v7094_v16, %v12905_v12  ;;  %v7095_v2 = vmul.f32 %v12915_v5, %v13846_v53  ;;  %v7149_v52 = vsel %vm391_vm2, %v7096_v29, 0.0 }
 0x727   : > { %v7146_v23 = vadd.f32 %v7145_v14, %v7144_v61  ;;  %v7257_v63 = vadd.f32 %v7256_v20, %v7255_v4  ;;  %v7210_v9 = vmul.f32 %v7097_v25, %v12909_v48  ;;  %v7151_v15 = vsel %vm391_vm2, %v7097_v25, 0.0  ;;  %v13851_v4 = vld [vmem:[#allocation24_spill] sm:$0xff] }
 0x728   : > { %v7258_v8 = vsel %vm391_vm2, %v7207_v42, 0.0  ;;  %v7147_v60 = vsel %vm391_vm2, %v7095_v2, 0.0  ;;  %v7208_v59 = vmul.f32 %v7095_v2, %v12915_v5  ;;  %v9071_v17 = vpop.f32.mrb[20].mxu1  ;;  %v7262_v1 = vsel %vm391_vm2, %v7209_v6, 0.0 }
 0x729   : > { %v7148_v56 = vadd.f32 %v7147_v60, %v7146_v23  ;;  %v12932_v58 = vadd.f32 %v9071_v17, %v12775_v43  ;;  %v6939_v39 = vpop.f32.mrb[21].mxu1  ;;  %v7259_v7 = vadd.f32 %v7258_v8, %v7257_v63  ;;  %v7264_v29 = vsel %vm391_vm2, %v7210_v9, 0.0 }
 0x72a   : > { %v7260_v40 = vsel %vm391_vm2, %v7208_v59, 0.0  ;;  %v12937_v49 = vadd.f32 %v12775_v43, %v6939_v39  ;;  %v9072_v35 = vpop.f32.mrb[22].mxu1 }
 0x72b   : > { %v7150_v51 = vadd.f32 %v7149_v52, %v7148_v56  ;;  %v12941_v47 = vadd.f32 %v9072_v35, %v12775_v43  ;;  %v6942_v57 = vpop.f32.mrb[23].mxu1  ;;  %v7261_v18 = vadd.f32 %v7260_v40, %v7259_v7  ;;  %v7100_v19 = vmul.f32 %v12932_v58, %v13849_v37 }
 0x72c   : > { %v7098_v11 = vmul.f32 %v12937_v49, %v13848_v31  ;;  %v12947_v41 = vadd.f32 %v12775_v43, %v6942_v57  ;;  %v13853_v31 = vld [vmem:[#allocation29_spill] sm:$0xff] }
 0x72d   : > { %v7152_v28 = vadd.f32 %v7151_v15, %v7150_v51  ;;  %v7263_v0 = vadd.f32 %v7262_v1, %v7261_v18  ;;  %v7101_v14 = vmul.f32 %v12941_v47, %v13851_v4  ;;  %v7213_v22 = vmul.f32 %v7100_v19, %v12932_v58  ;;  %v13852_v51 = vld [vmem:[#allocation25_spill] sm:$0xff] }
 0x72e   : > { %v7153_v3 = vsel %vm391_vm2, %v7098_v11, 0.0  ;;  %v7211_v16 = vmul.f32 %v7098_v11, %v12937_v49  ;;  %v7099_v34 = vmul.f32 %v12947_v41, %v13850_v26  ;;  %v7157_v60 = vsel %vm391_vm2, %v7100_v19, 0.0 }
 0x72f   : > { %v7154_v61 = vadd.f32 %v7153_v3, %v7152_v28  ;;  %v7265_v42 = vadd.f32 %v7264_v29, %v7263_v0  ;;  %v7214_v39 = vmul.f32 %v7101_v14, %v12941_v47  ;;  %v7159_v35 = vsel %vm391_vm2, %v7101_v14, 0.0  ;;  %v13854_v0 = vld [vmem:[#allocation26_spill] sm:$0xff] }
 0x730   : > { %v7266_v53 = vsel %vm391_vm2, %v7211_v16, 0.0  ;;  %v7155_v2 = vsel %vm391_vm2, %v7099_v34, 0.0  ;;  %v7212_v20 = vmul.f32 %v7099_v34, %v12947_v41  ;;  %v9075_v23 = vpop.f32.mrb[24].mxu1  ;;  %v7270_v18 = vsel %vm391_vm2, %v7213_v22, 0.0  ;;  %v13855_v34 = vld [vmem:[#allocation30_spill] sm:$0xff] }
 0x731   : > { %v7156_v25 = vadd.f32 %v7155_v2, %v7154_v61  ;;  %v12964_v63 = vadd.f32 %v9075_v23, %v12775_v43  ;;  %v6955_v8 = vpop.f32.mrb[25].mxu1  ;;  %v7267_v59 = vadd.f32 %v7266_v53, %v7265_v42  ;;  %v7272_v16 = vsel %vm391_vm2, %v7214_v39, 0.0 }
 0x732   : > { %v7268_v17 = vsel %vm391_vm2, %v7212_v20, 0.0  ;;  %v12969_v6 = vadd.f32 %v12775_v43, %v6955_v8  ;;  %v9076_v56 = vpop.f32.mrb[26].mxu1 }
 0x733   : > { %v7158_v52 = vadd.f32 %v7157_v60, %v7156_v25  ;;  %v12973_v7 = vadd.f32 %v9076_v56, %v12775_v43  ;;  %v6958_v40 = vpop.f32.mrb[27].mxu1  ;;  %v7269_v9 = vadd.f32 %v7268_v17, %v7267_v59  ;;  %v7104_v11 = vmul.f32 %v12964_v63, %v13853_v31 }
 0x734   : > { %v7102_v57 = vmul.f32 %v12969_v6, %v13852_v51  ;;  %v12979_v15 = vadd.f32 %v12775_v43, %v6958_v40  ;;  %v13856_v51 = vld [vmem:[#allocation31_spill] sm:$0xff] }
 0x735   : > { %v7160_v1 = vadd.f32 %v7159_v35, %v7158_v52  ;;  %v7271_v37 = vadd.f32 %v7270_v18, %v7269_v9  ;;  %v7105_v29 = vmul.f32 %v12973_v7, %v13855_v34  ;;  %v7217_v2 = vmul.f32 %v7104_v11, %v12964_v63 }
 0x736   : > { %v7161_v19 = vsel %vm391_vm2, %v7102_v57, 0.0  ;;  %v7215_v28 = vmul.f32 %v7102_v57, %v12969_v6  ;;  %v7103_v3 = vmul.f32 %v12979_v15, %v13854_v0  ;;  %v7165_v25 = vsel %vm391_vm2, %v7104_v11, 0.0  ;;  %v13857_v11 = vld [vmem:[#allocation33_spill] sm:$0xff] }
 0x737   : > { %v7162_v26 = vadd.f32 %v7161_v19, %v7160_v1  ;;  %v7273_v61 = vadd.f32 %v7272_v16, %v7271_v37  ;;  %v7218_v56 = vmul.f32 %v7105_v29, %v12973_v7  ;;  %v7167_v35 = vsel %vm391_vm2, %v7105_v29, 0.0  ;;  %v13859_v29 = vld [vmem:[#allocation34_spill] sm:$0xff] }
 0x738   : > { %v7274_v4 = vsel %vm391_vm2, %v7215_v28, 0.0  ;;  %v7163_v14 = vsel %vm391_vm2, %v7103_v3, 0.0  ;;  %v7216_v42 = vmul.f32 %v7103_v3, %v12979_v15  ;;  %v9079_v53 = vpop.f32.mrb[28].mxu1  ;;  %v7278_v31 = vsel %vm391_vm2, %v7217_v2, 0.0  ;;  %v13858_v3 = vld [vmem:[#allocation32_spill] sm:$0xff] }
 0x739   : > { %v7164_v20 = vadd.f32 %v7163_v14, %v7162_v26  ;;  %v12996_v23 = vadd.f32 %v9079_v53, %v12775_v43  ;;  %v6971_v22 = vpop.f32.mrb[29].mxu1  ;;  %v7275_v8 = vadd.f32 %v7274_v4, %v7273_v61  ;;  %v7280_v26 = vsel %vm391_vm2, %v7218_v56, 0.0 }
 0x73a   : > { %v7276_v60 = vsel %vm391_vm2, %v7216_v42, 0.0  ;;  %v13001_v59 = vadd.f32 %v12775_v43, %v6971_v22  ;;  %v9080_v17 = vpop.f32.mrb[30].mxu1 }
 0x73b   : > { %v7166_v39 = vadd.f32 %v7165_v25, %v7164_v20  ;;  %v13005_v52 = vadd.f32 %v9080_v17, %v12775_v43  ;;  %v6974_v40 = vpop.f32.mrb[31].mxu1  ;;  %v7277_v9 = vadd.f32 %v7276_v60, %v7275_v8  ;;  %v7108_v1 = vmul.f32 %v12996_v23, %v13857_v11 }
 0x73c   : > { %v7106_v57 = vmul.f32 %v13001_v59, %v13856_v51  ;;  %v13011_v18 = vadd.f32 %v12775_v43, %v6974_v40 }
 0x73d   : > { %v7168_v37 = vadd.f32 %v7167_v35, %v7166_v39  ;;  %v7279_v19 = vadd.f32 %v7278_v31, %v7277_v9  ;;  %v7109_v61 = vmul.f32 %v13005_v52, %v13859_v29  ;;  %v7221_v20 = vmul.f32 %v7108_v1, %v12996_v23 }
 0x73e   : > { %v7169_v28 = vsel %vm391_vm2, %v7106_v57, 0.0  ;;  %v7219_v0 = vmul.f32 %v7106_v57, %v13001_v59  ;;  %v7107_v16 = vmul.f32 %v13011_v18, %v13858_v3  ;;  %v7173_v60 = vsel %vm391_vm2, %v7108_v1, 0.0 }
 0x73f   : > { %v7170_v34 = vadd.f32 %v7169_v28, %v7168_v37  ;;  %v7281_v4 = vadd.f32 %v7280_v26, %v7279_v19  ;;  %v7222_v35 = vmul.f32 %v7109_v61, %v13005_v52  ;;  %v7175_v31 = vsel %vm391_vm2, %v7109_v61, 0.0  ;;  %v13860_v37 = vld [vmem:[#allocation35_spill] sm:$0xff] }
 0x740   : > { %v7282_v14 = vsel %vm391_vm2, %v7219_v0, 0.0  ;;  %v7171_v42 = vsel %vm391_vm2, %v7107_v16, 0.0  ;;  %v7220_v53 = vmul.f32 %v7107_v16, %v13011_v18  ;;  %v9083_v2 = vpop.f32.mrb[32].mxu1  ;;  %v7286_v28 = vsel %vm391_vm2, %v7221_v20, 0.0  ;;  %v13861_v0 = vld [vmem:[#allocation37_spill] sm:$0xff] }
 0x741   : > { %v7172_v22 = vadd.f32 %v7171_v42, %v7170_v34  ;;  %v13028_v25 = vadd.f32 %v9083_v2, %v12775_v43  ;;  %v6987_v8 = vpop.f32.mrb[33].mxu1  ;;  %v7283_v17 = vadd.f32 %v7282_v14, %v7281_v4  ;;  %v13862_v4 = vld [vmem:[#allocation36_spill] sm:$0xff]  ;;  %v7288_v14 = vsel %vm391_vm2, %v7222_v35, 0.0 }
 0x742   : > { %v7284_v56 = vsel %vm391_vm2, %v7220_v53, 0.0  ;;  %v13033_v39 = vadd.f32 %v12775_v43, %v6987_v8  ;;  %v9084_v40 = vpop.f32.mrb[34].mxu1  ;;  %v13863_v53 = vld [vmem:[#allocation38_spill] sm:$0xff] }
 0x743   : > { %v7174_v9 = vadd.f32 %v7173_v60, %v7172_v22  ;;  %v13037_v51 = vadd.f32 %v9084_v40, %v12775_v43  ;;  %v6990_v57 = vpop.f32.mrb[35].mxu1  ;;  %v7285_v11 = vadd.f32 %v7284_v56, %v7283_v17  ;;  %v7112_v3 = vmul.f32 %v13028_v25, %v13861_v0 }
 0x744   : > { %v7110_v1 = vmul.f32 %v13033_v39, %v13860_v37  ;;  %v13043_v19 = vadd.f32 %v12775_v43, %v6990_v57 }
 0x745   : > { %v7176_v16 = vadd.f32 %v7175_v31, %v7174_v9  ;;  %v7287_v26 = vadd.f32 %v7286_v28, %v7285_v11  ;;  %v7113_v43 = vmul.f32 %v13037_v51, %v13863_v53  ;;  %v7225_v60 = vmul.f32 %v7112_v3, %v13028_v25 }
 0x746   : > { %v7177_v34 = vsel %vm391_vm2, %v7110_v1, 0.0  ;;  %v7223_v29 = vmul.f32 %v7110_v1, %v13033_v39  ;;  %v7111_v61 = vmul.f32 %v13043_v19, %v13862_v4  ;;  %v7181_v56 = vsel %vm391_vm2, %v7112_v3, 0.0 }
 0x747   : > { %v7178_v42 = vadd.f32 %v7177_v34, %v7176_v16  ;;  %v7289_v2 = vadd.f32 %v7288_v14, %v7287_v26  ;;  %v7226_v35 = vmul.f32 %v7113_v43, %v13037_v51  ;;  %v7183_v31 = vsel %vm391_vm2, %v7113_v43, 0.0 }
 0x748   : > { %v7290_v20 = vsel %vm391_vm2, %v7223_v29, 0.0  ;;  %v7179_v22 = vsel %vm391_vm2, %v7111_v61, 0.0  ;;  %v7224_v8 = vmul.f32 %v7111_v61, %v13043_v19  ;;  %v7294_v37 = vsel %vm391_vm2, %v7225_v60, 0.0 }
 0x749   : > { %v7180_v17 = vadd.f32 %v7179_v22, %v7178_v42  ;;  %v7291_v40 = vadd.f32 %v7290_v20, %v7289_v2  ;;  %v7296_v0 = vsel %vm391_vm2, %v7226_v35, 0.0 }
 0x74a   : > { %v7292_v9 = vsel %vm391_vm2, %v7224_v8, 0.0 }
 0x74b   : > { %v7182_v57 = vadd.f32 %v7181_v56, %v7180_v17  ;;  %v7293_v11 = vadd.f32 %v7292_v9, %v7291_v40 }
 0x74d   : > { %v7184_v1 = vadd.f32 %v7183_v31, %v7182_v57  ;;  %v7295_v28 = vadd.f32 %v7294_v37, %v7293_v11 }
 0x74f   : > { %v7185_v16 = vrot.slane %v7184_v1, 4  ;;  %v7297_v26 = vadd.f32 %v7296_v0, %v7295_v28 }
 0x751   : > { %v7186_v34 = vadd.f32 %v7185_v16, %v7184_v1  ;;  %v7298_v29 = vrot.slane %v7297_v26, 4 }
 0x753   : > { %v7187_v3 = vrot.slane %v7186_v34, 2  ;;  %v7299_v4 = vadd.f32 %v7298_v29, %v7297_v26 }
 0x755   : > { %v7188_v61 = vadd.f32 %v7187_v3, %v7186_v34  ;;  %v7300_v14 = vrot.slane %v7299_v4, 2 }
 0x757   : > { %v7189_v42 = vrot.slane %v7188_v61, 1  ;;  %v7301_v53 = vadd.f32 %v7300_v14, %v7299_v4 }
 0x759   : > { %v7190_v2 = vadd.f32 %v7189_v42, %v7188_v61  ;;  %v7302_v20 = vrot.slane %v7301_v53, 1 }
 0x75b   : > { %v13065_v43 = vmul.f32 0.00390625, %v7190_v2  ;;  %v7303_v22 = vadd.f32 %v7302_v20, %v7301_v53 }
 0x75d   : > { %v7306_v8 = vmul.f32 %v13065_v43, %v13065_v43  ;;  %v7305_v60 = vmul.f32 0.00390625, %v7303_v22  ;;  %v7325_v56 = vsub.f32 %v12905_v12, %v13065_v43  ;;  %v7326_v9 = vsub.f32 %v12915_v5, %v13065_v43 }
 0x75e   : > { %v7327_v35 = vsub.f32 %v12900_v13, %v13065_v43  ;;  %v7328_v57 = vsub.f32 %v12909_v48, %v13065_v43  ;;  %v7329_v31 = vsub.f32 %v12937_v49, %v13065_v43  ;;  %v7330_v11 = vsub.f32 %v12947_v41, %v13065_v43 }
 0x75f   : > { %v7307_v17 = vsub.f32 %v7305_v60, %v7306_v8  ;;  %v7331_v37 = vsub.f32 %v12932_v58, %v13065_v43  ;;  %v7332_v12 = vsub.f32 %v12941_v47, %v13065_v43  ;;  %v7333_v5 = vsub.f32 %v12969_v6, %v13065_v43 }
 0x760   : > { %v7334_v13 = vsub.f32 %v12979_v15, %v13065_v43  ;;  %v7335_v48 = vsub.f32 %v12964_v63, %v13065_v43  ;;  %v7336_v49 = vsub.f32 %v12973_v7, %v13065_v43  ;;  %v7337_v41 = vsub.f32 %v13001_v59, %v13065_v43 }
 0x761   : > { %v7308_v40 = vmax.f32 %v7307_v17, 0.0  ;;  %v7338_v58 = vsub.f32 %v13011_v18, %v13065_v43  ;;  %v7339_v47 = vsub.f32 %v12996_v23, %v13065_v43  ;;  %v7340_v6 = vsub.f32 %v13005_v52, %v13065_v43  ;;  %v8019_v17 = vld [vmem:[%s13324_s3 + $0x4] ss:$0 sm:$0xff] }
 0x762   : > { %v7341_v15 = vsub.f32 %v13033_v39, %v13065_v43  ;;  %v7342_v63 = vsub.f32 %v13043_v19, %v13065_v43  ;;  %v7343_v7 = vsub.f32 %v13028_v25, %v13065_v43  ;;  %v7344_v59 = vsub.f32 %v13037_v51, %v13065_v43 }
 0x763   : > { %v7345_v1 = vadd.f32 1e-05, %v7308_v40  ;;  %v7309_v23 = vsub.f32 %v12781_v44, %v13065_v43  ;;  %v7310_v52 = vsub.f32 %v12791_v54, %v13065_v43  ;;  %v7311_v18 = vsub.f32 %v12778_v45, %v13065_v43 }
 0x764   : > { %v7312_v39 = vsub.f32 %v12786_v10, %v13065_v43  ;;  %v7313_v25 = vsub.f32 %v12810_v33, %v13065_v43  ;;  %v7314_v51 = vsub.f32 %v12822_v21, %v13065_v43  ;;  %v7315_v19 = vsub.f32 %v12804_v24, %v13065_v43 }
 0x765   : > { %9736 = vrsqrt.f32 %v7345_v1  ;;  %v7316_v44 = vsub.f32 %v12814_v55, %v13065_v43  ;;  %v7317_v54 = vsub.f32 %v12840_v50, %v13065_v43  ;;  %v7318_v45 = vsub.f32 %v12851_v46, %v13065_v43 }
 0x766   : > { %v7319_v10 = vsub.f32 %v12836_v30, %v13065_v43  ;;  %v7320_v33 = vsub.f32 %v12845_v32, %v13065_v43  ;;  %v7321_v21 = vsub.f32 %v12873_v27, %v13065_v43  ;;  %v7322_v24 = vsub.f32 %v12883_v62, %v13065_v43 }
 0x767   : > { %v7323_v55 = vsub.f32 %v12868_v36, %v13065_v43  ;;  %v7324_v50 = vsub.f32 %v12877_v38, %v13065_v43 }
 0x76f   : > { %v9737_v28 = vpop.eup %9736 }
 0x770   : > { %v7347_v46 = vmul.f32 %v9737_v28, %v7309_v23  ;;  %v7348_v0 = vmul.f32 %v9737_v28, %v7310_v52  ;;  %v7349_v16 = vmul.f32 %v9737_v28, %v7311_v18  ;;  %v7350_v30 = vmul.f32 %v9737_v28, %v7312_v39 }
 0x771   : > { %v7351_v26 = vmul.f32 %v9737_v28, %v7313_v25  ;;  %v7352_v34 = vmul.f32 %v9737_v28, %v7314_v51  ;;  %v7353_v32 = vmul.f32 %v9737_v28, %v7315_v19  ;;  %v7354_v29 = vmul.f32 %v9737_v28, %v7316_v44 }
 0x772   : > { %v7355_v3 = vmul.f32 %v9737_v28, %v7317_v54  ;;  %v7356_v4 = vmul.f32 %v9737_v28, %v7318_v45  ;;  %v7357_v27 = vmul.f32 %v9737_v28, %v7319_v10  ;;  %v7358_v61 = vmul.f32 %v9737_v28, %v7320_v33 }
 0x773   : > { %v7359_v14 = vmul.f32 %v9737_v28, %v7321_v21  ;;  %v7360_v62 = vmul.f32 %v9737_v28, %v7322_v24  ;;  %v7361_v42 = vmul.f32 %v9737_v28, %v7323_v55  ;;  %v7362_v53 = vmul.f32 %v9737_v28, %v7324_v50  ;;  %v8020_v24 = vld [vmem:[%s13324_s3 + $0x5] ss:$0 sm:$0xff] }
 0x774   : > { %v7363_v36 = vmul.f32 %v9737_v28, %v7325_v56  ;;  %v7364_v2 = vmul.f32 %v9737_v28, %v7326_v9  ;;  %v7365_v20 = vmul.f32 %v9737_v28, %v7327_v35  ;;  %v7366_v38 = vmul.f32 %v9737_v28, %v7328_v57 }
 0x775   : > { %v7367_v43 = vmul.f32 %v9737_v28, %v7329_v31  ;;  %v7368_v22 = vmul.f32 %v9737_v28, %v7330_v11  ;;  %v7369_v8 = vmul.f32 %v9737_v28, %v7331_v37  ;;  %v7370_v60 = vmul.f32 %v9737_v28, %v7332_v12 }
 0x776   : > { %v7371_v40 = vmul.f32 %v9737_v28, %v7333_v5  ;;  %v7372_v1 = vmul.f32 %v9737_v28, %v7334_v13  ;;  %v7373_v23 = vmul.f32 %v9737_v28, %v7335_v48  ;;  %v7374_v52 = vmul.f32 %v9737_v28, %v7336_v49 }
 0x777   : > { %v7375_v18 = vmul.f32 %v9737_v28, %v7337_v41  ;;  %v7376_v39 = vmul.f32 %v9737_v28, %v7338_v58  ;;  %v7377_v25 = vmul.f32 %v9737_v28, %v7339_v47  ;;  %v7378_v51 = vmul.f32 %v9737_v28, %v7340_v6 }
 0x778   : > { %v7379_v56 = vmul.f32 %v9737_v28, %v7341_v15  ;;  %v7380_v9 = vmul.f32 %v9737_v28, %v7342_v63  ;;  %v7381_v35 = vmul.f32 %v9737_v28, %v7343_v7  ;;  %v7382_v57 = vmul.f32 %v9737_v28, %v7344_v59 }
 0x779   : > { %v7387_v31 = vmul.f32 %v8019_v17, %v7347_v46  ;;  %v7388_v11 = vmul.f32 %v8019_v17, %v7348_v0  ;;  %v7389_v37 = vmul.f32 %v8019_v17, %v7349_v16  ;;  %v7390_v12 = vmul.f32 %v8019_v17, %v7350_v30 }
 0x77a   : > { %v7391_v19 = vmul.f32 %v8019_v17, %v7351_v26  ;;  %v7392_v44 = vmul.f32 %v8019_v17, %v7352_v34  ;;  %v7393_v54 = vmul.f32 %v8019_v17, %v7353_v32  ;;  %v7394_v45 = vmul.f32 %v8019_v17, %v7354_v29 }
 0x77b   : > { %v7395_v5 = vmul.f32 %v8019_v17, %v7355_v3  ;;  %v7396_v13 = vmul.f32 %v8019_v17, %v7356_v4  ;;  %v7397_v48 = vmul.f32 %v8019_v17, %v7357_v27  ;;  %v7398_v49 = vmul.f32 %v8019_v17, %v7358_v61 }
 0x77c   : > { %v7399_v41 = vmul.f32 %v8019_v17, %v7359_v14  ;;  %v7400_v58 = vmul.f32 %v8019_v17, %v7360_v62  ;;  %v7401_v47 = vmul.f32 %v8019_v17, %v7361_v42  ;;  %v7402_v6 = vmul.f32 %v8019_v17, %v7362_v53 }
 0x77d   : > { %v7403_v15 = vmul.f32 %v8019_v17, %v7363_v36  ;;  %v7404_v63 = vmul.f32 %v8019_v17, %v7364_v2  ;;  %v7405_v7 = vmul.f32 %v8019_v17, %v7365_v20  ;;  %v7406_v59 = vmul.f32 %v8019_v17, %v7366_v38 }
 0x77e   : > { %v7407_v10 = vmul.f32 %v8019_v17, %v7367_v43  ;;  %v7408_v33 = vmul.f32 %v8019_v17, %v7368_v22  ;;  %v7409_v28 = vmul.f32 %v8019_v17, %v7369_v8  ;;  %v7410_v21 = vmul.f32 %v8019_v17, %v7370_v60 }
 0x77f   : > { %v7411_v55 = vmul.f32 %v8019_v17, %v7371_v40  ;;  %v7412_v50 = vmul.f32 %v8019_v17, %v7372_v1  ;;  %v7413_v46 = vmul.f32 %v8019_v17, %v7373_v23  ;;  %v7414_v0 = vmul.f32 %v8019_v17, %v7374_v52 }
 0x780   : > { %v7415_v16 = vmul.f32 %v8019_v17, %v7375_v18  ;;  %v7416_v30 = vmul.f32 %v8019_v17, %v7376_v39  ;;  %v7417_v26 = vmul.f32 %v8019_v17, %v7377_v25  ;;  %v7418_v34 = vmul.f32 %v8019_v17, %v7378_v51 }
 0x781   : > { %v7419_v32 = vmul.f32 %v8019_v17, %v7379_v56  ;;  %v7420_v29 = vmul.f32 %v8019_v17, %v7380_v9  ;;  %v7421_v3 = vmul.f32 %v8019_v17, %v7381_v35  ;;  %v7422_v4 = vmul.f32 %v8019_v17, %v7382_v57 }
 0x782   : > { %v7427_v27 = vadd.f32 %v8020_v24, %v7387_v31  ;;  %v7428_v61 = vadd.f32 %v8020_v24, %v7388_v11  ;;  %v7429_v14 = vadd.f32 %v8020_v24, %v7389_v37  ;;  %v7430_v62 = vadd.f32 %v8020_v24, %v7390_v12 }
 0x783   : > { %v7431_v42 = vadd.f32 %v8020_v24, %v7391_v19  ;;  %v7432_v53 = vadd.f32 %v8020_v24, %v7392_v44  ;;  %v7433_v36 = vadd.f32 %v8020_v24, %v7393_v54  ;;  %v7434_v2 = vadd.f32 %v8020_v24, %v7394_v45 }
 0x784   : > { %v7435_v20 = vadd.f32 %v8020_v24, %v7395_v5  ;;  %v7436_v38 = vadd.f32 %v8020_v24, %v7396_v13  ;;  %v7437_v43 = vadd.f32 %v8020_v24, %v7397_v48  ;;  %v7438_v22 = vadd.f32 %v8020_v24, %v7398_v49  ;;  %v9738_v13 = vld [vmem:[%s9836_s27 + $0x48] sm:$0xff]  ;;  %v9739_v49 = vld [vmem:[%s9836_s27 + $0x50] sm:$0xff] }
 0x785   : > { %v7439_v8 = vadd.f32 %v8020_v24, %v7399_v41  ;;  %v7440_v60 = vadd.f32 %v8020_v24, %v7400_v58  ;;  %v7441_v40 = vadd.f32 %v8020_v24, %v7401_v47  ;;  %v7442_v1 = vadd.f32 %v8020_v24, %v7402_v6  ;;  %v9740_v58 = vld [vmem:[%s9836_s27 + $0x58] sm:$0xff]  ;;  %v9741_v6 = vld [vmem:[%s9836_s27 + $0x60] sm:$0xff] }
 0x786   : > { %v7443_v23 = vadd.f32 %v8020_v24, %v7403_v15  ;;  %v13148_v17 = vadd.f32 %v8020_v24, %v7404_v63  ;;  %v13150_v52 = vadd.f32 %v8020_v24, %v7405_v7  ;;  %v13152_v18 = vadd.f32 %v8020_v24, %v7406_v59  ;;  %v9742_v63 = vld [vmem:[%s9836_s27 + $0x68] sm:$0xff]  ;;  %v9743_v59 = vld [vmem:[%s9836_s27 + $0x70] sm:$0xff] }
 0x787   : > { %v13154_v39 = vadd.f32 %v8020_v24, %v7407_v10  ;;  %v13156_v25 = vadd.f32 %v8020_v24, %v7408_v33  ;;  %v13158_v51 = vadd.f32 %v8020_v24, %v7409_v28  ;;  %v13160_v56 = vadd.f32 %v8020_v24, %v7410_v21  ;;  %v9744_v33 = vld [vmem:[%s9836_s27 + $0x78] sm:$0xff]  ;;  %v9745_v21 = vld [vmem:[%s9836_s27 + $0x80] sm:$0xff] }
 0x788   : > { %v13162_v9 = vadd.f32 %v8020_v24, %v7411_v55  ;;  %v13164_v35 = vadd.f32 %v8020_v24, %v7412_v50  ;;  %v13166_v57 = vadd.f32 %v8020_v24, %v7413_v46  ;;  %v13168_v31 = vadd.f32 %v8020_v24, %v7414_v0  ;;  %v9746_v55 = vld [vmem:[%s9836_s27 + $0x88] sm:$0xff]  ;;  %v9747_v46 = vld [vmem:[%s9836_s27 + $0x90] sm:$0xff] }
 0x789   : > { %v13170_v11 = vadd.f32 %v8020_v24, %v7415_v16  ;;  %v13172_v37 = vadd.f32 %v8020_v24, %v7416_v30  ;;  %v13174_v12 = vadd.f32 %v8020_v24, %v7417_v26  ;;  %v13176_v19 = vadd.f32 %v8020_v24, %v7418_v34  ;;  %v9748_v16 = vld [vmem:[%s9836_s27 + $0x98] sm:$0xff]  ;;  %v9749_v26 = vld [vmem:[%s9836_s27 + $0xa0] sm:$0xff] }
 0x78a   : > { %v13183_v44 = vadd.f32 %v8020_v24, %v7419_v32  ;;  %v13185_v54 = vadd.f32 %v8020_v24, %v7420_v29  ;;  %v13187_v45 = vadd.f32 %v8020_v24, %v7421_v3  ;;  %v13189_v5 = vadd.f32 %v8020_v24, %v7422_v4  ;;  %v9750_v32 = vld [vmem:[%s9836_s27 + $0xa8] sm:$0xff]  ;;  %v9751_v3 = vld [vmem:[%s9836_s27 + $0xb0] sm:$0xff] }
 0x78b   : > { %v7463_v48 = vadd.f32 %v9738_v13, %v7427_v27  ;;  %v7464_v41 = vadd.f32 %v9739_v49, %v7428_v61  ;;  %v7465_v47 = vadd.f32 %v9740_v58, %v7429_v14  ;;  %v7466_v15 = vadd.f32 %v9741_v6, %v7430_v62  ;;  %v9752_v27 = vld [vmem:[%s9836_s27 + $0xb8] sm:$0xff]  ;;  %v9753_v14 = vld [vmem:[%s9836_s27 + $0xc0] sm:$0xff] }
 0x78c   : > { %v7467_v7 = vadd.f32 %v9742_v63, %v7431_v42  ;;  %v7468_v10 = vadd.f32 %v9743_v59, %v7432_v53  ;;  %v7469_v28 = vadd.f32 %v9744_v33, %v7433_v36  ;;  %v7470_v24 = vadd.f32 %v9745_v21, %v7434_v2  ;;  %v9754_v42 = vld [vmem:[%s9836_s27 + $0xc8] sm:$0xff]  ;;  %v9755_v36 = vld [vmem:[%s9836_s27 + $0xd0] sm:$0xff]  ;;  %v9765_v49 = vld [vmem:[%s9836_s27 + $0x120] sm:$0xff] }
 0x78d   : > { %v7471_v50 = vadd.f32 %v9746_v55, %v7435_v20  ;;  %v7472_v0 = vadd.f32 %v9747_v46, %v7436_v38  ;;  %v7473_v30 = vadd.f32 %v9748_v16, %v7437_v43  ;;  %v7474_v34 = vadd.f32 %v9749_v26, %v7438_v22  ;;  %7499 = vst.msk [vmem:[%s13181_s11] sm:$0xff] %vm391_vm2, %v7463_v48  ;;  %v9756_v20 = vld [vmem:[%s9836_s27 + $0xd8] sm:$0xff]  ;;  %v9757_v43 = vld [vmem:[%s9836_s27 + $0xe0] sm:$0xff] }
 0x78e   : > { %7500 = vst.msk [vmem:[%s13181_s11 + $0x8] sm:$0xff] %vm391_vm2, %v7464_v41  ;;  %7501 = vst.msk [vmem:[%s13181_s11 + $0x10] sm:$0xff] %vm391_vm2, %v7465_v47  ;;  %v7475_v29 = vadd.f32 %v9750_v32, %v7439_v8  ;;  %v7476_v4 = vadd.f32 %v9751_v3, %v7440_v60  ;;  %v7477_v61 = vadd.f32 %v9752_v27, %v7441_v40  ;;  %v9758_v8 = vld [vmem:[%s9836_s27 + $0xe8] sm:$0xff]  ;;  %v9759_v40 = vld [vmem:[%s9836_s27 + $0xf0] sm:$0xff] }
 0x78f   : > { %7502 = vst.msk [vmem:[%s13181_s11 + $0x18] sm:$0xff] %vm391_vm2, %v7466_v15  ;;  %v7478_v62 = vadd.f32 %v9753_v14, %v7442_v1  ;;  %7503 = vst.msk [vmem:[%s13181_s11 + $0x20] sm:$0xff] %vm391_vm2, %v7467_v7  ;;  %v7479_v53 = vadd.f32 %v9754_v42, %v7443_v23  ;;  %v7480_v2 = vadd.f32 %v9755_v36, %v13148_v17  ;;  %v9760_v23 = vld [vmem:[%s9836_s27 + $0xf8] sm:$0xff]  ;;  %v9769_v6 = vld [vmem:[%s9836_s27 + $0x140] sm:$0xff] }
 0x790   : > { %7504 = vst.msk [vmem:[%s13181_s11 + $0x28] sm:$0xff] %vm391_vm2, %v7468_v10  ;;  %7505 = vst.msk [vmem:[%s13181_s11 + $0x30] sm:$0xff] %vm391_vm2, %v7469_v28  ;;  %v7481_v38 = vadd.f32 %v9756_v20, %v13150_v52  ;;  %v7482_v22 = vadd.f32 %v9757_v43, %v13152_v18  ;;  %v7483_v60 = vadd.f32 %v9758_v8, %v13154_v39  ;;  %v9761_v52 = vld [vmem:[%s9836_s27 + $0x100] sm:$0xff]  ;;  %v9762_v39 = vld [vmem:[%s9836_s27 + $0x108] sm:$0xff] }
 0x791   : > { %7506 = vst.msk [vmem:[%s13181_s11 + $0x38] sm:$0xff] %vm391_vm2, %v7470_v24  ;;  %7507 = vst.msk [vmem:[%s13181_s11 + $0x40] sm:$0xff] %vm391_vm2, %v7471_v50  ;;  %v7484_v1 = vadd.f32 %v9759_v40, %v13156_v25  ;;  %v7485_v17 = vadd.f32 %v9760_v23, %v13158_v51  ;;  %v7486_v18 = vadd.f32 %v9761_v52, %v13160_v56  ;;  %v9763_v51 = vld [vmem:[%s9836_s27 + $0x110] sm:$0xff]  ;;  %v9764_v56 = vld [vmem:[%s9836_s27 + $0x118] sm:$0xff] }
 0x792   : > { %7508 = vst.msk [vmem:[%s13181_s11 + $0x48] sm:$0xff] %vm391_vm2, %v7472_v0  ;;  %7509 = vst.msk [vmem:[%s13181_s11 + $0x50] sm:$0xff] %vm391_vm2, %v7473_v30  ;;  %v7487_v25 = vadd.f32 %v9762_v39, %v13162_v9  ;;  %v7488_v13 = vadd.f32 %v9763_v51, %v13164_v35  ;;  %v7489_v48 = vadd.f32 %v9764_v56, %v13166_v57  ;;  %v9766_v9 = vld [vmem:[%s9836_s27 + $0x128] sm:$0xff]  ;;  %v9767_v57 = vld [vmem:[%s9836_s27 + $0x130] sm:$0xff] }
 0x793   : > { %7510 = vst.msk [vmem:[%s13181_s11 + $0x58] sm:$0xff] %vm391_vm2, %v7474_v34  ;;  %7511 = vst.msk [vmem:[%s13181_s11 + $0x60] sm:$0xff] %vm391_vm2, %v7475_v29  ;;  %v7490_v41 = vadd.f32 %v9765_v49, %v13168_v31  ;;  %v7491_v35 = vadd.f32 %v9766_v9, %v13170_v11  ;;  %v7492_v58 = vadd.f32 %v9767_v57, %v13172_v37  ;;  %v9768_v31 = vld [vmem:[%s9836_s27 + $0x138] sm:$0xff]  ;;  %v9770_v11 = vld [vmem:[%s9836_s27 + $0x148] sm:$0xff] }
 0x794   : > { %7512 = vst.msk [vmem:[%s13181_s11 + $0x68] sm:$0xff] %vm391_vm2, %v7476_v4  ;;  %7513 = vst.msk [vmem:[%s13181_s11 + $0x70] sm:$0xff] %vm391_vm2, %v7477_v61  ;;  %v7493_v47 = vadd.f32 %v9768_v31, %v13174_v12  ;;  %v7494_v15 = vadd.f32 %v9769_v6, %v13176_v19  ;;  %v7495_v37 = vadd.f32 %v9770_v11, %v13183_v44  ;;  %v9771_v12 = vld [vmem:[%s9836_s27 + $0x150] sm:$0xff]  ;;  %v9772_v63 = vld [vmem:[%s9836_s27 + $0x158] sm:$0xff] }
 0x795   : > { %7514 = vst.msk [vmem:[%s13181_s11 + $0x78] sm:$0xff] %vm391_vm2, %v7478_v62  ;;  %7515 = vst.msk [vmem:[%s13181_s11 + $0x80] sm:$0xff] %vm391_vm2, %v7479_v53  ;;  %v7496_v19 = vadd.f32 %v9771_v12, %v13185_v54  ;;  %v7497_v7 = vadd.f32 %v9772_v63, %v13187_v45  ;;  %v9773_v59 = vld [vmem:[%s9836_s27 + $0x160] sm:$0xff] }
 0x796   : > { %7516 = vst.msk [vmem:[%s13181_s11 + $0x88] sm:$0xff] %vm391_vm2, %v7480_v2  ;;  %7517 = vst.msk [vmem:[%s13181_s11 + $0x90] sm:$0xff] %vm391_vm2, %v7481_v38  ;;  %v7498_v10 = vadd.f32 %v9773_v59, %v13189_v5 }
 0x797   : > { %7518 = vst.msk [vmem:[%s13181_s11 + $0x98] sm:$0xff] %vm391_vm2, %v7482_v22  ;;  %7519 = vst.msk [vmem:[%s13181_s11 + $0xa0] sm:$0xff] %vm391_vm2, %v7483_v60 }
 0x798   : > { %7520 = vst.msk [vmem:[%s13181_s11 + $0xa8] sm:$0xff] %vm391_vm2, %v7484_v1  ;;  %7521 = vst.msk [vmem:[%s13181_s11 + $0xb0] sm:$0xff] %vm391_vm2, %v7485_v17 }
 0x799   : > { %7522 = vst.msk [vmem:[%s13181_s11 + $0xb8] sm:$0xff] %vm391_vm2, %v7486_v18  ;;  %7523 = vst.msk [vmem:[%s13181_s11 + $0xc0] sm:$0xff] %vm391_vm2, %v7487_v25 }
 0x79a   : > { %7524 = vst.msk [vmem:[%s13181_s11 + $0xc8] sm:$0xff] %vm391_vm2, %v7488_v13  ;;  %7525 = vst.msk [vmem:[%s13181_s11 + $0xd0] sm:$0xff] %vm391_vm2, %v7489_v48 }
 0x79b   : > { %7526 = vst.msk [vmem:[%s13181_s11 + $0xd8] sm:$0xff] %vm391_vm2, %v7490_v41  ;;  %7527 = vst.msk [vmem:[%s13181_s11 + $0xe0] sm:$0xff] %vm391_vm2, %v7491_v35 }
 0x79c   : > { %7528 = vst.msk [vmem:[%s13181_s11 + $0xe8] sm:$0xff] %vm391_vm2, %v7492_v58  ;;  %7529 = vst.msk [vmem:[%s13181_s11 + $0xf0] sm:$0xff] %vm391_vm2, %v7493_v47 }
 0x79d   : > { %7530 = vst.msk [vmem:[%s13181_s11 + $0xf8] sm:$0xff] %vm391_vm2, %v7494_v15  ;;  %7531 = vst.msk [vmem:[%s13181_s11 + $0x100] sm:$0xff] %vm391_vm2, %v7495_v37 }
 0x79e   : > { %7532 = vst.msk [vmem:[%s13181_s11 + $0x108] sm:$0xff] %vm391_vm2, %v7496_v19  ;;  %7533 = vst.msk [vmem:[%s13181_s11 + $0x110] sm:$0xff] %vm391_vm2, %v7497_v7 }
 0x79f   : > { %7534 = vst.msk [vmem:[%s13181_s11 + $0x118] sm:$0xff] %vm391_vm2, %v7498_v10 }
 0x7a0 PF: > { %s15_s18 = sadd.s32 1, %s9780_s18  }
 0x7a1   : > { %p12_p4 = scmp.ge.s32.totalorder %s15_s18, 4  }
 0x7a3   :  { %14 = sbr.rel (!%p12_p4) target bundleno = 1 (0x1), region = 86 }

// kernel: tpu_custom_call.1
= control target key start
LH: loop header
LB: loop body
LE: loop exit
PB: predicated region body
PF: predicated region fallthrough
CT: control target
= control target key end

     0   :  { %s9813_s18 = smov 0   ;;  %s13321_s0 = inlined_call_operand.vmem [shape: f32[2,396,4], index: 0, kind: input, shape index: {}]   ;;  %s13322_s1 = inlined_call_operand.vmem [shape: bf16[9,4,4], index: 1, kind: input, shape index: {}]   ;;  %s13323_s2 = inlined_call_operand.vmem [shape: bf16[9,4,4], index: 2, kind: input, shape index: {}]   ;;  %s13324_s3 = inlined_call_operand.vmem [shape: f32[8,4], index: 3, kind: input, shape index: {}]   ;;  %s13325_s4 = inlined_call_operand.vmem [shape: f32[288,1], index: 4, kind: input, shape index: {}]   ;;  %s13326_s5 = inlined_call_operand.vmem [shape: f32[2,288,4], index: 5, kind: output, shape index: {}]  }
   0x1 LB: > { %s7590_s19 = sadd.s32 4294967295, %s9780_s18   ;;  %p7594_p0 = scmp.ge.s32.totalorder %s9780_s18, 1  ;;  %s9780_s18 = sphi %s9813_s18, %s15_s18  }
   0x2   : > { %p187_p1 = scmp.lt.s32.totalorder %s9780_s18, 3 }
   0x4   : > { %p188_p2 = pnand %p7594_p0, %p187_p1 }
   0x6   : > { %191 = sbr.rel (%p188_p2) target bundleno = 1952 (0x7a0), region = 40 }
   0xd   : > { %v7597_v0 = vld [vmem:[%s13322_s1 + $0x2] sm:$0x3]  ;;  %vm446_vm0 = vcmask 1041408   ;;  %p215_p3 = scmp.lt.s32.totalorder %s7590_s19, 1  ;;  %v331_v2 = vld [vmem:[%s13322_s1] sm:$0x3] }
   0xe   : > { %9661 = vmatprep.subr.msk.bf16.mxu0 %vm446_vm0, %v7597_v0  ;;  %v448_v1 = vsel %vm446_vm0, %v7597_v0, 0  ;;  %vm353_vm1 = vcmask 1044480   ;;  %vm391_vm2 = vcmask 31744   ;;  %v853_v26 = vsel %vm446_vm0, %v331_v2, 0  ;;  %v9874_v29 = vld [vmem:[%s13322_s1 + $0x4] sm:$0x3] }
   0xf   : > { %8402 = vmatpush3.bf16.msra.mxu0 %v448_v1  ;;  %s13865_s19 = smov (!%p215_p3, %s7590_s19), 1  ;;  %vm627_vm3 = vsmask.f32 5376  ;;  %vm1034_vm4 = vsmask.f32 4352  ;;  %vm1613_vm5 = vcmask 1043456  }
  0x10   : > { %9662 = vmatprep.subr.msk.bf16.mxu0 %vm446_vm0, %v331_v2  ;;  %s9679_s24 = smul.u32 400, %s13865_s19  ;;  %vm1923_vm6 = vsmask.f32 3328  ;;  %vm3835_vm7 = vcmask 27648   ;;  %vm2502_vm8 = vcmask 1042432   ;;  %vm6380_vm12 = vcmask 1046528  }
  0x11   : > { %vm2812_vm9 = vsmask.f32 2304  ;;  %vm5734_vm10 = vsmask.f32 7424  ;;  %vm6690_vm11 = vsmask.f32 6400 }
  0x12   : > { %s9836_s27 = scalar_lea.vmem %s13321_s0, %s9679_s24  ;;  %s9680_s9 = smul.u32 288, %s13865_s19 }
  0x13   : > { %v226_v3 = vld [vmem:[%s9836_s27 + $0x30] sm:$0xff]  ;;  %v227_v4 = vld [vmem:[%s9836_s27 + $0x38] sm:$0xff]  ;;  %v228_v5 = vld [vmem:[%s9836_s27 + $0x40] sm:$0xff] }
  0x14   : > { %v229_v6 = vld [vmem:[%s9836_s27 + $0x48] sm:$0xff]  ;;  %v9842_v7 = vpack.c.bf16 %v227_v4, %v226_v3  ;;  %v230_v8 = vld [vmem:[%s9836_s27 + $0x50] sm:$0xff]  ;;  %v231_v9 = vld [vmem:[%s9836_s27 + $0x58] sm:$0xff]  ;;  %s13181_s11 = scalar_lea.vmem %s13326_s5, %s9680_s9 }
  0x15   : > { %v9846_v10 = vpack.c.bf16 %v229_v6, %v228_v5  ;;  %v9848_v11 = vpack.c.bf16 %v231_v9, %v230_v8  ;;  %v232_v12 = vld [vmem:[%s9836_s27 + $0x60] sm:$0xff]  ;;  %v233_v13 = vld [vmem:[%s9836_s27 + $0x68] sm:$0xff]  ;;  %v234_v14 = vld [vmem:[%s9836_s27 + $0x70] sm:$0xff] }
  0x16   : > { %v354_v15 = vrot.slane %v9842_v7, 3  ;;  %v9854_v16 = vpack.c.bf16 %v233_v13, %v232_v12  ;;  %v235_v17 = vld [vmem:[%s9836_s27 + $0x78] sm:$0xff]  ;;  %v236_v18 = vld [vmem:[%s9836_s27 + $0x80] sm:$0xff]  ;;  %v237_v19 = vld [vmem:[%s9836_s27 + $0x88] sm:$0xff]  ;;  %v629_v8 = vshrl.u32 %v9842_v7, 16  ;;  %v632_v9 = vshll.u32 %v9842_v7, 16 }
  0x17   : > { %v355_v20 = vrot.slane %v9846_v10, 3  ;;  %v357_v21 = vrot.slane %v9848_v11, 3  ;;  %v9862_v23 = vpack.c.bf16 %v235_v17, %v234_v14  ;;  %v9867_v27 = vpack.c.bf16 %v237_v19, %v236_v18  ;;  %v238_v32 = vld [vmem:[%s9836_s27 + $0x90] sm:$0xff]  ;;  %v239_v33 = vld [vmem:[%s9836_s27 + $0x98] sm:$0xff]  ;;  %v240_v34 = vld [vmem:[%s9836_s27 + $0xa0] sm:$0xff] }
  0x18   : > { %v359_v22 = vrot.slane %v9854_v16, 3  ;;  %v241_v35 = vld [vmem:[%s9836_s27 + $0xa8] sm:$0xff]  ;;  %v9887_v37 = vpack.c.bf16 %v239_v33, %v238_v32  ;;  %v242_v42 = vld [vmem:[%s9836_s27 + $0xb0] sm:$0xff]  ;;  %v243_v43 = vld [vmem:[%s9836_s27 + $0xb8] sm:$0xff]  ;;  %v9944_v18 = vrot.slane %v629_v8, 3  ;;  %v9946_v19 = vrot.slane %v632_v9, 4 }
  0x19   : > { %v356_v24 = vsel %vm353_vm1, %v354_v15, %v355_v20  ;;  %v358_v25 = vsel %vm353_vm1, %v355_v20, %v357_v21  ;;  %v361_v30 = vrot.slane %v9862_v23, 3  ;;  %v363_v31 = vrot.slane %v9867_v27, 3  ;;  %v244_v44 = vld [vmem:[%s9836_s27 + $0xc0] sm:$0xff]  ;;  %v245_v45 = vld [vmem:[%s9836_s27 + $0xc8] sm:$0xff]  ;;  %v246_v52 = vld [vmem:[%s9836_s27 + $0xd0] sm:$0xff] }
  0x1a   : > { %8403 = vmatprep.mubr.msk.bf16.mxu0 %vm391_vm2, %v356_v24  ;;  %v360_v28 = vsel %vm353_vm1, %v357_v21, %v359_v22  ;;  %v9890_v39 = vpack.c.bf16 %v241_v35, %v240_v34  ;;  %v365_v40 = vrot.slane %v9887_v37, 3  ;;  %v9901_v47 = vpack.c.bf16 %v243_v43, %v242_v42  ;;  %v247_v53 = vld [vmem:[%s9836_s27 + $0xd8] sm:$0xff]  ;;  %v248_v54 = vld [vmem:[%s9836_s27 + $0xe0] sm:$0xff]  ;;  %v249_v55 = vld [vmem:[%s9836_s27 + $0xe8] sm:$0xff] }
  0x1b   : > { %8404 = vmatmul.mubr.msk.bf16.vlgmr.msra.gmra.mrb[0].mxu0 %vm391_vm2, %v358_v25  ;;  %v362_v36 = vsel %vm353_vm1, %v359_v22, %v361_v30  ;;  %v364_v38 = vsel %vm353_vm1, %v361_v30, %v363_v31  ;;  %v9904_v49 = vpack.c.bf16 %v245_v45, %v244_v44  ;;  %v9915_v57 = vpack.c.bf16 %v247_v53, %v246_v52  ;;  %v250_v62 = vld [vmem:[%s9836_s27 + $0xf0] sm:$0xff]  ;;  %v251_v63 = vld [vmem:[%s9836_s27 + $0xf8] sm:$0xff]  ;;  %v252_v0 = vld [vmem:[%s9836_s27 + $0x100] sm:$0xff] }
  0x1c   : > { %8440 = vmatpush3.bf16.msra.mxu0 %v853_v26  ;;  %8407 = vmatprep.mubr.msk.bf16.mxu0 %vm391_vm2, %v360_v28  ;;  %v367_v41 = vrot.slane %v9890_v39, 3  ;;  %v366_v46 = vsel %vm353_vm1, %v363_v31, %v365_v40  ;;  %v369_v50 = vrot.slane %v9901_v47, 3  ;;  %v9918_v59 = vpack.c.bf16 %v249_v55, %v248_v54  ;;  %v253_v1 = vld [vmem:[%s9836_s27 + $0x108] sm:$0xff]  ;;  %v254_v13 = vld [vmem:[%s9836_s27 + $0x110] sm:$0xff]  ;;  %v255_v14 = vld [vmem:[%s9836_s27 + $0x118] sm:$0xff] }
  0x1d   : > { %9663 = vmatprep.subr.msk.bf16.mxu0 %vm446_vm0, %v9874_v29  ;;  %v371_v51 = vrot.slane %v9904_v49, 3  ;;  %v373_v60 = vrot.slane %v9915_v57, 3  ;;  %v9929_v3 = vpack.c.bf16 %v251_v63, %v250_v62  ;;  %v9932_v5 = vpack.c.bf16 %v253_v1, %v252_v0  ;;  %v256_v15 = vld [vmem:[%s9836_s27 + $0x120] sm:$0xff]  ;;  %v257_v17 = vld [vmem:[%s9836_s27 + $0x128] sm:$0xff]  ;;  %v258_v28 = vld [vmem:[%s9836_s27 + $0x130] sm:$0xff] }
  0x1e   : > { %v368_v48 = vsel %vm353_vm1, %v365_v40, %v367_v41  ;;  %v370_v56 = vsel %vm353_vm1, %v367_v41, %v369_v50  ;;  %v375_v61 = vrot.slane %v9918_v59, 3  ;;  %v9949_v21 = vpack.c.bf16 %v255_v14, %v254_v13  ;;  %v259_v30 = vld [vmem:[%s9836_s27 + $0x138] sm:$0xff]  ;;  %v260_v31 = vld [vmem:[%s9836_s27 + $0x140] sm:$0xff]  ;;  %v261_v32 = vld [vmem:[%s9836_s27 + $0x148] sm:$0xff] }
  0x1f   : > { %v372_v58 = vsel %vm353_vm1, %v369_v50, %v371_v51  ;;  %v374_v2 = vsel %vm353_vm1, %v371_v51, %v373_v60  ;;  %13501 = vst [vmem:[#allocation3_spill] sm:$0xff] %v9929_v3  ;;  %13502 = vst [vmem:[#allocation4_spill] sm:$0xff] %v9932_v5  ;;  %v377_v6 = vrot.slane %v9929_v3, 3  ;;  %v379_v12 = vrot.slane %v9932_v5, 3  ;;  %v262_v41 = vld [vmem:[%s9836_s27 + $0x150] sm:$0xff]  ;;  %v263_v42 = vld [vmem:[%s9836_s27 + $0x158] sm:$0xff] }
  0x20   : > { %v376_v4 = vsel %vm353_vm1, %v373_v60, %v375_v61  ;;  %13503 = vst [vmem:[#allocation5_spill] sm:$0xff] %v9949_v21  ;;  %v9954_v24 = vpack.c.bf16 %v257_v17, %v256_v15  ;;  %v381_v25 = vrot.slane %v9949_v21, 3  ;;  %v9965_v34 = vpack.c.bf16 %v259_v30, %v258_v28 }
  0x21   : > { %v378_v20 = vsel %vm353_vm1, %v375_v61, %v377_v6  ;;  %v380_v22 = vsel %vm353_vm1, %v377_v6, %v379_v12  ;;  %v9977_v43 = vshrl.u32 %v9846_v10, 16  ;;  %v9980_v44 = vshll.u32 %v9846_v10, 16 }
  0x22   : > { %13504 = vst [vmem:[#allocation6_spill] sm:$0xff] %v9954_v24  ;;  %v383_v26 = vrot.slane %v9954_v24, 3  ;;  %v382_v33 = vsel %vm353_vm1, %v379_v12, %v381_v25  ;;  %13505 = vst [vmem:[#allocation7_spill] sm:$0xff] %v9965_v34  ;;  %v634_v51 = vrot.slane %v632_v9, 3  ;;  %v9992_v55 = vshrl.u32 %v9848_v11, 16 }
  0x23   : > { %8408 = vmatmul.mubr.msk.bf16.gmra.mrb[4].mxu0 %vm391_vm2, %v362_v36  ;;  %v9968_v36 = vpack.c.bf16 %v261_v32, %v260_v31  ;;  %13507 = vst [vmem:[#allocation9_spill] sm:$0xff] %v9977_v43  ;;  %13508 = vst [vmem:[#allocation10_spill] sm:$0xff] %v9980_v44  ;;  %v639_v52 = vrot.slane %v9977_v43, 2  ;;  %v642_v53 = vrot.slane %v9980_v44, 3  ;;  %v9998_v61 = vshrl.u32 %v9854_v16, 16 }
  0x24   : > { %8411 = vmatprep.mubr.msk.bf16.mxu0 %vm391_vm2, %v364_v38  ;;  %v384_v35 = vsel %vm353_vm1, %v381_v25, %v383_v26  ;;  %v385_v38 = vrot.slane %v9965_v34, 3  ;;  %v10001_v62 = vshll.u32 %v9854_v16, 16  ;;  %v648_v0 = vrot.slane %v9992_v55, 2  ;;  %v10034_v31 = vld [vmem:[%s13322_s1 + $0x6] sm:$0x3] }
  0x25   : > { %13506 = vst [vmem:[#allocation8_spill] sm:$0xff] %v9968_v36  ;;  %v387_v40 = vrot.slane %v9968_v36, 3  ;;  %v643_v60 = vor.u32 %v642_v53, %v639_v52  ;;  %v10012_v9 = vshrl.u32 %v9862_v23, 16  ;;  %v10015_v12 = vshll.u32 %v9862_v23, 16 }
  0x26   : > { %v386_v45 = vsel %vm353_vm1, %v383_v26, %v385_v38  ;;  %v660_v6 = vrot.slane %v10001_v62, 3  ;;  %v10018_v14 = vshrl.u32 %v9867_v27, 16  ;;  %v10021_v15 = vshll.u32 %v9867_v27, 16 }
  0x27   : > { %v388_v50 = vsel %vm353_vm1, %v385_v38, %v387_v40  ;;  %v1165_v25 = vsel %vm446_vm0, %v9874_v29, 0  ;;  %v10042_v29 = vshll.u32 %v9887_v37, 16  ;;  %v10045_v38 = vshrl.u32 %v9890_v39, 16 }
  0x28   : > { %v675_v28 = vrot.slane %v10018_v14, 2  ;;  %v678_v30 = vrot.slane %v10021_v15, 3  ;;  %v10061_v53 = vshrl.u32 %v9901_v47, 16  ;;  %v10147_v7 = vshrl.u32 %v9968_v36, 16 }
  0x29   : > { %13509 = vst [vmem:[#allocation11_spill] sm:$0xff] %v10045_v38 }
  0x2a   : > { %13511 = vst [vmem:[#allocation13_spill] sm:$0xff] %v10061_v53 }
  0x2b   : > { %8412 = vmatmul.mubr.msk.bf16.gmra.mrb[8].mxu0 %vm391_vm2, %v366_v46  ;;  %v9983_v46 = vpack.c.bf16 %v263_v42, %v262_v41 }
  0x2c   : > { %8415 = vmatprep.mubr.msk.bf16.mxu0 %vm391_vm2, %v368_v48  ;;  %v631_v48 = vrot.slane %v629_v8, 2 }
  0x2d   : > { %v389_v54 = vrot.slane %v9983_v46, 3 }
  0x2f   : > { %v390_v63 = vsel %vm353_vm1, %v387_v40, %v389_v54  ;;  %v10048_v40 = vshll.u32 %v9890_v39, 16  ;;  %v10064_v54 = vshll.u32 %v9901_v47, 16 }
  0x31   : > { %13510 = vst [vmem:[#allocation12_spill] sm:$0xff] %v10048_v40  ;;  %13512 = vst [vmem:[#allocation14_spill] sm:$0xff] %v10064_v54 }
  0x33   : > { %8416 = vmatmul.mubr.msk.bf16.gmra.mrb[12].mxu0 %vm391_vm2, %v370_v56  ;;  %v9995_v56 = vshll.u32 %v9848_v11, 16 }
  0x34   : > { %8419 = vmatprep.mubr.msk.bf16.mxu0 %vm391_vm2, %v372_v58  ;;  %v635_v58 = vor.u32 %v634_v51, %v631_v48  ;;  %v696_v51 = vrot.slane %v10048_v40, 3 }
  0x35   : > { %v651_v1 = vrot.slane %v9995_v56, 3 }
  0x37   : > { %v652_v8 = vor.u32 %v651_v1, %v648_v0  ;;  %v702_v1 = vrot.slane %v10061_v53, 2 }
  0x39   : > { %v653_v17 = vsel %vm627_vm3, %v643_v60, %v652_v8 }
  0x3b   : > { %8420 = vmatmul.mubr.msk.bf16.gmra.mrb[16].mxu0 %vm391_vm2, %v374_v2  ;;  %v644_v2 = vsel %vm627_vm3, %v635_v58, %v643_v60  ;;  %v10067_v60 = vshrl.u32 %v9904_v49, 16 }
  0x3c   : > { %8423 = vmatprep.mubr.msk.bf16.mxu0 %vm391_vm2, %v376_v4  ;;  %v657_v4 = vrot.slane %v9998_v61, 2 }
  0x3d   : > { %13513 = vst [vmem:[#allocation15_spill] sm:$0xff] %v10067_v60 }
  0x3e   : > { %v661_v13 = vor.u32 %v660_v6, %v657_v4  ;;  %v711_v6 = vrot.slane %v10067_v60, 2 }
  0x40   : > { %v662_v26 = vsel %vm627_vm3, %v652_v8, %v661_v13 }
  0x43   : > { %8424 = vmatmul.mubr.msk.bf16.gmra.mrb[20].mxu0 %vm391_vm2, %v378_v20  ;;  %v666_v20 = vrot.slane %v10012_v9, 2 }
  0x44   : > { %8427 = vmatprep.mubr.msk.bf16.mxu0 %vm391_vm2, %v380_v22  ;;  %v669_v22 = vrot.slane %v10015_v12, 3 }
  0x46   : > { %v670_v32 = vor.u32 %v669_v22, %v666_v20  ;;  %v10084_v20 = vshll.u32 %v9915_v57, 16 }
  0x48   : > { %v671_v41 = vsel %vm627_vm3, %v661_v13, %v670_v32  ;;  %13516 = vst [vmem:[#allocation18_spill] sm:$0xff] %v10084_v20 }
  0x4b   : > { %8428 = vmatmul.mubr.msk.bf16.gmra.mrb[24].mxu0 %vm391_vm2, %v382_v33  ;;  %v10039_v33 = vshrl.u32 %v9887_v37, 16 }
  0x4c   : > { %8431 = vmatprep.mubr.msk.bf16.mxu0 %vm391_vm2, %v384_v35  ;;  %v679_v35 = vor.u32 %v678_v30, %v675_v28 }
  0x4d   : > { %v684_v42 = vrot.slane %v10039_v33, 2 }
  0x4e   : > { %v680_v48 = vsel %vm627_vm3, %v670_v32, %v679_v35  ;;  %v723_v32 = vrot.slane %v10084_v20, 3 }
  0x53   : > { %8432 = vmatmul.mubr.msk.bf16.gmra.mrb[28].mxu0 %vm391_vm2, %v386_v45  ;;  %v687_v45 = vrot.slane %v10042_v29, 3 }
  0x54   : > { %8435 = vmatprep.mubr.msk.bf16.mxu0 %vm391_vm2, %v388_v50  ;;  %v693_v50 = vrot.slane %v10045_v38, 2 }
  0x55   : > { %v688_v52 = vor.u32 %v687_v45, %v684_v42 }
  0x56   : > { %v697_v58 = vor.u32 %v696_v51, %v693_v50  ;;  %v10104_v50 = vshll.u32 %v9929_v3, 16 }
  0x57   : > { %v689_v0 = vsel %vm627_vm3, %v679_v35, %v688_v52 }
  0x58   : > { %v698_v4 = vsel %vm627_vm3, %v688_v52, %v697_v58  ;;  %13520 = vst [vmem:[#allocation22_spill] sm:$0xff] %v10104_v50  ;;  %v10107_v52 = vshrl.u32 %v9932_v5, 16 }
  0x5a   : > { %13521 = vst [vmem:[#allocation23_spill] sm:$0xff] %v10107_v52 }
  0x5b   : > { %8436 = vmatmul.mubr.msk.bf16.gmra.mrb[32].mxu0 %vm391_vm2, %v390_v63  ;;  %v10070_v63 = vshll.u32 %v9904_v49, 16 }
  0x5c   : > { %8441 = vmatprep.mubr.msk.bf16.mxu0 %vm391_vm2, %v644_v2  ;;  %v705_v2 = vrot.slane %v10064_v54, 3 }
  0x5d   : > { %13514 = vst [vmem:[#allocation16_spill] sm:$0xff] %v10070_v63  ;;  %v714_v8 = vrot.slane %v10070_v63, 3 }
  0x5e   : > { %v706_v13 = vor.u32 %v705_v2, %v702_v1  ;;  %v741_v2 = vrot.slane %v10104_v50, 3 }
  0x5f   : > { %v715_v22 = vor.u32 %v714_v8, %v711_v6  ;;  %v747_v6 = vrot.slane %v10107_v52, 2 }
  0x60   : > { %v707_v28 = vsel %vm627_vm3, %v697_v58, %v706_v13  ;;  %v10110_v58 = vshll.u32 %v9932_v5, 16 }
  0x61   : > { %v716_v35 = vsel %vm627_vm3, %v706_v13, %v715_v22 }
  0x62   : > { %13522 = vst [vmem:[#allocation24_spill] sm:$0xff] %v10110_v58  ;;  %v750_v8 = vrot.slane %v10110_v58, 3 }
  0x63   : > { %8442 = vmatmul.mubr.msk.bf16.vlgmr.msra.gmra.mrb[0].mxu0 %vm391_vm2, %v653_v17  ;;  %v10081_v17 = vshrl.u32 %v9915_v57, 16 }
  0x64   : > { %8478 = vmatpush3.bf16.msra.mxu0 %v1165_v25  ;;  %8445 = vmatprep.mubr.msk.bf16.mxu0 %vm391_vm2, %v662_v26  ;;  %v10087_v25 = vshrl.u32 %v9918_v59, 16  ;;  %v10090_v26 = vshll.u32 %v9918_v59, 16 }
  0x65   : > { %9664 = vmatprep.subr.msk.bf16.mxu0 %vm446_vm0, %v10034_v31  ;;  %13515 = vst [vmem:[#allocation17_spill] sm:$0xff] %v10081_v17  ;;  %v720_v30 = vrot.slane %v10081_v17, 2 }
  0x66   : > { %13517 = vst [vmem:[#allocation19_spill] sm:$0xff] %v10087_v25  ;;  %13518 = vst [vmem:[#allocation20_spill] sm:$0xff] %v10090_v26  ;;  %v732_v42 = vrot.slane %v10090_v26, 3 }
  0x67   : > { %v724_v45 = vor.u32 %v723_v32, %v720_v30  ;;  %v751_v30 = vor.u32 %v750_v8, %v747_v6  ;;  %v10127_v32 = vshrl.u32 %v9954_v24, 16  ;;  %v10141_v6 = vshrl.u32 %v9965_v34, 16 }
  0x69   : > { %13525 = vst [vmem:[#allocation27_spill] sm:$0xff] %v10127_v32  ;;  %13527 = vst [vmem:[#allocation29_spill] sm:$0xff] %v10141_v6 }
  0x6b   : > { %8446 = vmatmul.mubr.msk.bf16.gmra.mrb[4].mxu0 %vm391_vm2, %v671_v41  ;;  %v729_v41 = vrot.slane %v10087_v25, 2 }
  0x6c   : > { %8449 = vmatprep.mubr.msk.bf16.mxu0 %vm391_vm2, %v680_v48  ;;  %v10101_v48 = vshrl.u32 %v9929_v3, 16 }
  0x6d   : > { %v733_v51 = vor.u32 %v732_v42, %v729_v41 }
  0x6e   : > { %13519 = vst [vmem:[#allocation21_spill] sm:$0xff] %v10101_v48  ;;  %v738_v1 = vrot.slane %v10101_v48, 2 }
  0x70   : > { %v742_v13 = vor.u32 %v741_v2, %v738_v1  ;;  %v765_v1 = vrot.slane %v10127_v32, 2 }
  0x72   : > { %v743_v41 = vsel %vm627_vm3, %v733_v51, %v742_v13 }
  0x73   : > { %8450 = vmatmul.mubr.msk.bf16.gmra.mrb[8].mxu0 %vm391_vm2, %v689_v0  ;;  %v725_v0 = vsel %vm627_vm3, %v715_v22, %v724_v45  ;;  %v10124_v22 = vshll.u32 %v9949_v21, 16 }
  0x74   : > { %8453 = vmatprep.mubr.msk.bf16.mxu0 %vm391_vm2, %v698_v4  ;;  %v734_v4 = vsel %vm627_vm3, %v724_v45, %v733_v51  ;;  %v10144_v51 = vshll.u32 %v9965_v34, 16 }
  0x75   : > { %13524 = vst [vmem:[#allocation26_spill] sm:$0xff] %v10124_v22  ;;  %v759_v45 = vrot.slane %v10124_v22, 3 }
  0x76   : > { %13528 = vst [vmem:[#allocation30_spill] sm:$0xff] %v10144_v51 }
  0x7b   : > { %8454 = vmatmul.mubr.msk.bf16.gmra.mrb[12].mxu0 %vm391_vm2, %v707_v28  ;;  %v10121_v28 = vshrl.u32 %v9949_v21, 16 }
  0x7c   : > { %8457 = vmatprep.mubr.msk.bf16.mxu0 %vm391_vm2, %v716_v35  ;;  %v10130_v35 = vshll.u32 %v9954_v24, 16 }
  0x7d   : > { %13523 = vst [vmem:[#allocation25_spill] sm:$0xff] %v10121_v28  ;;  %v756_v42 = vrot.slane %v10121_v28, 2 }
  0x7e   : > { %13526 = vst [vmem:[#allocation28_spill] sm:$0xff] %v10130_v35  ;;  %v768_v2 = vrot.slane %v10130_v35, 3 }
  0x80   : > { %v769_v8 = vor.u32 %v768_v2, %v765_v1  ;;  %v10161_v2 = vshrl.u32 %v9983_v46, 16 }
  0x83   : > { %8458 = vmatmul.mubr.msk.bf16.gmra.mrb[16].mxu0 %vm391_vm2, %v725_v0  ;;  %v752_v0 = vsel %vm627_vm3, %v742_v13, %v751_v30  ;;  %v10150_v13 = vshll.u32 %v9968_v36, 16 }
  0x84   : > { %8461 = vmatprep.mubr.msk.bf16.mxu0 %vm391_vm2, %v734_v4  ;;  %v760_v4 = vor.u32 %v759_v45, %v756_v42  ;;  %v783_v45 = vrot.slane %v10147_v7, 2 }
  0x85   : > { %v786_v34 = vrot.slane %v10150_v13, 3 }
  0x86   : > { %v761_v24 = vsel %vm627_vm3, %v751_v30, %v760_v4  ;;  %v770_v42 = vsel %vm627_vm3, %v760_v4, %v769_v8  ;;  %v10164_v30 = vshll.u32 %v9983_v46, 16  ;;  %v792_v4 = vrot.slane %v10161_v2, 2 }
  0x87   : > { %v787_v36 = vor.u32 %v786_v34, %v783_v45  ;;  %v1043_v45 = vrot.slane %v9995_v56, 4 }
  0x88   : > { %v795_v5 = vrot.slane %v10164_v30, 3 }
  0x8b   : > { %8462 = vmatmul.mubr.msk.bf16.gmra.mrb[20].mxu0 %vm391_vm2, %v743_v41  ;;  %v774_v41 = vrot.slane %v10141_v6, 2 }
  0x8c   : > { %8465 = vmatprep.mubr.msk.bf16.mxu0 %vm391_vm2, %v752_v0  ;;  %v777_v0 = vrot.slane %v10144_v51, 3 }
  0x8e   : > { %v778_v1 = vor.u32 %v777_v0, %v774_v41  ;;  %v796_v41 = vor.u32 %v795_v5, %v792_v4  ;;  %v1050_v4 = vrot.slane %v10012_v9, 3 }
  0x90   : > { %v779_v21 = vsel %vm627_vm3, %v769_v8, %v778_v1  ;;  %v788_v3 = vsel %vm627_vm3, %v778_v1, %v787_v36  ;;  %v797_v34 = vsel %vm627_vm3, %v787_v36, %v796_v41  ;;  %v1042_v8 = vrot.slane %v9992_v55, 3 }
  0x91   : > { %v13529_v1 = vor.u32 %v9946_v19, %v9944_v18  ;;  %v1395_v18 = vsel %vm446_vm0, %v10034_v31, 0  ;;  %v1055_v41 = vrot.slane %v10021_v15, 4 }
  0x93   : > { %8466 = vmatmul.mubr.msk.bf16.gmra.mrb[24].mxu0 %vm391_vm2, %v761_v24  ;;  %v1038_v24 = vrot.slane %v9977_v43, 3 }
  0x94   : > { %8469 = vmatprep.mubr.msk.bf16.mxu0 %vm391_vm2, %v770_v42  ;;  %v1039_v42 = vrot.slane %v9980_v44, 4  ;;  %v1046_v44 = vrot.slane %v9998_v61, 3 }
  0x96   : > { %v1040_v0 = vor.u32 %v1039_v42, %v1038_v24  ;;  %v1051_v24 = vrot.slane %v10015_v12, 4  ;;  %v1054_v42 = vrot.slane %v10018_v14, 3 }
  0x98   : > { %v1041_v43 = vsel %vm1034_vm4, %v13529_v1, %v1040_v0  ;;  %v1056_v31 = vor.u32 %v1055_v41, %v1054_v42  ;;  %v1062_v1 = vrot.slane %v10045_v38, 3  ;;  %v1070_v41 = vrot.slane %v10067_v60, 3 }
  0x99   : > { %v1078_v60 = vrot.slane %v10087_v25, 3 }
  0x9b   : > { %8470 = vmatmul.mubr.msk.bf16.gmra.mrb[28].mxu0 %vm391_vm2, %v779_v21  ;;  %v1047_v21 = vrot.slane %v10001_v62, 4 }
  0x9c   : > { %8473 = vmatprep.mubr.msk.bf16.mxu0 %vm391_vm2, %v788_v3  ;;  %v1044_v3 = vor.u32 %v1043_v45, %v1042_v8  ;;  %v1059_v8 = vrot.slane %v10042_v29, 4 }
  0x9d   : > { %v1048_v5 = vor.u32 %v1047_v21, %v1046_v44  ;;  %v1052_v44 = vor.u32 %v1051_v24, %v1050_v4  ;;  %v1063_v21 = vrot.slane %v10048_v40, 4  ;;  %v1066_v24 = vrot.slane %v10061_v53, 3 }
  0x9e   : > { %v10186_v36 = vsel %vm1034_vm4, %v1040_v0, %v1044_v3 }
  0x9f   : > { %v10193_v19 = vsel %vm1034_vm4, %v1044_v3, %v1048_v5  ;;  %v10209_v0 = vsel %vm1034_vm4, %v1048_v5, %v1052_v44  ;;  %v10214_v45 = vsel %vm1034_vm4, %v1052_v44, %v1056_v31  ;;  %v1064_v5 = vor.u32 %v1063_v21, %v1062_v1 }
  0xa0   : > { %v1071_v44 = vrot.slane %v10070_v63, 4  ;;  %v1074_v1 = vrot.slane %v10081_v17, 3  ;;  %v1075_v21 = vrot.slane %v10084_v20, 4  ;;  %v1079_v63 = vrot.slane %v10090_v26, 4 }
  0xa2   : > { %v1080_v53 = vor.u32 %v1079_v63, %v1078_v60  ;;  %v1090_v63 = vrot.slane %v10121_v28, 3 }
  0xa3   : > { %8474 = vmatmul.mubr.msk.bf16.gmra.mrb[32].mxu0 %vm391_vm2, %v797_v34  ;;  %v1058_v34 = vrot.slane %v10039_v33, 3 }
  0xa4   : > { %8479 = vmatprep.mubr.msk.bf16.mxu0 %vm391_vm2, %v1041_v43  ;;  %v10200_v43 = vld [vmem:[%s13322_s1 + $0x8] sm:$0x3] }
  0xa5   : > { %v1060_v3 = vor.u32 %v1059_v8, %v1058_v34 }
  0xa7   : > { %v10223_v4 = vsel %vm1034_vm4, %v1056_v31, %v1060_v3  ;;  %v10228_v42 = vsel %vm1034_vm4, %v1060_v3, %v1064_v5  ;;  %v1072_v31 = vor.u32 %v1071_v44, %v1070_v41  ;;  %v1086_v44 = vrot.slane %v10107_v52, 3 }
  0xab   : > { %8480 = vmatmul.mubr.msk.bf16.vlgmr.msra.gmra.mrb[0].mxu0 %vm391_vm2, %v10186_v36 }
  0xac   : > { %8516 = vmatpush3.bf16.msra.mxu0 %v1395_v18  ;;  %8483 = vmatprep.mubr.msk.bf16.mxu0 %vm391_vm2, %v10193_v19  ;;  %v1067_v18 = vrot.slane %v10064_v54, 4  ;;  %v1076_v54 = vor.u32 %v1075_v21, %v1074_v1  ;;  %v1095_v21 = vrot.slane %v10130_v35, 4 }
  0xad   : > { %9665 = vmatprep.subr.msk.bf16.mxu0 %vm446_vm0, %v10200_v43 }
  0xae   : > { %v1068_v34 = vor.u32 %v1067_v18, %v1066_v24  ;;  %v1077_v24 = vsel %vm1034_vm4, %v1072_v31, %v1076_v54  ;;  %v1083_v18 = vrot.slane %v10104_v50, 4  ;;  %v1081_v41 = vsel %vm1034_vm4, %v1076_v54, %v1080_v53 }
  0xaf   : > { %v1094_v54 = vrot.slane %v10127_v32, 3 }
  0xb0   : > { %v1069_v8 = vsel %vm1034_vm4, %v1064_v5, %v1068_v34  ;;  %v1073_v3 = vsel %vm1034_vm4, %v1068_v34, %v1072_v31  ;;  %v1082_v5 = vrot.slane %v10101_v48, 3  ;;  %v1087_v34 = vrot.slane %v10110_v58, 4 }
  0xb1   : > { %v1091_v31 = vrot.slane %v10124_v22, 4  ;;  %v1096_v52 = vor.u32 %v1095_v21, %v1094_v54 }
  0xb2   : > { %v1084_v26 = vor.u32 %v1083_v18, %v1082_v5  ;;  %v1088_v25 = vor.u32 %v1087_v34, %v1086_v44  ;;  %v1099_v18 = vrot.slane %v10144_v51, 4  ;;  %v1103_v34 = vrot.slane %v10150_v13, 4 }
  0xb3   : > { %8484 = vmatmul.mubr.msk.bf16.gmra.mrb[4].mxu0 %vm391_vm2, %v10209_v0  ;;  %v1092_v58 = vor.u32 %v1091_v31, %v1090_v63  ;;  %v1107_v31 = vrot.slane %v10164_v30, 4 }
  0xb4   : > { %8487 = vmatprep.mubr.msk.bf16.mxu0 %vm391_vm2, %v10214_v45  ;;  %v1085_v60 = vsel %vm1034_vm4, %v1080_v53, %v1084_v26  ;;  %v1089_v1 = vsel %vm1034_vm4, %v1084_v26, %v1088_v25  ;;  %v1098_v53 = vrot.slane %v10141_v6, 3  ;;  %v1102_v26 = vrot.slane %v10147_v7, 3 }
  0xb5   : > { %v1093_v5 = vsel %vm1034_vm4, %v1088_v25, %v1092_v58  ;;  %v1097_v44 = vsel %vm1034_vm4, %v1092_v58, %v1096_v52  ;;  %v1106_v25 = vrot.slane %v10161_v2, 3 }
  0xb6   : > { %v1100_v35 = vor.u32 %v1099_v18, %v1098_v53  ;;  %v1104_v32 = vor.u32 %v1103_v34, %v1102_v26  ;;  %v10331_v18 = vld [vmem:[%s13322_s1 + $0xc] sm:$0x3]  ;;  %v1623_v26 = vrot.slane %v9887_v37, 4 }
  0xb7   : > { %v1108_v58 = vor.u32 %v1107_v31, %v1106_v25  ;;  %v1625_v25 = vrot.slane %v9890_v39, 4  ;;  %v1627_v31 = vrot.slane %v9901_v47, 4 }
  0xb8   : > { %v1101_v63 = vsel %vm1034_vm4, %v1096_v52, %v1100_v35  ;;  %v1105_v54 = vsel %vm1034_vm4, %v1100_v35, %v1104_v32  ;;  %v1706_v52 = vsel %vm446_vm0, %v10200_v43, 0  ;;  %v7691_v35 = vld [vmem:[%s13322_s1 + $0xa] sm:$0x3] }
  0xb9   : > { %v1109_v21 = vsel %vm1034_vm4, %v1104_v32, %v1108_v58  ;;  %v264_v32 = vld [vmem:[%s9836_s27 + $0x160] sm:$0xff]  ;;  %v2054_v53 = vsel %vm446_vm0, %v7691_v35, 0 }
  0xbb   : > { %8488 = vmatmul.mubr.msk.bf16.gmra.mrb[8].mxu0 %vm391_vm2, %v10223_v4 }
  0xbc   : > { %8491 = vmatprep.mubr.msk.bf16.mxu0 %vm391_vm2, %v10228_v42 }
  0xc3   : > { %8492 = vmatmul.mubr.msk.bf16.gmra.mrb[12].mxu0 %vm391_vm2, %v1069_v8 }
  0xc4   : > { %8495 = vmatprep.mubr.msk.bf16.mxu0 %vm391_vm2, %v1073_v3 }
  0xcb   : > { %8496 = vmatmul.mubr.msk.bf16.gmra.mrb[16].mxu0 %vm391_vm2, %v1077_v24 }
  0xcc   : > { %8499 = vmatprep.mubr.msk.bf16.mxu0 %vm391_vm2, %v1081_v41 }
  0xd3   : > { %8500 = vmatmul.mubr.msk.bf16.gmra.mrb[20].mxu0 %vm391_vm2, %v1085_v60 }
  0xd4   : > { %8503 = vmatprep.mubr.msk.bf16.mxu0 %vm391_vm2, %v1089_v1 }
  0xdb   : > { %8504 = vmatmul.mubr.msk.bf16.gmra.mrb[24].mxu0 %vm391_vm2, %v1093_v5 }
  0xdc   : > { %8507 = vmatprep.mubr.msk.bf16.mxu0 %vm391_vm2, %v1097_v44 }
  0xe3   : > { %8508 = vmatmul.mubr.msk.bf16.gmra.mrb[28].mxu0 %vm391_vm2, %v1101_v63 }
  0xe4   : > { %8511 = vmatprep.mubr.msk.bf16.mxu0 %vm391_vm2, %v1105_v54 }
  0xeb   : > { %8512 = vmatmul.mubr.msk.bf16.gmra.mrb[32].mxu0 %vm391_vm2, %v1109_v21 }
  0xec   : > { %8517 = vmatprep.mubr.msk.bf16.mxu0 %vm391_vm2, %v10186_v36  ;;  %v265_v36 = vld [vmem:[%s9836_s27 + $0x168] sm:$0xff] }
  0xf3   : > { %8518 = vmatmul.mubr.msk.bf16.vlgmr.msra.gmra.mrb[0].mxu0 %vm391_vm2, %v10193_v19  ;;  %v10303_v19 = vpack.c.bf16 %v265_v36, %v264_v32  ;;  %v1633_v36 = vrot.slane %v9918_v59, 4 }
  0xf4   : > { %8554 = vmatpush3.bf16.msra.mxu0 %v1706_v52  ;;  %8521 = vmatprep.mubr.msk.bf16.mxu0 %vm391_vm2, %v10209_v0  ;;  %v1631_v52 = vrot.slane %v9915_v57, 4 }
  0xf5   : > { %9666 = vmatprep.subr.msk.bf16.mxu0 %vm446_vm0, %v7691_v35  ;;  %v10308_v43 = vshrl.u32 %v10303_v19, 16  ;;  %v10311_v0 = vshll.u32 %v10303_v19, 16 }
  0xfb   : > { %8522 = vmatmul.mubr.msk.bf16.gmra.mrb[4].mxu0 %vm391_vm2, %v10214_v45  ;;  %v1385_v45 = vrot.slane %v10308_v43, 3 }
  0xfc   : > { %8525 = vmatprep.mubr.msk.bf16.mxu0 %vm391_vm2, %v10223_v4  ;;  %v1388_v4 = vrot.slane %v10311_v0, 4 }
 0x103   : > { %8526 = vmatmul.mubr.msk.bf16.gmra.mrb[8].mxu0 %vm391_vm2, %v10228_v42  ;;  %v1389_v42 = vor.u32 %v1388_v4, %v1385_v45  ;;  %v13530_v45 = vld [vmem:[#allocation3_spill] sm:$0xff] }
 0x104   : > { %8529 = vmatprep.mubr.msk.bf16.mxu0 %vm391_vm2, %v1069_v8  ;;  %v1614_v8 = vrot.slane %v9846_v10, 4  ;;  %v1635_v4 = vrot.slane %v13530_v45, 4 }
 0x10b   : > { %8530 = vmatmul.mubr.msk.bf16.gmra.mrb[12].mxu0 %vm391_vm2, %v1073_v3  ;;  %v1615_v3 = vrot.slane %v9848_v11, 4 }
 0x10c   : > { %8533 = vmatprep.mubr.msk.bf16.mxu0 %vm391_vm2, %v1077_v24  ;;  %v1390_v24 = vsel %vm1034_vm4, %v1108_v58, %v1389_v42  ;;  %v1628_v58 = vsel %vm1613_vm5, %v1625_v25, %v1627_v31  ;;  %v1634_v42 = vsel %vm1613_vm5, %v1631_v52, %v1633_v36 }
 0x113   : > { %8534 = vmatmul.mubr.msk.bf16.gmra.mrb[16].mxu0 %vm391_vm2, %v1081_v41  ;;  %v1616_v41 = vsel %vm1613_vm5, %v1614_v8, %v1615_v3  ;;  %v1636_v8 = vsel %vm1613_vm5, %v1633_v36, %v1635_v4 }
 0x114   : > { %8537 = vmatprep.mubr.msk.bf16.mxu0 %vm391_vm2, %v1085_v60  ;;  %v1617_v60 = vrot.slane %v9854_v16, 4 }
 0x11b   : > { %8538 = vmatmul.mubr.msk.bf16.gmra.mrb[20].mxu0 %vm391_vm2, %v1089_v1  ;;  %v1619_v1 = vrot.slane %v9862_v23, 4 }
 0x11c   : > { %8541 = vmatprep.mubr.msk.bf16.mxu0 %vm391_vm2, %v1093_v5  ;;  %v1618_v5 = vsel %vm1613_vm5, %v1615_v3, %v1617_v60  ;;  %v13531_v3 = vld [vmem:[#allocation4_spill] sm:$0xff] }
 0x11d   : > { %v1620_v10 = vsel %vm1613_vm5, %v1617_v60, %v1619_v1 }
 0x123   : > { %8542 = vmatmul.mubr.msk.bf16.gmra.mrb[24].mxu0 %vm391_vm2, %v1097_v44  ;;  %v1621_v44 = vrot.slane %v9867_v27, 4 }
 0x124   : > { %8545 = vmatprep.mubr.msk.bf16.mxu0 %vm391_vm2, %v1101_v63 }
 0x125   : > { %v1622_v34 = vsel %vm1613_vm5, %v1619_v1, %v1621_v44  ;;  %v1624_v63 = vsel %vm1613_vm5, %v1621_v44, %v1623_v26  ;;  %v13534_v44 = vld [vmem:[#allocation7_spill] sm:$0xff] }
 0x12b   : > { %8546 = vmatmul.mubr.msk.bf16.gmra.mrb[28].mxu0 %vm391_vm2, %v1105_v54  ;;  %v1626_v54 = vsel %vm1613_vm5, %v1623_v26, %v1625_v25  ;;  %v1643_v26 = vrot.slane %v13534_v44, 4  ;;  %v13535_v25 = vld [vmem:[#allocation8_spill] sm:$0xff] }
 0x12c   : > { %8549 = vmatprep.mubr.msk.bf16.mxu0 %vm391_vm2, %v1109_v21  ;;  %v1629_v21 = vrot.slane %v9904_v49, 4 }
 0x12e   : > { %v1630_v35 = vsel %vm1613_vm5, %v1627_v31, %v1629_v21  ;;  %v1632_v32 = vsel %vm1613_vm5, %v1629_v21, %v1631_v52  ;;  %v1645_v31 = vrot.slane %v13535_v25, 4  ;;  %v13536_v52 = vld [vmem:[#allocation9_spill] sm:$0xff] }
 0x133   : > { %8550 = vmatmul.mubr.msk.bf16.gmra.mrb[32].mxu0 %vm391_vm2, %v1390_v24  ;;  %v1637_v24 = vrot.slane %v13531_v3, 4 }
 0x134   : > { %8555 = vmatprep.mubr.msk.bf16.mxu0 %vm391_vm2, %v1616_v41  ;;  %v13532_v41 = vld [vmem:[#allocation5_spill] sm:$0xff] }
 0x135   : > { %v1639_v60 = vrot.slane %v13532_v41, 4  ;;  %v1638_v1 = vsel %vm1613_vm5, %v1635_v4, %v1637_v24  ;;  %v1927_v4 = vrot.slane %v9992_v55, 4 }
 0x13b   : > { %8556 = vmatmul.mubr.msk.bf16.vlgmr.msra.gmra.mrb[0].mxu0 %vm391_vm2, %v1618_v5  ;;  %v1640_v5 = vsel %vm1613_vm5, %v1637_v24, %v1639_v60 }
 0x13c   : > { %8592 = vmatpush3.bf16.msra.mxu0 %v2054_v53  ;;  %8559 = vmatprep.mubr.msk.bf16.mxu0 %vm391_vm2, %v1620_v10  ;;  %v13533_v53 = vld [vmem:[#allocation6_spill] sm:$0xff] }
 0x13d   : > { %9667 = vmatprep.subr.msk.bf16.mxu0 %vm446_vm0, %v10331_v18  ;;  %v1641_v10 = vrot.slane %v13533_v53, 4 }
 0x143   : > { %8560 = vmatmul.mubr.msk.bf16.gmra.mrb[4].mxu0 %vm391_vm2, %v1622_v34  ;;  %v1642_v34 = vsel %vm1613_vm5, %v1639_v60, %v1641_v10 }
 0x144   : > { %8563 = vmatprep.mubr.msk.bf16.mxu0 %vm391_vm2, %v1624_v63  ;;  %v1644_v63 = vsel %vm1613_vm5, %v1641_v10, %v1643_v26  ;;  %v1932_v10 = vrot.slane %v10001_v62, 5 }
 0x14b   : > { %8564 = vmatmul.mubr.msk.bf16.gmra.mrb[8].mxu0 %vm391_vm2, %v1626_v54  ;;  %v1647_v54 = vrot.slane %v9983_v46, 4 }
 0x14c   : > { %8567 = vmatprep.mubr.msk.bf16.mxu0 %vm391_vm2, %v1628_v58  ;;  %v1646_v58 = vsel %vm1613_vm5, %v1643_v26, %v1645_v31 }
 0x14d   : > { %v1648_v21 = vsel %vm1613_vm5, %v1645_v31, %v1647_v54 }
 0x153   : > { %8568 = vmatmul.mubr.msk.bf16.gmra.mrb[12].mxu0 %vm391_vm2, %v1630_v35  ;;  %v1924_v35 = vrot.slane %v13536_v52, 4  ;;  %v1940_v52 = vrot.slane %v10021_v15, 5 }
 0x154   : > { %8571 = vmatprep.mubr.msk.bf16.mxu0 %vm391_vm2, %v1632_v32  ;;  %v13537_v32 = vld [vmem:[#allocation10_spill] sm:$0xff] }
 0x155   : > { %v1925_v36 = vrot.slane %v13537_v32, 5 }
 0x157   : > { %v1926_v24 = vor.u32 %v1925_v36, %v1924_v35  ;;  %v2284_v35 = vsel %vm446_vm0, %v10331_v18, 0  ;;  %v1943_v36 = vrot.slane %v10039_v33, 4 }
 0x15b   : > { %8572 = vmatmul.mubr.msk.bf16.gmra.mrb[16].mxu0 %vm391_vm2, %v1634_v42  ;;  %v1928_v42 = vrot.slane %v9995_v56, 5 }
 0x15c   : > { %8575 = vmatprep.mubr.msk.bf16.mxu0 %vm391_vm2, %v1636_v8  ;;  %v1649_v8 = vrot.slane %v10303_v19, 4 }
 0x15d   : > { %v1929_v60 = vor.u32 %v1928_v42, %v1927_v4  ;;  %v1944_v4 = vrot.slane %v10042_v29, 5  ;;  %v10407_v42 = vld [vmem:[%s13322_s1 + $0xe] sm:$0x3] }
 0x15f   : > { %v1930_v26 = vsel %vm1923_vm6, %v1926_v24, %v1929_v60 }
 0x163   : > { %8576 = vmatmul.mubr.msk.bf16.gmra.mrb[20].mxu0 %vm391_vm2, %v1638_v1  ;;  %v1650_v1 = vsel %vm1613_vm5, %v1647_v54, %v1649_v8  ;;  %v1939_v54 = vrot.slane %v10018_v14, 4  ;;  %v1945_v8 = vor.u32 %v1944_v4, %v1943_v36  ;;  %v13541_v36 = vld [vmem:[#allocation16_spill] sm:$0xff] }
 0x164   : > { %8579 = vmatprep.mubr.msk.bf16.mxu0 %vm391_vm2, %v1640_v5  ;;  %v1931_v5 = vrot.slane %v9998_v61, 4  ;;  %v1956_v4 = vrot.slane %v13541_v36, 5  ;;  %v13543_v36 = vld [vmem:[#allocation20_spill] sm:$0xff] }
 0x165   : > { %v1941_v18 = vor.u32 %v1940_v52, %v1939_v54  ;;  %v13540_v52 = vld [vmem:[#allocation15_spill] sm:$0xff] }
 0x166   : > { %v1933_v31 = vor.u32 %v1932_v10, %v1931_v5  ;;  %v13538_v10 = vld [vmem:[#allocation13_spill] sm:$0xff] }
 0x167   : > { %v10421_v5 = vsel %vm1923_vm6, %v1941_v18, %v1945_v8 }
 0x16b   : > { %8580 = vmatmul.mubr.msk.bf16.gmra.mrb[24].mxu0 %vm391_vm2, %v1642_v34  ;;  %v1935_v34 = vrot.slane %v10012_v9, 4 }
 0x16c   : > { %8583 = vmatprep.mubr.msk.bf16.mxu0 %vm391_vm2, %v1644_v63  ;;  %v1936_v63 = vrot.slane %v10015_v12, 5 }
 0x173   : > { %8584 = vmatmul.mubr.msk.bf16.gmra.mrb[28].mxu0 %vm391_vm2, %v1646_v58  ;;  %v1937_v58 = vor.u32 %v1936_v63, %v1935_v34  ;;  %v13539_v34 = vld [vmem:[#allocation14_spill] sm:$0xff] }
 0x174   : > { %8587 = vmatprep.mubr.msk.bf16.mxu0 %vm391_vm2, %v1648_v21  ;;  %v10393_v21 = vsel %vm1923_vm6, %v1929_v60, %v1933_v31  ;;  %v1947_v60 = vrot.slane %v10045_v38, 4  ;;  %v1952_v63 = vrot.slane %v13539_v34, 5  ;;  %v1959_v34 = vrot.slane %v10081_v17, 4 }
 0x175   : > { %v10400_v32 = vsel %vm1923_vm6, %v1933_v31, %v1937_v58  ;;  %v10416_v24 = vsel %vm1923_vm6, %v1937_v58, %v1941_v18  ;;  %v1967_v17 = vrot.slane %v10101_v48, 4  ;;  %v1976_v48 = vrot.slane %v10124_v22, 5 }
 0x17b   : > { %8588 = vmatmul.mubr.msk.bf16.gmra.mrb[32].mxu0 %vm391_vm2, %v1650_v1  ;;  %v1948_v1 = vrot.slane %v10048_v40, 5 }
 0x17c   : > { %8593 = vmatprep.mubr.msk.bf16.mxu0 %vm391_vm2, %v1930_v26  ;;  %v1951_v26 = vrot.slane %v13538_v10, 4  ;;  %v1960_v10 = vrot.slane %v10084_v20, 5  ;;  %v1968_v20 = vrot.slane %v10104_v50, 5 }
 0x17d   : > { %v1949_v31 = vor.u32 %v1948_v1, %v1947_v60 }
 0x17e   : > { %v1953_v58 = vor.u32 %v1952_v63, %v1951_v26  ;;  %v13542_v26 = vld [vmem:[#allocation19_spill] sm:$0xff]  ;;  %v1969_v38 = vor.u32 %v1968_v20, %v1967_v17 }
 0x17f   : > { %v10430_v54 = vsel %vm1923_vm6, %v1945_v8, %v1949_v31  ;;  %v1961_v8 = vor.u32 %v1960_v10, %v1959_v34  ;;  %v1963_v63 = vrot.slane %v13542_v26, 4  ;;  %v13544_v34 = vld [vmem:[#allocation23_spill] sm:$0xff] }
 0x180   : > { %v10435_v18 = vsel %vm1923_vm6, %v1949_v31, %v1953_v58  ;;  %v13546_v20 = vld [vmem:[#allocation27_spill] sm:$0xff] }
 0x183   : > { %8594 = vmatmul.mubr.msk.bf16.vlgmr.msra.gmra.mrb[0].mxu0 %vm391_vm2, %v10393_v21 }
 0x184   : > { %8630 = vmatpush3.bf16.msra.mxu0 %v2284_v35  ;;  %8597 = vmatprep.mubr.msk.bf16.mxu0 %vm391_vm2, %v10400_v32  ;;  %v1955_v35 = vrot.slane %v13540_v52, 4  ;;  %v1964_v52 = vrot.slane %v13543_v36, 5 }
 0x185   : > { %9668 = vmatprep.subr.msk.bf16.mxu0 %vm446_vm0, %v10407_v42 }
 0x186   : > { %v1957_v60 = vor.u32 %v1956_v4, %v1955_v35  ;;  %v1965_v40 = vor.u32 %v1964_v52, %v1963_v63  ;;  %v13545_v35 = vld [vmem:[#allocation24_spill] sm:$0xff]  ;;  %v1979_v52 = vrot.slane %v13546_v20, 4 }
 0x187   : > { %v1972_v4 = vrot.slane %v13545_v35, 5 }
 0x188   : > { %v1958_v1 = vsel %vm1923_vm6, %v1953_v58, %v1957_v60  ;;  %v1962_v31 = vsel %vm1923_vm6, %v1957_v60, %v1961_v8  ;;  %v1966_v10 = vsel %vm1923_vm6, %v1961_v8, %v1965_v40  ;;  %v1971_v58 = vrot.slane %v13544_v34, 4  ;;  %v13547_v8 = vld [vmem:[#allocation28_spill] sm:$0xff] }
 0x189   : > { %v1970_v36 = vsel %vm1923_vm6, %v1965_v40, %v1969_v38  ;;  %v1975_v60 = vrot.slane %v10121_v28, 4  ;;  %v1980_v63 = vrot.slane %v13547_v8, 5  ;;  %v1983_v40 = vrot.slane %v10141_v6, 4 }
 0x18a   : > { %v1973_v50 = vor.u32 %v1972_v4, %v1971_v58  ;;  %v1984_v28 = vrot.slane %v10144_v51, 5  ;;  %v1988_v58 = vrot.slane %v10150_v13, 5 }
 0x18b   : > { %8598 = vmatmul.mubr.msk.bf16.gmra.mrb[4].mxu0 %vm391_vm2, %v10416_v24  ;;  %v1977_v26 = vor.u32 %v1976_v48, %v1975_v60  ;;  %v1981_v22 = vor.u32 %v1980_v63, %v1979_v52  ;;  %v1992_v60 = vrot.slane %v10164_v30, 5  ;;  %v1996_v52 = vrot.slane %v10311_v0, 5 }
 0x18c   : > { %8601 = vmatprep.mubr.msk.bf16.mxu0 %vm391_vm2, %v10421_v5  ;;  %v1974_v17 = vsel %vm1923_vm6, %v1969_v38, %v1973_v50  ;;  %v1985_v34 = vor.u32 %v1984_v28, %v1983_v40  ;;  %v1987_v38 = vrot.slane %v10147_v7, 4 }
 0x18d   : > { %v1978_v35 = vsel %vm1923_vm6, %v1973_v50, %v1977_v26  ;;  %v1982_v48 = vsel %vm1923_vm6, %v1977_v26, %v1981_v22  ;;  %v1991_v50 = vrot.slane %v10161_v2, 4  ;;  %v1995_v26 = vrot.slane %v10308_v43, 4 }
 0x18e   : > { %v1986_v4 = vsel %vm1923_vm6, %v1981_v22, %v1985_v34  ;;  %v1989_v51 = vor.u32 %v1988_v58, %v1987_v38  ;;  %v298_v38 = vld [vmem:[%s13325_s4 + $0x48] sm:$0xff]  ;;  %v299_v58 = vld [vmem:[%s13325_s4 + $0x50] sm:$0xff] }
 0x18f   : > { %v1993_v6 = vor.u32 %v1992_v60, %v1991_v50  ;;  %v10484_v22 = vor.u32 %v1996_v52, %v1995_v26  ;;  %v300_v60 = vld [vmem:[%s13325_s4 + $0x58] sm:$0xff]  ;;  %v2503_v52 = vrot.slane %v9848_v11, 5 }
 0x190   : > { %v1990_v28 = vsel %vm1923_vm6, %v1985_v34, %v1989_v51  ;;  %v10499_v34 = vld [vmem:[%s13322_s1 + $0x10] sm:$0x3]  ;;  %v304_v11 = vld [vmem:[%s13325_s4 + $0x78] sm:$0xff] }
 0x191   : > { %v10479_v63 = vsel %vm1923_vm6, %v1989_v51, %v1993_v6  ;;  %v10488_v40 = vsel %vm1923_vm6, %v1993_v6, %v10484_v22  ;;  %v2595_v51 = vsel %vm446_vm0, %v10407_v42, 0  ;;  %v9782_v6 = vmov 0   ;;  %v290_v42 = vld [vmem:[%s13325_s4 + $0x8] sm:$0xff] }
 0x192   : > { %9690 = vset.pattern.permute.xlu0 %v9782_v6  ;;  %3842 = vst.msk [vmem:[#allocation2 + $0x18] sm:$0xf] %vm3835_vm7, %v9782_v6  ;;  %3843 = vst.msk [vmem:[#allocation2 + $0x1c] sm:$0xf] %vm3835_vm7, %v9782_v6  ;;  %9691 = vset.pattern.permute.xlu1 %v9782_v6 }
 0x193   : > { %8602 = vmatmul.mubr.msk.bf16.gmra.mrb[8].mxu0 %vm391_vm2, %v10430_v54  ;;  %3844 = vst.msk [vmem:[#allocation2 + $0x20] sm:$0xf] %vm3835_vm7, %v9782_v6  ;;  %3845 = vst.msk [vmem:[#allocation2 + $0xb4] sm:$0xf] %vm3835_vm7, %v9782_v6 }
 0x194   : > { %8605 = vmatprep.mubr.msk.bf16.mxu0 %vm391_vm2, %v10435_v18  ;;  %3846 = vst.msk [vmem:[#allocation2 + $0xb8] sm:$0xf] %vm3835_vm7, %v9782_v6  ;;  %3847 = vst.msk [vmem:[#allocation2 + $0xbc] sm:$0xf] %vm3835_vm7, %v9782_v6  ;;  %v303_v6 = vld [vmem:[%s13325_s4 + $0x70] sm:$0xff] }
 0x19b   : > { %8606 = vmatmul.mubr.msk.bf16.gmra.mrb[12].mxu0 %vm391_vm2, %v1958_v1 }
 0x19c   : > { %8609 = vmatprep.mubr.msk.bf16.mxu0 %vm391_vm2, %v1962_v31 }
 0x1a3   : > { %8610 = vmatmul.mubr.msk.bf16.gmra.mrb[16].mxu0 %vm391_vm2, %v1966_v10 }
 0x1a4   : > { %8613 = vmatprep.mubr.msk.bf16.mxu0 %vm391_vm2, %v1970_v36 }
 0x1ab   : > { %8614 = vmatmul.mubr.msk.bf16.gmra.mrb[20].mxu0 %vm391_vm2, %v1974_v17 }
 0x1ac   : > { %8617 = vmatprep.mubr.msk.bf16.mxu0 %vm391_vm2, %v1978_v35 }
 0x1b3   : > { %8618 = vmatmul.mubr.msk.bf16.gmra.mrb[24].mxu0 %vm391_vm2, %v1982_v48 }
 0x1b4   : > { %8621 = vmatprep.mubr.msk.bf16.mxu0 %vm391_vm2, %v1986_v4 }
 0x1bb   : > { %8622 = vmatmul.mubr.msk.bf16.gmra.mrb[28].mxu0 %vm391_vm2, %v1990_v28 }
 0x1bc   : > { %8625 = vmatprep.mubr.msk.bf16.mxu0 %vm391_vm2, %v10479_v63 }
 0x1c3   : > { %8626 = vmatmul.mubr.msk.bf16.gmra.mrb[32].mxu0 %vm391_vm2, %v10488_v40 }
 0x1c4   : > { %8631 = vmatprep.mubr.msk.bf16.mxu0 %vm391_vm2, %v10393_v21  ;;  %v289_v21 = vld [vmem:[%s13325_s4] sm:$0xff] }
 0x1c5   : > { %3200 = vperm.xlu0 %9690, %v289_v21  }
 0x1c9   : > { %3205 = vperm.xlu0 %9690, %v290_v42   ;;  %v306_v42 = vld [vmem:[%s13325_s4 + $0x88] sm:$0xff] }
 0x1cb   : > { %8632 = vmatmul.mubr.msk.bf16.vlgmr.msra.gmra.mrb[0].mxu0 %vm391_vm2, %v10400_v32  ;;  %v291_v32 = vld [vmem:[%s13325_s4 + $0x10] sm:$0xff] }
 0x1cc   : > { %8668 = vmatpush3.bf16.msra.mxu0 %v2595_v51  ;;  %8635 = vmatprep.mubr.msk.bf16.mxu0 %vm391_vm2, %v10416_v24  ;;  %v292_v24 = vld [vmem:[%s13325_s4 + $0x18] sm:$0xff]  ;;  %v2504_v51 = vrot.slane %v9854_v16, 5  ;;  %v305_v16 = vld [vmem:[%s13325_s4 + $0x80] sm:$0xff] }
 0x1cd   : > { %9669 = vmatprep.subr.msk.bf16.mxu0 %vm446_vm0, %v10499_v34  ;;  %3210 = vperm.xlu1 %9691, %v291_v32   ;;  %v2506_v32 = vrot.slane %v9862_v23, 5 }
 0x1d1   : > { %3215 = vperm.xlu1 %9691, %v292_v24   ;;  %v307_v24 = vld [vmem:[%s13325_s4 + $0x90] sm:$0xff] }
 0x1d3   : > { %8636 = vmatmul.mubr.msk.bf16.gmra.mrb[4].mxu0 %vm391_vm2, %v10421_v5  ;;  %v293_v5 = vld [vmem:[%s13325_s4 + $0x20] sm:$0xff] }
 0x1d4   : > { %8639 = vmatprep.mubr.msk.bf16.mxu0 %vm391_vm2, %v10430_v54  ;;  %v266_v54 = vld [vmem:[%s9836_s27 + $0x170] sm:$0xff]  ;;  %3220 = vperm.xlu0 %9690, %v293_v5   ;;  %v2507_v5 = vsel %vm2502_vm8, %v2504_v51, %v2506_v32 }
 0x1db   : > { %8640 = vmatmul.mubr.msk.bf16.gmra.mrb[8].mxu0 %vm391_vm2, %v10435_v18  ;;  %v294_v18 = vld [vmem:[%s13325_s4 + $0x28] sm:$0xff] }
 0x1dc   : > { %8643 = vmatprep.mubr.msk.bf16.mxu0 %vm391_vm2, %v1958_v1  ;;  %v295_v1 = vld [vmem:[%s13325_s4 + $0x30] sm:$0xff]  ;;  %3225 = vperm.xlu1 %9691, %v294_v18   ;;  %v2510_v18 = vrot.slane %v9887_v37, 5  ;;  %v312_v37 = vld [vmem:[%s13325_s4 + $0xb8] sm:$0xff] }
 0x1dd   : > { %3230 = vperm.xlu0 %9690, %v295_v1   ;;  %v310_v1 = vld [vmem:[%s13325_s4 + $0xa8] sm:$0xff] }
 0x1e3   : > { %8644 = vmatmul.mubr.msk.bf16.gmra.mrb[12].mxu0 %vm391_vm2, %v1962_v31 }
 0x1e4   : > { %8647 = vmatprep.mubr.msk.bf16.mxu0 %vm391_vm2, %v1966_v10  ;;  %v296_v10 = vld [vmem:[%s13325_s4 + $0x38] sm:$0xff] }
 0x1e5   : > { %3235 = vperm.xlu1 %9691, %v296_v10   ;;  %v311_v10 = vld [vmem:[%s13325_s4 + $0xb0] sm:$0xff] }
 0x1e9   : > { %3245 = vperm.xlu1 %9691, %v298_v38  }
 0x1eb   : > { %8648 = vmatmul.mubr.msk.bf16.gmra.mrb[16].mxu0 %vm391_vm2, %v1970_v36  ;;  %v267_v36 = vld [vmem:[%s9836_s27 + $0x178] sm:$0xff] }
 0x1ec   : > { %8651 = vmatprep.mubr.msk.bf16.mxu0 %vm391_vm2, %v1974_v17  ;;  %v10549_v31 = vpack.c.bf16 %v267_v36, %v266_v54  ;;  %v2943_v54 = vsel %vm446_vm0, %v10499_v34, 0  ;;  %v309_v36 = vld [vmem:[%s13325_s4 + $0xa0] sm:$0xff]  ;;  %v2512_v34 = vrot.slane %v9890_v39, 5 }
 0x1ed   : > { %3255 = vperm.xlu1 %9691, %v300_v60   ;;  %v313_v39 = vld [vmem:[%s13325_s4 + $0xc0] sm:$0xff]  ;;  %v315_v60 = vld [vmem:[%s13325_s4 + $0xd0] sm:$0xff] }
 0x1ee   : > { %v2272_v17 = vshrl.u32 %v10549_v31, 16  ;;  %v2513_v38 = vsel %vm2502_vm8, %v2510_v18, %v2512_v34 }
 0x1f3   : > { %8652 = vmatmul.mubr.msk.bf16.gmra.mrb[20].mxu0 %vm391_vm2, %v1978_v35  ;;  %v297_v35 = vld [vmem:[%s13325_s4 + $0x40] sm:$0xff] }
 0x1f4   : > { %8655 = vmatprep.mubr.msk.bf16.mxu0 %vm391_vm2, %v1982_v48  ;;  %v2275_v48 = vshll.u32 %v10549_v31, 16  ;;  %3240 = vperm.xlu0 %9690, %v297_v35  }
 0x1f6   : > { %v2277_v50 = vrot.slane %v2275_v48, 5 }
 0x1f8   : > { %3250 = vperm.xlu0 %9690, %v299_v58   ;;  %v2514_v58 = vrot.slane %v9901_v47, 5  ;;  %v316_v47 = vld [vmem:[%s13325_s4 + $0xd8] sm:$0xff] }
 0x1fb   : > { %8656 = vmatmul.mubr.msk.bf16.gmra.mrb[24].mxu0 %vm391_vm2, %v1986_v4  ;;  %v2274_v4 = vrot.slane %v2272_v17, 4 }
 0x1fc   : > { %8659 = vmatprep.mubr.msk.bf16.mxu0 %vm391_vm2, %v1990_v28  ;;  %v301_v28 = vld [vmem:[%s13325_s4 + $0x60] sm:$0xff] }
 0x1fd   : > { %v2278_v26 = vor.u32 %v2277_v50, %v2274_v4  ;;  %3260 = vperm.xlu0 %9690, %v301_v28   ;;  %v2516_v4 = vrot.slane %v9904_v49, 5  ;;  %v314_v50 = vld [vmem:[%s13325_s4 + $0xc8] sm:$0xff]  ;;  %v2515_v28 = vsel %vm2502_vm8, %v2512_v34, %v2514_v58  ;;  %v317_v49 = vld [vmem:[%s13325_s4 + $0xe0] sm:$0xff] }
 0x1ff   : > { %v2279_v21 = vsel %vm1923_vm6, %v10484_v22, %v2278_v26  ;;  %v2508_v22 = vrot.slane %v9867_v27, 5  ;;  %v308_v27 = vld [vmem:[%s13325_s4 + $0x98] sm:$0xff]  ;;  %v2517_v26 = vsel %vm2502_vm8, %v2514_v58, %v2516_v4  ;;  %v2820_v58 = vrot.slane %v10012_v9, 5 }
 0x200   : > { %v2829_v9 = vrot.slane %v10042_v29, 6 }
 0x201   : > { %3270 = vperm.xlu0 %9690, %v303_v6   ;;  %v2509_v23 = vsel %vm2502_vm8, %v2506_v32, %v2508_v22  ;;  %v2511_v35 = vsel %vm2502_vm8, %v2508_v22, %v2510_v18  ;;  %v319_v6 = vld [vmem:[%s13325_s4 + $0xf0] sm:$0xff]  ;;  %v322_v32 = vld [vmem:[%s13325_s4 + $0x108] sm:$0xff] }
 0x202   : > { %v323_v22 = vld [vmem:[%s13325_s4 + $0x110] sm:$0xff] }
 0x203   : > { %8660 = vmatmul.mubr.msk.bf16.gmra.mrb[28].mxu0 %vm391_vm2, %v10479_v63  ;;  %v302_v63 = vld [vmem:[%s13325_s4 + $0x68] sm:$0xff] }
 0x204   : > { %8663 = vmatprep.mubr.msk.bf16.mxu0 %vm391_vm2, %v10488_v40  ;;  %3265 = vperm.xlu1 %9691, %v302_v63   ;;  %v2505_v40 = vsel %vm2502_vm8, %v2503_v52, %v2504_v51  ;;  %v2518_v52 = vrot.slane %v9915_v57, 5  ;;  %v2520_v51 = vrot.slane %v9918_v59, 5  ;;  %v318_v63 = vld [vmem:[%s13325_s4 + $0xe8] sm:$0xff]  ;;  %v320_v57 = vld [vmem:[%s13325_s4 + $0xf8] sm:$0xff]  ;;  %v321_v59 = vld [vmem:[%s13325_s4 + $0x100] sm:$0xff] }
 0x205   : > { %3280 = vperm.xlu0 %9690, %v305_v16   ;;  %v2524_v16 = vrot.slane %v13531_v3, 5  ;;  %v2526_v3 = vrot.slane %v13532_v41, 5  ;;  %v2534_v41 = vrot.slane %v9983_v46, 5  ;;  %v2538_v46 = vrot.slane %v10549_v31, 5 }
 0x208   : > { %3275 = vperm.xlu1 %9691, %v304_v11   ;;  %v2522_v11 = vrot.slane %v13530_v45, 5  ;;  %v324_v45 = vld [vmem:[%s13325_s4 + $0x118] sm:$0xff] }
 0x209   : > { %3290 = vperm.xlu0 %9690, %v307_v24  }
 0x20a   : > { %v2525_v24 = vsel %vm2502_vm8, %v2522_v11, %v2524_v16 }
 0x20b   : > { %8664 = vmatmul.mubr.msk.bf16.gmra.mrb[32].mxu0 %vm391_vm2, %v2279_v21  ;;  %v2519_v21 = vsel %vm2502_vm8, %v2516_v4, %v2518_v52 }
 0x20c   : > { %8669 = vmatprep.mubr.msk.bf16.mxu0 %vm391_vm2, %v2505_v40  ;;  %3285 = vperm.xlu1 %9691, %v306_v42   ;;  %v2521_v40 = vsel %vm2502_vm8, %v2518_v52, %v2520_v51  ;;  %v2523_v42 = vsel %vm2502_vm8, %v2520_v51, %v2522_v11 }
 0x20d   : > { %3300 = vperm.xlu0 %9690, %v309_v36   ;;  %v2532_v36 = vrot.slane %v13535_v25, 5  ;;  %v2814_v25 = vrot.slane %v9995_v56, 6 }
 0x210   : > { %3295 = vperm.xlu1 %9691, %v308_v27   ;;  %v2530_v27 = vrot.slane %v13534_v44, 5  ;;  %v2813_v44 = vrot.slane %v9992_v55, 5  ;;  %v2821_v55 = vrot.slane %v10015_v12, 6 }
 0x211   : > { %3310 = vperm.xlu0 %9690, %v311_v10  }
 0x212   : > { %v2533_v34 = vsel %vm2502_vm8, %v2530_v27, %v2532_v36  ;;  %v2822_v4 = vor.u32 %v2821_v55, %v2820_v58  ;;  %v13562_v55 = vld [vmem:[#allocation25_spill] sm:$0xff] }
 0x213   : > { %8670 = vmatmul.mubr.msk.bf16.vlgmr.msra.gmra.mrb[0].mxu0 %vm391_vm2, %v2507_v5  ;;  %v2528_v5 = vrot.slane %v13533_v53, 5  ;;  %v2536_v53 = vrot.slane %v10303_v19, 5 }
 0x214   : > { %8706 = vmatpush3.bf16.msra.mxu0 %v2943_v54  ;;  %8673 = vmatprep.mubr.msk.bf16.mxu0 %vm391_vm2, %v2509_v23  ;;  %v2527_v54 = vsel %vm2502_vm8, %v2524_v16, %v2526_v3 }
 0x215   : > { %3305 = vperm.xlu1 %9691, %v310_v1   ;;  %3320 = vperm.xlu0 %9690, %v313_v39   ;;  %v2529_v23 = vsel %vm2502_vm8, %v2526_v3, %v2528_v5  ;;  %v2531_v18 = vsel %vm2502_vm8, %v2528_v5, %v2530_v27  ;;  %v2535_v1 = vsel %vm2502_vm8, %v2532_v36, %v2534_v41  ;;  %v13557_v27 = vld [vmem:[#allocation20_spill] sm:$0xff] }
 0x216   : > { %v2537_v10 = vsel %vm2502_vm8, %v2534_v41, %v2536_v53  ;;  %v2539_v39 = vsel %vm2502_vm8, %v2536_v53, %v2538_v46  ;;  %v2849_v36 = vrot.slane %v13557_v27, 6  ;;  %v13558_v53 = vld [vmem:[#allocation21_spill] sm:$0xff]  ;;  %v13561_v46 = vld [vmem:[#allocation24_spill] sm:$0xff] }
 0x219   : > { %3315 = vperm.xlu1 %9691, %v312_v37   ;;  %3330 = vperm.xlu0 %9690, %v315_v60   ;;  %v2815_v37 = vor.u32 %v2814_v25, %v2813_v44 }
 0x21b   : > { %8674 = vmatmul.mubr.msk.bf16.gmra.mrb[4].mxu0 %vm391_vm2, %v2511_v35  ;;  %v2816_v35 = vrot.slane %v9998_v61, 5  ;;  %v2824_v61 = vrot.slane %v10018_v14, 5 }
 0x21c   : > { %8677 = vmatprep.mubr.msk.bf16.mxu0 %vm391_vm2, %v2513_v38  ;;  %v2817_v38 = vrot.slane %v10001_v62, 6  ;;  %v2825_v62 = vrot.slane %v10021_v15, 6 }
 0x21d   : > { %3325 = vperm.xlu1 %9691, %v314_v50   ;;  %3340 = vperm.xlu0 %9690, %v317_v49   ;;  %v13549_v49 = vld [vmem:[#allocation12_spill] sm:$0xff] }
 0x21e   : > { %v2818_v19 = vor.u32 %v2817_v38, %v2816_v35  ;;  %v2826_v50 = vor.u32 %v2825_v62, %v2824_v61  ;;  %v2833_v14 = vrot.slane %v13549_v49, 6  ;;  %v13560_v35 = vld [vmem:[#allocation23_spill] sm:$0xff]  ;;  %v13563_v61 = vld [vmem:[#allocation26_spill] sm:$0xff] }
 0x21f   : > { %v2856_v38 = vrot.slane %v13560_v35, 5  ;;  %v2861_v62 = vrot.slane %v13563_v61, 6  ;;  %v13565_v49 = vld [vmem:[#allocation30_spill] sm:$0xff] }
 0x220   : > { %v2819_v56 = vsel %vm2812_vm9, %v2815_v37, %v2818_v19  ;;  %v2823_v60 = vsel %vm2812_vm9, %v2818_v19, %v2822_v4  ;;  %v2827_v12 = vsel %vm2812_vm9, %v2822_v4, %v2826_v50  ;;  %v2857_v37 = vrot.slane %v13561_v46, 6 }
 0x221   : > { %3335 = vperm.xlu1 %9691, %v316_v47   ;;  %3350 = vperm.xlu0 %9690, %v319_v6  }
 0x223   : > { %8678 = vmatmul.mubr.msk.bf16.gmra.mrb[8].mxu0 %vm391_vm2, %v2515_v28  ;;  %v2828_v28 = vrot.slane %v10039_v33, 5 }
 0x224   : > { %8681 = vmatprep.mubr.msk.bf16.mxu0 %vm391_vm2, %v2517_v26  ;;  %v13548_v26 = vld [vmem:[#allocation11_spill] sm:$0xff] }
 0x225   : > { %3345 = vperm.xlu1 %9691, %v318_v63   ;;  %3360 = vperm.xlu0 %9690, %v321_v59   ;;  %v2832_v47 = vrot.slane %v13548_v26, 5  ;;  %v2830_v15 = vor.u32 %v2829_v9, %v2828_v28  ;;  %v13550_v63 = vld [vmem:[#allocation13_spill] sm:$0xff]  ;;  %v13553_v59 = vld [vmem:[#allocation16_spill] sm:$0xff] }
 0x226   : > { %v2836_v6 = vrot.slane %v13550_v63, 5  ;;  %v2841_v11 = vrot.slane %v13553_v59, 6  ;;  %v13564_v26 = vld [vmem:[#allocation29_spill] sm:$0xff]  ;;  %v2884_v59 = vrot.slane %v2272_v17, 5 }
 0x227   : > { %v2834_v52 = vor.u32 %v2833_v14, %v2832_v47  ;;  %v2831_v51 = vsel %vm2812_vm9, %v2826_v50, %v2830_v15  ;;  %v2864_v50 = vrot.slane %v13546_v20, 5  ;;  %v2868_v47 = vrot.slane %v13564_v26, 5 }
 0x228   : > { %v2869_v14 = vrot.slane %v13565_v49, 6  ;;  %v2873_v20 = vrot.slane %v10150_v13, 6 }
 0x229   : > { %3355 = vperm.xlu1 %9691, %v320_v57   ;;  %3370 = vperm.xlu0 %9690, %v323_v22   ;;  %v2835_v29 = vsel %vm2812_vm9, %v2830_v15, %v2834_v52 }
 0x22b   : > { %8682 = vmatmul.mubr.msk.bf16.gmra.mrb[12].mxu0 %vm391_vm2, %v2519_v21  ;;  %v13551_v21 = vld [vmem:[#allocation14_spill] sm:$0xff] }
 0x22c   : > { %8685 = vmatprep.mubr.msk.bf16.mxu0 %vm391_vm2, %v2521_v40  ;;  %v2837_v33 = vrot.slane %v13551_v21, 6  ;;  %v13552_v40 = vld [vmem:[#allocation15_spill] sm:$0xff]  ;;  %v2877_v21 = vrot.slane %v10164_v30, 6 }
 0x22d   : > { %3365 = vperm.xlu1 %9691, %v322_v32   ;;  %v2840_v57 = vrot.slane %v13552_v40, 5 }
 0x22e   : > { %v2838_v16 = vor.u32 %v2837_v33, %v2836_v6  ;;  %v2876_v6 = vrot.slane %v10161_v2, 5  ;;  %v2885_v2 = vrot.slane %v2275_v48, 6 }
 0x22f   : > { %v2842_v32 = vor.u32 %v2841_v11, %v2840_v57 }
 0x230   : > { %v2839_v22 = vsel %vm2812_vm9, %v2834_v52, %v2838_v16  ;;  %v2872_v52 = vrot.slane %v10147_v7, 5  ;;  %v2881_v7 = vrot.slane %v10311_v0, 6  ;;  %v2878_v13 = vor.u32 %v2877_v21, %v2876_v6 }
 0x231   : > { %3375 = vperm.xlu1 %9691, %v324_v45   ;;  %v13555_v45 = vld [vmem:[#allocation18_spill] sm:$0xff]  ;;  %v2843_v5 = vsel %vm2812_vm9, %v2838_v16, %v2842_v32 }
 0x232   : > { %v2845_v3 = vrot.slane %v13555_v45, 6 }
 0x233   : > { %8686 = vmatmul.mubr.msk.bf16.gmra.mrb[16].mxu0 %vm391_vm2, %v2523_v42  ;;  %v13554_v42 = vld [vmem:[#allocation17_spill] sm:$0xff] }
 0x234   : > { %8689 = vmatprep.mubr.msk.bf16.mxu0 %vm391_vm2, %v2525_v24  ;;  %v2844_v24 = vrot.slane %v13554_v42, 5 }
 0x23b   : > { %8690 = vmatmul.mubr.msk.bf16.gmra.mrb[20].mxu0 %vm391_vm2, %v2527_v54  ;;  %v13556_v54 = vld [vmem:[#allocation19_spill] sm:$0xff] }
 0x23c   : > { %8693 = vmatprep.mubr.msk.bf16.mxu0 %vm391_vm2, %v2529_v23  ;;  %v2848_v23 = vrot.slane %v13556_v54, 5  ;;  %v10813_v54 = vld [vmem:[%s13324_s3] ss:$0 sm:$0xff] }
 0x243   : > { %8694 = vmatmul.mubr.msk.bf16.gmra.mrb[24].mxu0 %vm391_vm2, %v2531_v18  ;;  %v2846_v18 = vor.u32 %v2845_v3, %v2844_v24 }
 0x244   : > { %8697 = vmatprep.mubr.msk.bf16.mxu0 %vm391_vm2, %v2533_v34  ;;  %v2850_v34 = vor.u32 %v2849_v36, %v2848_v23  ;;  %v10786_v11 = vpop.permute.xlu0 %3200 }
 0x245   : > { %v2847_v41 = vsel %vm2812_vm9, %v2842_v32, %v2846_v18  ;;  %13566 = vst [vmem:[#allocation3_spill] sm:$0xff] %v10786_v11 }
 0x246   : > { %v2851_v25 = vsel %vm2812_vm9, %v2846_v18, %v2850_v34 }
 0x248   : > { %v10790_v32 = vpop.permute.xlu0 %3205 }
 0x249   : > { %13568 = vst [vmem:[#allocation5_spill] sm:$0xff] %v10790_v32 }
 0x24b   : > { %8698 = vmatmul.mubr.msk.bf16.gmra.mrb[28].mxu0 %vm391_vm2, %v2535_v1  ;;  %v2852_v1 = vrot.slane %v13558_v53, 5 }
 0x24c   : > { %8701 = vmatprep.mubr.msk.bf16.mxu0 %vm391_vm2, %v2537_v10  ;;  %v13559_v10 = vld [vmem:[#allocation22_spill] sm:$0xff]  ;;  %v10788_v16 = vpop.permute.xlu1 %3210 }
 0x24d   : > { %v2853_v44 = vrot.slane %v13559_v10, 6  ;;  %13567 = vst [vmem:[#allocation4_spill] sm:$0xff] %v10788_v16 }
 0x24f   : > { %v2854_v19 = vor.u32 %v2853_v44, %v2852_v1 }
 0x250   : > { %v10792_v17 = vpop.permute.xlu1 %3215 }
 0x251   : > { %v2855_v58 = vsel %vm2812_vm9, %v2850_v34, %v2854_v19  ;;  %13569 = vst [vmem:[#allocation6_spill] sm:$0xff] %v10792_v17 }
 0x253   : > { %8702 = vmatmul.mubr.msk.bf16.gmra.mrb[32].mxu0 %vm391_vm2, %v2539_v39  ;;  %v2858_v39 = vor.u32 %v2857_v37, %v2856_v38  ;;  %v10794_v31 = vpop.permute.xlu0 %3220 }
 0x254   : > { %8707 = vmatprep.mubr.msk.bf16.mxu0 %vm391_vm2, %v2819_v56  ;;  %v2860_v56 = vrot.slane %v13562_v55, 5  ;;  %13570 = vst [vmem:[#allocation7_spill] sm:$0xff] %v10794_v31 }
 0x255   : > { %v2859_v4 = vsel %vm2812_vm9, %v2854_v19, %v2858_v39 }
 0x256   : > { %v2862_v28 = vor.u32 %v2861_v62, %v2860_v56 }
 0x25b   : > { %8708 = vmatmul.mubr.msk.bf16.vlgmr.msra.gmra.mrb[0].mxu0 %vm391_vm2, %v2823_v60  ;;  %v2865_v60 = vrot.slane %v13547_v8, 6  ;;  %v2870_v8 = vor.u32 %v2869_v14, %v2868_v47  ;;  %v10796_v48 = vpop.permute.xlu1 %3225 }
 0x25c   : > { %8711 = vmatprep.mubr.msk.bf16.mxu0 %vm391_vm2, %v2827_v12  ;;  %v2863_v12 = vsel %vm2812_vm9, %v2858_v39, %v2862_v28  ;;  %13571 = vst [vmem:[#allocation8_spill] sm:$0xff] %v10796_v48 }
 0x25d   : > { %v2866_v9 = vor.u32 %v2865_v60, %v2864_v50 }
 0x25f   : > { %v2867_v15 = vsel %vm2812_vm9, %v2862_v28, %v2866_v9  ;;  %v2871_v63 = vsel %vm2812_vm9, %v2866_v9, %v2870_v8 }
 0x263   : > { %8712 = vmatmul.mubr.msk.bf16.gmra.mrb[4].mxu0 %vm391_vm2, %v2831_v51  ;;  %v2874_v51 = vor.u32 %v2873_v20, %v2872_v52 }
 0x264   : > { %8715 = vmatprep.mubr.msk.bf16.mxu0 %vm391_vm2, %v2835_v29  ;;  %v2880_v29 = vrot.slane %v10308_v43, 5  ;;  %v2886_v43 = vor.u32 %v2885_v2, %v2884_v59  ;;  %v10800_v42 = vpop.permute.xlu1 %3235 }
 0x265   : > { %v2875_v33 = vsel %vm2812_vm9, %v2870_v8, %v2874_v51  ;;  %v2879_v57 = vsel %vm2812_vm9, %v2874_v51, %v2878_v13  ;;  %13573 = vst [vmem:[#allocation10_spill] sm:$0xff] %v10800_v42 }
 0x266   : > { %v2882_v40 = vor.u32 %v2881_v7, %v2880_v29 }
 0x268   : > { %v2883_v30 = vsel %vm2812_vm9, %v2878_v13, %v2882_v40  ;;  %v2887_v0 = vsel %vm2812_vm9, %v2882_v40, %v2886_v43  ;;  %v10804_v45 = vpop.permute.xlu1 %3245 }
 0x269   : > { %13575 = vst [vmem:[#allocation28_spill] sm:$0xff] %v10804_v45 }
 0x26b   : > { %8716 = vmatmul.mubr.msk.bf16.gmra.mrb[8].mxu0 %vm391_vm2, %v2839_v22  ;;  %v10798_v22 = vpop.permute.xlu0 %3230 }
 0x26c   : > { %8719 = vmatprep.mubr.msk.bf16.mxu0 %vm391_vm2, %v2843_v5  ;;  %13572 = vst [vmem:[#allocation9_spill] sm:$0xff] %v10798_v22  ;;  %v10808_v5 = vpop.permute.xlu1 %3255 }
 0x26d   : > { %13577 = vst [vmem:[#allocation12_spill] sm:$0xff] %v10808_v5 }
 0x273   : > { %8720 = vmatmul.mubr.msk.bf16.gmra.mrb[12].mxu0 %vm391_vm2, %v2847_v41  ;;  %v10802_v24 = vpop.permute.xlu0 %3240 }
 0x274   : > { %8723 = vmatprep.mubr.msk.bf16.mxu0 %vm391_vm2, %v2851_v25  ;;  %13574 = vst [vmem:[#allocation27_spill] sm:$0xff] %v10802_v24 }
 0x277   : > { %v10806_v3 = vpop.permute.xlu0 %3250 }
 0x278   : > { %13576 = vst [vmem:[#allocation11_spill] sm:$0xff] %v10806_v3 }
 0x27b   : > { %8724 = vmatmul.mubr.msk.bf16.gmra.mrb[16].mxu0 %vm391_vm2, %v2855_v58 }
 0x27c   : > { %8727 = vmatprep.mubr.msk.bf16.mxu0 %vm391_vm2, %v2859_v4  ;;  %v10818_v18 = vpop.permute.xlu0 %3260 }
 0x27d   : > { %13578 = vst [vmem:[#allocation13_spill] sm:$0xff] %v10818_v18 }
 0x280   : > { %v10841_v39 = vpop.permute.xlu0 %3270 }
 0x281   : > { %13580 = vst [vmem:[#allocation15_spill] sm:$0xff] %v10841_v39 }
 0x283   : > { %8728 = vmatmul.mubr.msk.bf16.gmra.mrb[20].mxu0 %vm391_vm2, %v2863_v12  ;;  %v10828_v44 = vpop.permute.xlu1 %3265 }
 0x284   : > { %8731 = vmatprep.mubr.msk.bf16.mxu0 %vm391_vm2, %v2867_v15  ;;  %13579 = vst [vmem:[#allocation14_spill] sm:$0xff] %v10828_v44  ;;  %v10870_v7 = vpop.permute.xlu0 %3280 }
 0x285   : > { %13582 = vst [vmem:[#allocation17_spill] sm:$0xff] %v10870_v7 }
 0x287   : > { %v10850_v28 = vpop.permute.xlu1 %3275 }
 0x288   : > { %13581 = vst [vmem:[#allocation16_spill] sm:$0xff] %v10850_v28 }
 0x28b   : > { %8732 = vmatmul.mubr.msk.bf16.gmra.mrb[24].mxu0 %vm391_vm2, %v2871_v63 }
 0x28c   : > { %8735 = vmatprep.mubr.msk.bf16.mxu0 %vm391_vm2, %v2875_v33 }
 0x293   : > { %8736 = vmatmul.mubr.msk.bf16.gmra.mrb[28].mxu0 %vm391_vm2, %v2879_v57 }
 0x294   : > { %8739 = vmatprep.mubr.msk.bf16.mxu0 %vm391_vm2, %v2883_v30 }
 0x29b   : > { %8740 = vmatmul.mubr.msk.bf16.gmra.mrb[32].mxu0 %vm391_vm2, %v2887_v0  ;;  %v10879_v0 = vpop.permute.xlu1 %3285 }
 0x29c   : > { %13583 = vst [vmem:[#allocation18_spill] sm:$0xff] %v10879_v0 }
 0x32e   : > { %v8709_v23 = vpop.f32.mrb[0].mxu0 }
 0x32f   : > { %v10816_v27 = vadd.f32 %v8709_v23, %v10813_v54  ;;  %v2979_v36 = vpop.f32.mrb[1].mxu0 }
 0x330   : > { %v10821_v34 = vadd.f32 %v10813_v54, %v2979_v36  ;;  %v8710_v41 = vpop.f32.mrb[2].mxu0 }
 0x331   : > { %v3380_v53 = vmul.f32 %v10788_v16, %v10816_v27  ;;  %v10826_v1 = vadd.f32 %v8710_v41, %v10813_v54  ;;  %v2982_v10 = vpop.f32.mrb[3].mxu0 }
 0x332   : > { %v3378_v25 = vmul.f32 %v10786_v11, %v10821_v34  ;;  %v10833_v35 = vadd.f32 %v10813_v54, %v2982_v10 }
 0x333   : > { %v3381_v46 = vmul.f32 %v10792_v17, %v10826_v1  ;;  %v3493_v19 = vmul.f32 %v3380_v53, %v10816_v27  ;;  %v3417_v62 = vsel %vm391_vm2, %v3380_v53, 0.0 }
 0x334   : > { %v3491_v38 = vmul.f32 %v3378_v25, %v10821_v34  ;;  %v3379_v37 = vmul.f32 %v10790_v32, %v10833_v35  ;;  %v3414_v58 = vsel %vm391_vm2, %v3378_v25, 0.0 }
 0x335   : > { %v3494_v12 = vmul.f32 %v3381_v46, %v10826_v1  ;;  %v3530_v14 = vsel %vm391_vm2, %v3493_v19, 0.0  ;;  %v3419_v51 = vsel %vm391_vm2, %v3381_v46, 0.0 }
 0x336   : > { %v3415_v55 = vsel %vm391_vm2, %v3379_v37, 0.0  ;;  %v3492_v56 = vmul.f32 %v3379_v37, %v10833_v35  ;;  %v8713_v61 = vpop.f32.mrb[4].mxu0  ;;  %v3527_v9 = vsel %vm391_vm2, %v3491_v38, 0.0 }
 0x337   : > { %v3416_v4 = vadd.f32 %v3415_v55, %v3414_v58  ;;  %v10848_v50 = vadd.f32 %v8713_v61, %v10813_v54  ;;  %v2995_v60 = vpop.f32.mrb[5].mxu0  ;;  %v3532_v13 = vsel %vm391_vm2, %v3494_v12, 0.0 }
 0x338   : > { %v3528_v26 = vsel %vm391_vm2, %v3492_v56, 0.0  ;;  %v10856_v47 = vadd.f32 %v10813_v54, %v2995_v60  ;;  %v8714_v49 = vpop.f32.mrb[6].mxu0 }
 0x339   : > { %v3418_v15 = vadd.f32 %v3417_v62, %v3416_v4  ;;  %v3529_v52 = vadd.f32 %v3528_v26, %v3527_v9  ;;  %v10860_v20 = vadd.f32 %v8714_v49, %v10813_v54  ;;  %v2998_v8 = vpop.f32.mrb[7].mxu0  ;;  %v3384_v63 = vmul.f32 %v10798_v22, %v10848_v50  ;;  %v10897_v9 = vpop.permute.xlu0 %3290 }
 0x33a   : > { %v3382_v6 = vmul.f32 %v10794_v31, %v10856_v47  ;;  %v10868_v21 = vadd.f32 %v10813_v54, %v2998_v8  ;;  %13584 = vst [vmem:[#allocation19_spill] sm:$0xff] %v10897_v9 }
 0x33b   : > { %v3531_v33 = vadd.f32 %v3530_v14, %v3529_v52  ;;  %v3420_v29 = vadd.f32 %v3419_v51, %v3418_v15  ;;  %v3385_v43 = vmul.f32 %v10800_v42, %v10860_v20  ;;  %v3497_v23 = vmul.f32 %v3384_v63, %v10848_v50  ;;  %v10908_v51 = vpop.permute.xlu1 %3295 }
 0x33c   : > { %v3421_v40 = vsel %vm391_vm2, %v3382_v6, 0.0  ;;  %v3495_v57 = vmul.f32 %v3382_v6, %v10856_v47  ;;  %v3383_v59 = vmul.f32 %v10796_v48, %v10868_v21  ;;  %v3425_v19 = vsel %vm391_vm2, %v3384_v63, 0.0  ;;  %13585 = vst [vmem:[#allocation20_spill] sm:$0xff] %v10908_v51 }
 0x33d   : > { %v3422_v2 = vadd.f32 %v3421_v40, %v3420_v29  ;;  %v3533_v30 = vadd.f32 %v3532_v13, %v3531_v33  ;;  %v3498_v56 = vmul.f32 %v3385_v43, %v10860_v20  ;;  %v3427_v12 = vsel %vm391_vm2, %v3385_v43, 0.0 }
 0x33e   : > { %v3534_v36 = vsel %vm391_vm2, %v3495_v57, 0.0  ;;  %v3423_v41 = vsel %vm391_vm2, %v3383_v59, 0.0  ;;  %v8717_v53 = vpop.f32.mrb[8].mxu0  ;;  %v3496_v38 = vmul.f32 %v3383_v59, %v10868_v21  ;;  %v3538_v15 = vsel %vm391_vm2, %v3497_v23, 0.0 }
 0x33f   : > { %v3535_v10 = vadd.f32 %v3534_v36, %v3533_v30  ;;  %v3424_v25 = vadd.f32 %v3423_v41, %v3422_v2  ;;  %v10886_v46 = vadd.f32 %v8717_v53, %v10813_v54  ;;  %v3011_v37 = vpop.f32.mrb[9].mxu0  ;;  %v3540_v13 = vsel %vm391_vm2, %v3498_v56, 0.0 }
 0x340   : > { %v10890_v58 = vadd.f32 %v10813_v54, %v3011_v37  ;;  %v8718_v55 = vpop.f32.mrb[10].mxu0  ;;  %v3536_v62 = vsel %vm391_vm2, %v3496_v38, 0.0 }
 0x341   : > { %v3426_v61 = vadd.f32 %v3425_v19, %v3424_v25  ;;  %v10895_v4 = vadd.f32 %v8718_v55, %v10813_v54  ;;  %v3014_v60 = vpop.f32.mrb[11].mxu0  ;;  %v3537_v26 = vadd.f32 %v3536_v62, %v3535_v10  ;;  %v3388_v52 = vmul.f32 %v10806_v3, %v10886_v46  ;;  %v10924_v25 = vpop.permute.xlu0 %3300 }
 0x342   : > { %v3386_v49 = vmul.f32 %v10802_v24, %v10890_v58  ;;  %v10903_v14 = vadd.f32 %v10813_v54, %v3014_v60  ;;  %13586 = vst [vmem:[#allocation21_spill] sm:$0xff] %v10924_v25 }
 0x343   : > { %v3428_v8 = vadd.f32 %v3427_v12, %v3426_v61  ;;  %v3539_v63 = vadd.f32 %v3538_v15, %v3537_v26  ;;  %v3389_v57 = vmul.f32 %v10808_v5, %v10895_v4  ;;  %v3501_v36 = vmul.f32 %v3388_v52, %v10886_v46  ;;  %v10935_v26 = vpop.permute.xlu1 %3305 }
 0x344   : > { %v3429_v6 = vsel %vm391_vm2, %v3386_v49, 0.0  ;;  %v3499_v33 = vmul.f32 %v3386_v49, %v10890_v58  ;;  %v3387_v29 = vmul.f32 %v10804_v45, %v10903_v14  ;;  %v3433_v38 = vsel %vm391_vm2, %v3388_v52, 0.0  ;;  %13587 = vst [vmem:[#allocation22_spill] sm:$0xff] %v10935_v26 }
 0x345   : > { %v3430_v40 = vadd.f32 %v3429_v6, %v3428_v8  ;;  %v3541_v59 = vadd.f32 %v3540_v13, %v3539_v63  ;;  %v3502_v61 = vmul.f32 %v3389_v57, %v10895_v4  ;;  %v3435_v49 = vsel %vm391_vm2, %v3389_v57, 0.0 }
 0x346   : > { %v3542_v2 = vsel %vm391_vm2, %v3499_v33, 0.0  ;;  %v3431_v30 = vsel %vm391_vm2, %v3387_v29, 0.0  ;;  %v3500_v43 = vmul.f32 %v3387_v29, %v10903_v14  ;;  %v8721_v23 = vpop.f32.mrb[12].mxu0  ;;  %v3546_v63 = vsel %vm391_vm2, %v3501_v36, 0.0 }
 0x347   : > { %v3432_v41 = vadd.f32 %v3431_v30, %v3430_v40  ;;  %v10922_v53 = vadd.f32 %v8721_v23, %v10813_v54  ;;  %v3027_v10 = vpop.f32.mrb[13].mxu0  ;;  %v3543_v37 = vadd.f32 %v3542_v2, %v3541_v59  ;;  %v3548_v59 = vsel %vm391_vm2, %v3502_v61, 0.0 }
 0x348   : > { %v3544_v19 = vsel %vm391_vm2, %v3500_v43, 0.0  ;;  %v10929_v55 = vadd.f32 %v10813_v54, %v3027_v10  ;;  %v8722_v56 = vpop.f32.mrb[14].mxu0  ;;  %v10953_v43 = vpop.permute.xlu0 %3310 }
 0x349   : > { %v3434_v62 = vadd.f32 %v3433_v38, %v3432_v41  ;;  %v10933_v60 = vadd.f32 %v8722_v56, %v10813_v54  ;;  %v3030_v12 = vpop.f32.mrb[15].mxu0  ;;  %v3545_v15 = vadd.f32 %v3544_v19, %v3543_v37  ;;  %v3392_v6 = vmul.f32 %v10841_v39, %v10922_v53  ;;  %13588 = vst [vmem:[#allocation23_spill] sm:$0xff] %v10953_v43 }
 0x34a   : > { %v3390_v52 = vmul.f32 %v10818_v18, %v10929_v55  ;;  %v10941_v8 = vadd.f32 %v10813_v54, %v3030_v12 }
 0x34b   : > { %v3436_v33 = vadd.f32 %v3435_v49, %v3434_v62  ;;  %v3547_v29 = vadd.f32 %v3546_v63, %v3545_v15  ;;  %v3393_v30 = vmul.f32 %v10850_v28, %v10933_v60  ;;  %v3505_v37 = vmul.f32 %v3392_v6, %v10922_v53  ;;  %v10962_v62 = vpop.permute.xlu1 %3315 }
 0x34c   : > { %v3437_v13 = vsel %vm391_vm2, %v3390_v52, 0.0  ;;  %v3503_v40 = vmul.f32 %v3390_v52, %v10929_v55  ;;  %v3391_v57 = vmul.f32 %v10828_v44, %v10941_v8  ;;  %13589 = vst [vmem:[#allocation24_spill] sm:$0xff] %v10962_v62  ;;  %v3441_v12 = vsel %vm391_vm2, %v3392_v6, 0.0 }
 0x34d   : > { %v3438_v2 = vadd.f32 %v3437_v13, %v3436_v33  ;;  %v3549_v23 = vadd.f32 %v3548_v59, %v3547_v29  ;;  %v3506_v33 = vmul.f32 %v3393_v30, %v10933_v60 }
 0x34e   : > { %v3550_v36 = vsel %vm391_vm2, %v3503_v40, 0.0  ;;  %v3439_v41 = vsel %vm391_vm2, %v3391_v57, 0.0  ;;  %v3504_v10 = vmul.f32 %v3391_v57, %v10941_v8  ;;  %v8725_v38 = vpop.f32.mrb[16].mxu0  ;;  %v3443_v57 = vsel %vm391_vm2, %v3393_v30, 0.0 }
 0x34f   : > { %v3440_v19 = vadd.f32 %v3439_v41, %v3438_v2  ;;  %v10960_v56 = vadd.f32 %v8725_v38, %v10813_v54  ;;  %v3043_v61 = vpop.f32.mrb[17].mxu0  ;;  %v3551_v49 = vadd.f32 %v3550_v36, %v3549_v23  ;;  %v3554_v23 = vsel %vm391_vm2, %v3505_v37, 0.0 }
 0x350   : > { %v3552_v15 = vsel %vm391_vm2, %v3504_v10, 0.0  ;;  %v10967_v52 = vadd.f32 %v10813_v54, %v3043_v61  ;;  %v8726_v63 = vpop.f32.mrb[18].mxu0  ;;  %v10982_v10 = vpop.permute.xlu0 %3320 }
 0x351   : > { %v3442_v29 = vadd.f32 %v3441_v12, %v3440_v19  ;;  %v10971_v13 = vadd.f32 %v8726_v63, %v10813_v54  ;;  %v3046_v40 = vpop.f32.mrb[19].mxu0  ;;  %v3553_v59 = vadd.f32 %v3552_v15, %v3551_v49  ;;  %v3396_v36 = vmul.f32 %v10897_v9, %v10960_v56  ;;  %13590 = vst [vmem:[#allocation25_spill] sm:$0xff] %v10982_v10  ;;  %v10991_v15 = vpop.permute.xlu1 %3325 }
 0x352   : > { %v3394_v6 = vmul.f32 %v10870_v7, %v10967_v52  ;;  %v10977_v2 = vadd.f32 %v10813_v54, %v3046_v40  ;;  %v3556_v12 = vsel %vm391_vm2, %v3506_v33, 0.0  ;;  %13591 = vst [vmem:[#allocation26_spill] sm:$0xff] %v10991_v15 }
 0x353   : > { %v3444_v41 = vadd.f32 %v3443_v57, %v3442_v29  ;;  %v3555_v38 = vadd.f32 %v3554_v23, %v3553_v59  ;;  %v3397_v37 = vmul.f32 %v10908_v51, %v10971_v13  ;;  %v3509_v33 = vmul.f32 %v3396_v36, %v10960_v56 }
 0x354   : > { %v3445_v19 = vsel %vm391_vm2, %v3394_v6, 0.0  ;;  %v3507_v30 = vmul.f32 %v3394_v6, %v10967_v52  ;;  %v3395_v61 = vmul.f32 %v10879_v0, %v10977_v2  ;;  %v7806_v6 = vld [vmem:[%s13323_s2 + $0x2] sm:$0x3]  ;;  %v11014_v7 = vpop.permute.xlu0 %3330 }
 0x355   : > { %v3446_v49 = vadd.f32 %v3445_v19, %v3444_v41  ;;  %v3557_v63 = vadd.f32 %v3556_v12, %v3555_v38  ;;  %9670 = vmatprep.subr.msk.bf16.mxu1 %vm446_vm0, %v7806_v6  ;;  %v4261_v38 = vsel %vm446_vm0, %v7806_v6, 0  ;;  %13592 = vst [vmem:[#allocation29_spill] sm:$0xff] %v11014_v7  ;;  %v3451_v6 = vsel %vm391_vm2, %v3397_v37, 0.0 }
 0x356   : > { %v3558_v29 = vsel %vm391_vm2, %v3507_v30, 0.0  ;;  %v3447_v40 = vsel %vm391_vm2, %v3395_v61, 0.0  ;;  %v3508_v57 = vmul.f32 %v3395_v61, %v10977_v2  ;;  %v8729_v59 = vpop.f32.mrb[20].mxu0  ;;  %v3449_v30 = vsel %vm391_vm2, %v3396_v36, 0.0  ;;  %8744 = vmatpush3.bf16.msra.mxu1 %v4261_v38  ;;  %v11030_v38 = vpop.permute.xlu1 %3335 }
 0x357   : > { %v3448_v23 = vadd.f32 %v3447_v40, %v3446_v49  ;;  %v11001_v41 = vadd.f32 %v8729_v59, %v10813_v54  ;;  %v3059_v19 = vpop.f32.mrb[21].mxu0  ;;  %v3559_v12 = vadd.f32 %v3558_v29, %v3557_v63  ;;  %v3510_v49 = vmul.f32 %v3397_v37, %v10971_v13  ;;  %13593 = vst [vmem:[#allocation30_spill] sm:$0xff] %v11030_v38 }
 0x358   : > { %v3560_v61 = vsel %vm391_vm2, %v3508_v57, 0.0  ;;  %v11008_v51 = vadd.f32 %v10813_v54, %v3059_v19  ;;  %v8730_v9 = vpop.f32.mrb[22].mxu0  ;;  %v3562_v57 = vsel %vm391_vm2, %v3509_v33, 0.0 }
 0x359   : > { %v3450_v40 = vadd.f32 %v3449_v30, %v3448_v23  ;;  %v11012_v59 = vadd.f32 %v8730_v9, %v10813_v54  ;;  %v3062_v0 = vpop.f32.mrb[23].mxu0  ;;  %v3561_v36 = vadd.f32 %v3560_v61, %v3559_v12  ;;  %v3400_v23 = vmul.f32 %v10953_v43, %v11001_v41  ;;  %v11028_v9 = vld [vmem:[%s13323_s2] sm:$0x3] }
 0x35a   : > { %v3398_v63 = vmul.f32 %v10924_v25, %v11008_v51  ;;  %v11020_v29 = vadd.f32 %v10813_v54, %v3062_v0  ;;  %9671 = vmatprep.subr.msk.bf16.mxu1 %vm446_vm0, %v11028_v9  ;;  %v3564_v33 = vsel %vm391_vm2, %v3510_v49, 0.0  ;;  %v11048_v49 = vpop.permute.xlu0 %3340 }
 0x35b   : > { %v3452_v19 = vadd.f32 %v3451_v6, %v3450_v40  ;;  %v3563_v37 = vadd.f32 %v3562_v57, %v3561_v36  ;;  %v3401_v40 = vmul.f32 %v10962_v62, %v11012_v59  ;;  %v3513_v25 = vmul.f32 %v3400_v23, %v11001_v41  ;;  %13594 = vst [vmem:[#allocation31_spill] sm:$0xff] %v11048_v49 }
 0x35c   : > { %v3453_v30 = vsel %vm391_vm2, %v3398_v63, 0.0  ;;  %v3511_v12 = vmul.f32 %v3398_v63, %v11008_v51  ;;  %v3399_v0 = vmul.f32 %v10935_v26, %v11020_v29 }
 0x35d   : > { %v3454_v61 = vadd.f32 %v3453_v30, %v3452_v19  ;;  %v3565_v6 = vadd.f32 %v3564_v33, %v3563_v37  ;;  %v3457_v19 = vsel %vm391_vm2, %v3400_v23, 0.0  ;;  %v3459_v44 = vsel %vm391_vm2, %v3401_v40, 0.0 }
 0x35e   : > { %v3566_v43 = vsel %vm391_vm2, %v3511_v12, 0.0  ;;  %v3455_v36 = vsel %vm391_vm2, %v3399_v0, 0.0  ;;  %v3512_v57 = vmul.f32 %v3399_v0, %v11020_v29  ;;  %v8733_v63 = vpop.f32.mrb[24].mxu0  ;;  %v3514_v0 = vmul.f32 %v3401_v40, %v11012_v59 }
 0x35f   : > { %v3456_v26 = vadd.f32 %v3455_v36, %v3454_v61  ;;  %v11046_v28 = vadd.f32 %v8733_v63, %v10813_v54  ;;  %v3075_v39 = vpop.f32.mrb[25].mxu0  ;;  %v3567_v30 = vadd.f32 %v3566_v43, %v3565_v6  ;;  %v11059_v63 = vpop.permute.xlu1 %3345 }
 0x360   : > { %v3568_v37 = vsel %vm391_vm2, %v3512_v57, 0.0  ;;  %v11053_v12 = vadd.f32 %v10813_v54, %v3075_v39  ;;  %v8734_v33 = vpop.f32.mrb[26].mxu0  ;;  %13595 = vst [vmem:[#allocation32_spill] sm:$0xff] %v11059_v63  ;;  %v3570_v39 = vsel %vm391_vm2, %v3513_v25, 0.0 }
 0x361   : > { %v3458_v62 = vadd.f32 %v3457_v19, %v3456_v26  ;;  %v11057_v61 = vadd.f32 %v8734_v33, %v10813_v54  ;;  %v3078_v36 = vpop.f32.mrb[27].mxu0  ;;  %v3569_v18 = vadd.f32 %v3568_v37, %v3567_v30  ;;  %v3404_v26 = vmul.f32 %v11014_v7, %v11046_v28 }
 0x362   : > { %v3402_v43 = vmul.f32 %v10982_v10, %v11053_v12  ;;  %v11065_v23 = vadd.f32 %v10813_v54, %v3078_v36  ;;  %v3572_v30 = vsel %vm391_vm2, %v3514_v0, 0.0  ;;  %v11077_v10 = vpop.permute.xlu0 %3350 }
 0x363   : > { %v3460_v6 = vadd.f32 %v3459_v44, %v3458_v62  ;;  %v3571_v57 = vadd.f32 %v3570_v39, %v3569_v18  ;;  %v3405_v36 = vmul.f32 %v11030_v38, %v11057_v61  ;;  %13596 = vst [vmem:[#allocation33_spill] sm:$0xff] %v11077_v10 }
 0x364   : > { %v3461_v19 = vsel %vm391_vm2, %v3402_v43, 0.0  ;;  %v3515_v33 = vmul.f32 %v3402_v43, %v11053_v12  ;;  %v3403_v40 = vmul.f32 %v10991_v15, %v11065_v23  ;;  %v3517_v43 = vmul.f32 %v3404_v26, %v11046_v28 }
 0x365   : > { %v3462_v37 = vadd.f32 %v3461_v19, %v3460_v6  ;;  %v3573_v25 = vadd.f32 %v3572_v30, %v3571_v57  ;;  %v11086_v6 = vpop.permute.xlu1 %3355  ;;  %v3465_v19 = vsel %vm391_vm2, %v3404_v26, 0.0 }
 0x366   : > { %v3574_v7 = vsel %vm391_vm2, %v3515_v33, 0.0  ;;  %v3463_v18 = vsel %vm391_vm2, %v3403_v40, 0.0  ;;  %v3516_v44 = vmul.f32 %v3403_v40, %v11065_v23  ;;  %v8737_v62 = vpop.f32.mrb[28].mxu0  ;;  %13597 = vst [vmem:[#allocation34_spill] sm:$0xff] %v11086_v6  ;;  %v3518_v40 = vmul.f32 %v3405_v36, %v11057_v61 }
 0x367   : > { %v3464_v39 = vadd.f32 %v3463_v18, %v3462_v37  ;;  %v11084_v15 = vadd.f32 %v8737_v62, %v10813_v54  ;;  %v3091_v0 = vpop.f32.mrb[29].mxu0  ;;  %v3575_v38 = vadd.f32 %v3574_v7, %v3573_v25  ;;  %v3467_v62 = vsel %vm391_vm2, %v3405_v36, 0.0 }
 0x368   : > { %v3576_v57 = vsel %vm391_vm2, %v3516_v44, 0.0  ;;  %v11091_v33 = vadd.f32 %v10813_v54, %v3091_v0  ;;  %v8738_v30 = vpop.f32.mrb[30].mxu0  ;;  %v3578_v25 = vsel %vm391_vm2, %v3517_v43, 0.0 }
 0x369   : > { %v3466_v5 = vadd.f32 %v3465_v19, %v3464_v39  ;;  %v11095_v37 = vadd.f32 %v8738_v30, %v10813_v54  ;;  %v3094_v18 = vpop.f32.mrb[31].mxu0  ;;  %v3577_v3 = vadd.f32 %v3576_v57, %v3575_v38  ;;  %v3408_v44 = vmul.f32 %v11077_v10, %v11084_v15  ;;  %v11106_v39 = vpop.permute.xlu0 %3360 }
 0x36a   : > { %v3406_v26 = vmul.f32 %v11048_v49, %v11091_v33  ;;  %v11101_v7 = vadd.f32 %v10813_v54, %v3094_v18  ;;  %13598 = vst [vmem:[#allocation35_spill] sm:$0xff] %v11106_v39  ;;  %v3580_v57 = vsel %vm391_vm2, %v3518_v40, 0.0  ;;  %v11115_v49 = vpop.permute.xlu1 %3365 }
 0x36b   : > { %v3468_v0 = vadd.f32 %v3467_v62, %v3466_v5  ;;  %v3579_v19 = vadd.f32 %v3578_v25, %v3577_v3  ;;  %v3409_v43 = vmul.f32 %v11086_v6, %v11095_v37  ;;  %13599 = vst [vmem:[#allocation36_spill] sm:$0xff] %v11115_v49 }
 0x36c   : > { %v3469_v30 = vsel %vm391_vm2, %v3406_v26, 0.0  ;;  %v3519_v36 = vmul.f32 %v3406_v26, %v11091_v33  ;;  %v3407_v38 = vmul.f32 %v11059_v63, %v11101_v7  ;;  %v3521_v26 = vmul.f32 %v3408_v44, %v11084_v15 }
 0x36d   : > { %v3470_v18 = vadd.f32 %v3469_v30, %v3468_v0  ;;  %v3581_v10 = vadd.f32 %v3580_v57, %v3579_v19  ;;  %v3473_v0 = vsel %vm391_vm2, %v3408_v44, 0.0  ;;  %v3522_v57 = vmul.f32 %v3409_v43, %v11095_v37 }
 0x36e   : > { %v3582_v5 = vsel %vm391_vm2, %v3519_v36, 0.0  ;;  %v3471_v3 = vsel %vm391_vm2, %v3407_v38, 0.0  ;;  %v3520_v62 = vmul.f32 %v3407_v38, %v11101_v7  ;;  %v8741_v25 = vpop.f32.mrb[32].mxu0 }
 0x36f   : > { %v3472_v45 = vadd.f32 %v3471_v3, %v3470_v18  ;;  %v11122_v63 = vadd.f32 %v8741_v25, %v10813_v54  ;;  %v3107_v40 = vpop.f32.mrb[33].mxu0  ;;  %v3583_v30 = vadd.f32 %v3582_v5, %v3581_v10  ;;  %v11133_v3 = vpop.permute.xlu0 %3370  ;;  %v3475_v25 = vsel %vm391_vm2, %v3409_v43, 0.0 }
 0x370   : > { %v3584_v6 = vsel %vm391_vm2, %v3520_v62, 0.0  ;;  %v11127_v19 = vadd.f32 %v10813_v54, %v3107_v40  ;;  %v8742_v36 = vpop.f32.mrb[34].mxu0  ;;  %13600 = vst [vmem:[#allocation37_spill] sm:$0xff] %v11133_v3  ;;  %v3586_v5 = vsel %vm391_vm2, %v3521_v26, 0.0  ;;  %v11144_v40 = vpop.permute.xlu1 %3375 }
 0x371   : > { %v3474_v38 = vadd.f32 %v3473_v0, %v3472_v45  ;;  %v11131_v24 = vadd.f32 %v8742_v36, %v10813_v54  ;;  %v3110_v18 = vpop.f32.mrb[35].mxu0  ;;  %v3585_v42 = vadd.f32 %v3584_v6, %v3583_v30  ;;  %v3412_v45 = vmul.f32 %v11133_v3, %v11122_v63  ;;  %13601 = vst [vmem:[#allocation38_spill] sm:$0xff] %v11144_v40 }
 0x372   : > { %v3410_v10 = vmul.f32 %v11106_v39, %v11127_v19  ;;  %v11139_v44 = vadd.f32 %v10813_v54, %v3110_v18  ;;  %v3588_v30 = vsel %vm391_vm2, %v3522_v57, 0.0 }
 0x373   : > { %v3476_v62 = vadd.f32 %v3475_v25, %v3474_v38  ;;  %v3587_v0 = vadd.f32 %v3586_v5, %v3585_v42  ;;  %v3413_v26 = vmul.f32 %v11144_v40, %v11131_v24  ;;  %v3525_v25 = vmul.f32 %v3412_v45, %v11122_v63 }
 0x374   : > { %v3477_v36 = vsel %vm391_vm2, %v3410_v10, 0.0  ;;  %v3523_v43 = vmul.f32 %v3410_v10, %v11127_v19  ;;  %v3411_v6 = vmul.f32 %v11115_v49, %v11139_v44  ;;  %v11157_v10 = vld [vmem:[#allocation2 + $0x18] sm:$0xff]   ;;  %v3481_v39 = vsel %vm391_vm2, %v3412_v45, 0.0 }
 0x375   : > { %v3478_v54 = vadd.f32 %v3477_v36, %v3476_v62  ;;  %v3589_v18 = vadd.f32 %v3588_v30, %v3587_v0  ;;  %v3526_v62 = vmul.f32 %v3413_v26, %v11131_v24  ;;  %v3483_v0 = vsel %vm391_vm2, %v3413_v26, 0.0 }
 0x376   : > { %v3590_v3 = vsel %vm391_vm2, %v3523_v43, 0.0  ;;  %v3479_v38 = vsel %vm391_vm2, %v3411_v6, 0.0  ;;  %v3524_v42 = vmul.f32 %v3411_v6, %v11139_v44  ;;  %v3594_v30 = vsel %vm391_vm2, %v3525_v25, 0.0 }
 0x377   : > { %v3480_v5 = vadd.f32 %v3479_v38, %v3478_v54  ;;  %v3591_v22 = vadd.f32 %v3590_v3, %v3589_v18  ;;  %v13432_v6 = vshrl.u32 %v11157_v10, 16  ;;  %v13431_v54 = vshll.u32 %v11157_v10, 16 }
 0x378   : > { %v3592_v57 = vsel %vm391_vm2, %v3524_v42, 0.0  ;;  %v3596_v48 = vsel %vm391_vm2, %v3526_v62, 0.0 }
 0x379   : > { %v3482_v36 = vadd.f32 %v3481_v39, %v3480_v5  ;;  %v3593_v43 = vadd.f32 %v3592_v57, %v3591_v22  ;;  %v11169_v42 = vrot.slane %v13432_v6, 3  ;;  %v11173_v22 = vrot.slane %v13431_v54, 4 }
 0x37b   : > { %v3484_v40 = vadd.f32 %v3483_v0, %v3482_v36  ;;  %v3595_v38 = vadd.f32 %v3594_v30, %v3593_v43  ;;  %13602 = vst [vmem:[#allocation39_spill] sm:$0xff] %v11169_v42  ;;  %13603 = vst [vmem:[#allocation40_spill] sm:$0xff] %v11173_v22 }
 0x37d   : > { %v3485_v45 = vrot.slane %v3484_v40, 4  ;;  %v3597_v3 = vadd.f32 %v3596_v48, %v3595_v38 }
 0x37f   : > { %v3486_v18 = vadd.f32 %v3485_v45, %v3484_v40  ;;  %v3598_v39 = vrot.slane %v3597_v3, 4 }
 0x381   : > { %v3487_v26 = vrot.slane %v3486_v18, 2  ;;  %v3599_v5 = vadd.f32 %v3598_v39, %v3597_v3 }
 0x383   : > { %v3488_v57 = vadd.f32 %v3487_v26, %v3486_v18  ;;  %v3600_v36 = vrot.slane %v3599_v5, 2 }
 0x385   : > { %v3489_v62 = vrot.slane %v3488_v57, 1  ;;  %v3601_v0 = vadd.f32 %v3600_v36, %v3599_v5 }
 0x387   : > { %v3490_v48 = vadd.f32 %v3489_v62, %v3488_v57  ;;  %v3602_v40 = vrot.slane %v3601_v0, 1 }
 0x389   : > { %v11177_v43 = vmul.f32 0.00390625, %v3490_v48  ;;  %v3603_v30 = vadd.f32 %v3602_v40, %v3601_v0  ;;  %v11266_v0 = vld [vmem:[%s13324_s3 + $0x2] ss:$0 sm:$0xff] }
 0x38b   : > { %v3606_v38 = vmul.f32 %v11177_v43, %v11177_v43  ;;  %v3642_v45 = vsub.f32 %v11139_v44, %v11177_v43  ;;  %v3605_v54 = vmul.f32 0.00390625, %v3603_v30  ;;  %v3625_v3 = vsub.f32 %v10967_v52, %v11177_v43 }
 0x38c   : > { %v3626_v18 = vsub.f32 %v10977_v2, %v11177_v43  ;;  %v3627_v39 = vsub.f32 %v10960_v56, %v11177_v43  ;;  %v3628_v26 = vsub.f32 %v10971_v13, %v11177_v43  ;;  %v3629_v5 = vsub.f32 %v11008_v51, %v11177_v43 }
 0x38d   : > { %v3607_v6 = vsub.f32 %v3605_v54, %v3606_v38  ;;  %v3630_v44 = vsub.f32 %v11020_v29, %v11177_v43  ;;  %v3632_v52 = vsub.f32 %v11012_v59, %v11177_v43  ;;  %v3633_v2 = vsub.f32 %v11053_v12, %v11177_v43 }
 0x38e   : > { %v3634_v56 = vsub.f32 %v11065_v23, %v11177_v43  ;;  %v3635_v13 = vsub.f32 %v11046_v28, %v11177_v43  ;;  %v3636_v51 = vsub.f32 %v11057_v61, %v11177_v43  ;;  %v3637_v29 = vsub.f32 %v11091_v33, %v11177_v43 }
 0x38f   : > { %v3608_v31 = vmax.f32 %v3607_v6, 0.0  ;;  %v3631_v6 = vsub.f32 %v11001_v41, %v11177_v43  ;;  %v3639_v41 = vsub.f32 %v11084_v15, %v11177_v43  ;;  %v3640_v59 = vsub.f32 %v11095_v37, %v11177_v43 }
 0x390   : > { %v3641_v12 = vsub.f32 %v11127_v19, %v11177_v43  ;;  %v3643_v28 = vsub.f32 %v11122_v63, %v11177_v43  ;;  %v3644_v61 = vsub.f32 %v11131_v24, %v11177_v43  ;;  %v11224_v33 = vsel %vm446_vm0, %v11028_v9, 0 }
 0x391   : > { %v3645_v54 = vadd.f32 1e-05, %v3608_v31  ;;  %v3638_v31 = vsub.f32 %v11101_v7, %v11177_v43  ;;  %13604 = vst [vmem:[#allocation41_spill] sm:$0xff] %v11224_v33  ;;  %v3609_v15 = vsub.f32 %v10821_v34, %v11177_v43  ;;  %v3610_v37 = vsub.f32 %v10833_v35, %v11177_v43 }
 0x392   : > { %v3611_v7 = vsub.f32 %v10816_v27, %v11177_v43  ;;  %v3612_v63 = vsub.f32 %v10826_v1, %v11177_v43  ;;  %v3613_v24 = vsub.f32 %v10856_v47, %v11177_v43  ;;  %v3614_v19 = vsub.f32 %v10868_v21, %v11177_v43 }
 0x393   : > { %9734 = vrsqrt.f32 %v3645_v54  ;;  %v3615_v9 = vsub.f32 %v10848_v50, %v11177_v43  ;;  %v3616_v34 = vsub.f32 %v10860_v20, %v11177_v43  ;;  %v3617_v35 = vsub.f32 %v10890_v58, %v11177_v43  ;;  %v11253_v50 = vld [vmem:[%s13324_s3 + $0x1] ss:$0 sm:$0xff] }
 0x394   : > { %v3618_v27 = vsub.f32 %v10903_v14, %v11177_v43  ;;  %v3619_v1 = vsub.f32 %v10886_v46, %v11177_v43  ;;  %v3620_v47 = vsub.f32 %v10895_v4, %v11177_v43  ;;  %v3621_v20 = vsub.f32 %v10929_v55, %v11177_v43 }
 0x395   : > { %v3622_v21 = vsub.f32 %v10941_v8, %v11177_v43  ;;  %v3623_v58 = vsub.f32 %v10922_v53, %v11177_v43  ;;  %v3624_v46 = vsub.f32 %v10933_v60, %v11177_v43 }
 0x39d   : > { %v9735_v57 = vpop.eup %9734 }
 0x39e   : > { %v3680_v14 = vmul.f32 %v9735_v57, %v3642_v45  ;;  %v3647_v4 = vmul.f32 %v9735_v57, %v3609_v15  ;;  %v3648_v36 = vmul.f32 %v9735_v57, %v3610_v37  ;;  %v3649_v62 = vmul.f32 %v9735_v57, %v3611_v7 }
 0x39f   : > { %v3650_v48 = vmul.f32 %v9735_v57, %v3612_v63  ;;  %v3651_v55 = vmul.f32 %v9735_v57, %v3613_v24  ;;  %v3652_v40 = vmul.f32 %v9735_v57, %v3614_v19  ;;  %v3653_v30 = vmul.f32 %v9735_v57, %v3615_v9 }
 0x3a0   : > { %v3720_v8 = vmul.f32 %v11253_v50, %v3680_v14  ;;  %v3654_v38 = vmul.f32 %v9735_v57, %v3616_v34  ;;  %v3655_v53 = vmul.f32 %v9735_v57, %v3617_v35  ;;  %v3656_v54 = vmul.f32 %v9735_v57, %v3618_v27 }
 0x3a1   : > { %v3657_v25 = vmul.f32 %v9735_v57, %v3619_v1  ;;  %v3658_v60 = vmul.f32 %v9735_v57, %v3620_v47  ;;  %v3659_v43 = vmul.f32 %v9735_v57, %v3621_v20  ;;  %v3660_v45 = vmul.f32 %v9735_v57, %v3622_v21 }
 0x3a2   : > { %v3760_v15 = vadd.f32 %v11266_v0, %v3720_v8  ;;  %v3661_v37 = vmul.f32 %v9735_v57, %v3623_v58  ;;  %v3662_v7 = vmul.f32 %v9735_v57, %v3624_v46  ;;  %v3663_v23 = vmul.f32 %v9735_v57, %v3625_v3 }
 0x3a3   : > { %v3664_v42 = vmul.f32 %v9735_v57, %v3626_v18  ;;  %v3665_v22 = vmul.f32 %v9735_v57, %v3627_v39  ;;  %v3666_v63 = vmul.f32 %v9735_v57, %v3628_v26  ;;  %v3667_v24 = vmul.f32 %v9735_v57, %v3629_v5 }
 0x3a4   : > { %v3796_v19 = vmax.f32 %v3760_v15, 0.0  ;;  %v3668_v9 = vmul.f32 %v9735_v57, %v3630_v44  ;;  %v3669_v33 = vmul.f32 %v9735_v57, %v3631_v6  ;;  %v3670_v14 = vmul.f32 %v9735_v57, %v3632_v52 }
 0x3a5   : > { %v3671_v34 = vmul.f32 %v9735_v57, %v3633_v2  ;;  %v3672_v35 = vmul.f32 %v9735_v57, %v3634_v56  ;;  %v3673_v27 = vmul.f32 %v9735_v57, %v3635_v13  ;;  %v3674_v1 = vmul.f32 %v9735_v57, %v3636_v51 }
 0x3a6   : > { %v3832_v47 = vmul.f32 %v3796_v19, %v11115_v49  ;;  %v3675_v20 = vmul.f32 %v9735_v57, %v3637_v29  ;;  %v3676_v21 = vmul.f32 %v9735_v57, %v3638_v31  ;;  %v3677_v8 = vmul.f32 %v9735_v57, %v3639_v41 }
 0x3a7   : > { %v3678_v58 = vmul.f32 %v9735_v57, %v3640_v59  ;;  %v3679_v46 = vmul.f32 %v9735_v57, %v3641_v12  ;;  %v3681_v3 = vmul.f32 %v9735_v57, %v3643_v28  ;;  %v3682_v18 = vmul.f32 %v9735_v57, %v3644_v61 }
 0x3a8   : > { %v8056_v39 = vpack.c.bf16 %v3832_v47, %v3832_v47  ;;  %v3687_v26 = vmul.f32 %v11253_v50, %v3647_v4  ;;  %v3688_v5 = vmul.f32 %v11253_v50, %v3648_v36  ;;  %v3689_v44 = vmul.f32 %v11253_v50, %v3649_v62 }
 0x3a9   : > { %v3690_v6 = vmul.f32 %v11253_v50, %v3650_v48  ;;  %v3691_v52 = vmul.f32 %v11253_v50, %v3651_v55  ;;  %v3692_v2 = vmul.f32 %v11253_v50, %v3652_v40  ;;  %v3693_v56 = vmul.f32 %v11253_v50, %v3653_v30 }
 0x3aa   : > { %4028 = vst.msk [vmem:[#allocation2 + $0xa8] sm:$0xf] %vm3835_vm7, %v8056_v39  ;;  %v3694_v13 = vmul.f32 %v11253_v50, %v3654_v38  ;;  %v3695_v51 = vmul.f32 %v11253_v50, %v3655_v53  ;;  %v3696_v29 = vmul.f32 %v11253_v50, %v3656_v54  ;;  %v3697_v31 = vmul.f32 %v11253_v50, %v3657_v25 }
 0x3ab   : > { %v3698_v41 = vmul.f32 %v11253_v50, %v3658_v60  ;;  %v3699_v59 = vmul.f32 %v11253_v50, %v3659_v43  ;;  %v3700_v12 = vmul.f32 %v11253_v50, %v3660_v45  ;;  %v3701_v28 = vmul.f32 %v11253_v50, %v3661_v37 }
 0x3ac   : > { %v3702_v61 = vmul.f32 %v11253_v50, %v3662_v7  ;;  %v3703_v57 = vmul.f32 %v11253_v50, %v3663_v23  ;;  %v3704_v4 = vmul.f32 %v11253_v50, %v3664_v42  ;;  %v3705_v36 = vmul.f32 %v11253_v50, %v3665_v22 }
 0x3ad   : > { %v3706_v62 = vmul.f32 %v11253_v50, %v3666_v63  ;;  %v3707_v25 = vmul.f32 %v11253_v50, %v3667_v24  ;;  %v3708_v48 = vmul.f32 %v11253_v50, %v3668_v9  ;;  %v3709_v55 = vmul.f32 %v11253_v50, %v3669_v33 }
 0x3ae   : > { %v3710_v40 = vmul.f32 %v11253_v50, %v3670_v14  ;;  %v3711_v30 = vmul.f32 %v11253_v50, %v3671_v34  ;;  %v3712_v38 = vmul.f32 %v11253_v50, %v3672_v35  ;;  %v3713_v23 = vmul.f32 %v11253_v50, %v3673_v27 }
 0x3af   : > { %v3714_v42 = vmul.f32 %v11253_v50, %v3674_v1  ;;  %v3715_v22 = vmul.f32 %v11253_v50, %v3675_v20  ;;  %v3716_v53 = vmul.f32 %v11253_v50, %v3676_v21  ;;  %v3717_v54 = vmul.f32 %v11253_v50, %v3677_v8 }
 0x3b0   : > { %v3718_v60 = vmul.f32 %v11253_v50, %v3678_v58  ;;  %v3719_v33 = vmul.f32 %v11253_v50, %v3679_v46  ;;  %v3721_v43 = vmul.f32 %v11253_v50, %v3681_v3  ;;  %v3722_v45 = vmul.f32 %v11253_v50, %v3682_v18 }
 0x3b1   : > { %v11308_v15 = vadd.f32 %v11266_v0, %v3687_v26  ;;  %v11311_v37 = vadd.f32 %v11266_v0, %v3688_v5  ;;  %v11314_v7 = vadd.f32 %v11266_v0, %v3689_v44  ;;  %v11317_v63 = vadd.f32 %v11266_v0, %v3690_v6 }
 0x3b2   : > { %v11320_v24 = vadd.f32 %v11266_v0, %v3691_v52  ;;  %v11323_v19 = vadd.f32 %v11266_v0, %v3692_v2  ;;  %v11326_v50 = vadd.f32 %v11266_v0, %v3693_v56  ;;  %v11329_v9 = vadd.f32 %v11266_v0, %v3694_v13 }
 0x3b3   : > { %v11332_v14 = vadd.f32 %v11266_v0, %v3695_v51  ;;  %v11335_v34 = vadd.f32 %v11266_v0, %v3696_v29  ;;  %v11338_v35 = vadd.f32 %v11266_v0, %v3697_v31  ;;  %v11341_v27 = vadd.f32 %v11266_v0, %v3698_v41 }
 0x3b4   : > { %v11344_v1 = vadd.f32 %v11266_v0, %v3699_v59  ;;  %v11347_v47 = vadd.f32 %v11266_v0, %v3700_v12  ;;  %v11350_v20 = vadd.f32 %v11266_v0, %v3701_v28  ;;  %v11353_v21 = vadd.f32 %v11266_v0, %v3702_v61 }
 0x3b5   : > { %v11356_v8 = vadd.f32 %v11266_v0, %v3703_v57  ;;  %v11359_v58 = vadd.f32 %v11266_v0, %v3704_v4  ;;  %v11362_v46 = vadd.f32 %v11266_v0, %v3705_v36  ;;  %v11365_v3 = vadd.f32 %v11266_v0, %v3706_v62 }
 0x3b6   : > { %v11368_v18 = vadd.f32 %v11266_v0, %v3707_v25  ;;  %v11371_v39 = vadd.f32 %v11266_v0, %v3708_v48  ;;  %v11374_v26 = vadd.f32 %v11266_v0, %v3709_v55  ;;  %v11377_v5 = vadd.f32 %v11266_v0, %v3710_v40 }
 0x3b7   : > { %v11380_v44 = vadd.f32 %v11266_v0, %v3711_v30  ;;  %v11383_v6 = vadd.f32 %v11266_v0, %v3712_v38  ;;  %v11386_v52 = vadd.f32 %v11266_v0, %v3713_v23  ;;  %v11389_v2 = vadd.f32 %v11266_v0, %v3714_v42 }
 0x3b8   : > { %v11392_v56 = vadd.f32 %v11266_v0, %v3715_v22  ;;  %v11395_v13 = vadd.f32 %v11266_v0, %v3716_v53  ;;  %v11398_v51 = vadd.f32 %v11266_v0, %v3717_v54  ;;  %v11401_v29 = vadd.f32 %v11266_v0, %v3718_v60 }
 0x3b9   : > { %v11404_v31 = vadd.f32 %v11266_v0, %v3719_v33  ;;  %v11407_v41 = vadd.f32 %v11266_v0, %v3721_v43  ;;  %v11410_v59 = vadd.f32 %v11266_v0, %v3722_v45  ;;  %v3763_v12 = vmax.f32 %v11308_v15, 0.0 }
 0x3ba   : > { %v3764_v28 = vmax.f32 %v11311_v37, 0.0  ;;  %v3765_v61 = vmax.f32 %v11314_v7, 0.0  ;;  %v3766_v57 = vmax.f32 %v11317_v63, 0.0  ;;  %v3767_v4 = vmax.f32 %v11320_v24, 0.0 }
 0x3bb   : > { %v3768_v36 = vmax.f32 %v11323_v19, 0.0  ;;  %v3769_v62 = vmax.f32 %v11326_v50, 0.0  ;;  %v3770_v25 = vmax.f32 %v11329_v9, 0.0  ;;  %v3771_v48 = vmax.f32 %v11332_v14, 0.0 }
 0x3bc   : > { %v3772_v0 = vmax.f32 %v11335_v34, 0.0  ;;  %v3773_v55 = vmax.f32 %v11338_v35, 0.0  ;;  %v3774_v40 = vmax.f32 %v11341_v27, 0.0  ;;  %v3775_v30 = vmax.f32 %v11344_v1, 0.0 }
 0x3bd   : > { %v3776_v38 = vmax.f32 %v11347_v47, 0.0  ;;  %v3777_v23 = vmax.f32 %v11350_v20, 0.0  ;;  %v3778_v42 = vmax.f32 %v11353_v21, 0.0  ;;  %v3779_v22 = vmax.f32 %v11356_v8, 0.0  ;;  %v13605_v8 = vld [vmem:[#allocation7_spill] sm:$0xff] }
 0x3be   : > { %v3780_v53 = vmax.f32 %v11359_v58, 0.0  ;;  %v3781_v54 = vmax.f32 %v11362_v46, 0.0  ;;  %v3782_v60 = vmax.f32 %v11365_v3, 0.0  ;;  %v3783_v33 = vmax.f32 %v11368_v18, 0.0  ;;  %v13606_v46 = vld [vmem:[#allocation8_spill] sm:$0xff]  ;;  %v13607_v18 = vld [vmem:[#allocation9_spill] sm:$0xff] }
 0x3bf   : > { %v3784_v43 = vmax.f32 %v11371_v39, 0.0  ;;  %v3785_v45 = vmax.f32 %v11374_v26, 0.0  ;;  %v3786_v15 = vmax.f32 %v11377_v5, 0.0  ;;  %v3787_v37 = vmax.f32 %v11380_v44, 0.0  ;;  %v13608_v26 = vld [vmem:[#allocation10_spill] sm:$0xff]  ;;  %v13609_v44 = vld [vmem:[#allocation27_spill] sm:$0xff] }
 0x3c0   : > { %v3788_v7 = vmax.f32 %v11383_v6, 0.0  ;;  %v3789_v63 = vmax.f32 %v11386_v52, 0.0  ;;  %v3790_v24 = vmax.f32 %v11389_v2, 0.0  ;;  %v3791_v19 = vmax.f32 %v11392_v56, 0.0  ;;  %v13610_v52 = vld [vmem:[#allocation28_spill] sm:$0xff]  ;;  %v13611_v56 = vld [vmem:[#allocation11_spill] sm:$0xff] }
 0x3c1   : > { %v3792_v50 = vmax.f32 %v11395_v13, 0.0  ;;  %v3793_v9 = vmax.f32 %v11398_v51, 0.0  ;;  %v3794_v14 = vmax.f32 %v11401_v29, 0.0  ;;  %v3795_v34 = vmax.f32 %v11404_v31, 0.0  ;;  %v13612_v51 = vld [vmem:[#allocation12_spill] sm:$0xff]  ;;  %v13613_v31 = vld [vmem:[#allocation13_spill] sm:$0xff] }
 0x3c2   : > { %v3797_v35 = vmax.f32 %v11407_v41, 0.0  ;;  %v3798_v27 = vmax.f32 %v11410_v59, 0.0  ;;  %v3799_v1 = vmul.f32 %v3763_v12, %v10786_v11  ;;  %v3800_v47 = vmul.f32 %v3764_v28, %v10790_v32  ;;  %v13614_v59 = vld [vmem:[#allocation14_spill] sm:$0xff]  ;;  %v13615_v28 = vld [vmem:[#allocation15_spill] sm:$0xff] }
 0x3c3   : > { %v3801_v20 = vmul.f32 %v3765_v61, %v10788_v16  ;;  %v3802_v21 = vmul.f32 %v3766_v57, %v10792_v17  ;;  %v3803_v58 = vmul.f32 %v3767_v4, %v13605_v8  ;;  %v3804_v3 = vmul.f32 %v3768_v36, %v13606_v46  ;;  %v13616_v57 = vld [vmem:[#allocation16_spill] sm:$0xff]  ;;  %v13617_v36 = vld [vmem:[#allocation17_spill] sm:$0xff] }
 0x3c4   : > { %v3805_v39 = vmul.f32 %v3769_v62, %v13607_v18  ;;  %v3806_v5 = vmul.f32 %v3770_v25, %v13608_v26  ;;  %v3807_v6 = vmul.f32 %v3771_v48, %v13609_v44  ;;  %v3808_v2 = vmul.f32 %v3772_v0, %v13610_v52  ;;  %v13618_v25 = vld [vmem:[#allocation18_spill] sm:$0xff]  ;;  %v13619_v0 = vld [vmem:[#allocation19_spill] sm:$0xff] }
 0x3c5   : > { %v3809_v13 = vmul.f32 %v3773_v55, %v13611_v56  ;;  %v3810_v29 = vmul.f32 %v3774_v40, %v13612_v51  ;;  %v3811_v41 = vmul.f32 %v3775_v30, %v13613_v31  ;;  %v3812_v12 = vmul.f32 %v3776_v38, %v13614_v59  ;;  %v13620_v55 = vld [vmem:[#allocation20_spill] sm:$0xff]  ;;  %v13621_v30 = vld [vmem:[#allocation21_spill] sm:$0xff]  ;;  %v13622_v38 = vld [vmem:[#allocation22_spill] sm:$0xff] }
 0x3c6   : > { %v3813_v61 = vmul.f32 %v3777_v23, %v13615_v28  ;;  %v11463_v4 = vmul.f32 %v3778_v42, %v13616_v57  ;;  %v11466_v62 = vmul.f32 %v3779_v22, %v13617_v36  ;;  %v11469_v48 = vmul.f32 %v3780_v53, %v13618_v25  ;;  %v13623_v42 = vld [vmem:[#allocation23_spill] sm:$0xff]  ;;  %v13624_v22 = vld [vmem:[#allocation24_spill] sm:$0xff]  ;;  %v13625_v53 = vld [vmem:[#allocation25_spill] sm:$0xff] }
 0x3c7   : > { %v11472_v49 = vmul.f32 %v3781_v54, %v13619_v0  ;;  %v11475_v40 = vmul.f32 %v3782_v60, %v13620_v55  ;;  %v11478_v31 = vmul.f32 %v3783_v33, %v13621_v30  ;;  %v11481_v23 = vmul.f32 %v3784_v43, %v13622_v38  ;;  %v13626_v54 = vld [vmem:[#allocation26_spill] sm:$0xff]  ;;  %v13627_v60 = vld [vmem:[#allocation29_spill] sm:$0xff]  ;;  %v13629_v43 = vld [vmem:[#allocation31_spill] sm:$0xff] }
 0x3c8   : > { %v11484_v57 = vmul.f32 %v3785_v45, %v13623_v42  ;;  %v11487_v36 = vmul.f32 %v3786_v15, %v13624_v22  ;;  %v11490_v25 = vmul.f32 %v3787_v37, %v13625_v53  ;;  %v11493_v0 = vmul.f32 %v3788_v7, %v13626_v54  ;;  %v13628_v33 = vld [vmem:[#allocation30_spill] sm:$0xff]  ;;  %v13630_v45 = vld [vmem:[#allocation32_spill] sm:$0xff]  ;;  %v13631_v15 = vld [vmem:[#allocation33_spill] sm:$0xff] }
 0x3c9   : > { %v11496_v55 = vmul.f32 %v3789_v63, %v13627_v60  ;;  %v11499_v30 = vmul.f32 %v3790_v24, %v13628_v33  ;;  %v11502_v38 = vmul.f32 %v3791_v19, %v13629_v43  ;;  %v11505_v42 = vmul.f32 %v3792_v50, %v13630_v45  ;;  %v13632_v37 = vld [vmem:[#allocation34_spill] sm:$0xff]  ;;  %v13633_v7 = vld [vmem:[#allocation35_spill] sm:$0xff]  ;;  %v13634_v63 = vld [vmem:[#allocation37_spill] sm:$0xff] }
 0x3ca   : > { %v11508_v22 = vmul.f32 %v3793_v9, %v13631_v15  ;;  %v11511_v53 = vmul.f32 %v3794_v14, %v13632_v37  ;;  %v11514_v54 = vmul.f32 %v3795_v34, %v13633_v7  ;;  %v11517_v60 = vmul.f32 %v3797_v35, %v13634_v63  ;;  %v13635_v24 = vld [vmem:[#allocation38_spill] sm:$0xff] }
 0x3cb   : > { %v11520_v33 = vmul.f32 %v3798_v27, %v13635_v24  ;;  %v8023_v19 = vpack.c.bf16 %v3799_v1, %v3799_v1  ;;  %v8024_v43 = vpack.c.bf16 %v3800_v47, %v3800_v47  ;;  %v8025_v59 = vpack.c.bf16 %v3801_v20, %v3801_v20 }
 0x3cc   : > { %v8026_v50 = vpack.c.bf16 %v3802_v21, %v3802_v21  ;;  %v8027_v45 = vpack.c.bf16 %v3803_v58, %v3803_v58  ;;  %v8028_v28 = vpack.c.bf16 %v3804_v3, %v3804_v3  ;;  %v8029_v9 = vpack.c.bf16 %v3805_v39, %v3805_v39 }
 0x3cd   : > { %v8030_v15 = vpack.c.bf16 %v3806_v5, %v3806_v5  ;;  %v8031_v51 = vpack.c.bf16 %v3807_v6, %v3807_v6  ;;  %v8032_v14 = vpack.c.bf16 %v3808_v2, %v3808_v2  ;;  %v8033_v37 = vpack.c.bf16 %v3809_v13, %v3809_v13  ;;  %3995 = vst.msk [vmem:[#allocation2 + $0x24] sm:$0xf] %vm3835_vm7, %v8023_v19 }
 0x3ce   : > { %3996 = vst.msk [vmem:[#allocation2 + $0x28] sm:$0xf] %vm3835_vm7, %v8024_v43  ;;  %3997 = vst.msk [vmem:[#allocation2 + $0x2c] sm:$0xf] %vm3835_vm7, %v8025_v59  ;;  %v8034_v34 = vpack.c.bf16 %v3810_v29, %v3810_v29  ;;  %v8035_v35 = vpack.c.bf16 %v3811_v41, %v3811_v41  ;;  %v8036_v27 = vpack.c.bf16 %v3812_v12, %v3812_v12  ;;  %v4033_v12 = vld [vmem:[#allocation2 + $0x20] sm:$0xf] }
 0x3cf   : > { %v8037_v1 = vpack.c.bf16 %v3813_v61, %v3813_v61  ;;  %3998 = vst.msk [vmem:[#allocation2 + $0x30] sm:$0xf] %vm3835_vm7, %v8026_v50  ;;  %3999 = vst.msk [vmem:[#allocation2 + $0x34] sm:$0xf] %vm3835_vm7, %v8027_v45  ;;  %v8038_v47 = vpack.c.bf16 %v11463_v4, %v11463_v4  ;;  %v8039_v20 = vpack.c.bf16 %v11466_v62, %v11466_v62 }
 0x3d0   : > { %4000 = vst.msk [vmem:[#allocation2 + $0x38] sm:$0xf] %vm3835_vm7, %v8028_v28  ;;  %4001 = vst.msk [vmem:[#allocation2 + $0x3c] sm:$0xf] %vm3835_vm7, %v8029_v9  ;;  %v8040_v21 = vpack.c.bf16 %v11469_v48, %v11469_v48  ;;  %v8041_v58 = vpack.c.bf16 %v11472_v49, %v11472_v49  ;;  %v8042_v3 = vpack.c.bf16 %v11475_v40, %v11475_v40 }
 0x3d1   : > { %4002 = vst.msk [vmem:[#allocation2 + $0x40] sm:$0xf] %vm3835_vm7, %v8030_v15  ;;  %4003 = vst.msk [vmem:[#allocation2 + $0x44] sm:$0xf] %vm3835_vm7, %v8031_v51  ;;  %v8043_v39 = vpack.c.bf16 %v11478_v31, %v11478_v31  ;;  %v8044_v5 = vpack.c.bf16 %v11481_v23, %v11481_v23  ;;  %v8045_v49 = vpack.c.bf16 %v11484_v57, %v11484_v57 }
 0x3d2   : > { %4004 = vst.msk [vmem:[#allocation2 + $0x48] sm:$0xf] %vm3835_vm7, %v8032_v14  ;;  %4005 = vst.msk [vmem:[#allocation2 + $0x4c] sm:$0xf] %vm3835_vm7, %v8033_v37  ;;  %v8046_v6 = vpack.c.bf16 %v11487_v36, %v11487_v36  ;;  %v8047_v2 = vpack.c.bf16 %v11490_v25, %v11490_v25  ;;  %v8048_v13 = vpack.c.bf16 %v11493_v0, %v11493_v0 }
 0x3d3   : > { %4006 = vst.msk [vmem:[#allocation2 + $0x50] sm:$0xf] %vm3835_vm7, %v8034_v34  ;;  %4007 = vst.msk [vmem:[#allocation2 + $0x54] sm:$0xf] %vm3835_vm7, %v8035_v35  ;;  %v8049_v51 = vpack.c.bf16 %v11496_v55, %v11496_v55  ;;  %v8050_v29 = vpack.c.bf16 %v11499_v30, %v11499_v30  ;;  %v8051_v31 = vpack.c.bf16 %v11502_v38, %v11502_v38  ;;  %v13640_v35 = vrot.slane %v11157_v10, 3 }
 0x3d4   : > { %4008 = vst.msk [vmem:[#allocation2 + $0x58] sm:$0xf] %vm3835_vm7, %v8036_v27  ;;  %4009 = vst.msk [vmem:[#allocation2 + $0x5c] sm:$0xf] %vm3835_vm7, %v8037_v1  ;;  %v8052_v41 = vpack.c.bf16 %v11505_v42, %v11505_v42  ;;  %v8053_v59 = vpack.c.bf16 %v11508_v22, %v11508_v22  ;;  %v8054_v28 = vpack.c.bf16 %v11511_v53, %v11511_v53  ;;  %v4034_v36 = vld [vmem:[#allocation2 + $0x24] sm:$0xf] }
 0x3d5   : > { %4010 = vst.msk [vmem:[#allocation2 + $0x60] sm:$0xf] %vm3835_vm7, %v8038_v47  ;;  %4011 = vst.msk [vmem:[#allocation2 + $0x64] sm:$0xf] %vm3835_vm7, %v8039_v20  ;;  %v8055_v61 = vpack.c.bf16 %v11514_v54, %v11514_v54  ;;  %v8057_v57 = vpack.c.bf16 %v11517_v60, %v11517_v60  ;;  %v8058_v4 = vpack.c.bf16 %v11520_v33, %v11520_v33  ;;  %v4035_v62 = vld [vmem:[#allocation2 + $0x28] sm:$0xf] }
 0x3d6   : > { %4012 = vst.msk [vmem:[#allocation2 + $0x68] sm:$0xf] %vm3835_vm7, %v8040_v21  ;;  %4013 = vst.msk [vmem:[#allocation2 + $0x6c] sm:$0xf] %vm3835_vm7, %v8041_v58  ;;  %v4036_v25 = vld [vmem:[#allocation2 + $0x2c] sm:$0xf]  ;;  %v11597_v48 = vcombine.low %v4033_v12, %v4034_v36  ;;  %v11601_v38 = vcombine.low %v4034_v36, %v4035_v62 }
 0x3d7   : > { %4014 = vst.msk [vmem:[#allocation2 + $0x70] sm:$0xf] %vm3835_vm7, %v8042_v3  ;;  %4015 = vst.msk [vmem:[#allocation2 + $0x74] sm:$0xf] %vm3835_vm7, %v8043_v39  ;;  %v11599_v0 = vcombine.low %v4035_v62, %v4036_v25  ;;  %v4037_v55 = vld [vmem:[#allocation2 + $0x30] sm:$0xf] }
 0x3d8   : > { %4016 = vst.msk [vmem:[#allocation2 + $0x78] sm:$0xf] %vm3835_vm7, %v8044_v5  ;;  %4017 = vst.msk [vmem:[#allocation2 + $0x7c] sm:$0xf] %vm3835_vm7, %v8045_v49  ;;  %v4038_v40 = vld [vmem:[#allocation2 + $0x34] sm:$0xf]  ;;  %v11605_v42 = vcombine.low %v4036_v25, %v4037_v55 }
 0x3d9   : > { %4018 = vst.msk [vmem:[#allocation2 + $0x80] sm:$0xf] %vm3835_vm7, %v8046_v6  ;;  %4019 = vst.msk [vmem:[#allocation2 + $0x84] sm:$0xf] %vm3835_vm7, %v8047_v2  ;;  %v4039_v30 = vld [vmem:[#allocation2 + $0x38] sm:$0xf]  ;;  %v11603_v23 = vcombine.low %v4037_v55, %v4038_v40 }
 0x3da   : > { %4020 = vst.msk [vmem:[#allocation2 + $0x88] sm:$0xf] %vm3835_vm7, %v8048_v13  ;;  %4021 = vst.msk [vmem:[#allocation2 + $0x8c] sm:$0xf] %vm3835_vm7, %v8049_v51  ;;  %v4040_v22 = vld [vmem:[#allocation2 + $0x3c] sm:$0xf]  ;;  %v11607_v60 = vcombine.low %v4038_v40, %v4039_v30 }
 0x3db   : > { %4022 = vst.msk [vmem:[#allocation2 + $0x90] sm:$0xf] %vm3835_vm7, %v8050_v29  ;;  %4023 = vst.msk [vmem:[#allocation2 + $0x94] sm:$0xf] %vm3835_vm7, %v8051_v31  ;;  %v4041_v53 = vld [vmem:[#allocation2 + $0x40] sm:$0xf]  ;;  %v11612_v19 = vcombine.low %v4039_v30, %v4040_v22 }
 0x3dc   : > { %4024 = vst.msk [vmem:[#allocation2 + $0x98] sm:$0xf] %vm3835_vm7, %v8052_v41  ;;  %4025 = vst.msk [vmem:[#allocation2 + $0x9c] sm:$0xf] %vm3835_vm7, %v8053_v59  ;;  %v4042_v54 = vld [vmem:[#allocation2 + $0x44] sm:$0xf]  ;;  %v11618_v34 = vcombine.low %v4040_v22, %v4041_v53 }
 0x3dd   : > { %4026 = vst.msk [vmem:[#allocation2 + $0xa0] sm:$0xf] %vm3835_vm7, %v8054_v28  ;;  %4027 = vst.msk [vmem:[#allocation2 + $0xa4] sm:$0xf] %vm3835_vm7, %v8055_v61  ;;  %v4170_v33 = vrot.slane %v11597_v48, 3  ;;  %v4172_v43 = vrot.slane %v11599_v0, 3  ;;  %v11614_v50 = vcombine.low %v4041_v53, %v4042_v54 }
 0x3de   : > { %4029 = vst.msk [vmem:[#allocation2 + $0xac] sm:$0xf] %vm3835_vm7, %v8057_v57  ;;  %4030 = vst.msk [vmem:[#allocation2 + $0xb0] sm:$0xf] %vm3835_vm7, %v8058_v4  ;;  %v4043_v45 = vld [vmem:[#allocation2 + $0x48] sm:$0xf] }
 0x3df   : > { %13636 = vst [vmem:[#allocation42_spill] sm:$0xff] %v11601_v38  ;;  %13637 = vst [vmem:[#allocation43_spill] sm:$0xff] %v11605_v42  ;;  %v4044_v15 = vld [vmem:[#allocation2 + $0x4c] sm:$0xf]  ;;  %v4174_v37 = vrot.slane %v11603_v23, 3  ;;  %v4171_v27 = vsel %vm353_vm1, %v13640_v35, %v4170_v33  ;;  %v4173_v1 = vsel %vm353_vm1, %v4170_v33, %v4172_v43  ;;  %v11661_v41 = vcombine.low %v4042_v54, %v4043_v45  ;;  %v13644_v59 = vld [vmem:[#allocation41_spill] sm:$0xff] }
 0x3e0   : > { %13638 = vst [vmem:[#allocation44_spill] sm:$0xff] %v11607_v60  ;;  %v4045_v9 = vld [vmem:[#allocation2 + $0x50] sm:$0xf]  ;;  %v11616_v14 = vld [vmem:[#allocation2 + $0x54] sm:$0xf]  ;;  %13639 = vst [vmem:[#allocation45_spill] sm:$0xff] %v11618_v34  ;;  %8745 = vmatprep.mubr.msk.bf16.mxu1 %vm391_vm2, %v4171_v27  ;;  %v11634_v58 = vcombine.low %v4043_v45, %v4044_v15 }
 0x3e1   : > { %v11624_v47 = vld [vmem:[#allocation2 + $0x58] sm:$0xf]  ;;  %v11626_v20 = vld [vmem:[#allocation2 + $0x5c] sm:$0xf]  ;;  %v11631_v21 = vld [vmem:[%s13323_s2 + $0x4] sm:$0x3]  ;;  %v11637_v3 = vcombine.low %v4045_v9, %v11616_v14  ;;  %8746 = vmatmul.mubr.msk.bf16.vlgmr.msra.gmra.mrb[0].mxu1 %vm391_vm2, %v4173_v1  ;;  %v4175_v6 = vsel %vm353_vm1, %v4172_v43, %v4174_v37  ;;  %v11685_v55 = vcombine.low %v4044_v15, %v4045_v9 }
 0x3e2   : > { %13641 = vst [vmem:[#allocation46_spill] sm:$0xff] %v11631_v21  ;;  %v11639_v39 = vld [vmem:[#allocation2 + $0x60] sm:$0xf]  ;;  %v11641_v5 = vld [vmem:[#allocation2 + $0x64] sm:$0xf]  ;;  %v11649_v2 = vcombine.low %v11624_v47, %v11626_v20  ;;  %13643 = vst [vmem:[#allocation48_spill] sm:$0xff] %v11661_v41  ;;  %8782 = vmatpush3.bf16.msra.mxu1 %v13644_v59  ;;  %8749 = vmatprep.mubr.msk.bf16.mxu1 %vm391_vm2, %v4175_v6 }
 0x3e3   : > { %v11643_v49 = vld [vmem:[#allocation2 + $0xa8] sm:$0xf]  ;;  %v11653_v13 = vcombine.low %v11639_v39, %v11641_v5  ;;  %v11657_v29 = vld [vmem:[#allocation2 + $0x6c] sm:$0xf]  ;;  %v11659_v31 = vld [vmem:[#allocation2 + $0x70] sm:$0xf]  ;;  %9672 = vmatprep.subr.msk.bf16.mxu1 %vm446_vm0, %v11631_v21 }
 0x3e4   : > { %13642 = vst [vmem:[#allocation47_spill] sm:$0xff] %v11643_v49  ;;  %v11655_v51 = vld [vmem:[#allocation2 + $0x68] sm:$0xf]  ;;  %v4176_v12 = vrot.slane %v11612_v19, 3  ;;  %v4178_v28 = vrot.slane %v11614_v50, 3  ;;  %13645 = vst [vmem:[#allocation41_spill] sm:$0xff] %v11685_v55  ;;  %v11709_v35 = vcombine.low %v11643_v49, %v11643_v49 }
 0x3e5   : > { %v11669_v61 = vcombine.low %v11655_v51, %v11657_v29  ;;  %v11671_v57 = vld [vmem:[#allocation2 + $0x74] sm:$0xf]  ;;  %v11673_v4 = vld [vmem:[#allocation2 + $0x78] sm:$0xf]  ;;  %v11679_v62 = vld [vmem:[#allocation2 + $0x7c] sm:$0xf] }
 0x3e6   : > { %v11677_v36 = vcombine.low %v11659_v31, %v11671_v57  ;;  %v11681_v25 = vld [vmem:[#allocation2 + $0x80] sm:$0xf]  ;;  %v4180_v40 = vrot.slane %v11634_v58, 3  ;;  %v4182_v30 = vrot.slane %v11637_v3, 3  ;;  %v11691_v22 = vcombine.low %v11673_v4, %v11679_v62  ;;  %v11693_v53 = vld [vmem:[#allocation2 + $0x84] sm:$0xf] }
 0x3e7   : > { %v11695_v54 = vld [vmem:[#allocation2 + $0x88] sm:$0xf]  ;;  %v4184_v33 = vrot.slane %v11649_v2, 3  ;;  %v4186_v43 = vrot.slane %v11653_v13, 3  ;;  %v11701_v45 = vcombine.low %v11681_v25, %v11693_v53  ;;  %v11703_v15 = vld [vmem:[#allocation2 + $0x8c] sm:$0xf]  ;;  %v4177_v27 = vsel %vm353_vm1, %v4174_v37, %v4176_v12 }
 0x3e8   : > { %v11705_v9 = vld [vmem:[#allocation2 + $0x90] sm:$0xf]  ;;  %v4179_v1 = vsel %vm353_vm1, %v4176_v12, %v4178_v28  ;;  %v4188_v6 = vrot.slane %v11669_v61, 3  ;;  %v11716_v59 = vcombine.low %v11695_v54, %v11703_v15  ;;  %v11718_v24 = vld [vmem:[#allocation2 + $0x94] sm:$0xf]  ;;  %v4190_v7 = vrot.slane %v11677_v36, 3 }
 0x3e9   : > { %v11720_v63 = vld [vmem:[#allocation2 + $0x98] sm:$0xf]  ;;  %v4192_v52 = vrot.slane %v11691_v22, 3  ;;  %v4194_v56 = vrot.slane %v11701_v45, 3  ;;  %v11725_v44 = vld [vmem:[#allocation2 + $0x9c] sm:$0xf]  ;;  %v4181_v12 = vsel %vm353_vm1, %v4178_v28, %v4180_v40  ;;  %v4183_v26 = vsel %vm353_vm1, %v4180_v40, %v4182_v30  ;;  %8750 = vmatmul.mubr.msk.bf16.gmra.mrb[4].mxu1 %vm391_vm2, %v4177_v27 }
 0x3ea   : > { %13646 = vst [vmem:[#allocation49_spill] sm:$0xff] %v11725_v44  ;;  %v11732_v46 = vcombine.low %v11705_v9, %v11718_v24  ;;  %v11737_v18 = vsel %vm353_vm1, %v4182_v30, %v4184_v33  ;;  %v11740_v32 = vsel %vm353_vm1, %v4184_v33, %v4186_v43  ;;  %v4196_v37 = vrot.slane %v11716_v59, 3  ;;  %v11747_v40 = vld [vmem:[#allocation2 + $0xa0] sm:$0xf]  ;;  %v11749_v17 = vld [vmem:[#allocation2 + $0xa4] sm:$0xf]  ;;  %8753 = vmatprep.mubr.msk.bf16.mxu1 %vm391_vm2, %v4179_v1 }
 0x3eb   : > { %v11745_v28 = vcombine.low %v11720_v63, %v11725_v44  ;;  %13647 = vst [vmem:[#allocation50_spill] sm:$0xff] %v11747_v40  ;;  %13648 = vst [vmem:[#allocation51_spill] sm:$0xff] %v11749_v17  ;;  %v11753_v27 = vsel %vm353_vm1, %v4186_v43, %v4188_v6  ;;  %v13649_v33 = vshrl.u32 %v11599_v0, 16  ;;  %v13448_v11 = vshll.u32 %v11599_v0, 16 }
 0x3ec   : > { %v11760_v16 = vsel %vm353_vm1, %v4188_v6, %v4190_v7  ;;  %v11763_v38 = vsel %vm353_vm1, %v4190_v7, %v4192_v52  ;;  %v11766_v55 = vsel %vm353_vm1, %v4192_v52, %v4194_v56  ;;  %v13451_v1 = vshrl.u32 %v11603_v23, 16 }
 0x3ed   : > { %v4460_v8 = vrot.slane %v13649_v33, 2  ;;  %v11772_v30 = vcombine.low %v11747_v40, %v11749_v17  ;;  %v4463_v33 = vrot.slane %v13448_v11, 3  ;;  %v13453_v6 = vshll.u32 %v11603_v23, 16 }
 0x3ee   : > { %v11778_v41 = vsel %vm353_vm1, %v4194_v56, %v4196_v37  ;;  %v4469_v52 = vrot.slane %v13451_v1, 2  ;;  %v13455_v60 = vshrl.u32 %v11612_v19, 16  ;;  %v13461_v17 = vshll.u32 %v11612_v19, 16 }
 0x3ef   : > { %v11784_v43 = vor.u32 %v4463_v33, %v4460_v8  ;;  %v4472_v42 = vrot.slane %v13453_v6, 3  ;;  %v13459_v11 = vshrl.u32 %v11614_v50, 16  ;;  %v13458_v49 = vshll.u32 %v11614_v50, 16 }
 0x3f0   : > { %v4478_v56 = vrot.slane %v13455_v60, 2  ;;  %v13460_v7 = vshrl.u32 %v11634_v58, 16  ;;  %v13650_v34 = vrot.slane %v11732_v46, 3  ;;  %v4481_v6 = vrot.slane %v13461_v17, 3 }
 0x3f1   : > { %v4473_v33 = vor.u32 %v4472_v42, %v4469_v52  ;;  %v4487_v21 = vrot.slane %v13459_v11, 2  ;;  %8754 = vmatmul.mubr.msk.bf16.gmra.mrb[8].mxu1 %vm391_vm2, %v4181_v12  ;;  %v4490_v60 = vrot.slane %v13458_v49, 3  ;;  %v13651_v44 = vshll.u32 %v11634_v58, 16 }
 0x3f2   : > { %v11798_v8 = vsel %vm353_vm1, %v4196_v37, %v13650_v34  ;;  %v4496_v1 = vrot.slane %v13460_v7, 2  ;;  %v13464_v34 = vshrl.u32 %v11637_v3, 16  ;;  %8757 = vmatprep.mubr.msk.bf16.mxu1 %vm391_vm2, %v4183_v26  ;;  %v4482_v37 = vor.u32 %v4481_v6, %v4478_v56 }
 0x3f3   : > { %v4499_v40 = vrot.slane %v13651_v44, 3  ;;  %v11815_v42 = vsel %vm627_vm3, %v11784_v43, %v4473_v33  ;;  %v13462_v12 = vshll.u32 %v11637_v3, 16  ;;  %v13463_v52 = vshrl.u32 %v11649_v2, 16 }
 0x3f4   : > { %13652 = vst [vmem:[#allocation52_spill] sm:$0xff] %v11815_v42  ;;  %v4491_v49 = vor.u32 %v4490_v60, %v4487_v21  ;;  %v4505_v7 = vrot.slane %v13464_v34, 2  ;;  %v13465_v44 = vshll.u32 %v11649_v2, 16  ;;  %v11823_v17 = vsel %vm627_vm3, %v4473_v33, %v4482_v37 }
 0x3f5   : > { %v4500_v11 = vor.u32 %v4499_v40, %v4496_v1  ;;  %13653 = vst [vmem:[#allocation53_spill] sm:$0xff] %v11823_v17  ;;  %v4508_v26 = vrot.slane %v13462_v12, 3  ;;  %v4514_v6 = vrot.slane %v13463_v52, 2  ;;  %v13466_v56 = vshrl.u32 %v11653_v13, 16 }
 0x3f6   : > { %v11831_v42 = vsel %vm627_vm3, %v4482_v37, %v4491_v49  ;;  %v4517_v21 = vrot.slane %v13465_v44, 3  ;;  %v13467_v40 = vshll.u32 %v11653_v13, 16  ;;  %v13468_v12 = vshrl.u32 %v11669_v61, 16 }
 0x3f7   : > { %13654 = vst [vmem:[#allocation54_spill] sm:$0xff] %v11831_v42  ;;  %v11834_v60 = vsel %vm627_vm3, %v4491_v49, %v4500_v11  ;;  %v4509_v1 = vor.u32 %v4508_v26, %v4505_v7  ;;  %v4523_v33 = vrot.slane %v13466_v56, 2  ;;  %v13469_v52 = vshll.u32 %v11669_v61, 16 }
 0x3f8   : > { %13655 = vst [vmem:[#allocation55_spill] sm:$0xff] %v11834_v60  ;;  %v4518_v34 = vor.u32 %v4517_v21, %v4514_v6  ;;  %v4526_v37 = vrot.slane %v13467_v40, 3  ;;  %v13470_v49 = vshrl.u32 %v11677_v36, 16  ;;  %v13471_v60 = vshll.u32 %v11677_v36, 16 }
 0x3f9   : > { %v11848_v44 = vsel %vm627_vm3, %v4500_v11, %v4509_v1  ;;  %v4532_v7 = vrot.slane %v13468_v12, 2  ;;  %v4535_v26 = vrot.slane %v13469_v52, 3  ;;  %v13472_v56 = vshrl.u32 %v11691_v22, 16  ;;  %8758 = vmatmul.mubr.msk.bf16.gmra.mrb[12].mxu1 %vm391_vm2, %v11737_v18 }
 0x3fa   : > { %13656 = vst [vmem:[#allocation56_spill] sm:$0xff] %v11848_v44  ;;  %v11858_v6 = vsel %vm627_vm3, %v4509_v1, %v4518_v34  ;;  %v4527_v21 = vor.u32 %v4526_v37, %v4523_v33  ;;  %v4541_v40 = vrot.slane %v13470_v49, 2  ;;  %v4544_v11 = vrot.slane %v13471_v60, 3  ;;  %8761 = vmatprep.mubr.msk.bf16.mxu1 %vm391_vm2, %v11740_v32 }
 0x3fb   : > { %13657 = vst [vmem:[#allocation57_spill] sm:$0xff] %v11858_v6  ;;  %v4536_v12 = vor.u32 %v4535_v26, %v4532_v7  ;;  %v4550_v52 = vrot.slane %v13472_v56, 2  ;;  %v13473_v44 = vshll.u32 %v11691_v22, 16  ;;  %v13474_v18 = vshrl.u32 %v11701_v45, 16 }
 0x3fc   : > { %v11871_v1 = vsel %vm627_vm3, %v4518_v34, %v4527_v21  ;;  %v4545_v33 = vor.u32 %v4544_v11, %v4541_v40  ;;  %v13475_v37 = vshll.u32 %v11701_v45, 16  ;;  %v13476_v49 = vshrl.u32 %v11716_v59, 16 }
 0x3fd   : > { %13658 = vst [vmem:[#allocation58_spill] sm:$0xff] %v11871_v1  ;;  %v11876_v60 = vsel %vm627_vm3, %v4527_v21, %v4536_v12  ;;  %v4553_v32 = vrot.slane %v13473_v44, 3  ;;  %v4559_v7 = vrot.slane %v13474_v18, 2  ;;  %v13482_v26 = vshll.u32 %v11716_v59, 16 }
 0x3fe   : > { %13659 = vst [vmem:[#allocation59_spill] sm:$0xff] %v11876_v60  ;;  %v11884_v56 = vsel %vm627_vm3, %v4536_v12, %v4545_v33  ;;  %v4562_v34 = vrot.slane %v13475_v37, 3  ;;  %v4568_v40 = vrot.slane %v13476_v49, 2  ;;  %v13480_v21 = vshrl.u32 %v11732_v46, 16 }
 0x3ff   : > { %13660 = vst [vmem:[#allocation60_spill] sm:$0xff] %v11884_v56  ;;  %v4554_v11 = vor.u32 %v4553_v32, %v4550_v52  ;;  %v4571_v44 = vrot.slane %v13482_v26, 3  ;;  %v13478_v60 = vshll.u32 %v11732_v46, 16  ;;  %v13477_v18 = vshrl.u32 %v11745_v28, 16 }
 0x400   : > { %v4563_v1 = vor.u32 %v4562_v34, %v4559_v7  ;;  %v4577_v12 = vrot.slane %v13480_v21, 2  ;;  %v13479_v56 = vshll.u32 %v11745_v28, 16  ;;  %v13481_v37 = vshrl.u32 %v11772_v30, 16 }
 0x401   : > { %v11900_v49 = vsel %vm627_vm3, %v4545_v33, %v4554_v11  ;;  %v4572_v6 = vor.u32 %v4571_v44, %v4568_v40  ;;  %v4580_v52 = vrot.slane %v13478_v60, 3  ;;  %v4586_v32 = vrot.slane %v13477_v18, 2  ;;  %8762 = vmatmul.mubr.msk.bf16.gmra.mrb[16].mxu1 %vm391_vm2, %v11753_v27 }
 0x402   : > { %13661 = vst [vmem:[#allocation61_spill] sm:$0xff] %v11900_v49  ;;  %v11909_v7 = vsel %vm627_vm3, %v4554_v11, %v4563_v1  ;;  %v4589_v34 = vrot.slane %v13479_v56, 3  ;;  %v4595_v33 = vrot.slane %v13481_v37, 2  ;;  %v13483_v44 = vshll.u32 %v11772_v30, 16  ;;  %8765 = vmatprep.mubr.msk.bf16.mxu1 %vm391_vm2, %v11760_v16 }
 0x403   : > { %13662 = vst [vmem:[#allocation62_spill] sm:$0xff] %v11909_v7  ;;  %v11919_v40 = vsel %vm627_vm3, %v4563_v1, %v4572_v6  ;;  %v4581_v18 = vor.u32 %v4580_v52, %v4577_v12  ;;  %v13484_v27 = vshrl.u32 %v11709_v35, 16  ;;  %v13485_v11 = vshll.u32 %v11709_v35, 16 }
 0x404   : > { %13663 = vst [vmem:[#allocation63_spill] sm:$0xff] %v11919_v40  ;;  %v4590_v60 = vor.u32 %v4589_v34, %v4586_v32  ;;  %v4598_v56 = vrot.slane %v13483_v44, 3  ;;  %v13664_v21 = vshrl.u32 %v11597_v48, 16  ;;  %v13665_v26 = vshll.u32 %v11597_v48, 16 }
 0x405   : > { %v11930_v16 = vsel %vm627_vm3, %v4572_v6, %v4581_v18  ;;  %v4604_v1 = vrot.slane %v13484_v27, 2  ;;  %v4607_v12 = vrot.slane %v13485_v11, 3  ;;  %v13667_v52 = vshrl.u32 %v11599_v0, 16 }
 0x406   : > { %v4849_v37 = vrot.slane %v13664_v21, 3  ;;  %v4850_v7 = vrot.slane %v13665_v26, 4  ;;  %13666 = vst [vmem:[#allocation64_spill] sm:$0xff] %v11930_v16  ;;  %v11939_v34 = vsel %vm627_vm3, %v4581_v18, %v4590_v60  ;;  %v4599_v44 = vor.u32 %v4598_v56, %v4595_v33  ;;  %v13673_v18 = vld [vmem:[#allocation39_spill] sm:$0xff] }
 0x407   : > { %v4853_v32 = vrot.slane %v13667_v52, 3  ;;  %13668 = vst [vmem:[#allocation65_spill] sm:$0xff] %v11939_v34  ;;  %v13669_v40 = vshll.u32 %v11599_v0, 16  ;;  %v4202_v6 = vrot.slane %v11772_v30, 3  ;;  %v4608_v16 = vor.u32 %v4607_v12, %v4604_v1  ;;  %v13672_v52 = vld [vmem:[#allocation40_spill] sm:$0xff] }
 0x408   : > { %v4851_v21 = vor.u32 %v4850_v7, %v4849_v37  ;;  %v13670_v49 = vshrl.u32 %v11603_v23, 16  ;;  %v13671_v42 = vshll.u32 %v11603_v23, 16  ;;  %v11949_v17 = vsel %vm627_vm3, %v4590_v60, %v4599_v44 }
 0x409   : > { %v4854_v26 = vrot.slane %v13669_v40, 4  ;;  %v13674_v34 = vor.u32 %v13672_v52, %v13673_v18  ;;  %v13675_v37 = vshrl.u32 %v11612_v19, 16  ;;  %v11960_v33 = vsel %vm627_vm3, %v4599_v44, %v4608_v16  ;;  %8766 = vmatmul.mubr.msk.bf16.gmra.mrb[20].mxu1 %vm391_vm2, %v11763_v38 }
 0x40a   : > { %v4857_v27 = vrot.slane %v13670_v49, 3  ;;  %v4858_v11 = vrot.slane %v13671_v42, 4  ;;  %v13676_v23 = vshll.u32 %v11612_v19, 16  ;;  %v13677_v60 = vshrl.u32 %v11614_v50, 16  ;;  %8769 = vmatprep.mubr.msk.bf16.mxu1 %vm391_vm2, %v11766_v55 }
 0x40b   : > { %v11955_v56 = vsel %vm1034_vm4, %v13674_v34, %v4851_v21  ;;  %v4855_v0 = vor.u32 %v4854_v26, %v4853_v32  ;;  %v4861_v7 = vrot.slane %v13675_v37, 3  ;;  %v13678_v12 = vshll.u32 %v11614_v50, 16 }
 0x40c   : > { %v4859_v49 = vor.u32 %v4858_v11, %v4857_v27  ;;  %v4862_v42 = vrot.slane %v13676_v23, 4  ;;  %v4865_v40 = vrot.slane %v13677_v60, 3  ;;  %v13679_v34 = vshrl.u32 %v11634_v58, 16 }
 0x40d   : > { %v11969_v1 = vsel %vm1034_vm4, %v4851_v21, %v4855_v0  ;;  %v4866_v32 = vrot.slane %v13678_v12, 4  ;;  %v13680_v27 = vshll.u32 %v11634_v58, 16  ;;  %v13681_v38 = vshrl.u32 %v11637_v3, 16 }
 0x40e   : > { %v4869_v44 = vrot.slane %v13679_v34, 3  ;;  %v11980_v19 = vsel %vm1034_vm4, %v4855_v0, %v4859_v49  ;;  %v4863_v16 = vor.u32 %v4862_v42, %v4861_v7  ;;  %v13682_v26 = vshll.u32 %v11637_v3, 16 }
 0x40f   : > { %v4870_v11 = vrot.slane %v13680_v27, 4  ;;  %v4873_v21 = vrot.slane %v13681_v38, 3  ;;  %v4867_v52 = vor.u32 %v4866_v32, %v4865_v40  ;;  %v13683_v37 = vshrl.u32 %v11649_v2, 16 }
 0x410   : > { %v4874_v50 = vrot.slane %v13682_v26, 4  ;;  %v13684_v58 = vshll.u32 %v11649_v2, 16  ;;  %v11991_v55 = vsel %vm1034_vm4, %v4859_v49, %v4863_v16  ;;  %v13685_v7 = vshrl.u32 %v11653_v13, 16 }
 0x411   : > { %v4871_v18 = vor.u32 %v4870_v11, %v4869_v44  ;;  %v4877_v23 = vrot.slane %v13683_v37, 3  ;;  %v13686_v12 = vshll.u32 %v11653_v13, 16  ;;  %v11998_v3 = vsel %vm1034_vm4, %v4863_v16, %v4867_v52  ;;  %8770 = vmatmul.mubr.msk.bf16.gmra.mrb[24].mxu1 %vm391_vm2, %v11778_v41 }
 0x412   : > { %v4878_v60 = vrot.slane %v13684_v58, 4  ;;  %v4875_v0 = vor.u32 %v4874_v50, %v4873_v21  ;;  %v4881_v42 = vrot.slane %v13685_v7, 3  ;;  %v13687_v2 = vshrl.u32 %v11669_v61, 16  ;;  %8773 = vmatprep.mubr.msk.bf16.mxu1 %vm391_vm2, %v11798_v8 }
 0x413   : > { %v4882_v34 = vrot.slane %v13686_v12, 4  ;;  %v12001_v40 = vsel %vm1034_vm4, %v4867_v52, %v4871_v18  ;;  %v13688_v11 = vshll.u32 %v11669_v61, 16  ;;  %v13689_v13 = vshrl.u32 %v11677_v36, 16 }
 0x414   : > { %v4879_v32 = vor.u32 %v4878_v60, %v4877_v23  ;;  %v4885_v44 = vrot.slane %v13687_v2, 3  ;;  %v12006_v49 = vsel %vm1034_vm4, %v4871_v18, %v4875_v0  ;;  %v13690_v26 = vshll.u32 %v11677_v36, 16 }
 0x415   : > { %v4883_v27 = vor.u32 %v4882_v34, %v4881_v42  ;;  %v4886_v38 = vrot.slane %v13688_v11, 4  ;;  %v4889_v21 = vrot.slane %v13689_v13, 3  ;;  %v13691_v52 = vshrl.u32 %v11691_v22, 16 }
 0x416   : > { %v12013_v16 = vsel %vm1034_vm4, %v4875_v0, %v4879_v32  ;;  %v4890_v50 = vrot.slane %v13690_v26, 4  ;;  %v13692_v23 = vshll.u32 %v11691_v22, 16  ;;  %v13693_v60 = vshrl.u32 %v11701_v45, 16 }
 0x417   : > { %v4893_v37 = vrot.slane %v13691_v52, 3  ;;  %v12022_v58 = vsel %vm1034_vm4, %v4879_v32, %v4883_v27  ;;  %v4887_v61 = vor.u32 %v4886_v38, %v4885_v44  ;;  %v13694_v42 = vshll.u32 %v11701_v45, 16 }
 0x418   : > { %v4894_v18 = vrot.slane %v13692_v23, 4  ;;  %v4897_v7 = vrot.slane %v13693_v60, 3  ;;  %v4891_v36 = vor.u32 %v4890_v50, %v4889_v21  ;;  %v13695_v34 = vshrl.u32 %v11716_v59, 16 }
 0x419   : > { %v4898_v0 = vrot.slane %v13694_v42, 4  ;;  %v13696_v22 = vshll.u32 %v11716_v59, 16  ;;  %v12037_v32 = vsel %vm1034_vm4, %v4883_v27, %v4887_v61  ;;  %v13697_v45 = vshrl.u32 %v11732_v46, 16 }
 0x41a   : > { %v4895_v12 = vor.u32 %v4894_v18, %v4893_v37  ;;  %v4901_v2 = vrot.slane %v13695_v34, 3  ;;  %v13698_v41 = vshll.u32 %v11732_v46, 16  ;;  %v12044_v21 = vsel %vm1034_vm4, %v4887_v61, %v4891_v36 }
 0x41b   : > { %v4902_v11 = vrot.slane %v13696_v22, 4  ;;  %v4899_v44 = vor.u32 %v4898_v0, %v4897_v7  ;;  %v4905_v38 = vrot.slane %v13697_v45, 3  ;;  %v13699_v50 = vshrl.u32 %v11745_v28, 16 }
 0x41c   : > { %v4906_v13 = vrot.slane %v13698_v41, 4  ;;  %v12047_v26 = vsel %vm1034_vm4, %v4891_v36, %v4895_v12  ;;  %v13700_v37 = vshll.u32 %v11745_v28, 16  ;;  %v13701_v18 = vshrl.u32 %v11772_v30, 16 }
 0x41d   : > { %v4903_v59 = vor.u32 %v4902_v11, %v4901_v2  ;;  %v4909_v8 = vrot.slane %v13699_v50, 3  ;;  %v12052_v27 = vsel %vm1034_vm4, %v4895_v12, %v4899_v44  ;;  %v13702_v7 = vshll.u32 %v11772_v30, 16  ;;  %v13716_v30 = vld [vmem:[#allocation52_spill] sm:$0xff] }
 0x41e   : > { %v4907_v52 = vor.u32 %v4906_v13, %v4905_v38  ;;  %v4910_v23 = vrot.slane %v13700_v37, 4  ;;  %v4913_v60 = vrot.slane %v13701_v18, 3  ;;  %v13703_v0 = vshrl.u32 %v11709_v35, 16 }
 0x41f   : > { %v12059_v61 = vsel %vm1034_vm4, %v4899_v44, %v4903_v59  ;;  %v4914_v42 = vrot.slane %v13702_v7, 4  ;;  %v13704_v34 = vshll.u32 %v11709_v35, 16  ;;  %v13705_v2 = vshrl.u32 %v11157_v10, 16 }
 0x420   : > { %v4917_v36 = vrot.slane %v13703_v0, 3  ;;  %v13706_v11 = vshll.u32 %v11157_v10, 16  ;;  %v12072_v38 = vsel %vm1034_vm4, %v4903_v59, %v4907_v52  ;;  %v4911_v44 = vor.u32 %v4910_v23, %v4909_v8 }
 0x421   : > { %v4918_v12 = vrot.slane %v13704_v34, 4  ;;  %v4443_v22 = vrot.slane %v13705_v2, 2  ;;  %v12074_v41 = vor.u32 %v4914_v42, %v4913_v60  ;;  %v12078_v50 = vcombine.low %v11616_v14, %v11624_v47 }
 0x422   : > { %v4446_v45 = vrot.slane %v13706_v11, 3  ;;  %v12082_v37 = vcombine.low %v11626_v20, %v11639_v39  ;;  %v13708_v18 = vrot.slane %v11745_v28, 3  ;;  %v13709_v10 = vrot.slane %v11732_v46, 3  ;;  %v12115_v39 = vld [vmem:[#allocation2 + $0xac] sm:$0xf] }
 0x423   : > { %v4919_v13 = vor.u32 %v4918_v12, %v4917_v36  ;;  %13707 = vst [vmem:[#allocation40_spill] sm:$0xff] %v12078_v50  ;;  %v13710_v59 = vshrl.u32 %v11597_v48, 16  ;;  %v13711_v23 = vshll.u32 %v11597_v48, 16  ;;  %v12094_v42 = vsel %vm1034_vm4, %v4907_v52, %v4911_v44  ;;  %v12117_v52 = vld [vmem:[#allocation2 + $0xb0] sm:$0xf] }
 0x424   : > { %v4201_v7 = vsel %vm353_vm1, %v13709_v10, %v13708_v18  ;;  %v13712_v14 = vmov %v13708_v18  ;;  %v12104_v46 = vsel %vm1034_vm4, %v4911_v44, %v12074_v41  ;;  %v12112_v48 = vcombine.low %v11641_v5, %v11655_v51  ;;  %v4071_v12 = vld [vmem:[#allocation2 + $0xb8] sm:$0xf] }
 0x425   : > { %v4451_v8 = vrot.slane %v13710_v59, 2  ;;  %v4454_v60 = vrot.slane %v13711_v23, 3  ;;  %8774 = vmatmul.mubr.msk.bf16.gmra.mrb[28].mxu1 %vm391_vm2, %v4201_v7  ;;  %v4203_v47 = vsel %vm353_vm1, %v13712_v14, %v4202_v6  ;;  %v12108_v20 = vsel %vm1034_vm4, %v12074_v41, %v4919_v13  ;;  %v13721_v18 = vld [vmem:[#allocation45_spill] sm:$0xff]  ;;  %v13724_v23 = vld [vmem:[#allocation47_spill] sm:$0xff] }
 0x426   : > { %8777 = vmatprep.mubr.msk.bf16.mxu1 %vm391_vm2, %v4203_v47  ;;  %v12121_v28 = vcombine.low %v11657_v29, %v11659_v31  ;;  %v12125_v0 = vcombine.low %v11671_v57, %v11673_v4  ;;  %v12129_v36 = vcombine.low %v11679_v62, %v11681_v25  ;;  %v12133_v5 = vcombine.low %v11693_v53, %v11695_v54  ;;  %v13713_v31 = vld [vmem:[#allocation50_spill] sm:$0xff]  ;;  %v13714_v57 = vld [vmem:[#allocation49_spill] sm:$0xff]  ;;  %v13726_v47 = vld [vmem:[#allocation43_spill] sm:$0xff] }
 0x427   : > { %v4204_v51 = vrot.slane %v11709_v35, 3  ;;  %v12138_v34 = vcombine.low %v11703_v15, %v11705_v9  ;;  %v12142_v29 = vcombine.low %v11718_v24, %v11720_v63  ;;  %v12146_v4 = vcombine.low %v13714_v57, %v13713_v31  ;;  %v13715_v63 = vld [vmem:[#allocation46_spill] sm:$0xff]  ;;  %v13727_v57 = vld [vmem:[#allocation44_spill] sm:$0xff] }
 0x428   : > { %v4447_v62 = vor.u32 %v4446_v45, %v4443_v22  ;;  %v4455_v25 = vor.u32 %v4454_v60, %v4451_v8  ;;  %v12150_v53 = vcombine.low %v12115_v39, %v12117_v52  ;;  %v4976_v24 = vsel %vm446_vm0, %v13715_v63, 0  ;;  %v12165_v35 = vld [vmem:[%s13323_s2 + $0x6] sm:$0x3]  ;;  %v13725_v60 = vld [vmem:[#allocation51_spill] sm:$0xff] }
 0x429   : > { %v4205_v54 = vsel %vm353_vm1, %v4202_v6, %v4204_v51  ;;  %v12172_v6 = vld [vmem:[#allocation2 + $0xb4] sm:$0xf]  ;;  %v13719_v22 = vld [vmem:[#allocation54_spill] sm:$0xff]  ;;  %v13488_v10 = vshll.u32 %v13721_v18, 16  ;;  %v13490_v59 = vshrl.u32 %v13721_v18, 16  ;;  %v12201_v14 = vcombine.low %v13725_v60, %v13724_v23 }
 0x42a   : > { %v4456_v15 = vsel %vm627_vm3, %v4447_v62, %v4455_v25  ;;  %v4465_v9 = vsel %vm627_vm3, %v4455_v25, %v11784_v43  ;;  %13717 = vst [vmem:[#allocation39_spill] sm:$0xff] %v12172_v6  ;;  %v12175_v2 = vcombine.low %v12172_v6, %v4071_v12  ;;  %v13718_v43 = vld [vmem:[#allocation53_spill] sm:$0xff]  ;;  %v13487_v11 = vshll.u32 %v12150_v53, 16 }
 0x42b   : > { %v13489_v13 = vshrl.u32 %v12150_v53, 16  ;;  %v13492_v51 = vshll.u32 %v13726_v47, 16  ;;  %v13491_v31 = vshrl.u32 %v13726_v47, 16  ;;  %v13495_v62 = vshll.u32 %v13727_v57, 16  ;;  %v13731_v12 = vld [vmem:[#allocation41_spill] sm:$0xff] }
 0x42c   : > { %v13486_v45 = vshll.u32 %v12175_v2, 16  ;;  %v12185_v44 = vrot.slane %v13487_v11, 1  ;;  %v13493_v25 = vshrl.u32 %v13727_v57, 16  ;;  %v6699_v63 = vrot.slane %v13488_v10, 2  ;;  %v13735_v10 = vld [vmem:[#allocation58_spill] sm:$0xff] }
 0x42d   : > { %8778 = vmatmul.mubr.msk.bf16.gmra.mrb[32].mxu1 %vm391_vm2, %v4205_v54  ;;  %v6698_v60 = vrot.slane %v13490_v59, 1  ;;  %v13739_v59 = vshrl.u32 %v12078_v50, 16 }
 0x42e   : > { %8783 = vmatprep.mubr.msk.bf16.mxu1 %vm391_vm2, %v4456_v15  ;;  %13720 = vst [vmem:[#allocation50_spill] sm:$0xff] %v12185_v44  ;;  %v12191_v7 = vrot.slane %v13486_v45, 1  ;;  %v12197_v8 = vor.u32 %v13489_v13, %v12185_v44  ;;  %v13729_v15 = vld [vmem:[#allocation55_spill] sm:$0xff]  ;;  %v13741_v44 = vshrl.u32 %v12082_v37, 16 }
 0x42f   : > { %v6700_v11 = vor.u32 %v6699_v63, %v6698_v60  ;;  %v6710_v63 = vrot.slane %v13739_v59, 1  ;;  %v13740_v60 = vshll.u32 %v12078_v50, 16  ;;  %v13744_v59 = vshrl.u32 %v12112_v48, 16 }
 0x430   : > { %13722 = vst [vmem:[#allocation49_spill] sm:$0xff] %v12191_v7  ;;  %13723 = vst [vmem:[#allocation46_spill] sm:$0xff] %v12197_v8  ;;  %v12210_v54 = vsel %vm5734_vm10, %v12197_v8, %v12191_v7 }
 0x431   : > { %13728 = vst [vmem:[#allocation52_spill] sm:$0xff] %v12210_v54  ;;  %v6718_v6 = vrot.slane %v13744_v59, 1  ;;  %v13754_v59 = vshrl.u32 %v12129_v36, 16 }
 0x435   : > { %8784 = vmatmul.mubr.msk.bf16.vlgmr.msra.gmra.mrb[0].mxu1 %vm391_vm2, %v4465_v9  ;;  %v6692_v9 = vrot.slane %v13492_v51, 2 }
 0x436   : > { %8820 = vmatpush3.bf16.msra.mxu1 %v4976_v24  ;;  %8787 = vmatprep.mubr.msk.bf16.mxu1 %vm391_vm2, %v13716_v30  ;;  %v13730_v24 = vld [vmem:[#allocation48_spill] sm:$0xff]  ;;  %v6695_v30 = vrot.slane %v13495_v62, 2  ;;  %v13737_v62 = vshrl.u32 %v13731_v12, 16 }
 0x437   : > { %9673 = vmatprep.subr.msk.bf16.mxu1 %vm446_vm0, %v12165_v35 }
 0x438   : > { %v6706_v54 = vrot.slane %v13737_v62, 1  ;;  %v13743_v62 = vshll.u32 %v12082_v37, 16 }
 0x43d   : > { %8788 = vmatmul.mubr.msk.bf16.gmra.mrb[4].mxu1 %vm391_vm2, %v13718_v43  ;;  %v6694_v43 = vrot.slane %v13493_v25, 1  ;;  %v13736_v25 = vshll.u32 %v13730_v24, 16 }
 0x43e   : > { %8791 = vmatprep.mubr.msk.bf16.mxu1 %vm391_vm2, %v13719_v22  ;;  %v13732_v22 = vld [vmem:[#allocation56_spill] sm:$0xff] }
 0x43f   : > { %v6696_v13 = vor.u32 %v6695_v30, %v6694_v43  ;;  %v6703_v7 = vrot.slane %v13736_v25, 2  ;;  %v6715_v43 = vrot.slane %v13743_v62, 2 }
 0x441   : > { %v12277_v25 = vsel %vm6690_vm11, %v6696_v13, %v6700_v11 }
 0x445   : > { %8792 = vmatmul.mubr.msk.bf16.gmra.mrb[8].mxu1 %vm391_vm2, %v13729_v15  ;;  %v6691_v15 = vrot.slane %v13491_v31, 1  ;;  %v13734_v31 = vshrl.u32 %v13730_v24, 16 }
 0x446   : > { %8795 = vmatprep.mubr.msk.bf16.mxu1 %vm391_vm2, %v13732_v22  ;;  %v13733_v22 = vld [vmem:[#allocation57_spill] sm:$0xff] }
 0x447   : > { %v6702_v45 = vrot.slane %v13734_v31, 1  ;;  %v6693_v51 = vor.u32 %v6692_v9, %v6691_v15  ;;  %v6711_v31 = vrot.slane %v13740_v60, 2  ;;  %v13745_v60 = vshll.u32 %v12112_v48, 16 }
 0x449   : > { %v12274_v9 = vsel %vm6690_vm11, %v6693_v51, %v6696_v13  ;;  %v6704_v30 = vor.u32 %v6703_v7, %v6702_v45  ;;  %v6719_v50 = vrot.slane %v13745_v60, 2  ;;  %v13748_v45 = vshll.u32 %v12121_v28, 16 }
 0x44a   : > { %13742 = vst [vmem:[#allocation53_spill] sm:$0xff] %v12274_v9  ;;  %v13747_v9 = vshrl.u32 %v12121_v28, 16  ;;  %v6730_v60 = vrot.slane %v13754_v59, 1 }
 0x44b   : > { %v6723_v7 = vrot.slane %v13748_v45, 2  ;;  %v13755_v45 = vld [vmem:[#allocation59_spill] sm:$0xff] }
 0x44c   : > { %v6722_v13 = vrot.slane %v13747_v9, 1 }
 0x44d   : > { %8796 = vmatmul.mubr.msk.bf16.gmra.mrb[12].mxu1 %vm391_vm2, %v13733_v22  ;;  %v13738_v22 = vshll.u32 %v13731_v12, 16 }
 0x44e   : > { %8799 = vmatprep.mubr.msk.bf16.mxu1 %vm391_vm2, %v13735_v10  ;;  %v6714_v10 = vrot.slane %v13741_v44, 1  ;;  %v12286_v44 = vsel %vm6690_vm11, %v6700_v11, %v6704_v30 }
 0x44f   : > { %v6707_v8 = vrot.slane %v13738_v22, 2  ;;  %v6712_v22 = vor.u32 %v6711_v31, %v6710_v63  ;;  %13746 = vst [vmem:[#allocation54_spill] sm:$0xff] %v12286_v44  ;;  %v13751_v63 = vshrl.u32 %v12125_v0, 16 }
 0x450   : > { %v6716_v51 = vor.u32 %v6715_v43, %v6714_v10  ;;  %v6724_v10 = vor.u32 %v6723_v7, %v6722_v13  ;;  %v13753_v43 = vshll.u32 %v12125_v0, 16  ;;  %v13759_v13 = vshll.u32 %v12133_v5, 16 }
 0x451   : > { %v6708_v15 = vor.u32 %v6707_v8, %v6706_v54  ;;  %v6720_v54 = vor.u32 %v6719_v50, %v6718_v6  ;;  %v6726_v31 = vrot.slane %v13751_v63, 1  ;;  %v13757_v50 = vshll.u32 %v12129_v36, 16  ;;  %v13760_v63 = vld [vmem:[#allocation60_spill] sm:$0xff] }
 0x452   : > { %v12301_v11 = vsel %vm6690_vm11, %v6712_v22, %v6716_v51  ;;  %v6727_v9 = vrot.slane %v13753_v43, 2  ;;  %v6735_v7 = vrot.slane %v13759_v13, 2  ;;  %v13765_v13 = vshll.u32 %v12142_v29, 16 }
 0x453   : > { %v12293_v62 = vsel %vm6690_vm11, %v6704_v30, %v6708_v15  ;;  %v12296_v8 = vsel %vm6690_vm11, %v6708_v15, %v6712_v22  ;;  %13752 = vst [vmem:[#allocation51_spill] sm:$0xff] %v12301_v11  ;;  %v12310_v30 = vsel %vm6690_vm11, %v6716_v51, %v6720_v54  ;;  %v6731_v6 = vrot.slane %v13757_v50, 2 }
 0x454   : > { %13749 = vst [vmem:[#allocation45_spill] sm:$0xff] %v12293_v62  ;;  %13750 = vst [vmem:[#allocation47_spill] sm:$0xff] %v12296_v8  ;;  %v13758_v15 = vshrl.u32 %v12133_v5, 16  ;;  %v12321_v43 = vsel %vm6690_vm11, %v6720_v54, %v6724_v10  ;;  %v6728_v59 = vor.u32 %v6727_v9, %v6726_v31  ;;  %v6743_v44 = vrot.slane %v13765_v13, 2 }
 0x455   : > { %8800 = vmatmul.mubr.msk.bf16.gmra.mrb[16].mxu1 %vm391_vm2, %v13755_v45  ;;  %13756 = vst [vmem:[#allocation43_spill] sm:$0xff] %v12310_v30  ;;  %13761 = vst [vmem:[#allocation44_spill] sm:$0xff] %v12321_v43  ;;  %v13762_v45 = vshrl.u32 %v12138_v34, 16  ;;  %v13763_v30 = vshll.u32 %v12138_v34, 16  ;;  %v6732_v50 = vor.u32 %v6731_v6, %v6730_v60  ;;  %v13766_v31 = vshrl.u32 %v12146_v4, 16 }
 0x456   : > { %v6734_v22 = vrot.slane %v13758_v15, 1  ;;  %8803 = vmatprep.mubr.msk.bf16.mxu1 %vm391_vm2, %v13760_v63  ;;  %v13764_v15 = vshrl.u32 %v12142_v29, 16  ;;  %v12332_v63 = vsel %vm6690_vm11, %v6724_v10, %v6728_v59  ;;  %v13771_v13 = vshrl.u32 %v12150_v53, 16 }
 0x457   : > { %v6738_v51 = vrot.slane %v13762_v45, 1  ;;  %v6739_v11 = vrot.slane %v13763_v30, 2  ;;  %v6746_v9 = vrot.slane %v13766_v31, 1  ;;  %v13767_v45 = vshll.u32 %v12146_v4, 16 }
 0x458   : > { %v6736_v8 = vor.u32 %v6735_v7, %v6734_v22  ;;  %v6742_v62 = vrot.slane %v13764_v15, 1  ;;  %v12339_v30 = vsel %vm6690_vm11, %v6728_v59, %v6732_v50  ;;  %v13768_v22 = vshrl.u32 %v12201_v14, 16 }
 0x459   : > { %v6740_v54 = vor.u32 %v6739_v11, %v6738_v51  ;;  %v6747_v43 = vrot.slane %v13767_v45, 2  ;;  %v13770_v51 = vshll.u32 %v12201_v14, 16  ;;  %v6754_v31 = vrot.slane %v13771_v13, 1 }
 0x45a   : > { %v12342_v60 = vsel %vm6690_vm11, %v6732_v50, %v6736_v8  ;;  %v6744_v6 = vor.u32 %v6743_v44, %v6742_v62  ;;  %v6750_v7 = vrot.slane %v13768_v22, 1  ;;  %v13772_v50 = vshll.u32 %v12150_v53, 16 }
 0x45b   : > { %v12347_v10 = vsel %vm6690_vm11, %v6736_v8, %v6740_v54  ;;  %v6748_v11 = vor.u32 %v6747_v43, %v6746_v9  ;;  %v6751_v15 = vrot.slane %v13770_v51, 2  ;;  %v13773_v44 = vshrl.u32 %v12175_v2, 16  ;;  %v13775_v51 = vld [vmem:[#allocation61_spill] sm:$0xff] }
 0x45c   : > { %13769 = vst [vmem:[#allocation55_spill] sm:$0xff] %v12347_v10  ;;  %v12354_v59 = vsel %vm6690_vm11, %v6740_v54, %v6744_v6  ;;  %v6755_v45 = vrot.slane %v13772_v50, 2  ;;  %v13774_v22 = vshll.u32 %v12175_v2, 16  ;;  %v13776_v54 = vld [vmem:[#allocation62_spill] sm:$0xff] }
 0x45d   : > { %v6758_v62 = vrot.slane %v13773_v44, 1  ;;  %v12363_v43 = vsel %vm6690_vm11, %v6744_v6, %v6748_v11  ;;  %v6752_v9 = vor.u32 %v6751_v15, %v6750_v7  ;;  %8804 = vmatmul.mubr.msk.bf16.gmra.mrb[20].mxu1 %vm391_vm2, %v13775_v51  ;;  %v13777_v7 = vld [vmem:[#allocation63_spill] sm:$0xff]  ;;  %v13778_v15 = vld [vmem:[#allocation64_spill] sm:$0xff]  ;;  %v13784_v51 = vshrl.u32 %v13726_v47, 16 }
 0x45e   : > { %v6759_v8 = vrot.slane %v13774_v22, 2  ;;  %v6756_v13 = vor.u32 %v6755_v45, %v6754_v31  ;;  %8807 = vmatprep.mubr.msk.bf16.mxu1 %vm391_vm2, %v13776_v54  ;;  %v13779_v31 = vld [vmem:[#allocation65_spill] sm:$0xff]  ;;  %v7902_v45 = vld [vmem:[%s13323_s2 + $0x8] sm:$0x3]  ;;  %v13785_v54 = vshrl.u32 %v13727_v57, 16 }
 0x45f   : > { %v12372_v50 = vsel %vm6690_vm11, %v6748_v11, %v6752_v9  ;;  %v5224_v11 = vsel %vm446_vm0, %v12165_v35, 0 }
 0x460   : > { %v12367_v10 = vor.u32 %v6759_v8, %v6758_v62  ;;  %v12375_v44 = vsel %vm6690_vm11, %v6752_v9, %v6756_v13  ;;  %v13783_v8 = vshll.u32 %v13727_v57, 16 }
 0x462   : > { %v12379_v6 = vsel %vm6690_vm11, %v6756_v13, %v12367_v10  ;;  %v5750_v9 = vrot.slane %v13783_v8, 1  ;;  %v13797_v8 = vshrl.u32 %v12112_v48, 16 }
 0x465   : > { %8808 = vmatmul.mubr.msk.bf16.gmra.mrb[24].mxu1 %vm391_vm2, %v13777_v7  ;;  %v5754_v7 = vor.u32 %v13785_v54, %v5750_v9 }
 0x466   : > { %8811 = vmatprep.mubr.msk.bf16.mxu1 %vm391_vm2, %v13778_v15 }
 0x46d   : > { %8812 = vmatmul.mubr.msk.bf16.gmra.mrb[28].mxu1 %vm391_vm2, %v13779_v31  ;;  %v13786_v31 = vshll.u32 %v13721_v18, 16 }
 0x46e   : > { %8815 = vmatprep.mubr.msk.bf16.mxu1 %vm391_vm2, %v11949_v17  ;;  %v5514_v17 = vsel %vm446_vm0, %v7902_v45, 0 }
 0x475   : > { %8816 = vmatmul.mubr.msk.bf16.gmra.mrb[32].mxu1 %vm391_vm2, %v11960_v33  ;;  %v7882_v33 = vcombine.low %v13724_v23, %v12115_v39  ;;  %v13782_v23 = vshll.u32 %v13726_v47, 16 }
 0x476   : > { %8821 = vmatprep.mubr.msk.bf16.mxu1 %vm391_vm2, %v11955_v56  ;;  %v7939_v56 = vld [vmem:[%s13323_s2 + $0xa] sm:$0x3] }
 0x477   : > { %v5743_v62 = vrot.slane %v13782_v23, 1 }
 0x479   : > { %v5747_v13 = vor.u32 %v13784_v51, %v5743_v62  ;;  %v13798_v51 = vshll.u32 %v12121_v28, 16 }
 0x47d   : > { %8822 = vmatmul.mubr.msk.bf16.vlgmr.msra.gmra.mrb[0].mxu1 %vm391_vm2, %v11969_v1 }
 0x47e   : > { %8858 = vmatpush3.bf16.msra.mxu1 %v5224_v11  ;;  %8825 = vmatprep.mubr.msk.bf16.mxu1 %vm391_vm2, %v11980_v19  ;;  %v5757_v11 = vrot.slane %v13786_v31, 1 }
 0x47f   : > { %9674 = vmatprep.subr.msk.bf16.mxu1 %vm446_vm0, %v7902_v45  ;;  %v12536_v45 = vsel %vm5734_vm10, %v5747_v13, %v5750_v9  ;;  %v5799_v13 = vrot.slane %v13798_v51, 1 }
 0x485   : > { %8826 = vmatmul.mubr.msk.bf16.gmra.mrb[4].mxu1 %vm391_vm2, %v11991_v55 }
 0x486   : > { %8829 = vmatprep.mubr.msk.bf16.mxu1 %vm391_vm2, %v11998_v3 }
 0x48d   : > { %8830 = vmatmul.mubr.msk.bf16.gmra.mrb[8].mxu1 %vm391_vm2, %v12001_v40 }
 0x48e   : > { %8833 = vmatprep.mubr.msk.bf16.mxu1 %vm391_vm2, %v12006_v49 }
 0x495   : > { %8834 = vmatmul.mubr.msk.bf16.gmra.mrb[12].mxu1 %vm391_vm2, %v12013_v16 }
 0x496   : > { %8837 = vmatprep.mubr.msk.bf16.mxu1 %vm391_vm2, %v12022_v58 }
 0x49d   : > { %8838 = vmatmul.mubr.msk.bf16.gmra.mrb[16].mxu1 %vm391_vm2, %v12037_v32 }
 0x49e   : > { %8841 = vmatprep.mubr.msk.bf16.mxu1 %vm391_vm2, %v12044_v21 }
 0x4a5   : > { %8842 = vmatmul.mubr.msk.bf16.gmra.mrb[20].mxu1 %vm391_vm2, %v12047_v26 }
 0x4a6   : > { %8845 = vmatprep.mubr.msk.bf16.mxu1 %vm391_vm2, %v12052_v27 }
 0x4ad   : > { %8846 = vmatmul.mubr.msk.bf16.gmra.mrb[24].mxu1 %vm391_vm2, %v12059_v61 }
 0x4ae   : > { %8849 = vmatprep.mubr.msk.bf16.mxu1 %vm391_vm2, %v12072_v38 }
 0x4b5   : > { %8850 = vmatmul.mubr.msk.bf16.gmra.mrb[28].mxu1 %vm391_vm2, %v12094_v42 }
 0x4b6   : > { %8853 = vmatprep.mubr.msk.bf16.mxu1 %vm391_vm2, %v12104_v46 }
 0x4bd   : > { %8854 = vmatmul.mubr.msk.bf16.gmra.mrb[32].mxu1 %vm391_vm2, %v12108_v20  ;;  %v7959_v20 = vld [vmem:[%s13323_s2 + $0xc] sm:$0x3] }
 0x4be   : > { %8859 = vmatprep.mubr.msk.bf16.mxu1 %vm391_vm2, %v11969_v1  ;;  %v5200_v1 = vshrl.u32 %v7882_v33, 16  ;;  %v6163_v15 = vsel %vm446_vm0, %v7959_v20, 0 }
 0x4c5   : > { %8860 = vmatmul.mubr.msk.bf16.vlgmr.msra.gmra.mrb[0].mxu1 %vm391_vm2, %v11980_v19  ;;  %v5203_v19 = vshll.u32 %v7882_v33, 16  ;;  %v13787_v33 = vshll.u32 %v13730_v24, 16 }
 0x4c6   : > { %8896 = vmatpush3.bf16.msra.mxu1 %v5514_v17  ;;  %8863 = vmatprep.mubr.msk.bf16.mxu1 %vm391_vm2, %v11991_v55  ;;  %v7883_v55 = vcombine.low %v12117_v52, %v12117_v52  ;;  %v12541_v17 = vld [vmem:[%s13323_s2 + $0xe] sm:$0x3] }
 0x4c7   : > { %9675 = vmatprep.subr.msk.bf16.mxu1 %vm446_vm0, %v7939_v56 }
 0x4cd   : > { %8864 = vmatmul.mubr.msk.bf16.gmra.mrb[4].mxu1 %vm391_vm2, %v11998_v3  ;;  %v5202_v3 = vrot.slane %v5200_v1, 3  ;;  %v5764_v1 = vrot.slane %v13787_v33, 1 }
 0x4ce   : > { %8867 = vmatprep.mubr.msk.bf16.mxu1 %vm391_vm2, %v12001_v40  ;;  %v5205_v40 = vrot.slane %v5203_v19, 4  ;;  %v13788_v19 = vshrl.u32 %v13721_v18, 16 }
 0x4d5   : > { %8868 = vmatmul.mubr.msk.bf16.gmra.mrb[8].mxu1 %vm391_vm2, %v12006_v49  ;;  %v5209_v49 = vshrl.u32 %v7883_v55, 16 }
 0x4d6   : > { %8871 = vmatprep.mubr.msk.bf16.mxu1 %vm391_vm2, %v12013_v16  ;;  %v5212_v16 = vshll.u32 %v7883_v55, 16  ;;  %v5761_v55 = vor.u32 %v13788_v19, %v5757_v11 }
 0x4dd   : > { %8872 = vmatmul.mubr.msk.bf16.gmra.mrb[12].mxu1 %vm391_vm2, %v12022_v58  ;;  %v5206_v58 = vor.u32 %v5205_v40, %v5202_v3  ;;  %v13789_v3 = vshrl.u32 %v13730_v24, 16 }
 0x4de   : > { %8875 = vmatprep.mubr.msk.bf16.mxu1 %vm391_vm2, %v12037_v32  ;;  %v5211_v32 = vrot.slane %v5209_v49, 3  ;;  %v13790_v49 = vshll.u32 %v13731_v12, 16 }
 0x4df   : > { %v5768_v40 = vor.u32 %v13789_v3, %v5764_v1 }
 0x4e5   : > { %8876 = vmatmul.mubr.msk.bf16.gmra.mrb[16].mxu1 %vm391_vm2, %v12044_v21  ;;  %v5214_v21 = vrot.slane %v5212_v16, 4  ;;  %v5771_v16 = vrot.slane %v13790_v49, 1 }
 0x4e6   : > { %8879 = vmatprep.mubr.msk.bf16.mxu1 %vm391_vm2, %v12047_v26  ;;  %v5207_v26 = vsel %vm1034_vm4, %v12074_v41, %v5206_v58  ;;  %v13781_v41 = vld [vmem:[#allocation40_spill] sm:$0xff] }
 0x4ed   : > { %8880 = vmatmul.mubr.msk.bf16.gmra.mrb[20].mxu1 %vm391_vm2, %v12052_v27  ;;  %v5215_v27 = vor.u32 %v5214_v21, %v5211_v32  ;;  %v5772_v32 = vsel %vm5734_vm10, %v5768_v40, %v5771_v16  ;;  %v13791_v21 = vshll.u32 %v13781_v41, 16 }
 0x4ee   : > { %8883 = vmatprep.mubr.msk.bf16.mxu1 %vm391_vm2, %v12059_v61 }
 0x4ef   : > { %v5216_v61 = vsel %vm1034_vm4, %v5206_v58, %v5215_v27  ;;  %v5765_v58 = vsel %vm5734_vm10, %v5761_v55, %v5764_v1  ;;  %v13792_v27 = vshrl.u32 %v13731_v12, 16  ;;  %v13801_v1 = vshrl.u32 %v12125_v0, 16 }
 0x4f0   : > { %v13802_v55 = vshll.u32 %v12129_v36, 16 }
 0x4f2   : > { %v5813_v3 = vrot.slane %v13802_v55, 1 }
 0x4f5   : > { %8884 = vmatmul.mubr.msk.bf16.gmra.mrb[24].mxu1 %vm391_vm2, %v12072_v38  ;;  %v13780_v38 = vld [vmem:[#allocation42_spill] sm:$0xff] }
 0x4f6   : > { %8887 = vmatprep.mubr.msk.bf16.mxu1 %vm391_vm2, %v12094_v42  ;;  %v5920_v42 = vsel %vm446_vm0, %v7939_v56, 0  ;;  %v5735_v52 = vshrl.u32 %v13780_v38, 16  ;;  %v12546_v56 = vsel %vm5734_vm10, %v5754_v7, %v5757_v11  ;;  %v13800_v11 = vshrl.u32 %v12121_v28, 16 }
 0x4f8   : > { %v5803_v33 = vor.u32 %v13800_v11, %v5799_v13 }
 0x4fd   : > { %8888 = vmatmul.mubr.msk.bf16.gmra.mrb[28].mxu1 %vm391_vm2, %v12104_v46  ;;  %v5737_v46 = vshll.u32 %v13780_v38, 16 }
 0x4fe   : > { %8891 = vmatprep.mubr.msk.bf16.mxu1 %vm391_vm2, %v5207_v26  ;;  %v5778_v26 = vrot.slane %v13791_v21, 1 }
 0x4ff   : > { %v5739_v39 = vrot.slane %v5737_v46, 1 }
 0x501   : > { %v5740_v35 = vor.u32 %v5739_v39, %v5735_v52 }
 0x503   : > { %v5744_v22 = vsel %vm5734_vm10, %v5740_v35, %v5743_v62  ;;  %v13795_v35 = vshll.u32 %v12112_v48, 16  ;;  %v13796_v62 = vshrl.u32 %v12082_v37, 16 }
 0x505   : > { %8892 = vmatmul.mubr.msk.bf16.gmra.mrb[32].mxu1 %vm391_vm2, %v5216_v61  ;;  %v5775_v61 = vor.u32 %v13792_v27, %v5771_v16  ;;  %v5792_v23 = vrot.slane %v13795_v35, 1  ;;  %v13803_v16 = vshll.u32 %v12133_v5, 16 }
 0x506   : > { %8897 = vmatprep.mubr.msk.bf16.mxu1 %vm391_vm2, %v13780_v38  ;;  %v13793_v38 = vshrl.u32 %v13781_v41, 16 }
 0x507   : > { %v5779_v39 = vsel %vm5734_vm10, %v5775_v61, %v5778_v26  ;;  %v5796_v9 = vor.u32 %v13797_v8, %v5792_v23  ;;  %v5820_v21 = vrot.slane %v13803_v16, 1  ;;  %v13805_v61 = vshrl.u32 %v12133_v5, 16 }
 0x509   : > { %v5800_v7 = vsel %vm5734_vm10, %v5796_v9, %v5799_v13  ;;  %v13809_v9 = vshrl.u32 %v12142_v29, 16  ;;  %v13810_v13 = vshll.u32 %v12146_v4, 16 }
 0x50d   : > { %8898 = vmatmul.mubr.msk.bf16.vlgmr.msra.gmra.mrb[0].mxu1 %vm391_vm2, %v13726_v47 }
 0x50e   : > { %8934 = vmatpush3.bf16.msra.mxu1 %v5920_v42  ;;  %8901 = vmatprep.mubr.msk.bf16.mxu1 %vm391_vm2, %v13727_v57  ;;  %v5782_v42 = vor.u32 %v13793_v38, %v5778_v26  ;;  %v13804_v26 = vshrl.u32 %v12129_v36, 16  ;;  %v5824_v38 = vor.u32 %v13805_v61, %v5820_v21 }
 0x50f   : > { %9676 = vmatprep.subr.msk.bf16.mxu1 %vm446_vm0, %v7959_v20  ;;  %v13794_v20 = vshll.u32 %v12082_v37, 16 }
 0x510   : > { %v5817_v27 = vor.u32 %v13804_v26, %v5813_v3 }
 0x511   : > { %v5785_v46 = vrot.slane %v13794_v20, 1 }
 0x513   : > { %v5786_v52 = vsel %vm5734_vm10, %v5782_v42, %v5785_v46  ;;  %v13806_v42 = vshll.u32 %v12138_v34, 16 }
 0x515   : > { %8902 = vmatmul.mubr.msk.bf16.gmra.mrb[4].mxu1 %vm391_vm2, %v13721_v18  ;;  %v5827_v20 = vrot.slane %v13806_v42, 1 }
 0x516   : > { %8905 = vmatprep.mubr.msk.bf16.mxu1 %vm391_vm2, %v13730_v24 }
 0x517   : > { %v5828_v35 = vsel %vm5734_vm10, %v5824_v38, %v5827_v20  ;;  %v13815_v38 = vld [vmem:[#allocation50_spill] sm:$0xff] }
 0x51d   : > { %8906 = vmatmul.mubr.msk.bf16.gmra.mrb[8].mxu1 %vm391_vm2, %v13731_v12 }
 0x51e   : > { %8909 = vmatprep.mubr.msk.bf16.mxu1 %vm391_vm2, %v13781_v41 }
 0x525   : > { %8910 = vmatmul.mubr.msk.bf16.gmra.mrb[12].mxu1 %vm391_vm2, %v12082_v37 }
 0x526   : > { %8913 = vmatprep.mubr.msk.bf16.mxu1 %vm391_vm2, %v12112_v48 }
 0x52d   : > { %8914 = vmatmul.mubr.msk.bf16.gmra.mrb[16].mxu1 %vm391_vm2, %v12121_v28 }
 0x52e   : > { %8917 = vmatprep.mubr.msk.bf16.mxu1 %vm391_vm2, %v12125_v0 }
 0x535   : > { %8918 = vmatmul.mubr.msk.bf16.gmra.mrb[20].mxu1 %vm391_vm2, %v12129_v36 }
 0x536   : > { %8921 = vmatprep.mubr.msk.bf16.mxu1 %vm391_vm2, %v12133_v5 }
 0x53d   : > { %8922 = vmatmul.mubr.msk.bf16.gmra.mrb[24].mxu1 %vm391_vm2, %v12138_v34 }
 0x53e   : > { %8925 = vmatprep.mubr.msk.bf16.mxu1 %vm391_vm2, %v12142_v29 }
 0x545   : > { %8926 = vmatmul.mubr.msk.bf16.gmra.mrb[28].mxu1 %vm391_vm2, %v12146_v4 }
 0x546   : > { %8929 = vmatprep.mubr.msk.bf16.mxu1 %vm391_vm2, %v12201_v14 }
 0x54d   : > { %8930 = vmatmul.mubr.msk.bf16.gmra.mrb[32].mxu1 %vm391_vm2, %v12150_v53 }
 0x54e   : > { %8935 = vmatprep.mubr.msk.bf16.mxu1 %vm391_vm2, %v5744_v22  ;;  %v5789_v22 = vor.u32 %v13796_v62, %v5785_v46  ;;  %v5821_v46 = vsel %vm5734_vm10, %v5817_v27, %v5820_v21  ;;  %v13814_v21 = vshrl.u32 %v12201_v14, 16 }
 0x550   : > { %v5793_v54 = vsel %vm5734_vm10, %v5789_v22, %v5792_v23  ;;  %v13807_v23 = vshll.u32 %v12142_v29, 16  ;;  %v13808_v22 = vshrl.u32 %v12138_v34, 16 }
 0x552   : > { %v5834_v62 = vrot.slane %v13807_v23, 1  ;;  %v5831_v8 = vor.u32 %v13808_v22, %v5827_v20  ;;  %v13816_v23 = vld [vmem:[#allocation46_spill] sm:$0xff]  ;;  %v6473_v22 = vsel %vm446_vm0, %v12541_v17, 0 }
 0x554   : > { %v5838_v51 = vor.u32 %v13809_v9, %v5834_v62 }
 0x555   : > { %8936 = vmatmul.mubr.msk.bf16.vlgmr.msra.gmra.mrb[0].mxu1 %vm391_vm2, %v12536_v45 }
 0x556   : > { %8972 = vmatpush3.bf16.msra.mxu1 %v6163_v15  ;;  %8939 = vmatprep.mubr.msk.bf16.mxu1 %vm391_vm2, %v12546_v56  ;;  %v13799_v15 = vshll.u32 %v12125_v0, 16 }
 0x557   : > { %9677 = vmatprep.subr.msk.bf16.mxu1 %vm446_vm0, %v12541_v17 }
 0x558   : > { %v5806_v31 = vrot.slane %v13799_v15, 1  ;;  %v5841_v15 = vrot.slane %v13810_v13, 1  ;;  %v6390_v13 = vrot.slane %v13781_v41, 1  ;;  %v6396_v41 = vrot.slane %v12121_v28, 1 }
 0x55a   : > { %v5810_v19 = vor.u32 %v13801_v1, %v5806_v31  ;;  %v5807_v40 = vsel %vm5734_vm10, %v5803_v33, %v5806_v31  ;;  %v5835_v31 = vsel %vm5734_vm10, %v5831_v8, %v5834_v62  ;;  %v5842_v11 = vsel %vm5734_vm10, %v5838_v51, %v5841_v15  ;;  %v7999_v8 = vld [vmem:[%s13323_s2 + $0x10] sm:$0x3] }
 0x55b   : > { %v13811_v33 = vshll.u32 %v12201_v14, 16  ;;  %v6823_v9 = vsel %vm446_vm0, %v7999_v8, 0 }
 0x55c   : > { %v5814_v49 = vsel %vm5734_vm10, %v5810_v19, %v5813_v3  ;;  %v13812_v19 = vshrl.u32 %v12146_v4, 16  ;;  %v13813_v3 = vld [vmem:[#allocation39_spill] sm:$0xff] }
 0x55d   : > { %8940 = vmatmul.mubr.msk.bf16.gmra.mrb[4].mxu1 %vm391_vm2, %v5765_v58  ;;  %v5848_v1 = vrot.slane %v13811_v33, 1  ;;  %v7940_v16 = vcombine.low %v13813_v3, %v13813_v3  ;;  %v6398_v33 = vrot.slane %v12125_v0, 1  ;;  %v6404_v0 = vrot.slane %v12138_v34, 1 }
 0x55e   : > { %8943 = vmatprep.mubr.msk.bf16.mxu1 %vm391_vm2, %v5772_v32  ;;  %v5845_v55 = vor.u32 %v13812_v19, %v5841_v15  ;;  %v6402_v19 = vrot.slane %v12133_v5, 1  ;;  %v6406_v3 = vrot.slane %v12142_v29, 1  ;;  %v6408_v5 = vrot.slane %v12146_v4, 1 }
 0x55f   : > { %v5852_v26 = vor.u32 %v13814_v21, %v5848_v1  ;;  %v5861_v61 = vshll.u32 %v7940_v16, 16  ;;  %v6410_v21 = vrot.slane %v12201_v14, 1  ;;  %v6412_v29 = vrot.slane %v12150_v53, 1  ;;  %v13821_v53 = vld [vmem:[#allocation54_spill] sm:$0xff] }
 0x560   : > { %v5849_v27 = vsel %vm5734_vm10, %v5845_v55, %v5848_v1  ;;  %v6405_v16 = vsel %vm6380_vm12, %v6402_v19, %v6404_v0 }
 0x561   : > { %v5856_v42 = vsel %vm5734_vm10, %v5852_v26, %v13815_v38  ;;  %v5863_v20 = vrot.slane %v5861_v61, 1  ;;  %v6409_v26 = vsel %vm6380_vm12, %v6406_v3, %v6408_v5  ;;  %v6411_v34 = vsel %vm6380_vm12, %v6408_v5, %v6410_v21 }
 0x562   : > { %v6413_v61 = vsel %vm6380_vm12, %v6410_v21, %v6412_v29 }
 0x563   : > { %v5864_v62 = vsel %vm5734_vm10, %v13816_v23, %v5863_v20  ;;  %v13823_v20 = vld [vmem:[#allocation47_spill] sm:$0xff] }
 0x564   : > { %v13824_v23 = vld [vmem:[#allocation51_spill] sm:$0xff] }
 0x565   : > { %8944 = vmatmul.mubr.msk.bf16.gmra.mrb[8].mxu1 %vm391_vm2, %v5779_v39 }
 0x566   : > { %8947 = vmatprep.mubr.msk.bf16.mxu1 %vm391_vm2, %v5786_v52 }
 0x56d   : > { %8948 = vmatmul.mubr.msk.bf16.gmra.mrb[12].mxu1 %vm391_vm2, %v5793_v54 }
 0x56e   : > { %8951 = vmatprep.mubr.msk.bf16.mxu1 %vm391_vm2, %v5800_v7 }
 0x575   : > { %8952 = vmatmul.mubr.msk.bf16.gmra.mrb[16].mxu1 %vm391_vm2, %v5807_v40 }
 0x576   : > { %8955 = vmatprep.mubr.msk.bf16.mxu1 %vm391_vm2, %v5814_v49 }
 0x57d   : > { %8956 = vmatmul.mubr.msk.bf16.gmra.mrb[20].mxu1 %vm391_vm2, %v5821_v46 }
 0x57e   : > { %8959 = vmatprep.mubr.msk.bf16.mxu1 %vm391_vm2, %v5828_v35 }
 0x585   : > { %8960 = vmatmul.mubr.msk.bf16.gmra.mrb[24].mxu1 %vm391_vm2, %v5835_v31 }
 0x586   : > { %8963 = vmatprep.mubr.msk.bf16.mxu1 %vm391_vm2, %v5842_v11 }
 0x58d   : > { %8964 = vmatmul.mubr.msk.bf16.gmra.mrb[28].mxu1 %vm391_vm2, %v5849_v27 }
 0x58e   : > { %8967 = vmatprep.mubr.msk.bf16.mxu1 %vm391_vm2, %v5856_v42 }
 0x595   : > { %8968 = vmatmul.mubr.msk.bf16.gmra.mrb[32].mxu1 %vm391_vm2, %v5864_v62  ;;  %v13825_v62 = vld [vmem:[#allocation43_spill] sm:$0xff] }
 0x596   : > { %8973 = vmatprep.mubr.msk.bf16.mxu1 %vm391_vm2, %v12536_v45  ;;  %v12663_v45 = vld [vmem:[#allocation2 + $0xbc] ss:$0 sps:$4 sm:$0xff]  }
 0x597   : > { %v6152_v17 = vshll.u32 %v12663_v45, 16  ;;  %v6416_v14 = vrot.slane %v12663_v45, 1 }
 0x59d   : > { %8974 = vmatmul.mubr.msk.bf16.vlgmr.msra.gmra.mrb[0].mxu1 %vm391_vm2, %v12546_v56  ;;  %v13817_v56 = vld [vmem:[#allocation52_spill] sm:$0xff] }
 0x59e   : > { %9010 = vmatpush3.bf16.msra.mxu1 %v6473_v22  ;;  %8977 = vmatprep.mubr.msk.bf16.mxu1 %vm391_vm2, %v5765_v58  ;;  %v13818_v58 = vld [vmem:[#allocation49_spill] sm:$0xff]  ;;  %v13826_v22 = vld [vmem:[#allocation44_spill] sm:$0xff] }
 0x59f   : > { %9678 = vmatprep.subr.msk.bf16.mxu1 %vm446_vm0, %v7999_v8 }
 0x5a5   : > { %8978 = vmatmul.mubr.msk.bf16.gmra.mrb[4].mxu1 %vm391_vm2, %v5772_v32  ;;  %v13819_v32 = vshrl.u32 %v12175_v2, 16 }
 0x5a6   : > { %8981 = vmatprep.mubr.msk.bf16.mxu1 %vm391_vm2, %v5779_v39 }
 0x5a7   : > { %v6150_v39 = vor.u32 %v13819_v32, %v13818_v58 }
 0x5ad   : > { %8982 = vmatmul.mubr.msk.bf16.gmra.mrb[8].mxu1 %vm391_vm2, %v5786_v52  ;;  %v6154_v52 = vrot.slane %v6152_v17, 1 }
 0x5ae   : > { %8985 = vmatprep.mubr.msk.bf16.mxu1 %vm391_vm2, %v5793_v54  ;;  %v6381_v54 = vrot.slane %v13726_v47, 1 }
 0x5b5   : > { %8986 = vmatmul.mubr.msk.bf16.gmra.mrb[12].mxu1 %vm391_vm2, %v5800_v7  ;;  %v6382_v7 = vrot.slane %v13727_v57, 1  ;;  %v6388_v57 = vrot.slane %v13731_v12, 1 }
 0x5b6   : > { %8989 = vmatprep.mubr.msk.bf16.mxu1 %vm391_vm2, %v5807_v40  ;;  %v6155_v40 = vsel %vm5734_vm10, %v6150_v39, %v6154_v52  ;;  %v13829_v39 = vld [vmem:[#allocation3_spill] sm:$0xff] }
 0x5bd   : > { %8990 = vmatmul.mubr.msk.bf16.gmra.mrb[16].mxu1 %vm391_vm2, %v5814_v49  ;;  %v6383_v49 = vsel %vm6380_vm12, %v6381_v54, %v6382_v7 }
 0x5be   : > { %8993 = vmatprep.mubr.msk.bf16.mxu1 %vm391_vm2, %v5821_v46  ;;  %v6384_v46 = vrot.slane %v13721_v18, 1  ;;  %v6391_v18 = vsel %vm6380_vm12, %v6388_v57, %v6390_v13 }
 0x5c0   : > { %v6385_v51 = vsel %vm6380_vm12, %v6382_v7, %v6384_v46 }
 0x5c5   : > { %8994 = vmatmul.mubr.msk.bf16.gmra.mrb[20].mxu1 %vm391_vm2, %v5828_v35  ;;  %v6386_v35 = vrot.slane %v13730_v24, 1  ;;  %v6392_v24 = vrot.slane %v12082_v37, 1  ;;  %v6399_v37 = vsel %vm6380_vm12, %v6396_v41, %v6398_v33 }
 0x5c6   : > { %8997 = vmatprep.mubr.msk.bf16.mxu1 %vm391_vm2, %v5835_v31  ;;  %v6394_v31 = vrot.slane %v12112_v48, 1  ;;  %v6400_v48 = vrot.slane %v12129_v36, 1  ;;  %v6407_v36 = vsel %vm6380_vm12, %v6404_v0, %v6406_v3  ;;  %v13832_v3 = vld [vmem:[#allocation9_spill] sm:$0xff] }
 0x5c7   : > { %v6387_v47 = vsel %vm6380_vm12, %v6384_v46, %v6386_v35  ;;  %v6389_v15 = vsel %vm6380_vm12, %v6386_v35, %v6388_v57  ;;  %v13831_v46 = vld [vmem:[#allocation5_spill] sm:$0xff] }
 0x5c8   : > { %v6395_v12 = vsel %vm6380_vm12, %v6392_v24, %v6394_v31  ;;  %v6397_v1 = vsel %vm6380_vm12, %v6394_v31, %v6396_v41  ;;  %v6401_v55 = vsel %vm6380_vm12, %v6398_v33, %v6400_v48  ;;  %v6403_v28 = vsel %vm6380_vm12, %v6400_v48, %v6402_v19 }
 0x5cd   : > { %8998 = vmatmul.mubr.msk.bf16.gmra.mrb[24].mxu1 %vm391_vm2, %v5842_v11  ;;  %v6393_v11 = vsel %vm6380_vm12, %v6390_v13, %v6392_v24 }
 0x5ce   : > { %9001 = vmatprep.mubr.msk.bf16.mxu1 %vm391_vm2, %v5849_v27  ;;  %v6414_v27 = vrot.slane %v12175_v2, 1  ;;  %v13822_v2 = vld [vmem:[#allocation45_spill] sm:$0xff] }
 0x5d0   : > { %v6415_v4 = vsel %vm6380_vm12, %v6412_v29, %v6414_v27  ;;  %v6417_v38 = vsel %vm6380_vm12, %v6414_v27, %v6416_v14 }
 0x5d5   : > { %9002 = vmatmul.mubr.msk.bf16.gmra.mrb[28].mxu1 %vm391_vm2, %v5856_v42  ;;  %v13820_v42 = vld [vmem:[#allocation53_spill] sm:$0xff] }
 0x5d6   : > { %9005 = vmatprep.mubr.msk.bf16.mxu1 %vm391_vm2, %v13817_v56  ;;  %v13828_v56 = vld [vmem:[#allocation4_spill] sm:$0xff] }
 0x5dd   : > { %9006 = vmatmul.mubr.msk.bf16.gmra.mrb[32].mxu1 %vm391_vm2, %v6155_v40  ;;  %v13830_v40 = vld [vmem:[#allocation6_spill] sm:$0xff] }
 0x5de   : > { %9011 = vmatprep.mubr.msk.bf16.mxu1 %vm391_vm2, %v6383_v49 }
 0x5e5   : > { %9012 = vmatmul.mubr.msk.bf16.vlgmr.msra.gmra.mrb[0].mxu1 %vm391_vm2, %v6385_v51 }
 0x5e6   : > { %9048 = vmatpush3.bf16.msra.mxu1 %v6823_v9  ;;  %9015 = vmatprep.mubr.msk.bf16.mxu1 %vm391_vm2, %v6387_v47 }
 0x5ed   : > { %9016 = vmatmul.mubr.msk.bf16.gmra.mrb[4].mxu1 %vm391_vm2, %v6389_v15 }
 0x5ee   : > { %9019 = vmatprep.mubr.msk.bf16.mxu1 %vm391_vm2, %v6391_v18 }
 0x5f5   : > { %9020 = vmatmul.mubr.msk.bf16.gmra.mrb[8].mxu1 %vm391_vm2, %v6393_v11 }
 0x5f6   : > { %9023 = vmatprep.mubr.msk.bf16.mxu1 %vm391_vm2, %v6395_v12 }
 0x5fd   : > { %9024 = vmatmul.mubr.msk.bf16.gmra.mrb[12].mxu1 %vm391_vm2, %v6397_v1 }
 0x5fe   : > { %9027 = vmatprep.mubr.msk.bf16.mxu1 %vm391_vm2, %v6399_v37 }
 0x605   : > { %9028 = vmatmul.mubr.msk.bf16.gmra.mrb[16].mxu1 %vm391_vm2, %v6401_v55 }
 0x606   : > { %9031 = vmatprep.mubr.msk.bf16.mxu1 %vm391_vm2, %v6403_v28 }
 0x60d   : > { %9032 = vmatmul.mubr.msk.bf16.gmra.mrb[20].mxu1 %vm391_vm2, %v6405_v16 }
 0x60e   : > { %9035 = vmatprep.mubr.msk.bf16.mxu1 %vm391_vm2, %v6407_v36  ;;  %v13833_v36 = vld [vmem:[#allocation7_spill] sm:$0xff] }
 0x615   : > { %9036 = vmatmul.mubr.msk.bf16.gmra.mrb[24].mxu1 %vm391_vm2, %v6409_v26 }
 0x616   : > { %9039 = vmatprep.mubr.msk.bf16.mxu1 %vm391_vm2, %v6411_v34 }
 0x61d   : > { %9040 = vmatmul.mubr.msk.bf16.gmra.mrb[28].mxu1 %vm391_vm2, %v6413_v61 }
 0x61e   : > { %9043 = vmatprep.mubr.msk.bf16.mxu1 %vm391_vm2, %v6415_v4  ;;  %v13834_v4 = vld [vmem:[#allocation8_spill] sm:$0xff] }
 0x625   : > { %9044 = vmatmul.mubr.msk.bf16.gmra.mrb[32].mxu1 %vm391_vm2, %v6417_v38 }
 0x626   : > { %9049 = vmatprep.mubr.msk.bf16.mxu1 %vm391_vm2, %v13820_v42 }
 0x62d   : > { %9050 = vmatmul.mubr.msk.bf16.vlgmr.msra.gmra.mrb[0].mxu1 %vm391_vm2, %v12277_v25  ;;  %v13827_v25 = vld [vmem:[#allocation55_spill] sm:$0xff] }
 0x62e   : > { %9053 = vmatprep.mubr.msk.bf16.mxu1 %vm391_vm2, %v13821_v53  ;;  %v13835_v53 = vld [vmem:[#allocation10_spill] sm:$0xff] }
 0x635   : > { %9054 = vmatmul.mubr.msk.bf16.gmra.mrb[4].mxu1 %vm391_vm2, %v13822_v2 }
 0x636   : > { %9057 = vmatprep.mubr.msk.bf16.mxu1 %vm391_vm2, %v13823_v20 }
 0x63d   : > { %9058 = vmatmul.mubr.msk.bf16.gmra.mrb[8].mxu1 %vm391_vm2, %v13824_v23 }
 0x63e   : > { %9061 = vmatprep.mubr.msk.bf16.mxu1 %vm391_vm2, %v13825_v62 }
 0x645   : > { %9062 = vmatmul.mubr.msk.bf16.gmra.mrb[12].mxu1 %vm391_vm2, %v13826_v22 }
 0x646   : > { %9065 = vmatprep.mubr.msk.bf16.mxu1 %vm391_vm2, %v12332_v63  ;;  %v6762_v63 = vshrl.u32 %v12663_v45, 16 }
 0x648   : > { %v6764_v8 = vrot.slane %v6762_v63, 1 }
 0x64d   : > { %9066 = vmatmul.mubr.msk.bf16.gmra.mrb[16].mxu1 %vm391_vm2, %v12339_v30  ;;  %v6765_v30 = vrot.slane %v6152_v17, 2 }
 0x64e   : > { %9069 = vmatprep.mubr.msk.bf16.mxu1 %vm391_vm2, %v12342_v60 }
 0x64f   : > { %v6766_v60 = vor.u32 %v6765_v30, %v6764_v8 }
 0x655   : > { %9070 = vmatmul.mubr.msk.bf16.gmra.mrb[20].mxu1 %vm391_vm2, %v13827_v25 }
 0x656   : > { %9073 = vmatprep.mubr.msk.bf16.mxu1 %vm391_vm2, %v12354_v59  ;;  %v6767_v59 = vsel %vm6690_vm11, %v12367_v10, %v6766_v60 }
 0x65d   : > { %9074 = vmatmul.mubr.msk.bf16.gmra.mrb[24].mxu1 %vm391_vm2, %v12363_v43  ;;  %v12775_v43 = vld [vmem:[%s13324_s3 + $0x3] ss:$0 sm:$0xff] }
 0x65e   : > { %9077 = vmatprep.mubr.msk.bf16.mxu1 %vm391_vm2, %v12372_v50 }
 0x665   : > { %9078 = vmatmul.mubr.msk.bf16.gmra.mrb[28].mxu1 %vm391_vm2, %v12375_v44 }
 0x666   : > { %9081 = vmatprep.mubr.msk.bf16.mxu1 %vm391_vm2, %v12379_v6 }
 0x66d   : > { %9082 = vmatmul.mubr.msk.bf16.gmra.mrb[32].mxu1 %vm391_vm2, %v6767_v59 }
 0x700   : > { %v9051_v50 = vpop.f32.mrb[0].mxu1 }
 0x701   : > { %v12778_v45 = vadd.f32 %v9051_v50, %v12775_v43  ;;  %v6859_v17 = vpop.f32.mrb[1].mxu1 }
 0x702   : > { %v12781_v44 = vadd.f32 %v12775_v43, %v6859_v17  ;;  %v9052_v6 = vpop.f32.mrb[2].mxu1 }
 0x703   : > { %v7080_v58 = vmul.f32 %v12778_v45, %v13828_v56  ;;  %v12786_v10 = vadd.f32 %v9052_v6, %v12775_v43  ;;  %v6862_v32 = vpop.f32.mrb[3].mxu1 }
 0x704   : > { %v7078_v52 = vmul.f32 %v12781_v44, %v13829_v39  ;;  %v12791_v54 = vadd.f32 %v12775_v43, %v6862_v32 }
 0x705   : > { %v7081_v49 = vmul.f32 %v12786_v10, %v13830_v40  ;;  %v7193_v9 = vmul.f32 %v7080_v58, %v12778_v45  ;;  %v7117_v15 = vsel %vm391_vm2, %v7080_v58, 0.0  ;;  %v13836_v40 = vld [vmem:[#allocation27_spill] sm:$0xff] }
 0x706   : > { %v7191_v7 = vmul.f32 %v7078_v52, %v12781_v44  ;;  %v7079_v35 = vmul.f32 %v12791_v54, %v13831_v46  ;;  %v7114_v51 = vsel %vm391_vm2, %v7078_v52, 0.0 }
 0x707   : > { %v7194_v12 = vmul.f32 %v7081_v49, %v12786_v10  ;;  %v7230_v37 = vsel %vm391_vm2, %v7193_v9, 0.0  ;;  %v7119_v0 = vsel %vm391_vm2, %v7081_v49, 0.0  ;;  %v13837_v9 = vld [vmem:[#allocation11_spill] sm:$0xff] }
 0x708   : > { %v7115_v47 = vsel %vm391_vm2, %v7079_v35, 0.0  ;;  %v7192_v57 = vmul.f32 %v7079_v35, %v12791_v54  ;;  %v9055_v13 = vpop.f32.mrb[4].mxu1  ;;  %v7227_v11 = vsel %vm391_vm2, %v7191_v7, 0.0 }
 0x709   : > { %v7116_v18 = vadd.f32 %v7115_v47, %v7114_v51  ;;  %v12804_v24 = vadd.f32 %v9055_v13, %v12775_v43  ;;  %v6875_v31 = vpop.f32.mrb[5].mxu1  ;;  %v7232_v29 = vsel %vm391_vm2, %v7194_v12, 0.0 }
 0x70a   : > { %v7228_v41 = vsel %vm391_vm2, %v7192_v57, 0.0  ;;  %v12810_v33 = vadd.f32 %v12775_v43, %v6875_v31  ;;  %v9056_v1 = vpop.f32.mrb[6].mxu1 }
 0x70b   : > { %v7118_v48 = vadd.f32 %v7117_v15, %v7116_v18  ;;  %v7229_v19 = vadd.f32 %v7228_v41, %v7227_v11  ;;  %v12814_v55 = vadd.f32 %v9056_v1, %v12775_v43  ;;  %v6878_v28 = vpop.f32.mrb[7].mxu1  ;;  %v7084_v16 = vmul.f32 %v12804_v24, %v13832_v3  ;;  %v13838_v18 = vld [vmem:[#allocation28_spill] sm:$0xff] }
 0x70c   : > { %v7082_v5 = vmul.f32 %v12810_v33, %v13833_v36  ;;  %v12822_v21 = vadd.f32 %v12775_v43, %v6878_v28  ;;  %v13839_v41 = vld [vmem:[#allocation12_spill] sm:$0xff] }
 0x70d   : > { %v7231_v26 = vadd.f32 %v7230_v37, %v7229_v19  ;;  %v7120_v34 = vadd.f32 %v7119_v0, %v7118_v48  ;;  %v7085_v2 = vmul.f32 %v12814_v55, %v13835_v53  ;;  %v7197_v20 = vmul.f32 %v7084_v16, %v12804_v24 }
 0x70e   : > { %v7121_v27 = vsel %vm391_vm2, %v7082_v5, 0.0  ;;  %v7195_v61 = vmul.f32 %v7082_v5, %v12810_v33  ;;  %v7083_v14 = vmul.f32 %v12822_v21, %v13834_v4  ;;  %v7125_v59 = vsel %vm391_vm2, %v7084_v16, 0.0 }
 0x70f   : > { %v7122_v38 = vadd.f32 %v7121_v27, %v7120_v34  ;;  %v7233_v42 = vadd.f32 %v7232_v29, %v7231_v26  ;;  %v7198_v6 = vmul.f32 %v7085_v2, %v12814_v55  ;;  %v7127_v52 = vsel %vm391_vm2, %v7085_v2, 0.0 }
 0x710   : > { %v7234_v23 = vsel %vm391_vm2, %v7195_v61, 0.0  ;;  %v7123_v62 = vsel %vm391_vm2, %v7083_v14, 0.0  ;;  %v9059_v22 = vpop.f32.mrb[8].mxu1  ;;  %v7196_v8 = vmul.f32 %v7083_v14, %v12822_v21  ;;  %v7238_v35 = vsel %vm391_vm2, %v7197_v20, 0.0  ;;  %v13840_v20 = vld [vmem:[#allocation13_spill] sm:$0xff] }
 0x711   : > { %v7235_v25 = vadd.f32 %v7234_v23, %v7233_v42  ;;  %v7124_v63 = vadd.f32 %v7123_v62, %v7122_v38  ;;  %v12836_v30 = vadd.f32 %v9059_v22, %v12775_v43  ;;  %v6891_v60 = vpop.f32.mrb[9].mxu1  ;;  %v7240_v11 = vsel %vm391_vm2, %v7198_v6, 0.0  ;;  %v13842_v6 = vld [vmem:[#allocation14_spill] sm:$0xff] }
 0x712   : > { %v12840_v50 = vadd.f32 %v12775_v43, %v6891_v60  ;;  %v9060_v17 = vpop.f32.mrb[10].mxu1  ;;  %v7236_v58 = vsel %vm391_vm2, %v7196_v8, 0.0 }
 0x713   : > { %v7126_v56 = vadd.f32 %v7125_v59, %v7124_v63  ;;  %v12845_v32 = vadd.f32 %v9060_v17, %v12775_v43  ;;  %v6894_v39 = vpop.f32.mrb[11].mxu1  ;;  %v7237_v7 = vadd.f32 %v7236_v58, %v7235_v25  ;;  %v7088_v51 = vmul.f32 %v12836_v30, %v13837_v9  ;;  %v13841_v25 = vld [vmem:[#allocation15_spill] sm:$0xff] }
 0x714   : > { %v7086_v49 = vmul.f32 %v12840_v50, %v13836_v40  ;;  %v12851_v46 = vadd.f32 %v12775_v43, %v6894_v39 }
 0x715   : > { %v7128_v47 = vadd.f32 %v7127_v52, %v7126_v56  ;;  %v7239_v57 = vadd.f32 %v7238_v35, %v7237_v7  ;;  %v7089_v1 = vmul.f32 %v12845_v32, %v13839_v41  ;;  %v7201_v3 = vmul.f32 %v7088_v51, %v12836_v30  ;;  %v13843_v52 = vld [vmem:[#allocation16_spill] sm:$0xff] }
 0x716   : > { %v7129_v13 = vsel %vm391_vm2, %v7086_v49, 0.0  ;;  %v7199_v15 = vmul.f32 %v7086_v49, %v12840_v50  ;;  %v7087_v31 = vmul.f32 %v12851_v46, %v13838_v18  ;;  %v7133_v26 = vsel %vm391_vm2, %v7088_v51, 0.0 }
 0x717   : > { %v7130_v12 = vadd.f32 %v7129_v13, %v7128_v47  ;;  %v7241_v37 = vadd.f32 %v7240_v11, %v7239_v57  ;;  %v7202_v4 = vmul.f32 %v7089_v1, %v12845_v32  ;;  %v7135_v53 = vsel %vm391_vm2, %v7089_v1, 0.0 }
 0x718   : > { %v7242_v48 = vsel %vm391_vm2, %v7199_v15, 0.0  ;;  %v7131_v19 = vsel %vm391_vm2, %v7087_v31, 0.0  ;;  %v7200_v28 = vmul.f32 %v7087_v31, %v12851_v46  ;;  %v9063_v0 = vpop.f32.mrb[12].mxu1  ;;  %v7246_v22 = vsel %vm391_vm2, %v7201_v3, 0.0  ;;  %v13844_v3 = vld [vmem:[#allocation17_spill] sm:$0xff] }
 0x719   : > { %v7132_v16 = vadd.f32 %v7131_v19, %v7130_v12  ;;  %v12868_v36 = vadd.f32 %v9063_v0, %v12775_v43  ;;  %v6907_v5 = vpop.f32.mrb[13].mxu1  ;;  %v7243_v34 = vadd.f32 %v7242_v48, %v7241_v37  ;;  %v7248_v58 = vsel %vm391_vm2, %v7202_v4, 0.0 }
 0x71a   : > { %v7244_v29 = vsel %vm391_vm2, %v7200_v28, 0.0  ;;  %v12873_v27 = vadd.f32 %v12775_v43, %v6907_v5  ;;  %v9064_v61 = vpop.f32.mrb[14].mxu1 }
 0x71b   : > { %v7134_v14 = vadd.f32 %v7133_v26, %v7132_v16  ;;  %v12877_v38 = vadd.f32 %v9064_v61, %v12775_v43  ;;  %v6910_v42 = vpop.f32.mrb[15].mxu1  ;;  %v7245_v2 = vadd.f32 %v7244_v29, %v7243_v34  ;;  %v7092_v63 = vmul.f32 %v12868_v36, %v13841_v25  ;;  %v13845_v34 = vld [vmem:[#allocation19_spill] sm:$0xff] }
 0x71c   : > { %v7090_v23 = vmul.f32 %v12873_v27, %v13840_v20  ;;  %v12883_v62 = vadd.f32 %v12775_v43, %v6910_v42 }
 0x71d   : > { %v7136_v8 = vadd.f32 %v7135_v53, %v7134_v14  ;;  %v7247_v60 = vadd.f32 %v7246_v22, %v7245_v2  ;;  %v7093_v7 = vmul.f32 %v12877_v38, %v13843_v52  ;;  %v7205_v47 = vmul.f32 %v7092_v63, %v12868_v36  ;;  %v13846_v53 = vld [vmem:[#allocation18_spill] sm:$0xff]  ;;  %v13847_v22 = vld [vmem:[#allocation20_spill] sm:$0xff] }
 0x71e   : > { %v7137_v59 = vsel %vm391_vm2, %v7090_v23, 0.0  ;;  %v7203_v17 = vmul.f32 %v7090_v23, %v12873_v27  ;;  %v7091_v56 = vmul.f32 %v12883_v62, %v13842_v6  ;;  %v7141_v18 = vsel %vm391_vm2, %v7092_v63, 0.0 }
 0x71f   : > { %v7138_v39 = vadd.f32 %v7137_v59, %v7136_v8  ;;  %v7249_v40 = vadd.f32 %v7248_v58, %v7247_v60  ;;  %v7206_v1 = vmul.f32 %v7093_v7, %v12877_v38  ;;  %v7143_v28 = vsel %vm391_vm2, %v7093_v7, 0.0 }
 0x720   : > { %v7250_v49 = vsel %vm391_vm2, %v7203_v17, 0.0  ;;  %v7139_v35 = vsel %vm391_vm2, %v7091_v56, 0.0  ;;  %v7204_v9 = vmul.f32 %v7091_v56, %v12883_v62  ;;  %v9067_v51 = vpop.f32.mrb[16].mxu1  ;;  %v7254_v26 = vsel %vm391_vm2, %v7205_v47, 0.0 }
 0x721   : > { %v7140_v57 = vadd.f32 %v7139_v35, %v7138_v39  ;;  %v12900_v13 = vadd.f32 %v9067_v51, %v12775_v43  ;;  %v6923_v15 = vpop.f32.mrb[17].mxu1  ;;  %v7251_v31 = vadd.f32 %v7250_v49, %v7249_v40  ;;  %v7256_v20 = vsel %vm391_vm2, %v7206_v1, 0.0 }
 0x722   : > { %v7252_v11 = vsel %vm391_vm2, %v7204_v9, 0.0  ;;  %v12905_v12 = vadd.f32 %v12775_v43, %v6923_v15  ;;  %v9068_v41 = vpop.f32.mrb[18].mxu1 }
 0x723   : > { %v7142_v37 = vadd.f32 %v7141_v18, %v7140_v57  ;;  %v12909_v48 = vadd.f32 %v9068_v41, %v12775_v43  ;;  %v6926_v19 = vpop.f32.mrb[19].mxu1  ;;  %v7253_v0 = vadd.f32 %v7252_v11, %v7251_v31  ;;  %v7096_v29 = vmul.f32 %v12900_v13, %v13845_v34  ;;  %v13848_v31 = vld [vmem:[#allocation21_spill] sm:$0xff] }
 0x724   : > { %v7094_v16 = vmul.f32 %v12905_v12, %v13844_v3  ;;  %v12915_v5 = vadd.f32 %v12775_v43, %v6926_v19 }
 0x725   : > { %v7144_v61 = vadd.f32 %v7143_v28, %v7142_v37  ;;  %v7255_v4 = vadd.f32 %v7254_v26, %v7253_v0  ;;  %v7097_v25 = vmul.f32 %v12909_v48, %v13847_v22  ;;  %v7209_v6 = vmul.f32 %v7096_v29, %v12900_v13  ;;  %v13849_v37 = vld [vmem:[#allocation23_spill] sm:$0xff]  ;;  %v13850_v26 = vld [vmem:[#allocation22_spill] sm:$0xff] }
 0x726   : > { %v7145_v14 = vsel %vm391_vm2, %v7094_v16, 0.0  ;;  %v7207_v42 = vmul.f32 %v7094_v16, %v12905_v12  ;;  %v7095_v2 = vmul.f32 %v12915_v5, %v13846_v53  ;;  %v7149_v52 = vsel %vm391_vm2, %v7096_v29, 0.0 }
 0x727   : > { %v7146_v23 = vadd.f32 %v7145_v14, %v7144_v61  ;;  %v7257_v63 = vadd.f32 %v7256_v20, %v7255_v4  ;;  %v7210_v9 = vmul.f32 %v7097_v25, %v12909_v48  ;;  %v7151_v15 = vsel %vm391_vm2, %v7097_v25, 0.0  ;;  %v13851_v4 = vld [vmem:[#allocation24_spill] sm:$0xff] }
 0x728   : > { %v7258_v8 = vsel %vm391_vm2, %v7207_v42, 0.0  ;;  %v7147_v60 = vsel %vm391_vm2, %v7095_v2, 0.0  ;;  %v7208_v59 = vmul.f32 %v7095_v2, %v12915_v5  ;;  %v9071_v17 = vpop.f32.mrb[20].mxu1  ;;  %v7262_v1 = vsel %vm391_vm2, %v7209_v6, 0.0 }
 0x729   : > { %v7148_v56 = vadd.f32 %v7147_v60, %v7146_v23  ;;  %v12932_v58 = vadd.f32 %v9071_v17, %v12775_v43  ;;  %v6939_v39 = vpop.f32.mrb[21].mxu1  ;;  %v7259_v7 = vadd.f32 %v7258_v8, %v7257_v63  ;;  %v7264_v29 = vsel %vm391_vm2, %v7210_v9, 0.0 }
 0x72a   : > { %v7260_v40 = vsel %vm391_vm2, %v7208_v59, 0.0  ;;  %v12937_v49 = vadd.f32 %v12775_v43, %v6939_v39  ;;  %v9072_v35 = vpop.f32.mrb[22].mxu1 }
 0x72b   : > { %v7150_v51 = vadd.f32 %v7149_v52, %v7148_v56  ;;  %v12941_v47 = vadd.f32 %v9072_v35, %v12775_v43  ;;  %v6942_v57 = vpop.f32.mrb[23].mxu1  ;;  %v7261_v18 = vadd.f32 %v7260_v40, %v7259_v7  ;;  %v7100_v19 = vmul.f32 %v12932_v58, %v13849_v37 }
 0x72c   : > { %v7098_v11 = vmul.f32 %v12937_v49, %v13848_v31  ;;  %v12947_v41 = vadd.f32 %v12775_v43, %v6942_v57  ;;  %v13853_v31 = vld [vmem:[#allocation29_spill] sm:$0xff] }
 0x72d   : > { %v7152_v28 = vadd.f32 %v7151_v15, %v7150_v51  ;;  %v7263_v0 = vadd.f32 %v7262_v1, %v7261_v18  ;;  %v7101_v14 = vmul.f32 %v12941_v47, %v13851_v4  ;;  %v7213_v22 = vmul.f32 %v7100_v19, %v12932_v58  ;;  %v13852_v51 = vld [vmem:[#allocation25_spill] sm:$0xff] }
 0x72e   : > { %v7153_v3 = vsel %vm391_vm2, %v7098_v11, 0.0  ;;  %v7211_v16 = vmul.f32 %v7098_v11, %v12937_v49  ;;  %v7099_v34 = vmul.f32 %v12947_v41, %v13850_v26  ;;  %v7157_v60 = vsel %vm391_vm2, %v7100_v19, 0.0 }
 0x72f   : > { %v7154_v61 = vadd.f32 %v7153_v3, %v7152_v28  ;;  %v7265_v42 = vadd.f32 %v7264_v29, %v7263_v0  ;;  %v7214_v39 = vmul.f32 %v7101_v14, %v12941_v47  ;;  %v7159_v35 = vsel %vm391_vm2, %v7101_v14, 0.0  ;;  %v13854_v0 = vld [vmem:[#allocation26_spill] sm:$0xff] }
 0x730   : > { %v7266_v53 = vsel %vm391_vm2, %v7211_v16, 0.0  ;;  %v7155_v2 = vsel %vm391_vm2, %v7099_v34, 0.0  ;;  %v7212_v20 = vmul.f32 %v7099_v34, %v12947_v41  ;;  %v9075_v23 = vpop.f32.mrb[24].mxu1  ;;  %v7270_v18 = vsel %vm391_vm2, %v7213_v22, 0.0  ;;  %v13855_v34 = vld [vmem:[#allocation30_spill] sm:$0xff] }
 0x731   : > { %v7156_v25 = vadd.f32 %v7155_v2, %v7154_v61  ;;  %v12964_v63 = vadd.f32 %v9075_v23, %v12775_v43  ;;  %v6955_v8 = vpop.f32.mrb[25].mxu1  ;;  %v7267_v59 = vadd.f32 %v7266_v53, %v7265_v42  ;;  %v7272_v16 = vsel %vm391_vm2, %v7214_v39, 0.0 }
 0x732   : > { %v7268_v17 = vsel %vm391_vm2, %v7212_v20, 0.0  ;;  %v12969_v6 = vadd.f32 %v12775_v43, %v6955_v8  ;;  %v9076_v56 = vpop.f32.mrb[26].mxu1 }
 0x733   : > { %v7158_v52 = vadd.f32 %v7157_v60, %v7156_v25  ;;  %v12973_v7 = vadd.f32 %v9076_v56, %v12775_v43  ;;  %v6958_v40 = vpop.f32.mrb[27].mxu1  ;;  %v7269_v9 = vadd.f32 %v7268_v17, %v7267_v59  ;;  %v7104_v11 = vmul.f32 %v12964_v63, %v13853_v31 }
 0x734   : > { %v7102_v57 = vmul.f32 %v12969_v6, %v13852_v51  ;;  %v12979_v15 = vadd.f32 %v12775_v43, %v6958_v40  ;;  %v13856_v51 = vld [vmem:[#allocation31_spill] sm:$0xff] }
 0x735   : > { %v7160_v1 = vadd.f32 %v7159_v35, %v7158_v52  ;;  %v7271_v37 = vadd.f32 %v7270_v18, %v7269_v9  ;;  %v7105_v29 = vmul.f32 %v12973_v7, %v13855_v34  ;;  %v7217_v2 = vmul.f32 %v7104_v11, %v12964_v63 }
 0x736   : > { %v7161_v19 = vsel %vm391_vm2, %v7102_v57, 0.0  ;;  %v7215_v28 = vmul.f32 %v7102_v57, %v12969_v6  ;;  %v7103_v3 = vmul.f32 %v12979_v15, %v13854_v0  ;;  %v7165_v25 = vsel %vm391_vm2, %v7104_v11, 0.0  ;;  %v13857_v11 = vld [vmem:[#allocation33_spill] sm:$0xff] }
 0x737   : > { %v7162_v26 = vadd.f32 %v7161_v19, %v7160_v1  ;;  %v7273_v61 = vadd.f32 %v7272_v16, %v7271_v37  ;;  %v7218_v56 = vmul.f32 %v7105_v29, %v12973_v7  ;;  %v7167_v35 = vsel %vm391_vm2, %v7105_v29, 0.0  ;;  %v13859_v29 = vld [vmem:[#allocation34_spill] sm:$0xff] }
 0x738   : > { %v7274_v4 = vsel %vm391_vm2, %v7215_v28, 0.0  ;;  %v7163_v14 = vsel %vm391_vm2, %v7103_v3, 0.0  ;;  %v7216_v42 = vmul.f32 %v7103_v3, %v12979_v15  ;;  %v9079_v53 = vpop.f32.mrb[28].mxu1  ;;  %v7278_v31 = vsel %vm391_vm2, %v7217_v2, 0.0  ;;  %v13858_v3 = vld [vmem:[#allocation32_spill] sm:$0xff] }
 0x739   : > { %v7164_v20 = vadd.f32 %v7163_v14, %v7162_v26  ;;  %v12996_v23 = vadd.f32 %v9079_v53, %v12775_v43  ;;  %v6971_v22 = vpop.f32.mrb[29].mxu1  ;;  %v7275_v8 = vadd.f32 %v7274_v4, %v7273_v61  ;;  %v7280_v26 = vsel %vm391_vm2, %v7218_v56, 0.0 }
 0x73a   : > { %v7276_v60 = vsel %vm391_vm2, %v7216_v42, 0.0  ;;  %v13001_v59 = vadd.f32 %v12775_v43, %v6971_v22  ;;  %v9080_v17 = vpop.f32.mrb[30].mxu1 }
 0x73b   : > { %v7166_v39 = vadd.f32 %v7165_v25, %v7164_v20  ;;  %v13005_v52 = vadd.f32 %v9080_v17, %v12775_v43  ;;  %v6974_v40 = vpop.f32.mrb[31].mxu1  ;;  %v7277_v9 = vadd.f32 %v7276_v60, %v7275_v8  ;;  %v7108_v1 = vmul.f32 %v12996_v23, %v13857_v11 }
 0x73c   : > { %v7106_v57 = vmul.f32 %v13001_v59, %v13856_v51  ;;  %v13011_v18 = vadd.f32 %v12775_v43, %v6974_v40 }
 0x73d   : > { %v7168_v37 = vadd.f32 %v7167_v35, %v7166_v39  ;;  %v7279_v19 = vadd.f32 %v7278_v31, %v7277_v9  ;;  %v7109_v61 = vmul.f32 %v13005_v52, %v13859_v29  ;;  %v7221_v20 = vmul.f32 %v7108_v1, %v12996_v23 }
 0x73e   : > { %v7169_v28 = vsel %vm391_vm2, %v7106_v57, 0.0  ;;  %v7219_v0 = vmul.f32 %v7106_v57, %v13001_v59  ;;  %v7107_v16 = vmul.f32 %v13011_v18, %v13858_v3  ;;  %v7173_v60 = vsel %vm391_vm2, %v7108_v1, 0.0 }
 0x73f   : > { %v7170_v34 = vadd.f32 %v7169_v28, %v7168_v37  ;;  %v7281_v4 = vadd.f32 %v7280_v26, %v7279_v19  ;;  %v7222_v35 = vmul.f32 %v7109_v61, %v13005_v52  ;;  %v7175_v31 = vsel %vm391_vm2, %v7109_v61, 0.0  ;;  %v13860_v37 = vld [vmem:[#allocation35_spill] sm:$0xff] }
 0x740   : > { %v7282_v14 = vsel %vm391_vm2, %v7219_v0, 0.0  ;;  %v7171_v42 = vsel %vm391_vm2, %v7107_v16, 0.0  ;;  %v7220_v53 = vmul.f32 %v7107_v16, %v13011_v18  ;;  %v9083_v2 = vpop.f32.mrb[32].mxu1  ;;  %v7286_v28 = vsel %vm391_vm2, %v7221_v20, 0.0  ;;  %v13861_v0 = vld [vmem:[#allocation37_spill] sm:$0xff] }
 0x741   : > { %v7172_v22 = vadd.f32 %v7171_v42, %v7170_v34  ;;  %v13028_v25 = vadd.f32 %v9083_v2, %v12775_v43  ;;  %v6987_v8 = vpop.f32.mrb[33].mxu1  ;;  %v7283_v17 = vadd.f32 %v7282_v14, %v7281_v4  ;;  %v13862_v4 = vld [vmem:[#allocation36_spill] sm:$0xff]  ;;  %v7288_v14 = vsel %vm391_vm2, %v7222_v35, 0.0 }
 0x742   : > { %v7284_v56 = vsel %vm391_vm2, %v7220_v53, 0.0  ;;  %v13033_v39 = vadd.f32 %v12775_v43, %v6987_v8  ;;  %v9084_v40 = vpop.f32.mrb[34].mxu1  ;;  %v13863_v53 = vld [vmem:[#allocation38_spill] sm:$0xff] }
 0x743   : > { %v7174_v9 = vadd.f32 %v7173_v60, %v7172_v22  ;;  %v13037_v51 = vadd.f32 %v9084_v40, %v12775_v43  ;;  %v6990_v57 = vpop.f32.mrb[35].mxu1  ;;  %v7285_v11 = vadd.f32 %v7284_v56, %v7283_v17  ;;  %v7112_v3 = vmul.f32 %v13028_v25, %v13861_v0 }
 0x744   : > { %v7110_v1 = vmul.f32 %v13033_v39, %v13860_v37  ;;  %v13043_v19 = vadd.f32 %v12775_v43, %v6990_v57 }
 0x745   : > { %v7176_v16 = vadd.f32 %v7175_v31, %v7174_v9  ;;  %v7287_v26 = vadd.f32 %v7286_v28, %v7285_v11  ;;  %v7113_v43 = vmul.f32 %v13037_v51, %v13863_v53  ;;  %v7225_v60 = vmul.f32 %v7112_v3, %v13028_v25 }
 0x746   : > { %v7177_v34 = vsel %vm391_vm2, %v7110_v1, 0.0  ;;  %v7223_v29 = vmul.f32 %v7110_v1, %v13033_v39  ;;  %v7111_v61 = vmul.f32 %v13043_v19, %v13862_v4  ;;  %v7181_v56 = vsel %vm391_vm2, %v7112_v3, 0.0 }
 0x747   : > { %v7178_v42 = vadd.f32 %v7177_v34, %v7176_v16  ;;  %v7289_v2 = vadd.f32 %v7288_v14, %v7287_v26  ;;  %v7226_v35 = vmul.f32 %v7113_v43, %v13037_v51  ;;  %v7183_v31 = vsel %vm391_vm2, %v7113_v43, 0.0 }
 0x748   : > { %v7290_v20 = vsel %vm391_vm2, %v7223_v29, 0.0  ;;  %v7179_v22 = vsel %vm391_vm2, %v7111_v61, 0.0  ;;  %v7224_v8 = vmul.f32 %v7111_v61, %v13043_v19  ;;  %v7294_v37 = vsel %vm391_vm2, %v7225_v60, 0.0 }
 0x749   : > { %v7180_v17 = vadd.f32 %v7179_v22, %v7178_v42  ;;  %v7291_v40 = vadd.f32 %v7290_v20, %v7289_v2  ;;  %v7296_v0 = vsel %vm391_vm2, %v7226_v35, 0.0 }
 0x74a   : > { %v7292_v9 = vsel %vm391_vm2, %v7224_v8, 0.0 }
 0x74b   : > { %v7182_v57 = vadd.f32 %v7181_v56, %v7180_v17  ;;  %v7293_v11 = vadd.f32 %v7292_v9, %v7291_v40 }
 0x74d   : > { %v7184_v1 = vadd.f32 %v7183_v31, %v7182_v57  ;;  %v7295_v28 = vadd.f32 %v7294_v37, %v7293_v11 }
 0x74f   : > { %v7185_v16 = vrot.slane %v7184_v1, 4  ;;  %v7297_v26 = vadd.f32 %v7296_v0, %v7295_v28 }
 0x751   : > { %v7186_v34 = vadd.f32 %v7185_v16, %v7184_v1  ;;  %v7298_v29 = vrot.slane %v7297_v26, 4 }
 0x753   : > { %v7187_v3 = vrot.slane %v7186_v34, 2  ;;  %v7299_v4 = vadd.f32 %v7298_v29, %v7297_v26 }
 0x755   : > { %v7188_v61 = vadd.f32 %v7187_v3, %v7186_v34  ;;  %v7300_v14 = vrot.slane %v7299_v4, 2 }
 0x757   : > { %v7189_v42 = vrot.slane %v7188_v61, 1  ;;  %v7301_v53 = vadd.f32 %v7300_v14, %v7299_v4 }
 0x759   : > { %v7190_v2 = vadd.f32 %v7189_v42, %v7188_v61  ;;  %v7302_v20 = vrot.slane %v7301_v53, 1 }
 0x75b   : > { %v13065_v43 = vmul.f32 0.00390625, %v7190_v2  ;;  %v7303_v22 = vadd.f32 %v7302_v20, %v7301_v53 }
 0x75d   : > { %v7306_v8 = vmul.f32 %v13065_v43, %v13065_v43  ;;  %v7305_v60 = vmul.f32 0.00390625, %v7303_v22  ;;  %v7325_v56 = vsub.f32 %v12905_v12, %v13065_v43  ;;  %v7326_v9 = vsub.f32 %v12915_v5, %v13065_v43 }
 0x75e   : > { %v7327_v35 = vsub.f32 %v12900_v13, %v13065_v43  ;;  %v7328_v57 = vsub.f32 %v12909_v48, %v13065_v43  ;;  %v7329_v31 = vsub.f32 %v12937_v49, %v13065_v43  ;;  %v7330_v11 = vsub.f32 %v12947_v41, %v13065_v43 }
 0x75f   : > { %v7307_v17 = vsub.f32 %v7305_v60, %v7306_v8  ;;  %v7331_v37 = vsub.f32 %v12932_v58, %v13065_v43  ;;  %v7332_v12 = vsub.f32 %v12941_v47, %v13065_v43  ;;  %v7333_v5 = vsub.f32 %v12969_v6, %v13065_v43 }
 0x760   : > { %v7334_v13 = vsub.f32 %v12979_v15, %v13065_v43  ;;  %v7335_v48 = vsub.f32 %v12964_v63, %v13065_v43  ;;  %v7336_v49 = vsub.f32 %v12973_v7, %v13065_v43  ;;  %v7337_v41 = vsub.f32 %v13001_v59, %v13065_v43 }
 0x761   : > { %v7308_v40 = vmax.f32 %v7307_v17, 0.0  ;;  %v7338_v58 = vsub.f32 %v13011_v18, %v13065_v43  ;;  %v7339_v47 = vsub.f32 %v12996_v23, %v13065_v43  ;;  %v7340_v6 = vsub.f32 %v13005_v52, %v13065_v43  ;;  %v8019_v17 = vld [vmem:[%s13324_s3 + $0x4] ss:$0 sm:$0xff] }
 0x762   : > { %v7341_v15 = vsub.f32 %v13033_v39, %v13065_v43  ;;  %v7342_v63 = vsub.f32 %v13043_v19, %v13065_v43  ;;  %v7343_v7 = vsub.f32 %v13028_v25, %v13065_v43  ;;  %v7344_v59 = vsub.f32 %v13037_v51, %v13065_v43 }
 0x763   : > { %v7345_v1 = vadd.f32 1e-05, %v7308_v40  ;;  %v7309_v23 = vsub.f32 %v12781_v44, %v13065_v43  ;;  %v7310_v52 = vsub.f32 %v12791_v54, %v13065_v43  ;;  %v7311_v18 = vsub.f32 %v12778_v45, %v13065_v43 }
 0x764   : > { %v7312_v39 = vsub.f32 %v12786_v10, %v13065_v43  ;;  %v7313_v25 = vsub.f32 %v12810_v33, %v13065_v43  ;;  %v7314_v51 = vsub.f32 %v12822_v21, %v13065_v43  ;;  %v7315_v19 = vsub.f32 %v12804_v24, %v13065_v43 }
 0x765   : > { %9736 = vrsqrt.f32 %v7345_v1  ;;  %v7316_v44 = vsub.f32 %v12814_v55, %v13065_v43  ;;  %v7317_v54 = vsub.f32 %v12840_v50, %v13065_v43  ;;  %v7318_v45 = vsub.f32 %v12851_v46, %v13065_v43 }
 0x766   : > { %v7319_v10 = vsub.f32 %v12836_v30, %v13065_v43  ;;  %v7320_v33 = vsub.f32 %v12845_v32, %v13065_v43  ;;  %v7321_v21 = vsub.f32 %v12873_v27, %v13065_v43  ;;  %v7322_v24 = vsub.f32 %v12883_v62, %v13065_v43 }
 0x767   : > { %v7323_v55 = vsub.f32 %v12868_v36, %v13065_v43  ;;  %v7324_v50 = vsub.f32 %v12877_v38, %v13065_v43 }
 0x76f   : > { %v9737_v28 = vpop.eup %9736 }
 0x770   : > { %v7347_v46 = vmul.f32 %v9737_v28, %v7309_v23  ;;  %v7348_v0 = vmul.f32 %v9737_v28, %v7310_v52  ;;  %v7349_v16 = vmul.f32 %v9737_v28, %v7311_v18  ;;  %v7350_v30 = vmul.f32 %v9737_v28, %v7312_v39 }
 0x771   : > { %v7351_v26 = vmul.f32 %v9737_v28, %v7313_v25  ;;  %v7352_v34 = vmul.f32 %v9737_v28, %v7314_v51  ;;  %v7353_v32 = vmul.f32 %v9737_v28, %v7315_v19  ;;  %v7354_v29 = vmul.f32 %v9737_v28, %v7316_v44 }
 0x772   : > { %v7355_v3 = vmul.f32 %v9737_v28, %v7317_v54  ;;  %v7356_v4 = vmul.f32 %v9737_v28, %v7318_v45  ;;  %v7357_v27 = vmul.f32 %v9737_v28, %v7319_v10  ;;  %v7358_v61 = vmul.f32 %v9737_v28, %v7320_v33 }
 0x773   : > { %v7359_v14 = vmul.f32 %v9737_v28, %v7321_v21  ;;  %v7360_v62 = vmul.f32 %v9737_v28, %v7322_v24  ;;  %v7361_v42 = vmul.f32 %v9737_v28, %v7323_v55  ;;  %v7362_v53 = vmul.f32 %v9737_v28, %v7324_v50  ;;  %v8020_v24 = vld [vmem:[%s13324_s3 + $0x5] ss:$0 sm:$0xff] }
 0x774   : > { %v7363_v36 = vmul.f32 %v9737_v28, %v7325_v56  ;;  %v7364_v2 = vmul.f32 %v9737_v28, %v7326_v9  ;;  %v7365_v20 = vmul.f32 %v9737_v28, %v7327_v35  ;;  %v7366_v38 = vmul.f32 %v9737_v28, %v7328_v57 }
 0x775   : > { %v7367_v43 = vmul.f32 %v9737_v28, %v7329_v31  ;;  %v7368_v22 = vmul.f32 %v9737_v28, %v7330_v11  ;;  %v7369_v8 = vmul.f32 %v9737_v28, %v7331_v37  ;;  %v7370_v60 = vmul.f32 %v9737_v28, %v7332_v12 }
 0x776   : > { %v7371_v40 = vmul.f32 %v9737_v28, %v7333_v5  ;;  %v7372_v1 = vmul.f32 %v9737_v28, %v7334_v13  ;;  %v7373_v23 = vmul.f32 %v9737_v28, %v7335_v48  ;;  %v7374_v52 = vmul.f32 %v9737_v28, %v7336_v49 }
 0x777   : > { %v7375_v18 = vmul.f32 %v9737_v28, %v7337_v41  ;;  %v7376_v39 = vmul.f32 %v9737_v28, %v7338_v58  ;;  %v7377_v25 = vmul.f32 %v9737_v28, %v7339_v47  ;;  %v7378_v51 = vmul.f32 %v9737_v28, %v7340_v6 }
 0x778   : > { %v7379_v56 = vmul.f32 %v9737_v28, %v7341_v15  ;;  %v7380_v9 = vmul.f32 %v9737_v28, %v7342_v63  ;;  %v7381_v35 = vmul.f32 %v9737_v28, %v7343_v7  ;;  %v7382_v57 = vmul.f32 %v9737_v28, %v7344_v59 }
 0x779   : > { %v7387_v31 = vmul.f32 %v8019_v17, %v7347_v46  ;;  %v7388_v11 = vmul.f32 %v8019_v17, %v7348_v0  ;;  %v7389_v37 = vmul.f32 %v8019_v17, %v7349_v16  ;;  %v7390_v12 = vmul.f32 %v8019_v17, %v7350_v30 }
 0x77a   : > { %v7391_v19 = vmul.f32 %v8019_v17, %v7351_v26  ;;  %v7392_v44 = vmul.f32 %v8019_v17, %v7352_v34  ;;  %v7393_v54 = vmul.f32 %v8019_v17, %v7353_v32  ;;  %v7394_v45 = vmul.f32 %v8019_v17, %v7354_v29 }
 0x77b   : > { %v7395_v5 = vmul.f32 %v8019_v17, %v7355_v3  ;;  %v7396_v13 = vmul.f32 %v8019_v17, %v7356_v4  ;;  %v7397_v48 = vmul.f32 %v8019_v17, %v7357_v27  ;;  %v7398_v49 = vmul.f32 %v8019_v17, %v7358_v61 }
 0x77c   : > { %v7399_v41 = vmul.f32 %v8019_v17, %v7359_v14  ;;  %v7400_v58 = vmul.f32 %v8019_v17, %v7360_v62  ;;  %v7401_v47 = vmul.f32 %v8019_v17, %v7361_v42  ;;  %v7402_v6 = vmul.f32 %v8019_v17, %v7362_v53 }
 0x77d   : > { %v7403_v15 = vmul.f32 %v8019_v17, %v7363_v36  ;;  %v7404_v63 = vmul.f32 %v8019_v17, %v7364_v2  ;;  %v7405_v7 = vmul.f32 %v8019_v17, %v7365_v20  ;;  %v7406_v59 = vmul.f32 %v8019_v17, %v7366_v38 }
 0x77e   : > { %v7407_v10 = vmul.f32 %v8019_v17, %v7367_v43  ;;  %v7408_v33 = vmul.f32 %v8019_v17, %v7368_v22  ;;  %v7409_v28 = vmul.f32 %v8019_v17, %v7369_v8  ;;  %v7410_v21 = vmul.f32 %v8019_v17, %v7370_v60 }
 0x77f   : > { %v7411_v55 = vmul.f32 %v8019_v17, %v7371_v40  ;;  %v7412_v50 = vmul.f32 %v8019_v17, %v7372_v1  ;;  %v7413_v46 = vmul.f32 %v8019_v17, %v7373_v23  ;;  %v7414_v0 = vmul.f32 %v8019_v17, %v7374_v52 }
 0x780   : > { %v7415_v16 = vmul.f32 %v8019_v17, %v7375_v18  ;;  %v7416_v30 = vmul.f32 %v8019_v17, %v7376_v39  ;;  %v7417_v26 = vmul.f32 %v8019_v17, %v7377_v25  ;;  %v7418_v34 = vmul.f32 %v8019_v17, %v7378_v51 }
 0x781   : > { %v7419_v32 = vmul.f32 %v8019_v17, %v7379_v56  ;;  %v7420_v29 = vmul.f32 %v8019_v17, %v7380_v9  ;;  %v7421_v3 = vmul.f32 %v8019_v17, %v7381_v35  ;;  %v7422_v4 = vmul.f32 %v8019_v17, %v7382_v57 }
 0x782   : > { %v7427_v27 = vadd.f32 %v8020_v24, %v7387_v31  ;;  %v7428_v61 = vadd.f32 %v8020_v24, %v7388_v11  ;;  %v7429_v14 = vadd.f32 %v8020_v24, %v7389_v37  ;;  %v7430_v62 = vadd.f32 %v8020_v24, %v7390_v12 }
 0x783   : > { %v7431_v42 = vadd.f32 %v8020_v24, %v7391_v19  ;;  %v7432_v53 = vadd.f32 %v8020_v24, %v7392_v44  ;;  %v7433_v36 = vadd.f32 %v8020_v24, %v7393_v54  ;;  %v7434_v2 = vadd.f32 %v8020_v24, %v7394_v45 }
 0x784   : > { %v7435_v20 = vadd.f32 %v8020_v24, %v7395_v5  ;;  %v7436_v38 = vadd.f32 %v8020_v24, %v7396_v13  ;;  %v7437_v43 = vadd.f32 %v8020_v24, %v7397_v48  ;;  %v7438_v22 = vadd.f32 %v8020_v24, %v7398_v49  ;;  %v9738_v13 = vld [vmem:[%s9836_s27 + $0x48] sm:$0xff]  ;;  %v9739_v49 = vld [vmem:[%s9836_s27 + $0x50] sm:$0xff] }
 0x785   : > { %v7439_v8 = vadd.f32 %v8020_v24, %v7399_v41  ;;  %v7440_v60 = vadd.f32 %v8020_v24, %v7400_v58  ;;  %v7441_v40 = vadd.f32 %v8020_v24, %v7401_v47  ;;  %v7442_v1 = vadd.f32 %v8020_v24, %v7402_v6  ;;  %v9740_v58 = vld [vmem:[%s9836_s27 + $0x58] sm:$0xff]  ;;  %v9741_v6 = vld [vmem:[%s9836_s27 + $0x60] sm:$0xff] }
 0x786   : > { %v7443_v23 = vadd.f32 %v8020_v24, %v7403_v15  ;;  %v13148_v17 = vadd.f32 %v8020_v24, %v7404_v63  ;;  %v13150_v52 = vadd.f32 %v8020_v24, %v7405_v7  ;;  %v13152_v18 = vadd.f32 %v8020_v24, %v7406_v59  ;;  %v9742_v63 = vld [vmem:[%s9836_s27 + $0x68] sm:$0xff]  ;;  %v9743_v59 = vld [vmem:[%s9836_s27 + $0x70] sm:$0xff] }
 0x787   : > { %v13154_v39 = vadd.f32 %v8020_v24, %v7407_v10  ;;  %v13156_v25 = vadd.f32 %v8020_v24, %v7408_v33  ;;  %v13158_v51 = vadd.f32 %v8020_v24, %v7409_v28  ;;  %v13160_v56 = vadd.f32 %v8020_v24, %v7410_v21  ;;  %v9744_v33 = vld [vmem:[%s9836_s27 + $0x78] sm:$0xff]  ;;  %v9745_v21 = vld [vmem:[%s9836_s27 + $0x80] sm:$0xff] }
 0x788   : > { %v13162_v9 = vadd.f32 %v8020_v24, %v7411_v55  ;;  %v13164_v35 = vadd.f32 %v8020_v24, %v7412_v50  ;;  %v13166_v57 = vadd.f32 %v8020_v24, %v7413_v46  ;;  %v13168_v31 = vadd.f32 %v8020_v24, %v7414_v0  ;;  %v9746_v55 = vld [vmem:[%s9836_s27 + $0x88] sm:$0xff]  ;;  %v9747_v46 = vld [vmem:[%s9836_s27 + $0x90] sm:$0xff] }
 0x789   : > { %v13170_v11 = vadd.f32 %v8020_v24, %v7415_v16  ;;  %v13172_v37 = vadd.f32 %v8020_v24, %v7416_v30  ;;  %v13174_v12 = vadd.f32 %v8020_v24, %v7417_v26  ;;  %v13176_v19 = vadd.f32 %v8020_v24, %v7418_v34  ;;  %v9748_v16 = vld [vmem:[%s9836_s27 + $0x98] sm:$0xff]  ;;  %v9749_v26 = vld [vmem:[%s9836_s27 + $0xa0] sm:$0xff] }
 0x78a   : > { %v13183_v44 = vadd.f32 %v8020_v24, %v7419_v32  ;;  %v13185_v54 = vadd.f32 %v8020_v24, %v7420_v29  ;;  %v13187_v45 = vadd.f32 %v8020_v24, %v7421_v3  ;;  %v13189_v5 = vadd.f32 %v8020_v24, %v7422_v4  ;;  %v9750_v32 = vld [vmem:[%s9836_s27 + $0xa8] sm:$0xff]  ;;  %v9751_v3 = vld [vmem:[%s9836_s27 + $0xb0] sm:$0xff] }
 0x78b   : > { %v7463_v48 = vadd.f32 %v9738_v13, %v7427_v27  ;;  %v7464_v41 = vadd.f32 %v9739_v49, %v7428_v61  ;;  %v7465_v47 = vadd.f32 %v9740_v58, %v7429_v14  ;;  %v7466_v15 = vadd.f32 %v9741_v6, %v7430_v62  ;;  %v9752_v27 = vld [vmem:[%s9836_s27 + $0xb8] sm:$0xff]  ;;  %v9753_v14 = vld [vmem:[%s9836_s27 + $0xc0] sm:$0xff] }
 0x78c   : > { %v7467_v7 = vadd.f32 %v9742_v63, %v7431_v42  ;;  %v7468_v10 = vadd.f32 %v9743_v59, %v7432_v53  ;;  %v7469_v28 = vadd.f32 %v9744_v33, %v7433_v36  ;;  %v7470_v24 = vadd.f32 %v9745_v21, %v7434_v2  ;;  %v9754_v42 = vld [vmem:[%s9836_s27 + $0xc8] sm:$0xff]  ;;  %v9755_v36 = vld [vmem:[%s9836_s27 + $0xd0] sm:$0xff]  ;;  %v9765_v49 = vld [vmem:[%s9836_s27 + $0x120] sm:$0xff] }
 0x78d   : > { %v7471_v50 = vadd.f32 %v9746_v55, %v7435_v20  ;;  %v7472_v0 = vadd.f32 %v9747_v46, %v7436_v38  ;;  %v7473_v30 = vadd.f32 %v9748_v16, %v7437_v43  ;;  %v7474_v34 = vadd.f32 %v9749_v26, %v7438_v22  ;;  %7499 = vst.msk [vmem:[%s13181_s11] sm:$0xff] %vm391_vm2, %v7463_v48  ;;  %v9756_v20 = vld [vmem:[%s9836_s27 + $0xd8] sm:$0xff]  ;;  %v9757_v43 = vld [vmem:[%s9836_s27 + $0xe0] sm:$0xff] }
 0x78e   : > { %7500 = vst.msk [vmem:[%s13181_s11 + $0x8] sm:$0xff] %vm391_vm2, %v7464_v41  ;;  %7501 = vst.msk [vmem:[%s13181_s11 + $0x10] sm:$0xff] %vm391_vm2, %v7465_v47  ;;  %v7475_v29 = vadd.f32 %v9750_v32, %v7439_v8  ;;  %v7476_v4 = vadd.f32 %v9751_v3, %v7440_v60  ;;  %v7477_v61 = vadd.f32 %v9752_v27, %v7441_v40  ;;  %v9758_v8 = vld [vmem:[%s9836_s27 + $0xe8] sm:$0xff]  ;;  %v9759_v40 = vld [vmem:[%s9836_s27 + $0xf0] sm:$0xff] }
 0x78f   : > { %7502 = vst.msk [vmem:[%s13181_s11 + $0x18] sm:$0xff] %vm391_vm2, %v7466_v15  ;;  %v7478_v62 = vadd.f32 %v9753_v14, %v7442_v1  ;;  %7503 = vst.msk [vmem:[%s13181_s11 + $0x20] sm:$0xff] %vm391_vm2, %v7467_v7  ;;  %v7479_v53 = vadd.f32 %v9754_v42, %v7443_v23  ;;  %v7480_v2 = vadd.f32 %v9755_v36, %v13148_v17  ;;  %v9760_v23 = vld [vmem:[%s9836_s27 + $0xf8] sm:$0xff]  ;;  %v9769_v6 = vld [vmem:[%s9836_s27 + $0x140] sm:$0xff] }
 0x790   : > { %7504 = vst.msk [vmem:[%s13181_s11 + $0x28] sm:$0xff] %vm391_vm2, %v7468_v10  ;;  %7505 = vst.msk [vmem:[%s13181_s11 + $0x30] sm:$0xff] %vm391_vm2, %v7469_v28  ;;  %v7481_v38 = vadd.f32 %v9756_v20, %v13150_v52  ;;  %v7482_v22 = vadd.f32 %v9757_v43, %v13152_v18  ;;  %v7483_v60 = vadd.f32 %v9758_v8, %v13154_v39  ;;  %v9761_v52 = vld [vmem:[%s9836_s27 + $0x100] sm:$0xff]  ;;  %v9762_v39 = vld [vmem:[%s9836_s27 + $0x108] sm:$0xff] }
 0x791   : > { %7506 = vst.msk [vmem:[%s13181_s11 + $0x38] sm:$0xff] %vm391_vm2, %v7470_v24  ;;  %7507 = vst.msk [vmem:[%s13181_s11 + $0x40] sm:$0xff] %vm391_vm2, %v7471_v50  ;;  %v7484_v1 = vadd.f32 %v9759_v40, %v13156_v25  ;;  %v7485_v17 = vadd.f32 %v9760_v23, %v13158_v51  ;;  %v7486_v18 = vadd.f32 %v9761_v52, %v13160_v56  ;;  %v9763_v51 = vld [vmem:[%s9836_s27 + $0x110] sm:$0xff]  ;;  %v9764_v56 = vld [vmem:[%s9836_s27 + $0x118] sm:$0xff] }
 0x792   : > { %7508 = vst.msk [vmem:[%s13181_s11 + $0x48] sm:$0xff] %vm391_vm2, %v7472_v0  ;;  %7509 = vst.msk [vmem:[%s13181_s11 + $0x50] sm:$0xff] %vm391_vm2, %v7473_v30  ;;  %v7487_v25 = vadd.f32 %v9762_v39, %v13162_v9  ;;  %v7488_v13 = vadd.f32 %v9763_v51, %v13164_v35  ;;  %v7489_v48 = vadd.f32 %v9764_v56, %v13166_v57  ;;  %v9766_v9 = vld [vmem:[%s9836_s27 + $0x128] sm:$0xff]  ;;  %v9767_v57 = vld [vmem:[%s9836_s27 + $0x130] sm:$0xff] }
 0x793   : > { %7510 = vst.msk [vmem:[%s13181_s11 + $0x58] sm:$0xff] %vm391_vm2, %v7474_v34  ;;  %7511 = vst.msk [vmem:[%s13181_s11 + $0x60] sm:$0xff] %vm391_vm2, %v7475_v29  ;;  %v7490_v41 = vadd.f32 %v9765_v49, %v13168_v31  ;;  %v7491_v35 = vadd.f32 %v9766_v9, %v13170_v11  ;;  %v7492_v58 = vadd.f32 %v9767_v57, %v13172_v37  ;;  %v9768_v31 = vld [vmem:[%s9836_s27 + $0x138] sm:$0xff]  ;;  %v9770_v11 = vld [vmem:[%s9836_s27 + $0x148] sm:$0xff] }
 0x794   : > { %7512 = vst.msk [vmem:[%s13181_s11 + $0x68] sm:$0xff] %vm391_vm2, %v7476_v4  ;;  %7513 = vst.msk [vmem:[%s13181_s11 + $0x70] sm:$0xff] %vm391_vm2, %v7477_v61  ;;  %v7493_v47 = vadd.f32 %v9768_v31, %v13174_v12  ;;  %v7494_v15 = vadd.f32 %v9769_v6, %v13176_v19  ;;  %v7495_v37 = vadd.f32 %v9770_v11, %v13183_v44  ;;  %v9771_v12 = vld [vmem:[%s9836_s27 + $0x150] sm:$0xff]  ;;  %v9772_v63 = vld [vmem:[%s9836_s27 + $0x158] sm:$0xff] }
 0x795   : > { %7514 = vst.msk [vmem:[%s13181_s11 + $0x78] sm:$0xff] %vm391_vm2, %v7478_v62  ;;  %7515 = vst.msk [vmem:[%s13181_s11 + $0x80] sm:$0xff] %vm391_vm2, %v7479_v53  ;;  %v7496_v19 = vadd.f32 %v9771_v12, %v13185_v54  ;;  %v7497_v7 = vadd.f32 %v9772_v63, %v13187_v45  ;;  %v9773_v59 = vld [vmem:[%s9836_s27 + $0x160] sm:$0xff] }
 0x796   : > { %7516 = vst.msk [vmem:[%s13181_s11 + $0x88] sm:$0xff] %vm391_vm2, %v7480_v2  ;;  %7517 = vst.msk [vmem:[%s13181_s11 + $0x90] sm:$0xff] %vm391_vm2, %v7481_v38  ;;  %v7498_v10 = vadd.f32 %v9773_v59, %v13189_v5 }
 0x797   : > { %7518 = vst.msk [vmem:[%s13181_s11 + $0x98] sm:$0xff] %vm391_vm2, %v7482_v22  ;;  %7519 = vst.msk [vmem:[%s13181_s11 + $0xa0] sm:$0xff] %vm391_vm2, %v7483_v60 }
 0x798   : > { %7520 = vst.msk [vmem:[%s13181_s11 + $0xa8] sm:$0xff] %vm391_vm2, %v7484_v1  ;;  %7521 = vst.msk [vmem:[%s13181_s11 + $0xb0] sm:$0xff] %vm391_vm2, %v7485_v17 }
 0x799   : > { %7522 = vst.msk [vmem:[%s13181_s11 + $0xb8] sm:$0xff] %vm391_vm2, %v7486_v18  ;;  %7523 = vst.msk [vmem:[%s13181_s11 + $0xc0] sm:$0xff] %vm391_vm2, %v7487_v25 }
 0x79a   : > { %7524 = vst.msk [vmem:[%s13181_s11 + $0xc8] sm:$0xff] %vm391_vm2, %v7488_v13  ;;  %7525 = vst.msk [vmem:[%s13181_s11 + $0xd0] sm:$0xff] %vm391_vm2, %v7489_v48 }
 0x79b   : > { %7526 = vst.msk [vmem:[%s13181_s11 + $0xd8] sm:$0xff] %vm391_vm2, %v7490_v41  ;;  %7527 = vst.msk [vmem:[%s13181_s11 + $0xe0] sm:$0xff] %vm391_vm2, %v7491_v35 }
 0x79c   : > { %7528 = vst.msk [vmem:[%s13181_s11 + $0xe8] sm:$0xff] %vm391_vm2, %v7492_v58  ;;  %7529 = vst.msk [vmem:[%s13181_s11 + $0xf0] sm:$0xff] %vm391_vm2, %v7493_v47 }
 0x79d   : > { %7530 = vst.msk [vmem:[%s13181_s11 + $0xf8] sm:$0xff] %vm391_vm2, %v7494_v15  ;;  %7531 = vst.msk [vmem:[%s13181_s11 + $0x100] sm:$0xff] %vm391_vm2, %v7495_v37 }
 0x79e   : > { %7532 = vst.msk [vmem:[%s13181_s11 + $0x108] sm:$0xff] %vm391_vm2, %v7496_v19  ;;  %7533 = vst.msk [vmem:[%s13181_s11 + $0x110] sm:$0xff] %vm391_vm2, %v7497_v7 }
 0x79f   : > { %7534 = vst.msk [vmem:[%s13181_s11 + $0x118] sm:$0xff] %vm391_vm2, %v7498_v10 }
 0x7a0 PF: > { %s15_s18 = sadd.s32 1, %s9780_s18  }
 0x7a1   : > { %p12_p4 = scmp.ge.s32.totalorder %s15_s18, 4  }
 0x7a3   :  { %14 = sbr.rel (!%p12_p4) target bundleno = 1 (0x1), region = 86 }

</bundles_post_ra>
